<compile_context>
chip_gen: v6e
topology: v6e:2x2x1
jax: 0.10.0
libtpu: 0.0.40
codegen_flags: <defaults>
</compile_context>

<pallas_src>
import functools

import jax
import jax.numpy as jnp
from jax.experimental import pallas as pl
from jax.experimental.pallas import tpu as pltpu


def _dense_block_kernel(x_ref, *refs, H, W, C4, G, num_layers, concat_input):
    """Fused DenseBlock for one batch element.

    x_ref   : (1, H*W, Cin0)                input (channels-last, flattened)
    refs    : 5 per-layer param refs per layer:
                s1 (1, Cin_i), b1 (1, Cin_i)   folded BN1 scale/bias
                w1 (Cin_i, C4)                 1x1 conv weight, BN2 scale folded in
                b2 (1, C4)                     folded BN2 bias
                w3 (9*C4, G)                   3x3 conv weight, im2col-flattened
              then o_ref (1, Cout, H*W), then scratches:
                pad_ref   (H+2, W+2, C4)       zero-padded bottleneck activation
                patch_ref (H*W, 9*C4)          im2col patch matrix
    """
    n_params = 5 * num_layers
    param_refs = refs[:n_params]
    o_ref = refs[n_params]
    pad_ref = refs[n_params + 1]
    patch_ref = refs[n_params + 2]
    HW = H * W

    # Zero only the 1-pixel border of the padded buffer (every grid step, so it
    # is correct even when the grid is split across TensorCores); the interior
    # is fully overwritten by every layer.
    pad_ref[0:1, :, :] = jnp.zeros((1, W + 2, C4), jnp.float32)
    pad_ref[H + 1:H + 2, :, :] = jnp.zeros((1, W + 2, C4), jnp.float32)
    pad_ref[:, 0:1, :] = jnp.zeros((H + 2, 1, C4), jnp.float32)
    pad_ref[:, W + 1:W + 2, :] = jnp.zeros((H + 2, 1, C4), jnp.float32)

    feats = x_ref[0]                          # (H*W, Cin0) running dense concat
    outs = [feats] if concat_input else []

    for i in range(num_layers):
        s1 = param_refs[5 * i + 0][...]       # (1, Cin_i)
        b1 = param_refs[5 * i + 1][...]       # (1, Cin_i)
        w1 = param_refs[5 * i + 2][...]       # (Cin_i, C4)  (BN2 scale folded)
        b2 = param_refs[5 * i + 3][...]       # (1, C4)
        w3 = param_refs[5 * i + 4][...]       # (9*C4, G)

        # BN1 + ReLU + 1x1 conv (channel matmul on the MXU); BN2 folded.
        a1 = jnp.maximum(feats * s1 + b1, 0.0)
        y1 = jnp.dot(a1, w1, preferred_element_type=jnp.float32)      # (H*W, C4)
        a2 = jnp.maximum(y1 + b2, 0.0)

        # 3x3 SAME conv as a single K = 9*C4 matmul via im2col.
        pad_ref[1:H + 1, 1:W + 1, :] = a2.reshape(H, W, C4)
        for kh in range(3):
            for kw in range(3):
                k = kh * 3 + kw
                if kh == 1 and kw == 1:
                    tap = a2                                           # center tap
                else:
                    tap = pad_ref[kh:kh + H, kw:kw + W, :].reshape(HW, C4)
                patch_ref[:, k * C4:(k + 1) * C4] = tap
        y = jnp.dot(patch_ref[...], w3,
                    preferred_element_type=jnp.float32)                # (H*W, G)

        outs.append(y)
        if i + 1 < num_layers:
            feats = jnp.concatenate([feats, y], axis=-1)

    out = outs[0] if len(outs) == 1 else jnp.concatenate(outs, axis=-1)  # (H*W, Cout)
    # Channel-major store: last dim = H*W (lane-dense), already NCHW-ordered.
    o_ref[0] = jnp.transpose(out)


def dense_block_forward(x_nchw, layer_params, concat_input=True):
    """DenseBlock.forward (inference): dense connectivity + channel concat."""
    N, Cin0, H, W = x_nchw.shape
    num_layers = len(layer_params)
    C4 = layer_params[0]["w1"].shape[1]
    G = layer_params[0]["w3"].shape[3]
    HW = H * W
    Cout = num_layers * G + (Cin0 if concat_input else 0)

    # NCHW -> (N, H*W, C): channels on lanes for the in-kernel matmuls.
    x_flat = jnp.transpose(x_nchw, (0, 2, 3, 1)).reshape(N, HW, Cin0)

    flat_params = []
    in_specs = [pl.BlockSpec((1, HW, Cin0), lambda n: (n, 0, 0))]
    for p in layer_params:
        cin = p["w1"].shape[0]
        s1 = p["s1"].reshape(1, cin).astype(jnp.float32)
        b1 = p["b1"].reshape(1, cin).astype(jnp.float32)
        w1f = (p["w1"] * p["s2"].reshape(1, C4)).astype(jnp.float32)  # fold BN2 scale
        b2 = p["b2"].reshape(1, C4).astype(jnp.float32)               # folded BN2 bias
        w3f = p["w3"].reshape(9 * C4, G).astype(jnp.float32)          # im2col weight
        for arr in (s1, b1, w1f, b2, w3f):
            flat_params.append(arr)
            in_specs.append(pl.BlockSpec(arr.shape, lambda n: (0, 0)))

    kernel = functools.partial(
        _dense_block_kernel, H=H, W=W, C4=C4, G=G,
        num_layers=num_layers, concat_input=concat_input)

    out = pl.pallas_call(
        kernel,
        out_shape=jax.ShapeDtypeStruct((N, Cout, HW), jnp.float32),
        grid_spec=pltpu.PrefetchScalarGridSpec(
            num_scalar_prefetch=0,
            grid=(N,),
            in_specs=in_specs,
            out_specs=pl.BlockSpec((1, Cout, HW), lambda n: (n, 0, 0)),
            scratch_shapes=[
                pltpu.VMEM((H + 2, W + 2, C4), jnp.float32),   # padded activation
                pltpu.VMEM((HW, 9 * C4), jnp.float32),         # im2col patch
            ],
        ),
        compiler_params=pltpu.CompilerParams(dimension_semantics=("parallel",)),
    )(x_flat, *flat_params)

    return out.reshape(N, Cout, H, W)          # already channel-major -> NCHW


# ---------------- plain-JAX reference (for correctness check) ----------------
def _ref_block(x_nchw, layer_params, concat_input=True):
    hp = jax.lax.Precision.HIGHEST
    x = jnp.transpose(x_nchw, (0, 2, 3, 1))
    outs = [x] if concat_input else []
    feats = x
    for p in layer_params:
        a1 = jnp.maximum(feats * p["s1"] + p["b1"], 0.0)
        y1 = jnp.einsum("nhwc,cd->nhwd", a1, p["w1"], precision=hp)
        a2 = jnp.maximum(y1 * p["s2"] + p["b2"], 0.0)
        y = jax.lax.conv_general_dilated(
            a2, p["w3"], window_strides=(1, 1), padding="SAME",
            dimension_numbers=("NHWC", "HWIO", "NHWC"), precision=hp)
        outs.append(y)
        feats = jnp.concatenate([feats, y], axis=-1)
    out = jnp.concatenate(outs, axis=-1)
    return jnp.transpose(out, (0, 3, 1, 2))


# ---------------- deterministic parameter initialization ---------------------
def init_dense_block_params(key, in_channels, growth_rate, num_layers):
    eps = 1e-5
    params = []
    for i in range(num_layers):
        cin = in_channels + i * growth_rate
        c4 = 4 * growth_rate
        key, *ks = jax.random.split(key, 11)
        gamma1 = 1.0 + 0.1 * jax.random.normal(ks[0], (cin,), jnp.float32)
        beta1 = 0.1 * jax.random.normal(ks[1], (cin,), jnp.float32)
        mean1 = 0.1 * jax.random.normal(ks[2], (cin,), jnp.float32)
        var1 = 1.0 + 0.1 * jnp.abs(jax.random.normal(ks[3], (cin,), jnp.float32))
        w1 = jax.random.normal(ks[4], (cin, c4), jnp.float32) / jnp.sqrt(1.0 * cin)
        gamma2 = 1.0 + 0.1 * jax.random.normal(ks[5], (c4,), jnp.float32)
        beta2 = 0.1 * jax.random.normal(ks[6], (c4,), jnp.float32)
        mean2 = 0.1 * jax.random.normal(ks[7], (c4,), jnp.float32)
        var2 = 1.0 + 0.1 * jnp.abs(jax.random.normal(ks[8], (c4,), jnp.float32))
        w3 = jax.random.normal(ks[9], (3, 3, c4, growth_rate),
                               jnp.float32) / jnp.sqrt(9.0 * c4)
        s1 = gamma1 / jnp.sqrt(var1 + eps)
        b1 = beta1 - mean1 * s1
        s2 = gamma2 / jnp.sqrt(var2 + eps)
        b2 = beta2 - mean2 * s2
        params.append(dict(s1=s1, b1=b1, w1=w1, s2=s2, b2=b2, w3=w3))
    return params


if __name__ == "__main__":
    in_channels, growth_rate, num_layers = 4, 8, 3
    N, H, W = 2, 16, 16

    key = jax.random.PRNGKey(0)
    k_x, k_p = jax.random.split(key)
    x = jax.random.normal(k_x, (N, in_channels, H, W), jnp.float32)   # NCHW input
    params = init_dense_block_params(k_p, in_channels, growth_rate, num_layers)

    out = dense_block_forward(x, params, concat_input=True)
    out = jax.block_until_ready(out)

    expected_channels = in_channels + num_layers * growth_rate
    assert out.shape == (N, expected_channels, H, W), out.shape

    ref = jax.block_until_ready(_ref_block(x, params, concat_input=True))
    max_err = float(jnp.max(jnp.abs(out - ref)))
    assert jnp.allclose(out, ref, atol=1e-4, rtol=1e-4), max_err

    print("KERNEL_OK")
</pallas_src>

<mosaic_0001>
module attributes {stable_mosaic.version = 11 : i64} {
  func.func @_dense_block_kernel(%arg0: i32, %arg1: memref<1x256x4xf32, #tpu.memory_space<vmem>>, %arg2: memref<1x4xf32, #tpu.memory_space<vmem>>, %arg3: memref<1x4xf32, #tpu.memory_space<vmem>>, %arg4: memref<4x32xf32, #tpu.memory_space<vmem>>, %arg5: memref<1x32xf32, #tpu.memory_space<vmem>>, %arg6: memref<288x8xf32, #tpu.memory_space<vmem>>, %arg7: memref<1x12xf32, #tpu.memory_space<vmem>>, %arg8: memref<1x12xf32, #tpu.memory_space<vmem>>, %arg9: memref<12x32xf32, #tpu.memory_space<vmem>>, %arg10: memref<1x32xf32, #tpu.memory_space<vmem>>, %arg11: memref<288x8xf32, #tpu.memory_space<vmem>>, %arg12: memref<1x20xf32, #tpu.memory_space<vmem>>, %arg13: memref<1x20xf32, #tpu.memory_space<vmem>>, %arg14: memref<20x32xf32, #tpu.memory_space<vmem>>, %arg15: memref<1x32xf32, #tpu.memory_space<vmem>>, %arg16: memref<288x8xf32, #tpu.memory_space<vmem>>, %arg17: memref<1x28x256xf32, #tpu.memory_space<vmem>>, %arg18: memref<18x18x32xf32, #tpu.memory_space<vmem>>, %arg19: memref<256x288xf32, #tpu.memory_space<vmem>>) attributes {dimension_semantics = [#tpu.dimension_semantics<parallel>], iteration_bounds = array<i64: 2>, scalar_prefetch = 0 : i64, scratch_operands = 2 : i64, tpu.core_type = #tpu.core_type<tc>, window_params = [{transform_indices = @transform_0, window_bounds = array<i64: 1, 256, 4>}, {pipeline_mode = #tpu.pipeline_mode<synchronous>, transform_indices = @transform_1, window_bounds = array<i64: 1, 4>}, {pipeline_mode = #tpu.pipeline_mode<synchronous>, transform_indices = @transform_2, window_bounds = array<i64: 1, 4>}, {pipeline_mode = #tpu.pipeline_mode<synchronous>, transform_indices = @transform_3, window_bounds = array<i64: 4, 32>}, {pipeline_mode = #tpu.pipeline_mode<synchronous>, transform_indices = @transform_4, window_bounds = array<i64: 1, 32>}, {pipeline_mode = #tpu.pipeline_mode<synchronous>, transform_indices = @transform_5, window_bounds = array<i64: 288, 8>}, {pipeline_mode = #tpu.pipeline_mode<synchronous>, transform_indices = @transform_6, window_bounds = array<i64: 1, 12>}, {pipeline_mode = #tpu.pipeline_mode<synchronous>, transform_indices = @transform_7, window_bounds = array<i64: 1, 12>}, {pipeline_mode = #tpu.pipeline_mode<synchronous>, transform_indices = @transform_8, window_bounds = array<i64: 12, 32>}, {pipeline_mode = #tpu.pipeline_mode<synchronous>, transform_indices = @transform_9, window_bounds = array<i64: 1, 32>}, {pipeline_mode = #tpu.pipeline_mode<synchronous>, transform_indices = @transform_10, window_bounds = array<i64: 288, 8>}, {pipeline_mode = #tpu.pipeline_mode<synchronous>, transform_indices = @transform_11, window_bounds = array<i64: 1, 20>}, {pipeline_mode = #tpu.pipeline_mode<synchronous>, transform_indices = @transform_12, window_bounds = array<i64: 1, 20>}, {pipeline_mode = #tpu.pipeline_mode<synchronous>, transform_indices = @transform_13, window_bounds = array<i64: 20, 32>}, {pipeline_mode = #tpu.pipeline_mode<synchronous>, transform_indices = @transform_14, window_bounds = array<i64: 1, 32>}, {pipeline_mode = #tpu.pipeline_mode<synchronous>, transform_indices = @transform_15, window_bounds = array<i64: 288, 8>}, {transform_indices = @transform_16, window_bounds = array<i64: 1, 28, 256>}]} {
    %cst = arith.constant 0.000000e+00 : f32
    %0 = vector.broadcast %cst : f32 to vector<1x18x32xf32>
    %c0 = arith.constant 0 : index
    %c0_0 = arith.constant 0 : index
    %c0_1 = arith.constant 0 : index
    %1 = vector.load %arg18[%c0, %c0_0, %c0_1] : memref<18x18x32xf32, #tpu.memory_space<vmem>>, vector<1x18x32xf32>
    tpu.vector_store %arg18[%c0, %c0_0, %c0_1], %0 {strides = array<i32>} : memref<18x18x32xf32, #tpu.memory_space<vmem>>, vector<1x18x32xf32>,
    %cst_2 = arith.constant 0.000000e+00 : f32
    %2 = vector.broadcast %cst_2 : f32 to vector<1x18x32xf32>
    %c17 = arith.constant 17 : index
    %c0_3 = arith.constant 0 : index
    %c0_4 = arith.constant 0 : index
    %3 = vector.load %arg18[%c17, %c0_3, %c0_4] : memref<18x18x32xf32, #tpu.memory_space<vmem>>, vector<1x18x32xf32>
    tpu.vector_store %arg18[%c17, %c0_3, %c0_4], %2 {strides = array<i32>} : memref<18x18x32xf32, #tpu.memory_space<vmem>>, vector<1x18x32xf32>,
    %cst_5 = arith.constant 0.000000e+00 : f32
    %4 = vector.broadcast %cst_5 : f32 to vector<18x1x32xf32>
    %c0_6 = arith.constant 0 : index
    %c0_7 = arith.constant 0 : index
    %c0_8 = arith.constant 0 : index
    %5 = vector.load %arg18[%c0_6, %c0_7, %c0_8] : memref<18x18x32xf32, #tpu.memory_space<vmem>>, vector<18x1x32xf32>
    tpu.vector_store %arg18[%c0_6, %c0_7, %c0_8], %4 {strides = array<i32>} : memref<18x18x32xf32, #tpu.memory_space<vmem>>, vector<18x1x32xf32>,
    %cst_9 = arith.constant 0.000000e+00 : f32
    %6 = vector.broadcast %cst_9 : f32 to vector<18x1x32xf32>
    %c0_10 = arith.constant 0 : index
    %c17_11 = arith.constant 17 : index
    %c0_12 = arith.constant 0 : index
    %7 = vector.load %arg18[%c0_10, %c17_11, %c0_12] : memref<18x18x32xf32, #tpu.memory_space<vmem>>, vector<18x1x32xf32>
    tpu.vector_store %arg18[%c0_10, %c17_11, %c0_12], %6 {strides = array<i32>} : memref<18x18x32xf32, #tpu.memory_space<vmem>>, vector<18x1x32xf32>,
    %c0_13 = arith.constant 0 : index
    %c0_14 = arith.constant 0 : index
    %c0_15 = arith.constant 0 : index
    %8 = vector.load %arg1[%c0_13, %c0_14, %c0_15] : memref<1x256x4xf32, #tpu.memory_space<vmem>>, vector<1x256x4xf32>
    %9 = vector.shape_cast %8 : vector<1x256x4xf32> to vector<256x4xf32>
    %c0_16 = arith.constant 0 : index
    %c0_17 = arith.constant 0 : index
    %10 = vector.load %arg2[%c0_16, %c0_17] : memref<1x4xf32, #tpu.memory_space<vmem>>, vector<1x4xf32>
    %c0_18 = arith.constant 0 : index
    %c0_19 = arith.constant 0 : index
    %11 = vector.load %arg3[%c0_18, %c0_19] : memref<1x4xf32, #tpu.memory_space<vmem>>, vector<1x4xf32>
    %c0_20 = arith.constant 0 : index
    %c0_21 = arith.constant 0 : index
    %12 = vector.load %arg4[%c0_20, %c0_21] : memref<4x32xf32, #tpu.memory_space<vmem>>, vector<4x32xf32>
    %c0_22 = arith.constant 0 : index
    %c0_23 = arith.constant 0 : index
    %13 = vector.load %arg5[%c0_22, %c0_23] : memref<1x32xf32, #tpu.memory_space<vmem>>, vector<1x32xf32>
    %c0_24 = arith.constant 0 : index
    %c0_25 = arith.constant 0 : index
    %14 = vector.load %arg6[%c0_24, %c0_25] : memref<288x8xf32, #tpu.memory_space<vmem>>, vector<288x8xf32>
    %15 = vector.broadcast %10 : vector<1x4xf32> to vector<256x4xf32>
    %16 = arith.mulf %9, %15 : vector<256x4xf32>
    %17 = vector.broadcast %11 : vector<1x4xf32> to vector<256x4xf32>
    %18 = arith.addf %16, %17 : vector<256x4xf32>
    %cst_26 = arith.constant 0.000000e+00 : f32
    %19 = vector.broadcast %cst_26 : f32 to vector<256x4xf32>
    %20 = arith.maximumf %18, %19 : vector<256x4xf32>
    %cst_27 = arith.constant dense<0.000000e+00> : vector<256x32xf32>
    %21 = tpu.matmul %20, %12, %cst_27 {dimension_numbers = #tpu.dot_dimension_numbers<[1], [0], [0], [1], [0, 0, 1, 1], [], []>} : vector<256x4xf32>, vector<4x32xf32>, vector<256x32xf32> -> vector<256x32xf32>
    %22 = vector.broadcast %13 : vector<1x32xf32> to vector<256x32xf32>
    %23 = arith.addf %21, %22 : vector<256x32xf32>
    %cst_28 = arith.constant 0.000000e+00 : f32
    %24 = vector.broadcast %cst_28 : f32 to vector<256x32xf32>
    %25 = arith.maximumf %23, %24 : vector<256x32xf32>
    %26 = vector.shape_cast %25 : vector<256x32xf32> to vector<16x16x32xf32>
    %c1 = arith.constant 1 : index
    %c1_29 = arith.constant 1 : index
    %c0_30 = arith.constant 0 : index
    %27 = vector.load %arg18[%c1, %c1_29, %c0_30] : memref<18x18x32xf32, #tpu.memory_space<vmem>>, vector<16x16x32xf32>
    tpu.vector_store %arg18[%c1, %c1_29, %c0_30], %26 {strides = array<i32>} : memref<18x18x32xf32, #tpu.memory_space<vmem>>, vector<16x16x32xf32>,
    %c0_31 = arith.constant 0 : index
    %c0_32 = arith.constant 0 : index
    %c0_33 = arith.constant 0 : index
    %28 = vector.load %arg18[%c0_31, %c0_32, %c0_33] : memref<18x18x32xf32, #tpu.memory_space<vmem>>, vector<16x16x32xf32>
    %29 = vector.shape_cast %28 : vector<16x16x32xf32> to vector<256x32xf32>
    %c0_34 = arith.constant 0 : index
    %c0_35 = arith.constant 0 : index
    %30 = vector.load %arg19[%c0_34, %c0_35] : memref<256x288xf32, #tpu.memory_space<vmem>>, vector<256x32xf32>
    tpu.vector_store %arg19[%c0_34, %c0_35], %29 {strides = array<i32>} : memref<256x288xf32, #tpu.memory_space<vmem>>, vector<256x32xf32>,
    %c0_36 = arith.constant 0 : index
    %c1_37 = arith.constant 1 : index
    %c0_38 = arith.constant 0 : index
    %31 = vector.load %arg18[%c0_36, %c1_37, %c0_38] : memref<18x18x32xf32, #tpu.memory_space<vmem>>, vector<16x16x32xf32>
    %32 = vector.shape_cast %31 : vector<16x16x32xf32> to vector<256x32xf32>
    %c0_39 = arith.constant 0 : index
    %c32 = arith.constant 32 : index
    %33 = vector.load %arg19[%c0_39, %c32] : memref<256x288xf32, #tpu.memory_space<vmem>>, vector<256x32xf32>
    tpu.vector_store %arg19[%c0_39, %c32], %32 {strides = array<i32>} : memref<256x288xf32, #tpu.memory_space<vmem>>, vector<256x32xf32>,
    %c0_40 = arith.constant 0 : index
    %c2 = arith.constant 2 : index
    %c0_41 = arith.constant 0 : index
    %34 = vector.load %arg18[%c0_40, %c2, %c0_41] : memref<18x18x32xf32, #tpu.memory_space<vmem>>, vector<16x16x32xf32>
    %35 = vector.shape_cast %34 : vector<16x16x32xf32> to vector<256x32xf32>
    %c0_42 = arith.constant 0 : index
    %c64 = arith.constant 64 : index
    %36 = vector.load %arg19[%c0_42, %c64] : memref<256x288xf32, #tpu.memory_space<vmem>>, vector<256x32xf32>
    tpu.vector_store %arg19[%c0_42, %c64], %35 {strides = array<i32>} : memref<256x288xf32, #tpu.memory_space<vmem>>, vector<256x32xf32>,
    %c1_43 = arith.constant 1 : index
    %c0_44 = arith.constant 0 : index
    %c0_45 = arith.constant 0 : index
    %37 = vector.load %arg18[%c1_43, %c0_44, %c0_45] : memref<18x18x32xf32, #tpu.memory_space<vmem>>, vector<16x16x32xf32>
    %38 = vector.shape_cast %37 : vector<16x16x32xf32> to vector<256x32xf32>
    %c0_46 = arith.constant 0 : index
    %c96 = arith.constant 96 : index
    %39 = vector.load %arg19[%c0_46, %c96] : memref<256x288xf32, #tpu.memory_space<vmem>>, vector<256x32xf32>
    tpu.vector_store %arg19[%c0_46, %c96], %38 {strides = array<i32>} : memref<256x288xf32, #tpu.memory_space<vmem>>, vector<256x32xf32>,
    %c0_47 = arith.constant 0 : index
    %c128 = arith.constant 128 : index
    %40 = vector.load %arg19[%c0_47, %c128] : memref<256x288xf32, #tpu.memory_space<vmem>>, vector<256x32xf32>
    tpu.vector_store %arg19[%c0_47, %c128], %25 {strides = array<i32>} : memref<256x288xf32, #tpu.memory_space<vmem>>, vector<256x32xf32>,
    %c1_48 = arith.constant 1 : index
    %c2_49 = arith.constant 2 : index
    %c0_50 = arith.constant 0 : index
    %41 = vector.load %arg18[%c1_48, %c2_49, %c0_50] : memref<18x18x32xf32, #tpu.memory_space<vmem>>, vector<16x16x32xf32>
    %42 = vector.shape_cast %41 : vector<16x16x32xf32> to vector<256x32xf32>
    %c0_51 = arith.constant 0 : index
    %c160 = arith.constant 160 : index
    %43 = vector.load %arg19[%c0_51, %c160] : memref<256x288xf32, #tpu.memory_space<vmem>>, vector<256x32xf32>
    tpu.vector_store %arg19[%c0_51, %c160], %42 {strides = array<i32>} : memref<256x288xf32, #tpu.memory_space<vmem>>, vector<256x32xf32>,
    %c2_52 = arith.constant 2 : index
    %c0_53 = arith.constant 0 : index
    %c0_54 = arith.constant 0 : index
    %44 = vector.load %arg18[%c2_52, %c0_53, %c0_54] : memref<18x18x32xf32, #tpu.memory_space<vmem>>, vector<16x16x32xf32>
    %45 = vector.shape_cast %44 : vector<16x16x32xf32> to vector<256x32xf32>
    %c0_55 = arith.constant 0 : index
    %c192 = arith.constant 192 : index
    %46 = vector.load %arg19[%c0_55, %c192] : memref<256x288xf32, #tpu.memory_space<vmem>>, vector<256x32xf32>
    tpu.vector_store %arg19[%c0_55, %c192], %45 {strides = array<i32>} : memref<256x288xf32, #tpu.memory_space<vmem>>, vector<256x32xf32>,
    %c2_56 = arith.constant 2 : index
    %c1_57 = arith.constant 1 : index
    %c0_58 = arith.constant 0 : index
    %47 = vector.load %arg18[%c2_56, %c1_57, %c0_58] : memref<18x18x32xf32, #tpu.memory_space<vmem>>, vector<16x16x32xf32>
    %48 = vector.shape_cast %47 : vector<16x16x32xf32> to vector<256x32xf32>
    %c0_59 = arith.constant 0 : index
    %c224 = arith.constant 224 : index
    %49 = vector.load %arg19[%c0_59, %c224] : memref<256x288xf32, #tpu.memory_space<vmem>>, vector<256x32xf32>
    tpu.vector_store %arg19[%c0_59, %c224], %48 {strides = array<i32>} : memref<256x288xf32, #tpu.memory_space<vmem>>, vector<256x32xf32>,
    %c2_60 = arith.constant 2 : index
    %c2_61 = arith.constant 2 : index
    %c0_62 = arith.constant 0 : index
    %50 = vector.load %arg18[%c2_60, %c2_61, %c0_62] : memref<18x18x32xf32, #tpu.memory_space<vmem>>, vector<16x16x32xf32>
    %51 = vector.shape_cast %50 : vector<16x16x32xf32> to vector<256x32xf32>
    %c0_63 = arith.constant 0 : index
    %c256 = arith.constant 256 : index
    %52 = vector.load %arg19[%c0_63, %c256] : memref<256x288xf32, #tpu.memory_space<vmem>>, vector<256x32xf32>
    tpu.vector_store %arg19[%c0_63, %c256], %51 {strides = array<i32>} : memref<256x288xf32, #tpu.memory_space<vmem>>, vector<256x32xf32>,
    %c0_64 = arith.constant 0 : index
    %c0_65 = arith.constant 0 : index
    %53 = vector.load %arg19[%c0_64, %c0_65] : memref<256x288xf32, #tpu.memory_space<vmem>>, vector<256x288xf32>
    %cst_66 = arith.constant dense<0.000000e+00> : vector<256x8xf32>
    %54 = tpu.matmul %53, %14, %cst_66 {dimension_numbers = #tpu.dot_dimension_numbers<[1], [0], [0], [1], [0, 0, 1, 1], [], []>} : vector<256x288xf32>, vector<288x8xf32>, vector<256x8xf32> -> vector<256x8xf32>
    %55 = tpu.concatenate %9, %54 in 1 : vector<256x4xf32>, vector<256x8xf32> -> vector<256x12xf32>
    %c0_67 = arith.constant 0 : index
    %c0_68 = arith.constant 0 : index
    %56 = vector.load %arg7[%c0_67, %c0_68] : memref<1x12xf32, #tpu.memory_space<vmem>>, vector<1x12xf32>
    %c0_69 = arith.constant 0 : index
    %c0_70 = arith.constant 0 : index
    %57 = vector.load %arg8[%c0_69, %c0_70] : memref<1x12xf32, #tpu.memory_space<vmem>>, vector<1x12xf32>
    %c0_71 = arith.constant 0 : index
    %c0_72 = arith.constant 0 : index
    %58 = vector.load %arg9[%c0_71, %c0_72] : memref<12x32xf32, #tpu.memory_space<vmem>>, vector<12x32xf32>
    %c0_73 = arith.constant 0 : index
    %c0_74 = arith.constant 0 : index
    %59 = vector.load %arg10[%c0_73, %c0_74] : memref<1x32xf32, #tpu.memory_space<vmem>>, vector<1x32xf32>
    %c0_75 = arith.constant 0 : index
    %c0_76 = arith.constant 0 : index
    %60 = vector.load %arg11[%c0_75, %c0_76] : memref<288x8xf32, #tpu.memory_space<vmem>>, vector<288x8xf32>
    %61 = vector.broadcast %56 : vector<1x12xf32> to vector<256x12xf32>
    %62 = arith.mulf %55, %61 : vector<256x12xf32>
    %63 = vector.broadcast %57 : vector<1x12xf32> to vector<256x12xf32>
    %64 = arith.addf %62, %63 : vector<256x12xf32>
    %cst_77 = arith.constant 0.000000e+00 : f32
    %65 = vector.broadcast %cst_77 : f32 to vector<256x12xf32>
    %66 = arith.maximumf %64, %65 : vector<256x12xf32>
    %cst_78 = arith.constant dense<0.000000e+00> : vector<256x32xf32>
    %67 = tpu.matmul %66, %58, %cst_78 {dimension_numbers = #tpu.dot_dimension_numbers<[1], [0], [0], [1], [0, 0, 1, 1], [], []>} : vector<256x12xf32>, vector<12x32xf32>, vector<256x32xf32> -> vector<256x32xf32>
    %68 = vector.broadcast %59 : vector<1x32xf32> to vector<256x32xf32>
    %69 = arith.addf %67, %68 : vector<256x32xf32>
    %cst_79 = arith.constant 0.000000e+00 : f32
    %70 = vector.broadcast %cst_79 : f32 to vector<256x32xf32>
    %71 = arith.maximumf %69, %70 : vector<256x32xf32>
    %72 = vector.shape_cast %71 : vector<256x32xf32> to vector<16x16x32xf32>
    %c1_80 = arith.constant 1 : index
    %c1_81 = arith.constant 1 : index
    %c0_82 = arith.constant 0 : index
    %73 = vector.load %arg18[%c1_80, %c1_81, %c0_82] : memref<18x18x32xf32, #tpu.memory_space<vmem>>, vector<16x16x32xf32>
    tpu.vector_store %arg18[%c1_80, %c1_81, %c0_82], %72 {strides = array<i32>} : memref<18x18x32xf32, #tpu.memory_space<vmem>>, vector<16x16x32xf32>,
    %c0_83 = arith.constant 0 : index
    %c0_84 = arith.constant 0 : index
    %c0_85 = arith.constant 0 : index
    %74 = vector.load %arg18[%c0_83, %c0_84, %c0_85] : memref<18x18x32xf32, #tpu.memory_space<vmem>>, vector<16x16x32xf32>
    %75 = vector.shape_cast %74 : vector<16x16x32xf32> to vector<256x32xf32>
    %c0_86 = arith.constant 0 : index
    %c0_87 = arith.constant 0 : index
    %76 = vector.load %arg19[%c0_86, %c0_87] : memref<256x288xf32, #tpu.memory_space<vmem>>, vector<256x32xf32>
    tpu.vector_store %arg19[%c0_86, %c0_87], %75 {strides = array<i32>} : memref<256x288xf32, #tpu.memory_space<vmem>>, vector<256x32xf32>,
    %c0_88 = arith.constant 0 : index
    %c1_89 = arith.constant 1 : index
    %c0_90 = arith.constant 0 : index
    %77 = vector.load %arg18[%c0_88, %c1_89, %c0_90] : memref<18x18x32xf32, #tpu.memory_space<vmem>>, vector<16x16x32xf32>
    %78 = vector.shape_cast %77 : vector<16x16x32xf32> to vector<256x32xf32>
    %c0_91 = arith.constant 0 : index
    %c32_92 = arith.constant 32 : index
    %79 = vector.load %arg19[%c0_91, %c32_92] : memref<256x288xf32, #tpu.memory_space<vmem>>, vector<256x32xf32>
    tpu.vector_store %arg19[%c0_91, %c32_92], %78 {strides = array<i32>} : memref<256x288xf32, #tpu.memory_space<vmem>>, vector<256x32xf32>,
    %c0_93 = arith.constant 0 : index
    %c2_94 = arith.constant 2 : index
    %c0_95 = arith.constant 0 : index
    %80 = vector.load %arg18[%c0_93, %c2_94, %c0_95] : memref<18x18x32xf32, #tpu.memory_space<vmem>>, vector<16x16x32xf32>
    %81 = vector.shape_cast %80 : vector<16x16x32xf32> to vector<256x32xf32>
    %c0_96 = arith.constant 0 : index
    %c64_97 = arith.constant 64 : index
    %82 = vector.load %arg19[%c0_96, %c64_97] : memref<256x288xf32, #tpu.memory_space<vmem>>, vector<256x32xf32>
    tpu.vector_store %arg19[%c0_96, %c64_97], %81 {strides = array<i32>} : memref<256x288xf32, #tpu.memory_space<vmem>>, vector<256x32xf32>,
    %c1_98 = arith.constant 1 : index
    %c0_99 = arith.constant 0 : index
    %c0_100 = arith.constant 0 : index
    %83 = vector.load %arg18[%c1_98, %c0_99, %c0_100] : memref<18x18x32xf32, #tpu.memory_space<vmem>>, vector<16x16x32xf32>
    %84 = vector.shape_cast %83 : vector<16x16x32xf32> to vector<256x32xf32>
    %c0_101 = arith.constant 0 : index
    %c96_102 = arith.constant 96 : index
    %85 = vector.load %arg19[%c0_101, %c96_102] : memref<256x288xf32, #tpu.memory_space<vmem>>, vector<256x32xf32>
    tpu.vector_store %arg19[%c0_101, %c96_102], %84 {strides = array<i32>} : memref<256x288xf32, #tpu.memory_space<vmem>>, vector<256x32xf32>,
    %c0_103 = arith.constant 0 : index
    %c128_104 = arith.constant 128 : index
    %86 = vector.load %arg19[%c0_103, %c128_104] : memref<256x288xf32, #tpu.memory_space<vmem>>, vector<256x32xf32>
    tpu.vector_store %arg19[%c0_103, %c128_104], %71 {strides = array<i32>} : memref<256x288xf32, #tpu.memory_space<vmem>>, vector<256x32xf32>,
    %c1_105 = arith.constant 1 : index
    %c2_106 = arith.constant 2 : index
    %c0_107 = arith.constant 0 : index
    %87 = vector.load %arg18[%c1_105, %c2_106, %c0_107] : memref<18x18x32xf32, #tpu.memory_space<vmem>>, vector<16x16x32xf32>
    %88 = vector.shape_cast %87 : vector<16x16x32xf32> to vector<256x32xf32>
    %c0_108 = arith.constant 0 : index
    %c160_109 = arith.constant 160 : index
    %89 = vector.load %arg19[%c0_108, %c160_109] : memref<256x288xf32, #tpu.memory_space<vmem>>, vector<256x32xf32>
    tpu.vector_store %arg19[%c0_108, %c160_109], %88 {strides = array<i32>} : memref<256x288xf32, #tpu.memory_space<vmem>>, vector<256x32xf32>,
    %c2_110 = arith.constant 2 : index
    %c0_111 = arith.constant 0 : index
    %c0_112 = arith.constant 0 : index
    %90 = vector.load %arg18[%c2_110, %c0_111, %c0_112] : memref<18x18x32xf32, #tpu.memory_space<vmem>>, vector<16x16x32xf32>
    %91 = vector.shape_cast %90 : vector<16x16x32xf32> to vector<256x32xf32>
    %c0_113 = arith.constant 0 : index
    %c192_114 = arith.constant 192 : index
    %92 = vector.load %arg19[%c0_113, %c192_114] : memref<256x288xf32, #tpu.memory_space<vmem>>, vector<256x32xf32>
    tpu.vector_store %arg19[%c0_113, %c192_114], %91 {strides = array<i32>} : memref<256x288xf32, #tpu.memory_space<vmem>>, vector<256x32xf32>,
    %c2_115 = arith.constant 2 : index
    %c1_116 = arith.constant 1 : index
    %c0_117 = arith.constant 0 : index
    %93 = vector.load %arg18[%c2_115, %c1_116, %c0_117] : memref<18x18x32xf32, #tpu.memory_space<vmem>>, vector<16x16x32xf32>
    %94 = vector.shape_cast %93 : vector<16x16x32xf32> to vector<256x32xf32>
    %c0_118 = arith.constant 0 : index
    %c224_119 = arith.constant 224 : index
    %95 = vector.load %arg19[%c0_118, %c224_119] : memref<256x288xf32, #tpu.memory_space<vmem>>, vector<256x32xf32>
    tpu.vector_store %arg19[%c0_118, %c224_119], %94 {strides = array<i32>} : memref<256x288xf32, #tpu.memory_space<vmem>>, vector<256x32xf32>,
    %c2_120 = arith.constant 2 : index
    %c2_121 = arith.constant 2 : index
    %c0_122 = arith.constant 0 : index
    %96 = vector.load %arg18[%c2_120, %c2_121, %c0_122] : memref<18x18x32xf32, #tpu.memory_space<vmem>>, vector<16x16x32xf32>
    %97 = vector.shape_cast %96 : vector<16x16x32xf32> to vector<256x32xf32>
    %c0_123 = arith.constant 0 : index
    %c256_124 = arith.constant 256 : index
    %98 = vector.load %arg19[%c0_123, %c256_124] : memref<256x288xf32, #tpu.memory_space<vmem>>, vector<256x32xf32>
    tpu.vector_store %arg19[%c0_123, %c256_124], %97 {strides = array<i32>} : memref<256x288xf32, #tpu.memory_space<vmem>>, vector<256x32xf32>,
    %c0_125 = arith.constant 0 : index
    %c0_126 = arith.constant 0 : index
    %99 = vector.load %arg19[%c0_125, %c0_126] : memref<256x288xf32, #tpu.memory_space<vmem>>, vector<256x288xf32>
    %cst_127 = arith.constant dense<0.000000e+00> : vector<256x8xf32>
    %100 = tpu.matmul %99, %60, %cst_127 {dimension_numbers = #tpu.dot_dimension_numbers<[1], [0], [0], [1], [0, 0, 1, 1], [], []>} : vector<256x288xf32>, vector<288x8xf32>, vector<256x8xf32> -> vector<256x8xf32>
    %101 = tpu.concatenate %55, %100 in 1 : vector<256x12xf32>, vector<256x8xf32> -> vector<256x20xf32>
    %c0_128 = arith.constant 0 : index
    %c0_129 = arith.constant 0 : index
    %102 = vector.load %arg12[%c0_128, %c0_129] : memref<1x20xf32, #tpu.memory_space<vmem>>, vector<1x20xf32>
    %c0_130 = arith.constant 0 : index
    %c0_131 = arith.constant 0 : index
    %103 = vector.load %arg13[%c0_130, %c0_131] : memref<1x20xf32, #tpu.memory_space<vmem>>, vector<1x20xf32>
    %c0_132 = arith.constant 0 : index
    %c0_133 = arith.constant 0 : index
    %104 = vector.load %arg14[%c0_132, %c0_133] : memref<20x32xf32, #tpu.memory_space<vmem>>, vector<20x32xf32>
    %c0_134 = arith.constant 0 : index
    %c0_135 = arith.constant 0 : index
    %105 = vector.load %arg15[%c0_134, %c0_135] : memref<1x32xf32, #tpu.memory_space<vmem>>, vector<1x32xf32>
    %c0_136 = arith.constant 0 : index
    %c0_137 = arith.constant 0 : index
    %106 = vector.load %arg16[%c0_136, %c0_137] : memref<288x8xf32, #tpu.memory_space<vmem>>, vector<288x8xf32>
    %107 = vector.broadcast %102 : vector<1x20xf32> to vector<256x20xf32>
    %108 = arith.mulf %101, %107 : vector<256x20xf32>
    %109 = vector.broadcast %103 : vector<1x20xf32> to vector<256x20xf32>
    %110 = arith.addf %108, %109 : vector<256x20xf32>
    %cst_138 = arith.constant 0.000000e+00 : f32
    %111 = vector.broadcast %cst_138 : f32 to vector<256x20xf32>
    %112 = arith.maximumf %110, %111 : vector<256x20xf32>
    %cst_139 = arith.constant dense<0.000000e+00> : vector<256x32xf32>
    %113 = tpu.matmul %112, %104, %cst_139 {dimension_numbers = #tpu.dot_dimension_numbers<[1], [0], [0], [1], [0, 0, 1, 1], [], []>} : vector<256x20xf32>, vector<20x32xf32>, vector<256x32xf32> -> vector<256x32xf32>
    %114 = vector.broadcast %105 : vector<1x32xf32> to vector<256x32xf32>
    %115 = arith.addf %113, %114 : vector<256x32xf32>
    %cst_140 = arith.constant 0.000000e+00 : f32
    %116 = vector.broadcast %cst_140 : f32 to vector<256x32xf32>
    %117 = arith.maximumf %115, %116 : vector<256x32xf32>
    %118 = vector.shape_cast %117 : vector<256x32xf32> to vector<16x16x32xf32>
    %c1_141 = arith.constant 1 : index
    %c1_142 = arith.constant 1 : index
    %c0_143 = arith.constant 0 : index
    %119 = vector.load %arg18[%c1_141, %c1_142, %c0_143] : memref<18x18x32xf32, #tpu.memory_space<vmem>>, vector<16x16x32xf32>
    tpu.vector_store %arg18[%c1_141, %c1_142, %c0_143], %118 {strides = array<i32>} : memref<18x18x32xf32, #tpu.memory_space<vmem>>, vector<16x16x32xf32>,
    %c0_144 = arith.constant 0 : index
    %c0_145 = arith.constant 0 : index
    %c0_146 = arith.constant 0 : index
    %120 = vector.load %arg18[%c0_144, %c0_145, %c0_146] : memref<18x18x32xf32, #tpu.memory_space<vmem>>, vector<16x16x32xf32>
    %121 = vector.shape_cast %120 : vector<16x16x32xf32> to vector<256x32xf32>
    %c0_147 = arith.constant 0 : index
    %c0_148 = arith.constant 0 : index
    %122 = vector.load %arg19[%c0_147, %c0_148] : memref<256x288xf32, #tpu.memory_space<vmem>>, vector<256x32xf32>
    tpu.vector_store %arg19[%c0_147, %c0_148], %121 {strides = array<i32>} : memref<256x288xf32, #tpu.memory_space<vmem>>, vector<256x32xf32>,
    %c0_149 = arith.constant 0 : index
    %c1_150 = arith.constant 1 : index
    %c0_151 = arith.constant 0 : index
    %123 = vector.load %arg18[%c0_149, %c1_150, %c0_151] : memref<18x18x32xf32, #tpu.memory_space<vmem>>, vector<16x16x32xf32>
    %124 = vector.shape_cast %123 : vector<16x16x32xf32> to vector<256x32xf32>
    %c0_152 = arith.constant 0 : index
    %c32_153 = arith.constant 32 : index
    %125 = vector.load %arg19[%c0_152, %c32_153] : memref<256x288xf32, #tpu.memory_space<vmem>>, vector<256x32xf32>
    tpu.vector_store %arg19[%c0_152, %c32_153], %124 {strides = array<i32>} : memref<256x288xf32, #tpu.memory_space<vmem>>, vector<256x32xf32>,
    %c0_154 = arith.constant 0 : index
    %c2_155 = arith.constant 2 : index
    %c0_156 = arith.constant 0 : index
    %126 = vector.load %arg18[%c0_154, %c2_155, %c0_156] : memref<18x18x32xf32, #tpu.memory_space<vmem>>, vector<16x16x32xf32>
    %127 = vector.shape_cast %126 : vector<16x16x32xf32> to vector<256x32xf32>
    %c0_157 = arith.constant 0 : index
    %c64_158 = arith.constant 64 : index
    %128 = vector.load %arg19[%c0_157, %c64_158] : memref<256x288xf32, #tpu.memory_space<vmem>>, vector<256x32xf32>
    tpu.vector_store %arg19[%c0_157, %c64_158], %127 {strides = array<i32>} : memref<256x288xf32, #tpu.memory_space<vmem>>, vector<256x32xf32>,
    %c1_159 = arith.constant 1 : index
    %c0_160 = arith.constant 0 : index
    %c0_161 = arith.constant 0 : index
    %129 = vector.load %arg18[%c1_159, %c0_160, %c0_161] : memref<18x18x32xf32, #tpu.memory_space<vmem>>, vector<16x16x32xf32>
    %130 = vector.shape_cast %129 : vector<16x16x32xf32> to vector<256x32xf32>
    %c0_162 = arith.constant 0 : index
    %c96_163 = arith.constant 96 : index
    %131 = vector.load %arg19[%c0_162, %c96_163] : memref<256x288xf32, #tpu.memory_space<vmem>>, vector<256x32xf32>
    tpu.vector_store %arg19[%c0_162, %c96_163], %130 {strides = array<i32>} : memref<256x288xf32, #tpu.memory_space<vmem>>, vector<256x32xf32>,
    %c0_164 = arith.constant 0 : index
    %c128_165 = arith.constant 128 : index
    %132 = vector.load %arg19[%c0_164, %c128_165] : memref<256x288xf32, #tpu.memory_space<vmem>>, vector<256x32xf32>
    tpu.vector_store %arg19[%c0_164, %c128_165], %117 {strides = array<i32>} : memref<256x288xf32, #tpu.memory_space<vmem>>, vector<256x32xf32>,
    %c1_166 = arith.constant 1 : index
    %c2_167 = arith.constant 2 : index
    %c0_168 = arith.constant 0 : index
    %133 = vector.load %arg18[%c1_166, %c2_167, %c0_168] : memref<18x18x32xf32, #tpu.memory_space<vmem>>, vector<16x16x32xf32>
    %134 = vector.shape_cast %133 : vector<16x16x32xf32> to vector<256x32xf32>
    %c0_169 = arith.constant 0 : index
    %c160_170 = arith.constant 160 : index
    %135 = vector.load %arg19[%c0_169, %c160_170] : memref<256x288xf32, #tpu.memory_space<vmem>>, vector<256x32xf32>
    tpu.vector_store %arg19[%c0_169, %c160_170], %134 {strides = array<i32>} : memref<256x288xf32, #tpu.memory_space<vmem>>, vector<256x32xf32>,
    %c2_171 = arith.constant 2 : index
    %c0_172 = arith.constant 0 : index
    %c0_173 = arith.constant 0 : index
    %136 = vector.load %arg18[%c2_171, %c0_172, %c0_173] : memref<18x18x32xf32, #tpu.memory_space<vmem>>, vector<16x16x32xf32>
    %137 = vector.shape_cast %136 : vector<16x16x32xf32> to vector<256x32xf32>
    %c0_174 = arith.constant 0 : index
    %c192_175 = arith.constant 192 : index
    %138 = vector.load %arg19[%c0_174, %c192_175] : memref<256x288xf32, #tpu.memory_space<vmem>>, vector<256x32xf32>
    tpu.vector_store %arg19[%c0_174, %c192_175], %137 {strides = array<i32>} : memref<256x288xf32, #tpu.memory_space<vmem>>, vector<256x32xf32>,
    %c2_176 = arith.constant 2 : index
    %c1_177 = arith.constant 1 : index
    %c0_178 = arith.constant 0 : index
    %139 = vector.load %arg18[%c2_176, %c1_177, %c0_178] : memref<18x18x32xf32, #tpu.memory_space<vmem>>, vector<16x16x32xf32>
    %140 = vector.shape_cast %139 : vector<16x16x32xf32> to vector<256x32xf32>
    %c0_179 = arith.constant 0 : index
    %c224_180 = arith.constant 224 : index
    %141 = vector.load %arg19[%c0_179, %c224_180] : memref<256x288xf32, #tpu.memory_space<vmem>>, vector<256x32xf32>
    tpu.vector_store %arg19[%c0_179, %c224_180], %140 {strides = array<i32>} : memref<256x288xf32, #tpu.memory_space<vmem>>, vector<256x32xf32>,
    %c2_181 = arith.constant 2 : index
    %c2_182 = arith.constant 2 : index
    %c0_183 = arith.constant 0 : index
    %142 = vector.load %arg18[%c2_181, %c2_182, %c0_183] : memref<18x18x32xf32, #tpu.memory_space<vmem>>, vector<16x16x32xf32>
    %143 = vector.shape_cast %142 : vector<16x16x32xf32> to vector<256x32xf32>
    %c0_184 = arith.constant 0 : index
    %c256_185 = arith.constant 256 : index
    %144 = vector.load %arg19[%c0_184, %c256_185] : memref<256x288xf32, #tpu.memory_space<vmem>>, vector<256x32xf32>
    tpu.vector_store %arg19[%c0_184, %c256_185], %143 {strides = array<i32>} : memref<256x288xf32, #tpu.memory_space<vmem>>, vector<256x32xf32>,
    %c0_186 = arith.constant 0 : index
    %c0_187 = arith.constant 0 : index
    %145 = vector.load %arg19[%c0_186, %c0_187] : memref<256x288xf32, #tpu.memory_space<vmem>>, vector<256x288xf32>
    %cst_188 = arith.constant dense<0.000000e+00> : vector<256x8xf32>
    %146 = tpu.matmul %145, %106, %cst_188 {dimension_numbers = #tpu.dot_dimension_numbers<[1], [0], [0], [1], [0, 0, 1, 1], [], []>} : vector<256x288xf32>, vector<288x8xf32>, vector<256x8xf32> -> vector<256x8xf32>
    %147 = tpu.concatenate %9, %54, %100, %146 in 1 : vector<256x4xf32>, vector<256x8xf32>, vector<256x8xf32>, vector<256x8xf32> -> vector<256x28xf32>
    %148 = tpu.transpose %147, [1, 0] : vector<256x28xf32> -> vector<28x256xf32>
    %c0_189 = arith.constant 0 : index
    %c0_190 = arith.constant 0 : index
    %c0_191 = arith.constant 0 : index
    %149 = vector.load %arg17[%c0_189, %c0_190, %c0_191] : memref<1x28x256xf32, #tpu.memory_space<vmem>>, vector<1x28x256xf32>
    %150 = vector.shape_cast %149 : vector<1x28x256xf32> to vector<28x256xf32>
    %151 = vector.shape_cast %148 : vector<28x256xf32> to vector<1x28x256xf32>
    tpu.vector_store %arg17[%c0_189, %c0_190, %c0_191], %151 {strides = array<i32>} : memref<1x28x256xf32, #tpu.memory_space<vmem>>, vector<1x28x256xf32>,
    return
  }
  func.func @transform_0(%arg0: i32) -> (i32, i32, i32) {
    %c0_i32 = arith.constant 0 : i32
    %c0_i32_0 = arith.constant 0 : i32
    %c0_i32_1 = arith.constant 0 : i32
    return %arg0, %c0_i32, %c0_i32_0 : i32, i32, i32
  }
  func.func @transform_1(%arg0: i32) -> (i32, i32) {
    %c0_i32 = arith.constant 0 : i32
    %c0_i32_0 = arith.constant 0 : i32
    %c0_i32_1 = arith.constant 0 : i32
    return %c0_i32, %c0_i32_0 : i32, i32
  }
  func.func @transform_2(%arg0: i32) -> (i32, i32) {
    %c0_i32 = arith.constant 0 : i32
    %c0_i32_0 = arith.constant 0 : i32
    %c0_i32_1 = arith.constant 0 : i32
    return %c0_i32, %c0_i32_0 : i32, i32
  }
  func.func @transform_3(%arg0: i32) -> (i32, i32) {
    %c0_i32 = arith.constant 0 : i32
    %c0_i32_0 = arith.constant 0 : i32
    %c0_i32_1 = arith.constant 0 : i32
    return %c0_i32, %c0_i32_0 : i32, i32
  }
  func.func @transform_4(%arg0: i32) -> (i32, i32) {
    %c0_i32 = arith.constant 0 : i32
    %c0_i32_0 = arith.constant 0 : i32
    %c0_i32_1 = arith.constant 0 : i32
    return %c0_i32, %c0_i32_0 : i32, i32
  }
  func.func @transform_5(%arg0: i32) -> (i32, i32) {
    %c0_i32 = arith.constant 0 : i32
    %c0_i32_0 = arith.constant 0 : i32
    %c0_i32_1 = arith.constant 0 : i32
    return %c0_i32, %c0_i32_0 : i32, i32
  }
  func.func @transform_6(%arg0: i32) -> (i32, i32) {
    %c0_i32 = arith.constant 0 : i32
    %c0_i32_0 = arith.constant 0 : i32
    %c0_i32_1 = arith.constant 0 : i32
    return %c0_i32, %c0_i32_0 : i32, i32
  }
  func.func @transform_7(%arg0: i32) -> (i32, i32) {
    %c0_i32 = arith.constant 0 : i32
    %c0_i32_0 = arith.constant 0 : i32
    %c0_i32_1 = arith.constant 0 : i32
    return %c0_i32, %c0_i32_0 : i32, i32
  }
  func.func @transform_8(%arg0: i32) -> (i32, i32) {
    %c0_i32 = arith.constant 0 : i32
    %c0_i32_0 = arith.constant 0 : i32
    %c0_i32_1 = arith.constant 0 : i32
    return %c0_i32, %c0_i32_0 : i32, i32
  }
  func.func @transform_9(%arg0: i32) -> (i32, i32) {
    %c0_i32 = arith.constant 0 : i32
    %c0_i32_0 = arith.constant 0 : i32
    %c0_i32_1 = arith.constant 0 : i32
    return %c0_i32, %c0_i32_0 : i32, i32
  }
  func.func @transform_10(%arg0: i32) -> (i32, i32) {
    %c0_i32 = arith.constant 0 : i32
    %c0_i32_0 = arith.constant 0 : i32
    %c0_i32_1 = arith.constant 0 : i32
    return %c0_i32, %c0_i32_0 : i32, i32
  }
  func.func @transform_11(%arg0: i32) -> (i32, i32) {
    %c0_i32 = arith.constant 0 : i32
    %c0_i32_0 = arith.constant 0 : i32
    %c0_i32_1 = arith.constant 0 : i32
    return %c0_i32, %c0_i32_0 : i32, i32
  }
  func.func @transform_12(%arg0: i32) -> (i32, i32) {
    %c0_i32 = arith.constant 0 : i32
    %c0_i32_0 = arith.constant 0 : i32
    %c0_i32_1 = arith.constant 0 : i32
    return %c0_i32, %c0_i32_0 : i32, i32
  }
  func.func @transform_13(%arg0: i32) -> (i32, i32) {
    %c0_i32 = arith.constant 0 : i32
    %c0_i32_0 = arith.constant 0 : i32
    %c0_i32_1 = arith.constant 0 : i32
    return %c0_i32, %c0_i32_0 : i32, i32
  }
  func.func @transform_14(%arg0: i32) -> (i32, i32) {
    %c0_i32 = arith.constant 0 : i32
    %c0_i32_0 = arith.constant 0 : i32
    %c0_i32_1 = arith.constant 0 : i32
    return %c0_i32, %c0_i32_0 : i32, i32
  }
  func.func @transform_15(%arg0: i32) -> (i32, i32) {
    %c0_i32 = arith.constant 0 : i32
    %c0_i32_0 = arith.constant 0 : i32
    %c0_i32_1 = arith.constant 0 : i32
    return %c0_i32, %c0_i32_0 : i32, i32
  }
  func.func @transform_16(%arg0: i32) -> (i32, i32, i32) {
    %c0_i32 = arith.constant 0 : i32
    %c0_i32_0 = arith.constant 0 : i32
    %c0_i32_1 = arith.constant 0 : i32
    return %arg0, %c0_i32, %c0_i32_0 : i32, i32, i32
  }
}

</mosaic_0001>

<bundles_post_ra>
// kernel: tpu_custom_call.1
= control target key start
LH: loop header
LB: loop body
LE: loop exit
PB: predicated region body
PF: predicated region fallthrough
CT: control target
= control target key end

     0   :  { %s9676_s21 = smov 0   ;;  %s13845_s0 = inlined_call_operand.vmem [shape: f32[2,256,4], index: 0, kind: input, shape index: {}]   ;;  %s13846_s1 = inlined_call_operand.vmem [shape: f32[1,4], index: 1, kind: input, shape index: {}]   ;;  %s13847_s2 = inlined_call_operand.vmem [shape: f32[1,4], index: 2, kind: input, shape index: {}]   ;;  %s13848_s3 = inlined_call_operand.vmem [shape: f32[4,32], index: 3, kind: input, shape index: {}]   ;;  %s13849_s4 = inlined_call_operand.vmem [shape: f32[1,32], index: 4, kind: input, shape index: {}]   ;;  %s13850_s5 = inlined_call_operand.vmem [shape: f32[288,8], index: 5, kind: input, shape index: {}]   ;;  %s13851_s6 = inlined_call_operand.vmem [shape: f32[1,12], index: 6, kind: input, shape index: {}]   ;;  %s13852_s7 = inlined_call_operand.vmem [shape: f32[1,12], index: 7, kind: input, shape index: {}]   ;;  %s13853_s8 = inlined_call_operand.vmem [shape: f32[12,32], index: 8, kind: input, shape index: {}]   ;;  %s13854_s9 = inlined_call_operand.vmem [shape: f32[1,32], index: 9, kind: input, shape index: {}]   ;;  %s13855_s10 = inlined_call_operand.vmem [shape: f32[288,8], index: 10, kind: input, shape index: {}]   ;;  %s13856_s11 = inlined_call_operand.vmem [shape: f32[1,20], index: 11, kind: input, shape index: {}]   ;;  %s13857_s12 = inlined_call_operand.vmem [shape: f32[1,20], index: 12, kind: input, shape index: {}]   ;;  %s13858_s13 = inlined_call_operand.vmem [shape: f32[20,32], index: 13, kind: input, shape index: {}]   ;;  %s13859_s14 = inlined_call_operand.vmem [shape: f32[1,32], index: 14, kind: input, shape index: {}]   ;;  %s13860_s15 = inlined_call_operand.vmem [shape: f32[288,8], index: 15, kind: input, shape index: {}]   ;;  %s13861_s16 = inlined_call_operand.vmem [shape: f32[2,28,256], index: 16, kind: output, shape index: {}]  }
   0x1   :  { %13864 = sst [smem:[#allocation4_spill]] %s13845_s0 }
   0x2 LB: > { %s8707_s22 = sadd.s32 4294967295, %s9582_s21   ;;  %p8711_p0 = scmp.ge.s32.totalorder %s9582_s21, 1  ;;  %s9582_s21 = sphi %s9676_s21, %s26_s21  }
   0x3   : > { %p462_p1 = scmp.lt.s32.totalorder %s9582_s21, 3 }
   0x5   : > { %p463_p2 = pnand %p8711_p0, %p462_p1 }
   0x6   : > { %p512_p3 = scmp.lt.s32.totalorder (!%p463_p2), %s8707_s22, 1  ;;  %s13865_s30 = sld [smem:[#allocation4_spill]] (!%p463_p2) }
   0x7   : > { %466 = sbr.rel (%p463_p2) target bundleno = 2574 (0xa0e), region = 84  ;;  %s9585_s19 = smov (!%p463_p2), 64  }
   0x8   : > { %s9586_s20 = smov (!%p463_p2), 32   ;;  %s9587_s27 = smov (!%p463_p2), 96  }
   0x9   : > { %s9588_s28 = smov (!%p463_p2), 4  }
   0xc   : > { %v602_v0 = vld [vmem:[%s13848_s3] sm:$0xf]  ;;  %vm851_vm0 = vcmask 1043456   ;;  %s13868_s22 = smov (!%p512_p3, %s8707_s22), 1  ;;  %vm754_vm1 = vcmask 31744   ;;  %vm522_vm2 = vcmask 261120  }
   0xd   : > { %9134 = vmatprep.subr.msk.mxu0 %vm851_vm0, %v602_v0  ;;  %s8922_s25 = sshll.u32 %s13868_s22, 8  ;;  %v9695_v1 = vld [vmem:[%s13846_s1] ss:$0 sm:$0xff]  ;;  %vm525_vm3 = vcmask 254976   ;;  %vm531_vm4 = vcmask 253952   ;;  %vm1369_vm5 = vcmask 523520  }
   0xe   : > { %9135 = vmatpush3.msk.msra.mxu0 %vm851_vm0, %v602_v0  ;;  %s9700_s0 = scalar_lea.vmem %s13865_s30, %s8922_s25  ;;  %v9705_v2 = vld [vmem:[%s13847_s2] ss:$0 sm:$0xff]  ;;  %vm1562_vm6 = vcmask 785920   ;;  %vm1755_vm7 = vcmask 1048320   ;;  %vm3418_vm8 = vcmask 97280   ;;  %s9589_s30 = smov 12  }
   0xf   : > { %v568_v3 = vld [vmem:[%s9700_s0] sm:$0xff]  ;;  %v569_v4 = vld [vmem:[%s9700_s0 + $0x8] sm:$0xff]  ;;  %v570_v5 = vld [vmem:[%s9700_s0 + $0x10] sm:$0xff]  ;;  %vm6077_vm9 = vcmask 162816  }
  0x10   : > { %v646_v6 = vmul.f32 %v9695_v1, %v568_v3  ;;  %v647_v7 = vmul.f32 %v9695_v1, %v569_v4  ;;  %v648_v8 = vmul.f32 %v9695_v1, %v570_v5  ;;  %v571_v9 = vld [vmem:[%s9700_s0 + $0x18] sm:$0xff]  ;;  %v572_v10 = vld [vmem:[%s9700_s0 + $0x20] sm:$0xff]  ;;  %v573_v11 = vld [vmem:[%s9700_s0 + $0x28] sm:$0xff] }
  0x11   : > { %v649_v12 = vmul.f32 %v9695_v1, %v571_v9  ;;  %v650_v13 = vmul.f32 %v9695_v1, %v572_v10  ;;  %v574_v14 = vld [vmem:[%s9700_s0 + $0x30] sm:$0xff]  ;;  %v651_v19 = vmul.f32 %v9695_v1, %v573_v11  ;;  %v575_v25 = vld [vmem:[%s9700_s0 + $0x38] sm:$0xff]  ;;  %v576_v26 = vld [vmem:[%s9700_s0 + $0x40] sm:$0xff] }
  0x12   : > { %v684_v15 = vadd.f32 %v9705_v2, %v646_v6  ;;  %v685_v16 = vadd.f32 %v9705_v2, %v647_v7  ;;  %v686_v17 = vadd.f32 %v9705_v2, %v648_v8  ;;  %v652_v20 = vmul.f32 %v9695_v1, %v574_v14  ;;  %v577_v33 = vld [vmem:[%s9700_s0 + $0x48] sm:$0xff]  ;;  %v578_v34 = vld [vmem:[%s9700_s0 + $0x50] sm:$0xff]  ;;  %v579_v41 = vld [vmem:[%s9700_s0 + $0x58] sm:$0xff] }
  0x13   : > { %v687_v18 = vadd.f32 %v9705_v2, %v649_v12  ;;  %v688_v24 = vadd.f32 %v9705_v2, %v650_v13  ;;  %v689_v28 = vadd.f32 %v9705_v2, %v651_v19  ;;  %v653_v29 = vmul.f32 %v9695_v1, %v575_v25  ;;  %v580_v42 = vld [vmem:[%s9700_s0 + $0x60] sm:$0xff]  ;;  %v581_v49 = vld [vmem:[%s9700_s0 + $0x68] sm:$0xff]  ;;  %v582_v50 = vld [vmem:[%s9700_s0 + $0x70] sm:$0xff] }
  0x14   : > { %v716_v21 = vmax.f32 %v684_v15, 0.0  ;;  %v717_v22 = vmax.f32 %v685_v16, 0.0  ;;  %v718_v23 = vmax.f32 %v686_v17, 0.0  ;;  %v690_v31 = vadd.f32 %v9705_v2, %v652_v20  ;;  %v583_v57 = vld [vmem:[%s9700_s0 + $0x78] sm:$0xff]  ;;  %v584_v58 = vld [vmem:[%s9700_s0 + $0x80] sm:$0xff]  ;;  %v585_v3 = vld [vmem:[%s9700_s0 + $0x88] sm:$0xff] }
  0x15   : > { %v719_v27 = vmax.f32 %v687_v18, 0.0  ;;  %v720_v30 = vmax.f32 %v688_v24, 0.0  ;;  %v654_v32 = vmul.f32 %v9695_v1, %v576_v26  ;;  %v721_v35 = vmax.f32 %v689_v28, 0.0  ;;  %v586_v14 = vld [vmem:[%s9700_s0 + $0x90] sm:$0xff]  ;;  %v587_v16 = vld [vmem:[%s9700_s0 + $0x98] sm:$0xff]  ;;  %v588_v26 = vld [vmem:[%s9700_s0 + $0xa0] sm:$0xff] }
  0x16   : > { %9136 = vmatprep.mubr.msk.f32.mxu0 %vm754_vm1, %v716_v21  ;;  %v691_v36 = vadd.f32 %v9705_v2, %v653_v29  ;;  %v655_v37 = vmul.f32 %v9695_v1, %v577_v33  ;;  %v722_v38 = vmax.f32 %v690_v31, 0.0  ;;  %v656_v40 = vmul.f32 %v9695_v1, %v578_v34  ;;  %v589_v28 = vld [vmem:[%s9700_s0 + $0xa8] sm:$0xff]  ;;  %v590_v34 = vld [vmem:[%s9700_s0 + $0xb0] sm:$0xff] }
  0x17   : > { %9137 = vmatmul.mubr.msk.f32.vlgmr.msra.gmra.mxu0 %vm754_vm1, %v717_v22  ;;  %v692_v39 = vadd.f32 %v9705_v2, %v654_v32  ;;  %v657_v45 = vmul.f32 %v9695_v1, %v579_v41  ;;  %v658_v48 = vmul.f32 %v9695_v1, %v580_v42  ;;  %v659_v53 = vmul.f32 %v9695_v1, %v581_v49  ;;  %v592_v42 = vld [vmem:[%s9700_s0 + $0xc0] sm:$0xff] }
  0x18   : > { %9139 = vmatprep.mubr.msk.f32.mxu0 %vm754_vm1, %v718_v23  ;;  %v723_v43 = vmax.f32 %v691_v36, 0.0  ;;  %v693_v44 = vadd.f32 %v9705_v2, %v655_v37  ;;  %v694_v47 = vadd.f32 %v9705_v2, %v656_v40  ;;  %v660_v56 = vmul.f32 %v9695_v1, %v582_v50  ;;  %v591_v36 = vld [vmem:[%s9700_s0 + $0xb8] sm:$0xff]  ;;  %v594_v50 = vld [vmem:[%s9700_s0 + $0xd0] sm:$0xff] }
  0x19   : > { %v724_v46 = vmax.f32 %v692_v39, 0.0  ;;  %v695_v52 = vadd.f32 %v9705_v2, %v657_v45  ;;  %v696_v55 = vadd.f32 %v9705_v2, %v658_v48  ;;  %v697_v60 = vadd.f32 %v9705_v2, %v659_v53 }
  0x1a   : > { %v725_v51 = vmax.f32 %v693_v44, 0.0  ;;  %v726_v54 = vmax.f32 %v694_v47, 0.0  ;;  %v661_v61 = vmul.f32 %v9695_v1, %v583_v57  ;;  %v698_v63 = vadd.f32 %v9705_v2, %v660_v56  ;;  %v593_v44 = vld [vmem:[%s9700_s0 + $0xc8] sm:$0xff] }
  0x1b   : > { %9140 = vmatmul.mubr.msk.f32.gmra.mxu0 %vm754_vm1, %v719_v27  ;;  %v727_v59 = vmax.f32 %v695_v52, 0.0  ;;  %v728_v62 = vmax.f32 %v696_v55, 0.0  ;;  %v662_v0 = vmul.f32 %v9695_v1, %v584_v58  ;;  %v729_v4 = vmax.f32 %v697_v60, 0.0  ;;  %v595_v52 = vld [vmem:[%s9700_s0 + $0xd8] sm:$0xff]  ;;  %v617_v60 = vld [vmem:[%s13850_s5 + $0x68] sm:$0xff] }
  0x1c   : > { %9142 = vmatprep.mubr.msk.f32.mxu0 %vm754_vm1, %v720_v30  ;;  %v699_v5 = vadd.f32 %v9705_v2, %v661_v61  ;;  %v663_v6 = vmul.f32 %v9695_v1, %v585_v3  ;;  %v730_v7 = vmax.f32 %v698_v63, 0.0  ;;  %v13862_v13 = vmov 0.0   ;;  %v619_v58 = vld [vmem:[%s13850_s5 + $0x78] sm:$0xff]  ;;  %v616_v61 = vld [vmem:[%s13850_s5 + $0x60] sm:$0xff] }
  0x1d   : > { %v700_v8 = vadd.f32 %v9705_v2, %v662_v0  ;;  %523 = vst.msk [vmem:[#allocation2] sm:$0xff] %vm522_vm2, %v13862_v13  ;;  %524 = vst.msk [vmem:[#allocation2 + $0x8] sm:$0xff] %vm522_vm2, %v13862_v13  ;;  %2653 = vmatprep.subr.mxu0 %v13862_v13  ;;  %9458 = vmatprep.subr.mxu1 %v13862_v13  ;;  %v664_v15 = vmul.f32 %v9695_v1, %v586_v14  ;;  %v597_v0 = vld [vmem:[%s9700_s0 + $0xe8] sm:$0xff]  ;;  %v615_v3 = vld [vmem:[%s13850_s5 + $0x58] sm:$0xff] }
  0x1e   : > { %v731_v9 = vmax.f32 %v699_v5, 0.0  ;;  %v701_v10 = vadd.f32 %v9705_v2, %v663_v6  ;;  %528 = vst.msk [vmem:[#allocation2 + $0x198] sm:$0xff] %vm522_vm2, %v13862_v13  ;;  %529 = vst.msk [vmem:[#allocation2 + $0x1a0] sm:$0xff] %vm522_vm2, %v13862_v13  ;;  %v665_v17 = vmul.f32 %v9695_v1, %v587_v16  ;;  %v666_v27 = vmul.f32 %v9695_v1, %v588_v26  ;;  %v613_v14 = vld [vmem:[%s13850_s5 + $0x48] sm:$0xff]  ;;  %v607_v26 = vld [vmem:[%s13850_s5 + $0x18] sm:$0xff] }
  0x1f   : > { %9143 = vmatmul.mubr.msk.f32.gmra.mxu0 %vm754_vm1, %v721_v35  ;;  %v732_v11 = vmax.f32 %v700_v8, 0.0  ;;  %526 = vst.msk [vmem:[#allocation2 + $0x10] sm:$0x3] %vm525_vm3, %v13862_v13  ;;  %530 = vst.msk [vmem:[#allocation2 + $0x1a8] sm:$0x3] %vm525_vm3, %v13862_v13  ;;  %v702_v18 = vadd.f32 %v9705_v2, %v664_v15  ;;  %v667_v29 = vmul.f32 %v9695_v1, %v589_v28  ;;  %9490 = vmatpush1.msra.mxu1 %v619_v58  ;;  %v612_v15 = vld [vmem:[%s13850_s5 + $0x40] sm:$0xff] }
  0x20   : > { %9145 = vmatprep.mubr.msk.f32.mxu0 %vm754_vm1, %v722_v38  ;;  %v733_v12 = vmax.f32 %v701_v10, 0.0  ;;  %v703_v20 = vadd.f32 %v9705_v2, %v665_v17  ;;  %550 = vst.msk [vmem:[#allocation2 + $0x11] sm:$0x1] %vm531_vm4, %v13862_v13  ;;  %532 = vst.msk [vmem:[#allocation2] sm:$0x1] %vm531_vm4, %v13862_v13  ;;  %v704_v30 = vadd.f32 %v9705_v2, %v666_v27  ;;  %2654 = vmatpush1.msra.mxu0 %v619_v58  ;;  %v633_v58 = vld [vmem:[%s13850_s5 + $0xe8] sm:$0xff] }
  0x21   : > { %v734_v21 = vmax.f32 %v702_v18, 0.0  ;;  %533 = vst.msk [vmem:[#allocation2 + $0x18] sm:$0x1] %vm531_vm4, %v13862_v13  ;;  %534 = vst.msk [vmem:[#allocation2 + $0x30] sm:$0x1] %vm531_vm4, %v13862_v13  ;;  %v705_v31 = vadd.f32 %v9705_v2, %v667_v29  ;;  %v668_v35 = vmul.f32 %v9695_v1, %v590_v34  ;;  %v669_v37 = vmul.f32 %v9695_v1, %v591_v36  ;;  %v611_v18 = vld [vmem:[%s13850_s5 + $0x38] sm:$0xff] }
  0x22   : > { %535 = vst.msk [vmem:[#allocation2 + $0x48] sm:$0x1] %vm531_vm4, %v13862_v13  ;;  %536 = vst.msk [vmem:[#allocation2 + $0x60] sm:$0x1] %vm531_vm4, %v13862_v13  ;;  %v735_v22 = vmax.f32 %v703_v20, 0.0  ;;  %v736_v32 = vmax.f32 %v704_v30, 0.0  ;;  %v671_v45 = vmul.f32 %v9695_v1, %v593_v44  ;;  %v673_v53 = vmul.f32 %v9695_v1, %v595_v52  ;;  %2655 = vmatprep.subr.mxu0 %v13862_v13 }
  0x23   : > { %9146 = vmatmul.mubr.msk.f32.gmra.mxu0 %vm754_vm1, %v723_v43  ;;  %537 = vst.msk [vmem:[#allocation2 + $0x78] sm:$0x1] %vm531_vm4, %v13862_v13  ;;  %538 = vst.msk [vmem:[#allocation2 + $0x90] sm:$0x1] %vm531_vm4, %v13862_v13  ;;  %v737_v33 = vmax.f32 %v705_v31, 0.0  ;;  %v706_v38 = vadd.f32 %v9705_v2, %v668_v35  ;;  %v707_v39 = vadd.f32 %v9705_v2, %v669_v37  ;;  %9459 = vmatprep.subr.mxu1 %v13862_v13  ;;  %v606_v31 = vld [vmem:[%s13850_s5 + $0x10] sm:$0xff] }
  0x24   : > { %9148 = vmatprep.mubr.msk.f32.mxu0 %vm754_vm1, %v724_v46  ;;  %v1402_v19 = vld [vmem:[#allocation2 + $0x2] sm:$0xff]  ;;  %539 = vst.msk [vmem:[#allocation2 + $0xa8] sm:$0x1] %vm531_vm4, %v13862_v13  ;;  %540 = vst.msk [vmem:[#allocation2 + $0xc0] sm:$0x1] %vm531_vm4, %v13862_v13  ;;  %v670_v43 = vmul.f32 %v9695_v1, %v592_v42  ;;  %v709_v47 = vadd.f32 %v9705_v2, %v671_v45  ;;  %v711_v55 = vadd.f32 %v9705_v2, %v673_v53  ;;  %v599_v42 = vld [vmem:[%s9700_s0 + $0xf8] sm:$0xff] }
  0x25   : > { %1466 = vrot.lane.b32.xlu1 %v1402_v19, %s9585_s19  ;;  %541 = vst.msk [vmem:[#allocation2 + $0xd8] sm:$0x1] %vm531_vm4, %v13862_v13  ;;  %542 = vst.msk [vmem:[#allocation2 + $0xf0] sm:$0x1] %vm531_vm4, %v13862_v13  ;;  %v1209_v24 = vld [vmem:[#allocation2 + $0x1] sm:$0xff]  ;;  %v738_v40 = vmax.f32 %v706_v38, 0.0  ;;  %v675_v5 = vmul.f32 %v9695_v1, %v597_v0 }
  0x26   : > { %543 = vst.msk [vmem:[#allocation2 + $0x108] sm:$0x1] %vm531_vm4, %v13862_v13  ;;  %544 = vst.msk [vmem:[#allocation2 + $0x120] sm:$0x1] %vm531_vm4, %v13862_v13  ;;  %v1210_v23 = vld [vmem:[#allocation2 + $0x9] sm:$0xff]  ;;  %1273 = vrot.lane.b32.xlu0 %v1209_v24, %s9586_s20  ;;  %v739_v41 = vmax.f32 %v707_v39, 0.0  ;;  %v708_v46 = vadd.f32 %v9705_v2, %v670_v43 }
  0x27   : > { %9149 = vmatmul.mubr.msk.f32.gmra.mxu0 %vm754_vm1, %v725_v51  ;;  %545 = vst.msk [vmem:[#allocation2 + $0x138] sm:$0x1] %vm531_vm4, %v13862_v13  ;;  %546 = vst.msk [vmem:[#allocation2 + $0x150] sm:$0x1] %vm531_vm4, %v13862_v13  ;;  %v1403_v25 = vld [vmem:[#allocation2 + $0xa] sm:$0xff]  ;;  %v741_v49 = vmax.f32 %v709_v47, 0.0  ;;  %v672_v51 = vmul.f32 %v9695_v1, %v594_v50  ;;  %v713_v8 = vadd.f32 %v9705_v2, %v675_v5 }
  0x28   : > { %9151 = vmatprep.mubr.msk.f32.mxu0 %vm754_vm1, %v726_v54  ;;  %547 = vst.msk [vmem:[#allocation2 + $0x168] sm:$0x1] %vm531_vm4, %v13862_v13  ;;  %548 = vst.msk [vmem:[#allocation2 + $0x180] sm:$0x1] %vm531_vm4, %v13862_v13  ;;  %v740_v48 = vmax.f32 %v708_v46, 0.0  ;;  %v743_v57 = vmax.f32 %v711_v55, 0.0  ;;  %v677_v46 = vmul.f32 %v9695_v1, %v599_v42 }
  0x29   : > { %549 = vst.msk [vmem:[#allocation2 + $0x198] sm:$0x1] %vm531_vm4, %v13862_v13  ;;  %551 = vst.msk [vmem:[#allocation2 + $0x29] sm:$0x1] %vm531_vm4, %v13862_v13  ;;  %1275 = vrot.lane.b32.xlu1 %v1210_v23, %s9586_s20  ;;  %v710_v54 = vadd.f32 %v9705_v2, %v672_v51  ;;  %v745_v10 = vmax.f32 %v713_v8, 0.0  ;;  %v610_v19 = vld [vmem:[%s13850_s5 + $0x30] sm:$0xff] }
  0x2a   : > { %552 = vst.msk [vmem:[#allocation2 + $0x41] sm:$0x1] %vm531_vm4, %v13862_v13  ;;  %553 = vst.msk [vmem:[#allocation2 + $0x59] sm:$0x1] %vm531_vm4, %v13862_v13  ;;  %v608_v24 = vld [vmem:[%s13850_s5 + $0x20] sm:$0xff]  ;;  %v605_v34 = vld [vmem:[%s13850_s5 + $0x8] sm:$0xff]  ;;  %v715_v51 = vadd.f32 %v9705_v2, %v677_v46 }
  0x2b   : > { %9152 = vmatmul.mubr.msk.f32.gmra.mxu0 %vm754_vm1, %v727_v59  ;;  %554 = vst.msk [vmem:[#allocation2 + $0x71] sm:$0x1] %vm531_vm4, %v13862_v13  ;;  %555 = vst.msk [vmem:[#allocation2 + $0x89] sm:$0x1] %vm531_vm4, %v13862_v13  ;;  %v742_v56 = vmax.f32 %v710_v54, 0.0  ;;  %v618_v59 = vld [vmem:[%s13850_s5 + $0x70] sm:$0xff] }
  0x2c   : > { %9154 = vmatprep.mubr.msk.f32.mxu0 %vm754_vm1, %v728_v62  ;;  %556 = vst.msk [vmem:[#allocation2 + $0xa1] sm:$0x1] %vm531_vm4, %v13862_v13  ;;  %557 = vst.msk [vmem:[#allocation2 + $0xb9] sm:$0x1] %vm531_vm4, %v13862_v13  ;;  %2656 = vmatpush1.msra.mxu0 %v618_v59  ;;  %v596_v62 = vld [vmem:[%s9700_s0 + $0xe0] sm:$0xff]  ;;  %v598_v38 = vld [vmem:[%s9700_s0 + $0xf0] sm:$0xff] }
  0x2d   : > { %558 = vst.msk [vmem:[#allocation2 + $0xd1] sm:$0x1] %vm531_vm4, %v13862_v13  ;;  %559 = vst.msk [vmem:[#allocation2 + $0xe9] sm:$0x1] %vm531_vm4, %v13862_v13  ;;  %1468 = vrot.lane.b32.xlu1 %v1403_v25, %s9585_s19  ;;  %9491 = vmatpush1.msra.mxu1 %v618_v59  ;;  %v674_v63 = vmul.f32 %v9695_v1, %v596_v62  ;;  %v635_v45 = vld [vmem:[%s13850_s5 + $0xf8] sm:$0xff]  ;;  %v634_v55 = vld [vmem:[%s13850_s5 + $0xf0] sm:$0xff] }
  0x2e   : > { %560 = vst.msk [vmem:[#allocation2 + $0x101] sm:$0x1] %vm531_vm4, %v13862_v13  ;;  %561 = vst.msk [vmem:[#allocation2 + $0x119] sm:$0x1] %vm531_vm4, %v13862_v13  ;;  %2657 = vmatprep.subr.mxu0 %v13862_v13  ;;  %9460 = vmatprep.subr.mxu1 %v13862_v13 }
  0x2f   : > { %9155 = vmatmul.mubr.msk.f32.gmra.mxu0 %vm754_vm1, %v729_v4  ;;  %562 = vst.msk [vmem:[#allocation2 + $0x131] sm:$0x1] %vm531_vm4, %v13862_v13  ;;  %563 = vst.msk [vmem:[#allocation2 + $0x149] sm:$0x1] %vm531_vm4, %v13862_v13  ;;  %9492 = vmatpush1.msra.mxu1 %v617_v60  ;;  %v614_v4 = vld [vmem:[%s13850_s5 + $0x50] sm:$0xff]  ;;  %v712_v6 = vadd.f32 %v9705_v2, %v674_v63 }
  0x30   : > { %9157 = vmatprep.mubr.msk.f32.mxu0 %vm754_vm1, %v730_v7  ;;  %564 = vst.msk [vmem:[#allocation2 + $0x161] sm:$0x1] %vm531_vm4, %v13862_v13  ;;  %565 = vst.msk [vmem:[#allocation2 + $0x179] sm:$0x1] %vm531_vm4, %v13862_v13  ;;  %2658 = vmatpush1.msra.mxu0 %v617_v60 }
  0x31   : > { %566 = vst.msk [vmem:[#allocation2 + $0x191] sm:$0x1] %vm531_vm4, %v13862_v13  ;;  %567 = vst.msk [vmem:[#allocation2 + $0x1a9] sm:$0x1] %vm531_vm4, %v13862_v13  ;;  %2659 = vmatprep.subr.mxu0 %v13862_v13  ;;  %9461 = vmatprep.subr.mxu1 %v13862_v13 }
  0x32   : > { %2660 = vmatpush1.msra.mxu0 %v616_v61  ;;  %9493 = vmatpush1.msra.mxu1 %v616_v61 }
  0x33   : > { %9158 = vmatmul.mubr.msk.f32.gmra.mxu0 %vm754_vm1, %v731_v9  ;;  %2661 = vmatprep.subr.mxu0 %v13862_v13  ;;  %v744_v9 = vmax.f32 %v712_v6, 0.0 }
  0x34   : > { %9160 = vmatprep.mubr.msk.f32.mxu0 %vm754_vm1, %v732_v11  ;;  %9462 = vmatprep.subr.mxu1 %v13862_v13  ;;  %v1146_v11 = vld [vmem:[#allocation2 + $0x8] sm:$0xff] }
  0x35   : > { %2662 = vmatpush1.msra.mxu0 %v615_v3  ;;  %9494 = vmatpush1.msra.mxu1 %v615_v3  ;;  %1178 = vst.msk [vmem:[#allocation3 + $0x18] sm:$0xff] %vm522_vm2, %v1146_v11 }
  0x36   : > { %2663 = vmatprep.subr.mxu0 %v13862_v13  ;;  %9463 = vmatprep.subr.mxu1 %v13862_v13 }
  0x37   : > { %9161 = vmatmul.mubr.msk.f32.gmra.mxu0 %vm754_vm1, %v733_v12  ;;  %9495 = vmatpush1.msra.mxu1 %v614_v4  ;;  %v1145_v12 = vld [vmem:[#allocation2] sm:$0xff] }
  0x38   : > { %9163 = vmatprep.mubr.msk.f32.mxu0 %vm754_vm1, %v734_v21  ;;  %2664 = vmatpush1.msra.mxu0 %v614_v4  ;;  %1177 = vst.msk [vmem:[#allocation3] sm:$0xff] %vm522_vm2, %v1145_v12  ;;  %v609_v21 = vld [vmem:[%s13850_s5 + $0x28] sm:$0xff]  ;;  %v632_v4 = vld [vmem:[%s13850_s5 + $0xe0] sm:$0xff] }
  0x39   : > { %2665 = vmatprep.subr.mxu0 %v13862_v13  ;;  %9464 = vmatprep.subr.mxu1 %v13862_v13 }
  0x3a   : > { %2666 = vmatpush1.msra.mxu0 %v613_v14  ;;  %9496 = vmatpush1.msra.mxu1 %v613_v14 }
  0x3b   : > { %9164 = vmatmul.mubr.msk.f32.gmra.mxu0 %vm754_vm1, %v735_v22  ;;  %2667 = vmatprep.subr.mxu0 %v13862_v13  ;;  %v9976_v22 = vld [vmem:[%s13849_s4] ss:$0 sm:$0xff] }
  0x3c   : > { %9166 = vmatprep.mubr.msk.f32.mxu0 %vm754_vm1, %v736_v32  ;;  %2668 = vmatpush1.msra.mxu0 %v612_v15 }
  0x3d   : > { %2669 = vmatprep.subr.mxu0 %v13862_v13  ;;  %9465 = vmatprep.subr.mxu1 %v13862_v13 }
  0x3e   : > { %2670 = vmatpush1.msra.mxu0 %v611_v18  ;;  %9497 = vmatpush1.msra.mxu1 %v612_v15 }
  0x3f   : > { %9167 = vmatmul.mubr.msk.f32.gmra.mxu0 %vm754_vm1, %v737_v33  ;;  %2671 = vmatprep.subr.mxu0 %v13862_v13 }
  0x40   : > { %9169 = vmatprep.mubr.msk.f32.mxu0 %vm754_vm1, %v738_v40  ;;  %9466 = vmatprep.subr.mxu1 %v13862_v13  ;;  %v604_v40 = vld [vmem:[%s13850_s5] sm:$0xff] }
  0x41   : > { %2672 = vmatpush1.msra.mxu0 %v610_v19  ;;  %9498 = vmatpush1.msra.mxu1 %v611_v18 }
  0x42   : > { %2673 = vmatprep.subr.mxu0 %v13862_v13  ;;  %9467 = vmatprep.subr.mxu1 %v13862_v13 }
  0x43   : > { %9170 = vmatmul.mubr.msk.f32.gmra.mxu0 %vm754_vm1, %v739_v41  ;;  %9499 = vmatpush1.msra.mxu1 %v610_v19  ;;  %v676_v41 = vmul.f32 %v9695_v1, %v598_v38 }
  0x44   : > { %9172 = vmatprep.mubr.msk.f32.mxu0 %vm754_vm1, %v740_v48  ;;  %2674 = vmatpush1.msra.mxu0 %v609_v21 }
  0x45   : > { %2675 = vmatprep.subr.mxu0 %v13862_v13  ;;  %9468 = vmatprep.subr.mxu1 %v13862_v13  ;;  %v714_v48 = vadd.f32 %v9705_v2, %v676_v41 }
  0x46   : > { %9500 = vmatpush1.msra.mxu1 %v609_v21  ;;  %2676 = vmatpush1.msra.mxu0 %v608_v24  ;;  %v630_v21 = vld [vmem:[%s13850_s5 + $0xd0] sm:$0xff] }
  0x47   : > { %9173 = vmatmul.mubr.msk.f32.gmra.mxu0 %vm754_vm1, %v741_v49  ;;  %9469 = vmatprep.subr.mxu1 %v13862_v13  ;;  %v746_v54 = vmax.f32 %v714_v48, 0.0 }
  0x48   : > { %9175 = vmatprep.mubr.msk.f32.mxu0 %vm754_vm1, %v742_v56  ;;  %2677 = vmatprep.subr.mxu0 %v13862_v13 }
  0x49   : > { %9501 = vmatpush1.msra.mxu1 %v608_v24  ;;  %2678 = vmatpush1.msra.mxu0 %v607_v26 }
  0x4a   : > { %9470 = vmatprep.subr.mxu1 %v13862_v13  ;;  %2679 = vmatprep.subr.mxu0 %v13862_v13 }
  0x4b   : > { %9176 = vmatmul.mubr.msk.f32.gmra.mxu0 %vm754_vm1, %v743_v57  ;;  %9502 = vmatpush1.msra.mxu1 %v607_v26  ;;  %v747_v57 = vmax.f32 %v715_v51, 0.0 }
  0x4c   : > { %9178 = vmatprep.mubr.msk.f32.mxu0 %vm754_vm1, %v744_v9  ;;  %2680 = vmatpush1.msra.mxu0 %v606_v31 }
  0x4d   : > { %9471 = vmatprep.subr.mxu1 %v13862_v13  ;;  %2681 = vmatprep.subr.mxu0 %v13862_v13 }
  0x4e   : > { %9503 = vmatpush1.msra.mxu1 %v606_v31  ;;  %2682 = vmatpush1.msra.mxu0 %v605_v34  ;;  %v629_v31 = vld [vmem:[%s13850_s5 + $0xc8] sm:$0xff] }
  0x4f   : > { %9179 = vmatmul.mubr.msk.f32.gmra.mxu0 %vm754_vm1, %v745_v10  ;;  %9472 = vmatprep.subr.mxu1 %v13862_v13 }
  0x50   : > { %2683 = vmatprep.subr.mxu0 %v13862_v13  ;;  %9504 = vmatpush1.msra.mxu1 %v605_v34 }
  0x51   : > { %2684 = vmatpush1.msra.mxu0 %v604_v40  ;;  %9473 = vmatprep.subr.mxu1 %v13862_v13 }
  0x52   : > { %2685 = vmatprep.subr.mxu0 %v13862_v13  ;;  %9505 = vmatpush1.msra.mxu1 %v604_v40  ;;  %v628_v40 = vld [vmem:[%s13850_s5 + $0xc0] sm:$0xff] }
  0x53   : > { %2686 = vmatpush2.msra.mxu0 %v635_v45  ;;  %9474 = vmatprep.subr.mxu1 %v13862_v13 }
  0x54   : > { %2687 = vmatprep.subr.mxu0 %v13862_v13  ;;  %9506 = vmatpush2.msra.mxu1 %v635_v45 }
  0x55   : > { %9181 = vmatprep.mubr.msk.f32.mxu0 %vm754_vm1, %v746_v54  ;;  %2688 = vmatpush2.msra.mxu0 %v634_v55 }
  0x56   : > { %9182 = vmatmul.mubr.msk.f32.gmra.mxu0 %vm754_vm1, %v747_v57  ;;  %2689 = vmatprep.subr.mxu0 %v13862_v13 }
  0x57   : > { %2690 = vmatpush2.msra.mxu0 %v633_v58  ;;  %9475 = vmatprep.subr.mxu1 %v13862_v13 }
  0x58   : > { %2691 = vmatprep.subr.mxu0 %v13862_v13  ;;  %9507 = vmatpush2.msra.mxu1 %v634_v55 }
  0x59   : > { %2692 = vmatpush2.msra.mxu0 %v632_v4  ;;  %9476 = vmatprep.subr.mxu1 %v13862_v13 }
  0x5a   : > { %2693 = vmatprep.subr.mxu0 %v13862_v13  ;;  %9508 = vmatpush2.msra.mxu1 %v633_v58 }
  0x5b   : > { %9477 = vmatprep.subr.mxu1 %v13862_v13 }
  0x5c   : > { %9509 = vmatpush2.msra.mxu1 %v632_v4 }
  0x5d   : > { %9478 = vmatprep.subr.mxu1 %v13862_v13 }
  0x97   : > { %v1467_v7 = vpop.permute.xlu1 %1466 }
  0x98   : > { %v1274_v17 = vpop.permute.xlu0 %1273 }
  0x99   : > { %1370 = vst.msk [vmem:[#allocation3] sm:$0xff] %vm1369_vm5, %v1274_v17 }
  0x9a   : > { %1563 = vst.msk [vmem:[#allocation3] sm:$0xff] %vm1562_vm6, %v1467_v7 }
  0x9b   : > { %v1276_v16 = vpop.permute.xlu1 %1275 }
  0x9c   : > { %1371 = vst.msk [vmem:[#allocation3 + $0x18] sm:$0xff] %vm1369_vm5, %v1276_v16  ;;  %v631_v16 = vld [vmem:[%s13850_s5 + $0xd8] sm:$0xff] }
  0x9d   : > { %2694 = vmatpush2.msra.mxu0 %v631_v16  ;;  %9510 = vmatpush2.msra.mxu1 %v631_v16  ;;  %v620_v16 = vld [vmem:[%s13850_s5 + $0x80] sm:$0xff] }
  0x9e   : > { %2695 = vmatprep.subr.mxu0 %v13862_v13  ;;  %9479 = vmatprep.subr.mxu1 %v13862_v13 }
  0x9f   : > { %v1469_v20 = vpop.permute.xlu1 %1468  ;;  %2696 = vmatpush2.msra.mxu0 %v630_v21  ;;  %9511 = vmatpush2.msra.mxu1 %v630_v21 }
  0xa0   : > { %1564 = vst.msk [vmem:[#allocation3 + $0x18] sm:$0xff] %vm1562_vm6, %v1469_v20  ;;  %2697 = vmatprep.subr.mxu0 %v13862_v13  ;;  %9480 = vmatprep.subr.mxu1 %v13862_v13 }
  0xa1   : > { %2698 = vmatpush2.msra.mxu0 %v629_v31  ;;  %9512 = vmatpush2.msra.mxu1 %v629_v31 }
  0xa2   : > { %2699 = vmatprep.subr.mxu0 %v13862_v13  ;;  %9481 = vmatprep.subr.mxu1 %v13862_v13 }
  0xa3   : > { %2700 = vmatpush2.msra.mxu0 %v628_v40  ;;  %9513 = vmatpush2.msra.mxu1 %v628_v40 }
  0xa4   : > { %2701 = vmatprep.subr.mxu0 %v13862_v13  ;;  %9482 = vmatprep.subr.mxu1 %v13862_v13 }
  0xd7   : > { %v9138_v23 = vpop.f32.mrf.mxu0 }
  0xd8   : > { %v927_v25 = vadd.f32 %v9138_v23, %v9976_v22 }
  0xd9   : > { %v921_v27 = vpop.f32.mrf.mxu0 }
  0xda   : > { %v1081_v28 = vmax.f32 %v927_v25, 0.0  ;;  %v922_v29 = vadd.f32 %v9976_v22, %v921_v27 }
  0xdb   : > { %v9141_v30 = vpop.f32.mrf.mxu0 }
  0xdc   : > { %1114 = vst.msk [vmem:[#allocation2 + $0x21] sm:$0xff] %vm522_vm2, %v1081_v28  ;;  %1789 = vst.msk [vmem:[#allocation3 + $0x20] sm:$0xff] %vm522_vm2, %v1081_v28  ;;  %v1080_v32 = vmax.f32 %v922_v29, 0.0  ;;  %v937_v33 = vadd.f32 %v9141_v30, %v9976_v22 }
  0xdd   : > { %v931_v35 = vpop.f32.mrf.mxu0 }
  0xde   : > { %1113 = vst.msk [vmem:[#allocation2 + $0x19] sm:$0xff] %vm522_vm2, %v1080_v32  ;;  %1788 = vst.msk [vmem:[#allocation3 + $0x8] sm:$0xff] %vm522_vm2, %v1080_v32  ;;  %v1083_v36 = vmax.f32 %v937_v33, 0.0  ;;  %v932_v37 = vadd.f32 %v9976_v22, %v931_v35 }
  0xdf   : > { %v9144_v39 = vpop.f32.mrf.mxu0 }
  0xe0   : > { %1116 = vst.msk [vmem:[#allocation2 + $0x39] sm:$0xff] %vm522_vm2, %v1083_v36  ;;  %1791 = vst.msk [vmem:[#allocation3 + $0x50] sm:$0xff] %vm522_vm2, %v1083_v36  ;;  %v1082_v43 = vmax.f32 %v932_v37, 0.0  ;;  %v947_v44 = vadd.f32 %v9144_v39, %v9976_v22 }
  0xe1   : > { %v941_v47 = vpop.f32.mrf.mxu0 }
  0xe2   : > { %1115 = vst.msk [vmem:[#allocation2 + $0x31] sm:$0xff] %vm522_vm2, %v1082_v43  ;;  %1790 = vst.msk [vmem:[#allocation3 + $0x38] sm:$0xff] %vm522_vm2, %v1082_v43  ;;  %v1085_v49 = vmax.f32 %v947_v44, 0.0  ;;  %v942_v50 = vadd.f32 %v9976_v22, %v941_v47  ;;  %v627_v47 = vld [vmem:[%s13850_s5 + $0xb8] sm:$0xff] }
  0xe3   : > { %v1821_v1 = vld [vmem:[#allocation2 + $0x22] sm:$0xff]  ;;  %v9147_v53 = vpop.f32.mrf.mxu0  ;;  %2702 = vmatpush2.msra.mxu0 %v627_v47  ;;  %9514 = vmatpush2.msra.mxu1 %v627_v47 }
  0xe4   : > { %v1212_v52 = vld [vmem:[#allocation2 + $0x21] sm:$0xff]  ;;  %1886 = vrot.lane.b32.xlu0 %v1821_v1, %s9586_s20  ;;  %1118 = vst.msk [vmem:[#allocation2 + $0x51] sm:$0xff] %vm522_vm2, %v1085_v49  ;;  %1793 = vst.msk [vmem:[#allocation3 + $0x80] sm:$0xff] %vm522_vm2, %v1085_v49  ;;  %v1084_v2 = vmax.f32 %v942_v50, 0.0  ;;  %v957_v56 = vadd.f32 %v9147_v53, %v9976_v22  ;;  %v626_v53 = vld [vmem:[%s13850_s5 + $0xb0] sm:$0xff]  ;;  %2703 = vmatprep.subr.mxu0 %v13862_v13 }
  0xe5   : > { %1279 = vrot.lane.b32.xlu1 %v1212_v52, %s9586_s20  ;;  %v1595_v59 = vld [vmem:[#allocation2 + $0x18] sm:$0xff]  ;;  %v10041_v60 = vld [vmem:[#allocation2 + $0x20] sm:$0xff]  ;;  %v951_v61 = vpop.f32.mrf.mxu0  ;;  %2704 = vmatpush2.msra.mxu0 %v626_v53 }
  0xe6   : > { %1117 = vst.msk [vmem:[#allocation2 + $0x49] sm:$0xff] %vm522_vm2, %v1084_v2  ;;  %1792 = vst.msk [vmem:[#allocation3 + $0x68] sm:$0xff] %vm522_vm2, %v1084_v2  ;;  %v1087_v62 = vmax.f32 %v957_v56, 0.0  ;;  %v952_v63 = vadd.f32 %v9976_v22, %v951_v61  ;;  %v10052_v0 = vld [vmem:[#allocation2 + $0x1a] sm:$0xff]  ;;  %v625_v56 = vld [vmem:[%s13850_s5 + $0xa8] sm:$0xff]  ;;  %2705 = vmatprep.subr.mxu0 %v13862_v13  ;;  %9483 = vmatprep.subr.mxu1 %v13862_v13 }
  0xe7   : > { %1180 = vst.msk [vmem:[#allocation3 + $0x48] sm:$0xff] %vm522_vm2, %v10041_v60  ;;  %1179 = vst.msk [vmem:[#allocation3 + $0x30] sm:$0xff] %vm522_vm2, %v1595_v59  ;;  %v9150_v3 = vpop.f32.mrf.mxu0  ;;  %v2398_v7 = vld [vmem:[#allocation2 + $0x3a] sm:$0xff]  ;;  %2706 = vmatpush2.msra.mxu0 %v625_v56  ;;  %9515 = vmatpush2.msra.mxu1 %v626_v53 }
  0xe8   : > { %1884 = vrot.lane.b32.xlu0 %v10052_v0, %s9586_s20  ;;  %1120 = vst.msk [vmem:[#allocation2 + $0x69] sm:$0xff] %vm522_vm2, %v1087_v62  ;;  %1795 = vst.msk [vmem:[#allocation3 + $0xb0] sm:$0xff] %vm522_vm2, %v1087_v62  ;;  %v1086_v5 = vmax.f32 %v952_v63, 0.0  ;;  %v967_v6 = vadd.f32 %v9150_v3, %v9976_v22  ;;  %v10066_v9 = vld [vmem:[#allocation2 + $0x39] sm:$0xff]  ;;  %2707 = vmatprep.subr.mxu0 %v13862_v13 }
  0xe9   : > { %1472 = vrot.lane.b32.xlu1 %v1821_v1, %s9585_s19  ;;  %v10064_v8 = vld [vmem:[#allocation2 + $0x32] sm:$0xff]  ;;  %v961_v11 = vpop.f32.mrf.mxu0  ;;  %2430 = vst.msk [vmem:[#allocation3 + $0x28] sm:$0xff] %vm522_vm2, %v2398_v7  ;;  %v10113_v29 = vld [vmem:[#allocation2 + $0x3a] sm:$0xff]  ;;  %9484 = vmatprep.subr.mxu1 %v13862_v13 }
  0xea   : > { %v10068_v10 = vld [vmem:[#allocation2 + $0x38] sm:$0xff]  ;;  %2429 = vst.msk [vmem:[#allocation3 + $0x10] sm:$0xff] %vm522_vm2, %v10064_v8  ;;  %v10074_v12 = vld [vmem:[#allocation2 + $0x30] sm:$0xff]  ;;  %1119 = vst.msk [vmem:[#allocation2 + $0x61] sm:$0xff] %vm522_vm2, %v1086_v5  ;;  %v1089_v14 = vmax.f32 %v967_v6, 0.0  ;;  %v962_v15 = vadd.f32 %v9976_v22, %v961_v11  ;;  %9516 = vmatpush2.msra.mxu1 %v625_v56 }
  0xeb   : > { %1794 = vst.msk [vmem:[#allocation3 + $0x98] sm:$0xff] %vm522_vm2, %v1086_v5  ;;  %1182 = vst.msk [vmem:[#allocation3 + $0x78] sm:$0xff] %vm522_vm2, %v10068_v10  ;;  %v9153_v17 = vpop.f32.mrf.mxu0  ;;  %v2400_v18 = vld [vmem:[#allocation2 + $0x52] sm:$0xff]  ;;  %9485 = vmatprep.subr.mxu1 %v13862_v13  ;;  %v621_v11 = vld [vmem:[%s13850_s5 + $0x88] sm:$0xff] }
  0xec   : > { %1181 = vst.msk [vmem:[#allocation3 + $0x60] sm:$0xff] %vm522_vm2, %v10074_v12  ;;  %2271 = vrot.lane.b32.xlu0 %v10066_v9, %s9587_s27  ;;  %1122 = vst.msk [vmem:[#allocation2 + $0x81] sm:$0xff] %vm522_vm2, %v1089_v14  ;;  %v1088_v19 = vmax.f32 %v962_v15, 0.0  ;;  %v977_v20 = vadd.f32 %v9153_v17, %v9976_v22  ;;  %v10143_v42 = vld [vmem:[#allocation2 + $0x31] sm:$0xff]  ;;  %v1211_v43 = vld [vmem:[#allocation2 + $0x19] sm:$0xff] }
  0xed   : > { %1659 = vrot.lane.b32.xlu1 %v1595_v59, %s9587_s27  ;;  %1797 = vst.msk [vmem:[#allocation3 + $0xe0] sm:$0xff] %vm522_vm2, %v1089_v14  ;;  %2432 = vst.msk [vmem:[#allocation3 + $0x58] sm:$0xff] %vm522_vm2, %v2400_v18  ;;  %v10098_v23 = vld [vmem:[#allocation2 + $0x4a] sm:$0xff]  ;;  %v971_v25 = vpop.f32.mrf.mxu0  ;;  %v624_v59 = vld [vmem:[%s13850_s5 + $0xa0] sm:$0xff] }
  0xee   : > { %v10100_v24 = vld [vmem:[#allocation2 + $0x48] sm:$0xff]  ;;  %2431 = vst.msk [vmem:[#allocation3 + $0x40] sm:$0xff] %vm522_vm2, %v10098_v23  ;;  %v10105_v26 = vld [vmem:[#allocation2 + $0x50] sm:$0xff]  ;;  %1121 = vst.msk [vmem:[#allocation2 + $0x79] sm:$0xff] %vm522_vm2, %v1088_v19  ;;  %v1091_v27 = vmax.f32 %v977_v20, 0.0  ;;  %v972_v28 = vadd.f32 %v9976_v22, %v971_v25  ;;  %2708 = vmatpush2.msra.mxu0 %v624_v59  ;;  %9517 = vmatpush2.msra.mxu1 %v624_v59 }
  0xef   : > { %1796 = vst.msk [vmem:[#allocation3 + $0xc8] sm:$0xff] %vm522_vm2, %v1088_v19  ;;  %1183 = vst.msk [vmem:[#allocation3 + $0x90] sm:$0xff] %vm522_vm2, %v10100_v24  ;;  %v9156_v30 = vpop.f32.mrf.mxu0  ;;  %v2402_v34 = vld [vmem:[#allocation2 + $0x6a] sm:$0xff]  ;;  %2709 = vmatprep.subr.mxu0 %v13862_v13  ;;  %9486 = vmatprep.subr.mxu1 %v13862_v13 }
  0xf0   : > { %1184 = vst.msk [vmem:[#allocation3 + $0xa8] sm:$0xff] %vm522_vm2, %v10105_v26  ;;  %1890 = vrot.lane.b32.xlu0 %v10113_v29, %s9586_s20  ;;  %1124 = vst.msk [vmem:[#allocation2 + $0x99] sm:$0xff] %vm522_vm2, %v1091_v27  ;;  %v1090_v32 = vmax.f32 %v972_v28, 0.0  ;;  %v987_v33 = vadd.f32 %v9156_v30, %v9976_v22  ;;  %v10204_v61 = vld [vmem:[#allocation2 + $0x51] sm:$0xff]  ;;  %v2207_v19 = vld [vmem:[#allocation2 + $0x49] sm:$0xff] }
  0xf1   : > { %1661 = vrot.lane.b32.xlu1 %v10041_v60, %s9587_s27  ;;  %1799 = vst.msk [vmem:[#allocation3 + $0x110] sm:$0xff] %vm522_vm2, %v1091_v27  ;;  %v10128_v35 = vld [vmem:[#allocation2 + $0x62] sm:$0xff]  ;;  %v981_v36 = vpop.f32.mrf.mxu0  ;;  %2434 = vst.msk [vmem:[#allocation3 + $0x88] sm:$0xff] %vm522_vm2, %v2402_v34  ;;  %v622_v7 = vld [vmem:[%s13850_s5 + $0x90] sm:$0xff] }
  0xf2   : > { %2433 = vst.msk [vmem:[#allocation3 + $0x70] sm:$0xff] %vm522_vm2, %v10128_v35  ;;  %v10134_v37 = vld [vmem:[#allocation2 + $0x68] sm:$0xff]  ;;  %1123 = vst.msk [vmem:[#allocation2 + $0x91] sm:$0xff] %vm522_vm2, %v1090_v32  ;;  %v1093_v38 = vmax.f32 %v987_v33, 0.0  ;;  %v982_v39 = vadd.f32 %v9976_v22, %v981_v36  ;;  %v1153_v41 = vld [vmem:[#allocation2 + $0x60] sm:$0xff] }
  0xf3   : > { %1798 = vst.msk [vmem:[#allocation3 + $0xf8] sm:$0xff] %vm522_vm2, %v1090_v32  ;;  %v9159_v44 = vpop.f32.mrf.mxu0  ;;  %1186 = vst.msk [vmem:[#allocation3 + $0xd8] sm:$0xff] %vm522_vm2, %v10134_v37  ;;  %v2404_v48 = vld [vmem:[#allocation2 + $0x82] sm:$0xff]  ;;  %v10297_v33 = vld [vmem:[%s13850_s5 + $0x118] sm:$0xff] }
  0xf4   : > { %1185 = vst.msk [vmem:[#allocation3 + $0xc0] sm:$0xff] %vm522_vm2, %v1153_v41  ;;  %2269 = vrot.lane.b32.xlu0 %v10143_v42, %s9587_s27  ;;  %1126 = vst.msk [vmem:[#allocation2 + $0xb1] sm:$0xff] %vm522_vm2, %v1093_v38  ;;  %v1092_v45 = vmax.f32 %v982_v39, 0.0  ;;  %v997_v46 = vadd.f32 %v9159_v44, %v9976_v22  ;;  %v2210_v27 = vld [vmem:[#allocation2 + $0x69] sm:$0xff]  ;;  %v2017_v31 = vld [vmem:[#allocation2 + $0x60] sm:$0xff] }
  0xf5   : > { %1277 = vrot.lane.b32.xlu1 %v1211_v43, %s9586_s20  ;;  %1801 = vst.msk [vmem:[#allocation3 + $0x140] sm:$0xff] %vm522_vm2, %v1093_v38  ;;  %v10158_v49 = vld [vmem:[#allocation2 + $0x7a] sm:$0xff]  ;;  %v991_v50 = vpop.f32.mrf.mxu0  ;;  %2436 = vst.msk [vmem:[#allocation3 + $0xb8] sm:$0xff] %vm522_vm2, %v2404_v48  ;;  %v1829_v43 = vld [vmem:[#allocation2 + $0x82] sm:$0xff] }
  0xf6   : > { %2435 = vst.msk [vmem:[#allocation3 + $0xa0] sm:$0xff] %vm522_vm2, %v10158_v49  ;;  %1125 = vst.msk [vmem:[#allocation2 + $0xa9] sm:$0xff] %vm522_vm2, %v1092_v45  ;;  %v1095_v51 = vmax.f32 %v997_v46, 0.0  ;;  %v992_v1 = vadd.f32 %v9976_v22, %v991_v50  ;;  %v1156_v52 = vld [vmem:[#allocation2 + $0x80] sm:$0xff]  ;;  %v1155_v54 = vld [vmem:[#allocation2 + $0x78] sm:$0xff] }
  0xf7   : > { %1800 = vst.msk [vmem:[#allocation3 + $0x128] sm:$0xff] %vm522_vm2, %v1092_v45  ;;  %1188 = vst.msk [vmem:[#allocation3 + $0x108] sm:$0xff] %vm522_vm2, %v1156_v52  ;;  %v2406_v57 = vld [vmem:[#allocation2 + $0x9a] sm:$0xff]  ;;  %v9162_v14 = vpop.f32.mrf.mxu0 }
  0xf8   : > { %2079 = vrot.lane.b32.xlu0 %v10068_v10, %s9585_s19  ;;  %1128 = vst.msk [vmem:[#allocation2 + $0xc9] sm:$0xff] %vm522_vm2, %v1095_v51  ;;  %1803 = vst.msk [vmem:[#allocation3 + $0x170] sm:$0xff] %vm522_vm2, %v1095_v51  ;;  %v1094_v55 = vmax.f32 %v992_v1, 0.0  ;;  %v1007_v15 = vadd.f32 %v9162_v14, %v9976_v22  ;;  %v2209_v36 = vld [vmem:[#allocation2 + $0x61] sm:$0xff]  ;;  %v2019_v46 = vld [vmem:[#allocation2 + $0x78] sm:$0xff] }
  0xf9   : > { %1470 = vrot.lane.b32.xlu1 %v10052_v0, %s9585_s19  ;;  %1187 = vst.msk [vmem:[#allocation3 + $0xf0] sm:$0xff] %vm522_vm2, %v1155_v54  ;;  %v10180_v2 = vld [vmem:[#allocation2 + $0x92] sm:$0xff]  ;;  %2438 = vst.msk [vmem:[#allocation3 + $0xe8] sm:$0xff] %vm522_vm2, %v2406_v57  ;;  %v1001_v20 = vpop.f32.mrf.mxu0  ;;  %v2020_v52 = vld [vmem:[#allocation2 + $0x80] sm:$0xff] }
  0xfa   : > { %2437 = vst.msk [vmem:[#allocation3 + $0xd0] sm:$0xff] %vm522_vm2, %v10180_v2  ;;  %1127 = vst.msk [vmem:[#allocation2 + $0xc1] sm:$0xff] %vm522_vm2, %v1094_v55  ;;  %v1158_v60 = vld [vmem:[#allocation2 + $0x98] sm:$0xff]  ;;  %v1157_v63 = vld [vmem:[#allocation2 + $0x90] sm:$0xff]  ;;  %v1097_v17 = vmax.f32 %v1007_v15, 0.0 }
  0xfb   : > { %1802 = vst.msk [vmem:[#allocation3 + $0x158] sm:$0xff] %vm522_vm2, %v1094_v55  ;;  %v10191_v58 = vld [vmem:[#allocation2 + $0xb2] sm:$0xff]  ;;  %1190 = vst.msk [vmem:[#allocation3 + $0x138] sm:$0xff] %vm522_vm2, %v1158_v60  ;;  %v1831_v57 = vld [vmem:[#allocation2 + $0x9a] sm:$0xff] }
  0xfc   : > { %1888 = vrot.lane.b32.xlu0 %v10064_v8, %s9586_s20  ;;  %2440 = vst.msk [vmem:[#allocation3 + $0x118] sm:$0xff] %vm522_vm2, %v10191_v58  ;;  %v623_v0 = vld [vmem:[%s13850_s5 + $0x98] sm:$0xff]  ;;  %1189 = vst.msk [vmem:[#allocation3 + $0x120] sm:$0xff] %vm522_vm2, %v1157_v63  ;;  %v10373_v59 = vld [vmem:[#allocation2 + $0x90] sm:$0xff] }
  0xfd   : > { %1283 = vrot.lane.b32.xlu1 %v10066_v9, %s9586_s20  ;;  %v10206_v62 = vld [vmem:[#allocation2 + $0xaa] sm:$0xff]  ;;  %2710 = vmatpush2.msra.mxu0 %v623_v0  ;;  %v1825_v9 = vld [vmem:[#allocation2 + $0x52] sm:$0xff]  ;;  %1130 = vst.msk [vmem:[#allocation2 + $0xe1] sm:$0xff] %vm522_vm2, %v1097_v17  ;;  %1805 = vst.msk [vmem:[#allocation3 + $0x1a0] sm:$0xff] %vm522_vm2, %v1097_v17 }
  0xfe   : > { %2439 = vst.msk [vmem:[#allocation3 + $0x100] sm:$0xff] %vm522_vm2, %v10206_v62  ;;  %v1160_v4 = vld [vmem:[#allocation2 + $0xb0] sm:$0xff]  ;;  %v1159_v5 = vld [vmem:[#allocation2 + $0xa8] sm:$0xff]  ;;  %2711 = vmatprep.subr.mxu0 %v13862_v13  ;;  %9518 = vmatpush2.msra.mxu1 %v623_v0  ;;  %v2211_v48 = vld [vmem:[#allocation2 + $0x79] sm:$0xff] }
  0xff   : > { %v10216_v3 = vld [vmem:[#allocation2 + $0xca] sm:$0xff]  ;;  %1192 = vst.msk [vmem:[#allocation3 + $0x168] sm:$0xff] %vm522_vm2, %v1160_v4  ;;  %1191 = vst.msk [vmem:[#allocation3 + $0x150] sm:$0xff] %vm522_vm2, %v1159_v5  ;;  %2712 = vmatpush2.msra.mxu0 %v622_v7  ;;  %9487 = vmatprep.subr.mxu1 %v13862_v13 }
 0x100   : > { %2275 = vrot.lane.b32.xlu0 %v10204_v61, %s9587_s27  ;;  %2442 = vst.msk [vmem:[#allocation3 + $0x148] sm:$0xff] %vm522_vm2, %v10216_v3  ;;  %2713 = vmatprep.subr.mxu0 %v13862_v13  ;;  %v10384_v5 = vld [vmem:[#allocation2 + $0x91] sm:$0xff] }
 0x101   : > { %1476 = vrot.lane.b32.xlu1 %v10113_v29, %s9585_s19  ;;  %v10226_v6 = vld [vmem:[#allocation2 + $0xc2] sm:$0xff]  ;;  %2714 = vmatpush2.msra.mxu0 %v621_v11  ;;  %v1827_v29 = vld [vmem:[#allocation2 + $0x6a] sm:$0xff] }
 0x102   : > { %2441 = vst.msk [vmem:[#allocation3 + $0x130] sm:$0xff] %vm522_vm2, %v10226_v6  ;;  %v10250_v18 = vld [vmem:[#allocation2 + $0xc8] sm:$0xff]  ;;  %2715 = vmatprep.subr.mxu0 %v13862_v13  ;;  %9519 = vmatpush2.msra.mxu1 %v622_v7  ;;  %v1161_v25 = vld [vmem:[#allocation2 + $0xc0] sm:$0xff] }
 0x103   : > { %1194 = vst.msk [vmem:[#allocation3 + $0x198] sm:$0xff] %vm522_vm2, %v10250_v18  ;;  %2716 = vmatpush2.msra.mxu0 %v620_v16  ;;  %9488 = vmatprep.subr.mxu1 %v13862_v13  ;;  %1193 = vst.msk [vmem:[#allocation3 + $0x180] sm:$0xff] %vm522_vm2, %v1161_v25 }
 0x104   : > { %1894 = vrot.lane.b32.xlu0 %v1825_v9, %s9586_s20  ;;  %9520 = vmatpush2.msra.mxu1 %v621_v11 }
 0x105   : > { %2077 = vrot.lane.b32.xlu1 %v10074_v12, %s9585_s19  ;;  %9489 = vmatprep.subr.mxu1 %v13862_v13 }
 0x106   : > { %9521 = vmatpush2.msra.mxu1 %v620_v16  ;;  %9184 = vmatprep.subr.mxu0 %v10297_v33 }
 0x107   : > { %5311 = vmatprep.subr.mxu1 %v13862_v13 }
 0x108   : > { %2081 = vrot.lane.b32.xlu0 %v10100_v24, %s9585_s19 }
 0x109   : > { %1663 = vrot.lane.b32.xlu1 %v10074_v12, %s9587_s27  ;;  %v1002_v12 = vadd.f32 %v9976_v22, %v1001_v20 }
 0x10b   : > { %v1096_v21 = vmax.f32 %v1002_v12, 0.0  ;;  %v10415_v12 = vld [vmem:[#allocation2 + $0xb1] sm:$0xff] }
 0x10c   : > { %2273 = vrot.lane.b32.xlu0 %v2207_v19, %s9587_s27 }
 0x10d   : > { %1665 = vrot.lane.b32.xlu1 %v10068_v10, %s9587_s27  ;;  %1129 = vst.msk [vmem:[#allocation2 + $0xd9] sm:$0xff] %vm522_vm2, %v1096_v21  ;;  %1804 = vst.msk [vmem:[#allocation3 + $0x188] sm:$0xff] %vm522_vm2, %v1096_v21  ;;  %v10276_v10 = vld [vmem:[#allocation2 + $0xe2] sm:$0xff] }
 0x10e   : > { %2444 = vst.msk [vmem:[#allocation3 + $0x178] sm:$0xff] %vm522_vm2, %v10276_v10 }
 0x110   : > { %2083 = vrot.lane.b32.xlu0 %v10105_v26, %s9585_s19 }
 0x111   : > { %1281 = vrot.lane.b32.xlu1 %v10143_v42, %s9586_s20 }
 0x114   : > { %1892 = vrot.lane.b32.xlu0 %v10098_v23, %s9586_s20  ;;  %v10284_v28 = vld [vmem:[#allocation2 + $0xda] sm:$0xff] }
 0x115   : > { %1474 = vrot.lane.b32.xlu1 %v10064_v8, %s9585_s19  ;;  %2443 = vst.msk [vmem:[#allocation3 + $0x160] sm:$0xff] %vm522_vm2, %v10284_v28  ;;  %v9165_v8 = vpop.f32.mrf.mxu0  ;;  %v10299_v34 = vld [vmem:[#allocation2 + $0xe0] sm:$0xff]  ;;  %v1163_v41 = vld [vmem:[#allocation2 + $0xd8] sm:$0xff] }
 0x116   : > { %v1017_v30 = vadd.f32 %v9165_v8, %v9976_v22  ;;  %1196 = vst.msk [vmem:[#allocation3 + $0x1c8] sm:$0xff] %vm522_vm2, %v10299_v34  ;;  %1195 = vst.msk [vmem:[#allocation3 + $0x1b0] sm:$0xff] %vm522_vm2, %v1163_v41 }
 0x117   : > { %v1011_v38 = vpop.f32.mrf.mxu0 }
 0x118   : > { %2279 = vrot.lane.b32.xlu0 %v2210_v27, %s9587_s27  ;;  %v1099_v32 = vmax.f32 %v1017_v30, 0.0  ;;  %v1012_v39 = vadd.f32 %v9976_v22, %v1011_v38 }
 0x119   : > { %1287 = vrot.lane.b32.xlu1 %v10204_v61, %s9586_s20  ;;  %v9168_v44 = vpop.f32.mrf.mxu0 }
 0x11a   : > { %1132 = vst.msk [vmem:[#allocation2 + $0xf9] sm:$0xff] %vm522_vm2, %v1099_v32  ;;  %1807 = vst.msk [vmem:[#allocation3 + $0x1d0] sm:$0xff] %vm522_vm2, %v1099_v32  ;;  %v1098_v40 = vmax.f32 %v1012_v39, 0.0  ;;  %v1027_v45 = vadd.f32 %v9168_v44, %v9976_v22  ;;  %v10432_v39 = vld [vmem:[#allocation2 + $0xa8] sm:$0xff] }
 0x11b   : > { %v1021_v50 = vpop.f32.mrf.mxu0 }
 0x11c   : > { %1898 = vrot.lane.b32.xlu0 %v1827_v29, %s9586_s20  ;;  %1131 = vst.msk [vmem:[#allocation2 + $0xf1] sm:$0xff] %vm522_vm2, %v1098_v40  ;;  %1806 = vst.msk [vmem:[#allocation3 + $0x1b8] sm:$0xff] %vm522_vm2, %v1098_v40  ;;  %v1022_v51 = vadd.f32 %v9976_v22, %v1021_v50 }
 0x11d   : > { %1480 = vrot.lane.b32.xlu1 %v1825_v9, %s9585_s19  ;;  %v2022_v9 = vld [vmem:[#allocation2 + $0x98] sm:$0xff] }
 0x11e   : > { %v1100_v1 = vmax.f32 %v1022_v51, 0.0 }
 0x120   : > { %2085 = vrot.lane.b32.xlu0 %v2017_v31, %s9585_s19  ;;  %1133 = vst.msk [vmem:[#allocation2 + $0x109] sm:$0xff] %vm522_vm2, %v1100_v1  ;;  %1808 = vst.msk [vmem:[#allocation3 + $0x1e8] sm:$0xff] %vm522_vm2, %v1100_v1 }
 0x121   : > { %1667 = vrot.lane.b32.xlu1 %v10100_v24, %s9587_s27  ;;  %v10316_v24 = vld [vmem:[#allocation2 + $0xfa] sm:$0xff] }
 0x122   : > { %2446 = vst.msk [vmem:[#allocation3 + $0x1a8] sm:$0xff] %vm522_vm2, %v10316_v24 }
 0x123   : > { %v10327_v42 = vld [vmem:[#allocation2 + $0xf2] sm:$0xff] }
 0x124   : > { %2277 = vrot.lane.b32.xlu0 %v2209_v36, %s9587_s27  ;;  %2445 = vst.msk [vmem:[#allocation3 + $0x190] sm:$0xff] %vm522_vm2, %v10327_v42  ;;  %v10336_v47 = vld [vmem:[#allocation2 + $0xf8] sm:$0xff]  ;;  %v1165_v54 = vld [vmem:[#allocation2 + $0xf0] sm:$0xff] }
 0x125   : > { %1669 = vrot.lane.b32.xlu1 %v10105_v26, %s9587_s27  ;;  %v2212_v26 = vld [vmem:[#allocation2 + $0x81] sm:$0xff]  ;;  %1198 = vst.msk [vmem:[#allocation3 + $0x1f8] sm:$0xff] %vm522_vm2, %v10336_v47  ;;  %1197 = vst.msk [vmem:[#allocation3 + $0x1e0] sm:$0xff] %vm522_vm2, %v1165_v54  ;;  %v10476_v54 = vld [vmem:[#allocation2 + $0xc9] sm:$0xff] }
 0x127   : > { %v10363_v56 = vld [vmem:[#allocation2 + $0x108] sm:$0xff] }
 0x128   : > { %2087 = vrot.lane.b32.xlu0 %v10134_v37, %s9585_s19  ;;  %1199 = vst.msk [vmem:[#allocation3 + $0x210] sm:$0xff] %vm522_vm2, %v10363_v56 }
 0x129   : > { %1285 = vrot.lane.b32.xlu1 %v2207_v19, %s9586_s20 }
 0x12c   : > { %1896 = vrot.lane.b32.xlu0 %v10128_v35, %s9586_s20 }
 0x12d   : > { %1478 = vrot.lane.b32.xlu1 %v10098_v23, %s9585_s19  ;;  %v1101_v23 = vmax.f32 %v1027_v45, 0.0 }
 0x12f   : > { %1134 = vst.msk [vmem:[#allocation2 + $0x111] sm:$0xff] %vm522_vm2, %v1101_v23  ;;  %1809 = vst.msk [vmem:[#allocation3 + $0x200] sm:$0xff] %vm522_vm2, %v1101_v23 }
 0x130   : > { %2283 = vrot.lane.b32.xlu0 %v2212_v26, %s9587_s27 }
 0x131   : > { %1291 = vrot.lane.b32.xlu1 %v2210_v27, %s9586_s20 }
 0x134   : > { %1902 = vrot.lane.b32.xlu0 %v1829_v43, %s9586_s20 }
 0x135   : > { %1484 = vrot.lane.b32.xlu1 %v1827_v29, %s9585_s19 }
 0x136   : > { %v10350_v53 = vld [vmem:[#allocation2 + $0x112] sm:$0xff]  ;;  %v10361_v55 = vld [vmem:[#allocation2 + $0x10a] sm:$0xff] }
 0x137   : > { %2448 = vst.msk [vmem:[#allocation3 + $0x1d8] sm:$0xff] %vm522_vm2, %v10350_v53  ;;  %2447 = vst.msk [vmem:[#allocation3 + $0x1c0] sm:$0xff] %vm522_vm2, %v10361_v55  ;;  %v10376_v0 = vld [vmem:[#allocation2 + $0x110] sm:$0xff] }
 0x138   : > { %2089 = vrot.lane.b32.xlu0 %v2019_v46, %s9585_s19  ;;  %1200 = vst.msk [vmem:[#allocation3 + $0x228] sm:$0xff] %vm522_vm2, %v10376_v0 }
 0x139   : > { %1671 = vrot.lane.b32.xlu1 %v2017_v31, %s9587_s27 }
 0x13c   : > { %2281 = vrot.lane.b32.xlu0 %v2211_v48, %s9587_s27 }
 0x13d   : > { %1673 = vrot.lane.b32.xlu1 %v10134_v37, %s9587_s27  ;;  %v2214_v37 = vld [vmem:[#allocation2 + $0x99] sm:$0xff] }
 0x140   : > { %2091 = vrot.lane.b32.xlu0 %v2020_v52, %s9585_s19 }
 0x141   : > { %1289 = vrot.lane.b32.xlu1 %v2209_v36, %s9586_s20 }
 0x144   : > { %1900 = vrot.lane.b32.xlu0 %v10158_v49, %s9586_s20 }
 0x145   : > { %1482 = vrot.lane.b32.xlu1 %v10128_v35, %s9585_s19  ;;  %v9171_v35 = vpop.f32.mrf.mxu0 }
 0x146   : > { %v1037_v60 = vadd.f32 %v9171_v35, %v9976_v22 }
 0x147   : > { %v1031_v63 = vpop.f32.mrf.mxu0 }
 0x148   : > { %2287 = vrot.lane.b32.xlu0 %v2214_v37, %s9587_s27  ;;  %v1103_v61 = vmax.f32 %v1037_v60, 0.0  ;;  %v1032_v4 = vadd.f32 %v9976_v22, %v1031_v63 }
 0x149   : > { %1295 = vrot.lane.b32.xlu1 %v2212_v26, %s9586_s20  ;;  %v9174_v27 = vpop.f32.mrf.mxu0  ;;  %v10443_v26 = vld [vmem:[#allocation2 + $0xa9] sm:$0xff] }
 0x14a   : > { %1136 = vst.msk [vmem:[#allocation2 + $0x129] sm:$0xff] %vm522_vm2, %v1103_v61  ;;  %1811 = vst.msk [vmem:[#allocation3 + $0x230] sm:$0xff] %vm522_vm2, %v1103_v61  ;;  %v1102_v7 = vmax.f32 %v1032_v4, 0.0 }
 0x14b   : > { %v1041_v29 = vpop.f32.mrf.mxu0 }
 0x14c   : > { %1906 = vrot.lane.b32.xlu0 %v1831_v57, %s9586_s20  ;;  %1135 = vst.msk [vmem:[#allocation2 + $0x121] sm:$0xff] %vm522_vm2, %v1102_v7  ;;  %1810 = vst.msk [vmem:[#allocation3 + $0x218] sm:$0xff] %vm522_vm2, %v1102_v7  ;;  %v1042_v32 = vadd.f32 %v9976_v22, %v1041_v29 }
 0x14d   : > { %1488 = vrot.lane.b32.xlu1 %v1829_v43, %s9585_s19  ;;  %v9177_v35 = vpop.f32.mrf.mxu0 }
 0x14e   : > { %v1104_v36 = vmax.f32 %v1042_v32, 0.0  ;;  %v637_v32 = vld [vmem:[%s13850_s5 + $0x108] sm:$0xff] }
 0x14f   : > { %v1051_v60 = vpop.f32.mrf.mxu0 }
 0x150   : > { %2093 = vrot.lane.b32.xlu0 %v10373_v59, %s9585_s19  ;;  %1137 = vst.msk [vmem:[#allocation2 + $0x139] sm:$0xff] %vm522_vm2, %v1104_v36  ;;  %1812 = vst.msk [vmem:[#allocation3 + $0x248] sm:$0xff] %vm522_vm2, %v1104_v36 }
 0x151   : > { %1675 = vrot.lane.b32.xlu1 %v2019_v46, %s9587_s27  ;;  %v10397_v15 = vld [vmem:[#allocation2 + $0x12a] sm:$0xff] }
 0x152   : > { %2450 = vst.msk [vmem:[#allocation3 + $0x208] sm:$0xff] %vm522_vm2, %v10397_v15  ;;  %v10455_v46 = vld [vmem:[#allocation2 + $0xb0] sm:$0xff] }
 0x153   : > { %v10403_v19 = vld [vmem:[#allocation2 + $0x122] sm:$0xff] }
 0x154   : > { %2285 = vrot.lane.b32.xlu0 %v10384_v5, %s9587_s27  ;;  %v10405_v20 = vld [vmem:[#allocation2 + $0x120] sm:$0xff]  ;;  %2449 = vst.msk [vmem:[#allocation3 + $0x1f0] sm:$0xff] %vm522_vm2, %v10403_v19  ;;  %v10430_v38 = vld [vmem:[#allocation2 + $0x128] sm:$0xff] }
 0x155   : > { %1677 = vrot.lane.b32.xlu1 %v2020_v52, %s9587_s27  ;;  %1201 = vst.msk [vmem:[#allocation3 + $0x240] sm:$0xff] %vm522_vm2, %v10405_v20  ;;  %1202 = vst.msk [vmem:[#allocation3 + $0x258] sm:$0xff] %vm522_vm2, %v10430_v38 }
 0x156   : > { %v1887_v11 = vpop.permute.xlu0 %1886 }
 0x157   : > { %v1280_v14 = vpop.permute.xlu1 %1279  ;;  %1981 = vst.msk [vmem:[#allocation3 + $0x20] sm:$0xff] %vm1369_vm5, %v1887_v11 }
 0x158   : > { %1373 = vst.msk [vmem:[#allocation3 + $0x48] sm:$0xff] %vm1369_vm5, %v1280_v14  ;;  %2095 = vrot.lane.b32.xlu0 %v2022_v9, %s9585_s19 }
 0x159   : > { %1293 = vrot.lane.b32.xlu1 %v2211_v48, %s9586_s20  ;;  %v10459_v48 = vld [vmem:[#allocation2 + $0x138] sm:$0xff] }
 0x15a   : > { %v1885_v17 = vpop.permute.xlu0 %1884  ;;  %1203 = vst.msk [vmem:[#allocation3 + $0x270] sm:$0xff] %vm522_vm2, %v10459_v48 }
 0x15b   : > { %v1473_v16 = vpop.permute.xlu1 %1472  ;;  %1980 = vst.msk [vmem:[#allocation3 + $0x8] sm:$0xff] %vm1369_vm5, %v1885_v17 }
 0x15c   : > { %1566 = vst.msk [vmem:[#allocation3 + $0x48] sm:$0xff] %vm1562_vm6, %v1473_v16  ;;  %1904 = vrot.lane.b32.xlu0 %v10180_v2, %s9586_s20  ;;  %v10509_v16 = vld [vmem:[#allocation2 + $0xc1] sm:$0xff] }
 0x15d   : > { %1486 = vrot.lane.b32.xlu1 %v10158_v49, %s9585_s19  ;;  %v1047_v49 = vadd.f32 %v9174_v27, %v9976_v22 }
 0x15e   : > { %v2272_v21 = vpop.permute.xlu0 %2271 }
 0x15f   : > { %v1660_v25 = vpop.permute.xlu1 %1659  ;;  %v1105_v31 = vmax.f32 %v1047_v49, 0.0 }
 0x160   : > { %1756 = vst.msk [vmem:[#allocation3] sm:$0xff] %vm1755_vm7, %v1660_v25  ;;  %2291 = vrot.lane.b32.xlu0 %v10415_v12, %s9587_s27  ;;  %v638_v25 = vld [vmem:[%s13850_s5 + $0x110] sm:$0xff] }
 0x161   : > { %1299 = vrot.lane.b32.xlu1 %v2214_v37, %s9586_s20  ;;  %1138 = vst.msk [vmem:[#allocation2 + $0x141] sm:$0xff] %vm522_vm2, %v1105_v31  ;;  %1813 = vst.msk [vmem:[#allocation3 + $0x260] sm:$0xff] %vm522_vm2, %v1105_v31 }
 0x162   : > { %v1891_v8 = vpop.permute.xlu0 %1890 }
 0x163   : > { %v1662_v30 = vpop.permute.xlu1 %1661  ;;  %1983 = vst.msk [vmem:[#allocation3 + $0x50] sm:$0xff] %vm1369_vm5, %v1891_v8 }
 0x164   : > { %1757 = vst.msk [vmem:[#allocation3 + $0x18] sm:$0xff] %vm1755_vm7, %v1662_v30  ;;  %1910 = vrot.lane.b32.xlu0 %v10191_v58, %s9586_s20 }
 0x165   : > { %1492 = vrot.lane.b32.xlu1 %v1831_v57, %s9585_s19 }
 0x166   : > { %v2270_v40 = vpop.permute.xlu0 %2269 }
 0x167   : > { %v1278_v41 = vpop.permute.xlu1 %1277 }
 0x168   : > { %1372 = vst.msk [vmem:[#allocation3 + $0x30] sm:$0xff] %vm1369_vm5, %v1278_v41  ;;  %2097 = vrot.lane.b32.xlu0 %v10432_v39, %s9585_s19  ;;  %v10447_v45 = vld [vmem:[#allocation2 + $0x142] sm:$0xff]  ;;  %v10457_v23 = vld [vmem:[#allocation2 + $0x13a] sm:$0xff] }
 0x169   : > { %1679 = vrot.lane.b32.xlu1 %v10373_v59, %s9587_s27  ;;  %2452 = vst.msk [vmem:[#allocation3 + $0x238] sm:$0xff] %vm522_vm2, %v10447_v45  ;;  %2451 = vst.msk [vmem:[#allocation3 + $0x220] sm:$0xff] %vm522_vm2, %v10457_v23  ;;  %v10480_v59 = vld [vmem:[#allocation2 + $0x140] sm:$0xff] }
 0x16a   : > { %v2080_v43 = vpop.permute.xlu0 %2079  ;;  %1204 = vst.msk [vmem:[#allocation3 + $0x288] sm:$0xff] %vm522_vm2, %v10480_v59  ;;  %v636_v41 = vld [vmem:[%s13850_s5 + $0x100] sm:$0xff] }
 0x16b   : > { %v1471_v44 = vpop.permute.xlu1 %1470  ;;  %2174 = vst.msk [vmem:[#allocation3 + $0x20] sm:$0xff] %vm1562_vm6, %v2080_v43  ;;  %v2464_v49 = vld [vmem:[#allocation3 + $0x18] sm:$0xff] }
 0x16c   : > { %1565 = vst.msk [vmem:[#allocation3 + $0x30] sm:$0xff] %vm1562_vm6, %v1471_v44  ;;  %2289 = vrot.lane.b32.xlu0 %v10443_v26, %s9587_s27  ;;  %v10551_v44 = vld [vmem:[#allocation2 + $0xe1] sm:$0xff] }
 0x16d   : > { %2366 = vst.msk [vmem:[#allocation3 + $0x20] sm:$0xff] %vm1755_vm7, %v2272_v21  ;;  %1681 = vrot.lane.b32.xlu1 %v2022_v9, %s9587_s27  ;;  %v10499_v9 = vld [vmem:[#allocation2 + $0xc0] sm:$0xff] }
 0x16e   : > { %v1889_v50 = vpop.permute.xlu0 %1888 }
 0x16f   : > { %v1284_v51 = vpop.permute.xlu1 %1283  ;;  %1982 = vst.msk [vmem:[#allocation3 + $0x38] sm:$0xff] %vm1369_vm5, %v1889_v50 }
 0x170   : > { %1375 = vst.msk [vmem:[#allocation3 + $0x78] sm:$0xff] %vm1369_vm5, %v1284_v51  ;;  %2099 = vrot.lane.b32.xlu0 %v10455_v46, %s9585_s19  ;;  %v9180_v51 = vpop.f32.mrf.mxu0 }
 0x171   : > { %1297 = vrot.lane.b32.xlu1 %v10384_v5, %s9586_s20  ;;  %v1052_v5 = vadd.f32 %v9976_v22, %v1051_v60 }
 0x172   : > { %v2276_v1 = vpop.permute.xlu0 %2275 }
 0x173   : > { %v1477_v52 = vpop.permute.xlu1 %1476  ;;  %v1106_v7 = vmax.f32 %v1052_v5, 0.0 }
 0x174   : > { %1568 = vst.msk [vmem:[#allocation3 + $0x78] sm:$0xff] %vm1562_vm6, %v1477_v52  ;;  %1908 = vrot.lane.b32.xlu0 %v10206_v62, %s9586_s20 }
 0x175   : > { %1490 = vrot.lane.b32.xlu1 %v10180_v2, %s9585_s19  ;;  %v1057_v2 = vadd.f32 %v9177_v35, %v9976_v22  ;;  %1139 = vst.msk [vmem:[#allocation2 + $0x151] sm:$0xff] %vm522_vm2, %v1106_v7  ;;  %1814 = vst.msk [vmem:[#allocation3 + $0x278] sm:$0xff] %vm522_vm2, %v1106_v7 }
 0x176   : > { %v1895_v37 = vpop.permute.xlu0 %1894 }
 0x177   : > { %v2078_v57 = vpop.permute.xlu1 %2077  ;;  %1985 = vst.msk [vmem:[#allocation3 + $0x80] sm:$0xff] %vm1369_vm5, %v1895_v37  ;;  %v1107_v4 = vmax.f32 %v1057_v2, 0.0  ;;  %v1061_v37 = vpop.f32.mrf.mxu0 }
 0x178   : > { %2173 = vst.msk [vmem:[#allocation3 + $0x8] sm:$0xff] %vm1562_vm6, %v2078_v57  ;;  %2295 = vrot.lane.b32.xlu0 %v10476_v54, %s9587_s27 }
 0x179   : > { %2365 = vst.msk [vmem:[#allocation3 + $0x8] sm:$0xff] %vm1755_vm7, %v2270_v40  ;;  %1303 = vrot.lane.b32.xlu1 %v10415_v12, %s9586_s20  ;;  %v2465_v12 = vld [vmem:[#allocation3 + $0x20] sm:$0xff] }
 0x17a   : > { %v2082_v61 = vpop.permute.xlu0 %2081  ;;  %1140 = vst.msk [vmem:[#allocation2 + $0x159] sm:$0xff] %vm522_vm2, %v1107_v4  ;;  %1815 = vst.msk [vmem:[#allocation3 + $0x290] sm:$0xff] %vm522_vm2, %v1107_v4 }
 0x17b   : > { %v1664_v63 = vpop.permute.xlu1 %1663  ;;  %2175 = vst.msk [vmem:[#allocation3 + $0x38] sm:$0xff] %vm1562_vm6, %v2082_v61  ;;  %v10578_v61 = vld [vmem:[#allocation2 + $0xd8] sm:$0xff] }
 0x17c   : > { %1758 = vst.msk [vmem:[#allocation3 + $0x30] sm:$0xff] %vm1755_vm7, %v1664_v63  ;;  %1914 = vrot.lane.b32.xlu0 %v10216_v3, %s9586_s20  ;;  %v10528_v8 = vld [vmem:[#allocation2 + $0x150] sm:$0xff] }
 0x17d   : > { %1496 = vrot.lane.b32.xlu1 %v10191_v58, %s9585_s19  ;;  %v2461_v58 = vld [vmem:[#allocation3] sm:$0xff]  ;;  %1205 = vst.msk [vmem:[#allocation3 + $0x2a0] sm:$0xff] %vm522_vm2, %v10528_v8 }
 0x17e   : > { %v2274_v11 = vpop.permute.xlu0 %2273 }
 0x17f   : > { %v1666_v14 = vpop.permute.xlu1 %1665  ;;  %2367 = vst.msk [vmem:[#allocation3 + $0x38] sm:$0xff] %vm1755_vm7, %v2274_v11 }
 0x180   : > { %1759 = vst.msk [vmem:[#allocation3 + $0x48] sm:$0xff] %vm1755_vm7, %v1666_v14  ;;  %v2462_v22 = vld [vmem:[#allocation3 + $0x8] sm:$0xff]  ;;  %2101 = vrot.lane.b32.xlu0 %v10499_v9, %s9585_s19 }
 0x181   : > { %1683 = vrot.lane.b32.xlu1 %v10432_v39, %s9587_s27  ;;  %2717 = vmatprep.mubr.f32.mxu0 %v2462_v22  ;;  %v10517_v27 = vld [vmem:[#allocation2 + $0x15a] sm:$0xff]  ;;  %v10526_v29 = vld [vmem:[#allocation2 + $0x152] sm:$0xff] }
 0x182   : > { %2718 = vmatmul.mubr.f32.vlgmr.msra.gmra.mxu0 %v2461_v58  ;;  %v2084_v17 = vpop.permute.xlu0 %2083  ;;  %2454 = vst.msk [vmem:[#allocation3 + $0x268] sm:$0xff] %vm522_vm2, %v10517_v27  ;;  %2453 = vst.msk [vmem:[#allocation3 + $0x250] sm:$0xff] %vm522_vm2, %v10526_v29 }
 0x183   : > { %v1282_v21 = vpop.permute.xlu1 %1281  ;;  %2176 = vst.msk [vmem:[#allocation3 + $0x50] sm:$0xff] %vm1562_vm6, %v2084_v17  ;;  %2722 = vmatprep.mubr.f32.mxu0 %v2465_v12  ;;  %9185 = vmatpush3.msra.mxu0 %v10297_v33  ;;  %v2467_v36 = vld [vmem:[#allocation3 + $0x30] sm:$0xff] }
 0x184   : > { %1374 = vst.msk [vmem:[#allocation3 + $0x60] sm:$0xff] %vm1369_vm5, %v1282_v21  ;;  %2293 = vrot.lane.b32.xlu0 %v10509_v16, %s9587_s27  ;;  %9186 = vmatprep.subr.mxu0 %v638_v25 }
 0x185   : > { %2368 = vst.msk [vmem:[#allocation3 + $0x50] sm:$0xff] %vm1755_vm7, %v2276_v1  ;;  %1685 = vrot.lane.b32.xlu1 %v10455_v46, %s9587_s27  ;;  %9187 = vmatpush3.msra.mxu0 %v638_v25  ;;  %v10555_v1 = vld [vmem:[#allocation2 + $0x158] sm:$0xff] }
 0x186   : > { %2723 = vmatmul.mubr.f32.gmra.mxu0 %v2464_v49  ;;  %v1893_v33 = vpop.permute.xlu0 %1892  ;;  %v2468_v31 = vld [vmem:[#allocation3 + $0x38] sm:$0xff]  ;;  %9188 = vmatprep.subr.mxu0 %v637_v32  ;;  %1206 = vst.msk [vmem:[#allocation3 + $0x2b8] sm:$0xff] %vm522_vm2, %v10555_v1 }
 0x187   : > { %v1475_v30 = vpop.permute.xlu1 %1474  ;;  %1984 = vst.msk [vmem:[#allocation3 + $0x68] sm:$0xff] %vm1369_vm5, %v1893_v33  ;;  %2727 = vmatprep.mubr.f32.mxu0 %v2468_v31  ;;  %9189 = vmatpush3.msra.mxu0 %v637_v32  ;;  %v10620_v33 = vld [vmem:[#allocation2 + $0xf9] sm:$0xff]  ;;  %v9183_v31 = vpop.f32.mrf.mxu0 }
 0x188   : > { %1567 = vst.msk [vmem:[#allocation3 + $0x60] sm:$0xff] %vm1562_vm6, %v1475_v30  ;;  %2103 = vrot.lane.b32.xlu0 %v10250_v18, %s9585_s19  ;;  %9190 = vmatprep.subr.mxu0 %v636_v41 }
 0x189   : > { %1301 = vrot.lane.b32.xlu1 %v10443_v26, %s9586_s20  ;;  %v2470_v26 = vld [vmem:[#allocation3 + $0x48] sm:$0xff]  ;;  %9191 = vmatpush3.msra.mxu0 %v636_v41 }
 0x18a   : > { %2728 = vmatmul.mubr.f32.gmra.mxu0 %v2467_v36  ;;  %v2280_v39 = vpop.permute.xlu0 %2279  ;;  %v1071_v36 = vpop.f32.mrf.mxu0 }
 0x18b   : > { %v1288_v40 = vpop.permute.xlu1 %1287 }
 0x18c   : > { %1377 = vst.msk [vmem:[#allocation3 + $0xa8] sm:$0xff] %vm1369_vm5, %v1288_v40  ;;  %v2471_v43 = vld [vmem:[#allocation3 + $0x50] sm:$0xff]  ;;  %1912 = vrot.lane.b32.xlu0 %v10226_v6, %s9586_s20 }
 0x18d   : > { %1494 = vrot.lane.b32.xlu1 %v10206_v62, %s9585_s19  ;;  %2732 = vmatprep.mubr.f32.mxu0 %v2471_v43  ;;  %v10564_v62 = vld [vmem:[%s13849_s4] ss:$0 sm:$0xff] }
 0x18e   : > { %2733 = vmatmul.mubr.f32.gmra.mxu0 %v2470_v26  ;;  %v1899_v46 = vpop.permute.xlu0 %1898  ;;  %v1067_v52 = vadd.f32 %v10564_v62, %v9180_v51  ;;  %v1062_v60 = vadd.f32 %v10564_v62, %v1061_v37  ;;  %v1072_v43 = vadd.f32 %v10564_v62, %v1071_v36  ;;  %v2490_v36 = vld [vmem:[#allocation3 + $0xe8] sm:$0xff] }
 0x18f   : > { %v1481_v50 = vpop.permute.xlu1 %1480  ;;  %1987 = vst.msk [vmem:[#allocation3 + $0xb0] sm:$0xff] %vm1369_vm5, %v1899_v46 }
 0x190   : > { %1570 = vst.msk [vmem:[#allocation3 + $0xa8] sm:$0xff] %vm1562_vm6, %v1481_v50  ;;  %2299 = vrot.lane.b32.xlu0 %v10551_v44, %s9587_s27  ;;  %v1109_v2 = vmax.f32 %v1067_v52, 0.0  ;;  %v1110_v26 = vmax.f32 %v1072_v43, 0.0 }
 0x191   : > { %1307 = vrot.lane.b32.xlu1 %v10476_v54, %s9586_s20  ;;  %v1108_v54 = vmax.f32 %v1062_v60, 0.0  ;;  %v2463_v60 = vld [vmem:[#allocation3 + $0x10] sm:$0xff] }
 0x192   : > { %v2086_v57 = vpop.permute.xlu0 %2085  ;;  %1142 = vst.msk [vmem:[#allocation2 + $0x171] sm:$0xff] %vm522_vm2, %v1109_v2  ;;  %1817 = vst.msk [vmem:[#allocation3 + $0x2c0] sm:$0xff] %vm522_vm2, %v1109_v2 }
 0x193   : > { %v1668_v35 = vpop.permute.xlu1 %1667  ;;  %2177 = vst.msk [vmem:[#allocation3 + $0x68] sm:$0xff] %vm1562_vm6, %v2086_v57 }
 0x194   : > { %1760 = vst.msk [vmem:[#allocation3 + $0x60] sm:$0xff] %vm1755_vm7, %v1668_v35  ;;  %1918 = vrot.lane.b32.xlu0 %v10276_v10, %s9586_s20 }
 0x195   : > { %1500 = vrot.lane.b32.xlu1 %v10216_v3, %s9585_s19  ;;  %1141 = vst.msk [vmem:[#allocation2 + $0x169] sm:$0xff] %vm522_vm2, %v1108_v54  ;;  %1816 = vst.msk [vmem:[#allocation3 + $0x2a8] sm:$0xff] %vm522_vm2, %v1108_v54  ;;  %v10588_v3 = vld [vmem:[#allocation2 + $0xd9] sm:$0xff] }
 0x196   : > { %v2278_v63 = vpop.permute.xlu0 %2277  ;;  %1143 = vst.msk [vmem:[#allocation2 + $0x181] sm:$0xff] %vm522_vm2, %v1110_v26  ;;  %1818 = vst.msk [vmem:[#allocation3 + $0x2d8] sm:$0xff] %vm522_vm2, %v1110_v26 }
 0x197   : > { %v1670_v4 = vpop.permute.xlu1 %1669  ;;  %2369 = vst.msk [vmem:[#allocation3 + $0x68] sm:$0xff] %vm1755_vm7, %v2278_v63 }
 0x198   : > { %1761 = vst.msk [vmem:[#allocation3 + $0x78] sm:$0xff] %vm1755_vm7, %v1670_v4  ;;  %2105 = vrot.lane.b32.xlu0 %v10578_v61, %s9585_s19  ;;  %v2466_v4 = vld [vmem:[#allocation3 + $0x28] sm:$0xff] }
 0x199   : > { %1687 = vrot.lane.b32.xlu1 %v10499_v9, %s9587_s27  ;;  %v10592_v11 = vld [vmem:[#allocation2 + $0x172] sm:$0xff] }
 0x19a   : > { %v2088_v5 = vpop.permute.xlu0 %2087  ;;  %2456 = vst.msk [vmem:[#allocation3 + $0x298] sm:$0xff] %vm522_vm2, %v10592_v11 }
 0x19b   : > { %v1286_v7 = vpop.permute.xlu1 %1285  ;;  %2178 = vst.msk [vmem:[#allocation3 + $0x80] sm:$0xff] %vm1562_vm6, %v2088_v5  ;;  %v2469_v5 = vld [vmem:[#allocation3 + $0x40] sm:$0xff] }
 0x19c   : > { %1376 = vst.msk [vmem:[#allocation3 + $0x90] sm:$0xff] %vm1369_vm5, %v1286_v7  ;;  %2297 = vrot.lane.b32.xlu0 %v10588_v3, %s9587_s27  ;;  %v10601_v9 = vld [vmem:[#allocation2 + $0x16a] sm:$0xff] }
 0x19d   : > { %2370 = vst.msk [vmem:[#allocation3 + $0x80] sm:$0xff] %vm1755_vm7, %v2280_v39  ;;  %1689 = vrot.lane.b32.xlu1 %v10250_v18, %s9587_s27  ;;  %v10603_v14 = vld [vmem:[#allocation2 + $0x168] sm:$0xff]  ;;  %v2473_v18 = vld [vmem:[#allocation3 + $0x60] sm:$0xff] }
 0x19e   : > { %v1897_v22 = vpop.permute.xlu0 %1896  ;;  %v2474_v17 = vld [vmem:[#allocation3 + $0x68] sm:$0xff]  ;;  %2455 = vst.msk [vmem:[#allocation3 + $0x280] sm:$0xff] %vm522_vm2, %v10601_v9  ;;  %1207 = vst.msk [vmem:[#allocation3 + $0x2d0] sm:$0xff] %vm522_vm2, %v10603_v14  ;;  %v10624_v32 = vld [vmem:[#allocation2 + $0x170] sm:$0xff] }
 0x19f   : > { %v1479_v58 = vpop.permute.xlu1 %1478  ;;  %1986 = vst.msk [vmem:[#allocation3 + $0x98] sm:$0xff] %vm1369_vm5, %v1897_v22  ;;  %2737 = vmatprep.mubr.f32.mxu0 %v2474_v17  ;;  %v2476_v49 = vld [vmem:[#allocation3 + $0x78] sm:$0xff]  ;;  %v10682_v7 = vld [vmem:[#allocation2 + $0x111] sm:$0xff] }
 0x1a0   : > { %1569 = vst.msk [vmem:[#allocation3 + $0x90] sm:$0xff] %vm1562_vm6, %v1479_v58  ;;  %2107 = vrot.lane.b32.xlu0 %v10299_v34, %s9585_s19  ;;  %2738 = vmatmul.mubr.f32.gmra.mxu0 %v2473_v18  ;;  %v2472_v17 = vld [vmem:[#allocation3 + $0x58] sm:$0xff] }
 0x1a1   : > { %1305 = vrot.lane.b32.xlu1 %v10509_v16, %s9586_s20  ;;  %1208 = vst.msk [vmem:[#allocation3 + $0x2e8] sm:$0xff] %vm522_vm2, %v10624_v32 }
 0x1a2   : > { %v2284_v12 = vpop.permute.xlu0 %2283 }
 0x1a3   : > { %v1292_v21 = vpop.permute.xlu1 %1291 }
 0x1a4   : > { %1379 = vst.msk [vmem:[#allocation3 + $0xd8] sm:$0xff] %vm1369_vm5, %v1292_v21  ;;  %v2477_v25 = vld [vmem:[#allocation3 + $0x80] sm:$0xff]  ;;  %1916 = vrot.lane.b32.xlu0 %v10284_v28, %s9586_s20  ;;  %v2478_v21 = vld [vmem:[#allocation3 + $0x88] sm:$0xff] }
 0x1a5   : > { %1498 = vrot.lane.b32.xlu1 %v10226_v6, %s9585_s19  ;;  %2742 = vmatprep.mubr.f32.mxu0 %v2477_v25  ;;  %v1077_v6 = vadd.f32 %v10564_v62, %v9183_v31  ;;  %v2481_v25 = vld [vmem:[#allocation3 + $0xa0] sm:$0xff] }
 0x1a6   : > { %2743 = vmatmul.mubr.f32.gmra.mxu0 %v2476_v49  ;;  %v1903_v30 = vpop.permute.xlu0 %1902 }
 0x1a7   : > { %v1485_v16 = vpop.permute.xlu1 %1484  ;;  %1989 = vst.msk [vmem:[#allocation3 + $0xe0] sm:$0xff] %vm1369_vm5, %v1903_v30  ;;  %v1111_v41 = vmax.f32 %v1077_v6, 0.0  ;;  %v2484_v30 = vld [vmem:[#allocation3 + $0xb8] sm:$0xff] }
 0x1a8   : > { %1572 = vst.msk [vmem:[#allocation3 + $0xd8] sm:$0xff] %vm1562_vm6, %v1485_v16  ;;  %2303 = vrot.lane.b32.xlu0 %v10620_v33, %s9587_s27  ;;  %v10708_v16 = vld [vmem:[#allocation2 + $0x109] sm:$0xff] }
 0x1a9   : > { %1311 = vrot.lane.b32.xlu1 %v10551_v44, %s9586_s20  ;;  %1144 = vst.msk [vmem:[#allocation2 + $0x189] sm:$0xff] %vm522_vm2, %v1111_v41  ;;  %1819 = vst.msk [vmem:[#allocation3 + $0x2f0] sm:$0xff] %vm522_vm2, %v1111_v41  ;;  %v10642_v44 = vld [vmem:[#allocation2 + $0xf0] sm:$0xff] }
 0x1aa   : > { %v2090_v39 = vpop.permute.xlu0 %2089 }
 0x1ab   : > { %v1672_v40 = vpop.permute.xlu1 %1671  ;;  %2179 = vst.msk [vmem:[#allocation3 + $0x98] sm:$0xff] %vm1562_vm6, %v2090_v39  ;;  %v2493_v39 = vld [vmem:[#allocation3 + $0x100] sm:$0xff] }
 0x1ac   : > { %1762 = vst.msk [vmem:[#allocation3 + $0x90] sm:$0xff] %vm1755_vm7, %v1672_v40  ;;  %1922 = vrot.lane.b32.xlu0 %v10316_v24, %s9586_s20 }
 0x1ad   : > { %1504 = vrot.lane.b32.xlu1 %v10276_v10, %s9585_s19  ;;  %v10652_v10 = vld [vmem:[#allocation2 + $0xf1] sm:$0xff] }
 0x1ae   : > { %v2282_v46 = vpop.permute.xlu0 %2281 }
 0x1af   : > { %v1674_v50 = vpop.permute.xlu1 %1673  ;;  %2371 = vst.msk [vmem:[#allocation3 + $0x98] sm:$0xff] %vm1755_vm7, %v2282_v46 }
 0x1b0   : > { %1763 = vst.msk [vmem:[#allocation3 + $0xa8] sm:$0xff] %vm1755_vm7, %v1674_v50  ;;  %2109 = vrot.lane.b32.xlu0 %v10642_v44, %s9585_s19  ;;  %v10656_v52 = vld [vmem:[#allocation2 + $0x18a] sm:$0xff]  ;;  %v10665_v37 = vld [vmem:[#allocation2 + $0x182] sm:$0xff] }
 0x1b1   : > { %1691 = vrot.lane.b32.xlu1 %v10578_v61, %s9587_s27  ;;  %2458 = vst.msk [vmem:[#allocation3 + $0x2c8] sm:$0xff] %vm522_vm2, %v10656_v52  ;;  %2457 = vst.msk [vmem:[#allocation3 + $0x2b0] sm:$0xff] %vm522_vm2, %v10665_v37 }
 0x1b2   : > { %v2092_v51 = vpop.permute.xlu0 %2091 }
 0x1b3   : > { %v1290_v62 = vpop.permute.xlu1 %1289  ;;  %2180 = vst.msk [vmem:[#allocation3 + $0xb0] sm:$0xff] %vm1562_vm6, %v2092_v51 }
 0x1b4   : > { %1378 = vst.msk [vmem:[#allocation3 + $0xc0] sm:$0xff] %vm1369_vm5, %v1290_v62  ;;  %2301 = vrot.lane.b32.xlu0 %v10652_v10, %s9587_s27  ;;  %v2502_v62 = vld [vmem:[#allocation3 + $0x148] sm:$0xff] }
 0x1b5   : > { %2372 = vst.msk [vmem:[#allocation3 + $0xb0] sm:$0xff] %vm1755_vm7, %v2284_v12  ;;  %1693 = vrot.lane.b32.xlu1 %v10299_v34, %s9587_s27  ;;  %v2479_v34 = vld [vmem:[#allocation3 + $0x90] sm:$0xff] }
 0x1b6   : > { %v1901_v57 = vpop.permute.xlu0 %1900  ;;  %v2480_v2 = vld [vmem:[#allocation3 + $0x98] sm:$0xff] }
 0x1b7   : > { %v1483_v35 = vpop.permute.xlu1 %1482  ;;  %1988 = vst.msk [vmem:[#allocation3 + $0xc8] sm:$0xff] %vm1369_vm5, %v1901_v57  ;;  %2747 = vmatprep.mubr.f32.mxu0 %v2480_v2  ;;  %v2505_v57 = vld [vmem:[#allocation3 + $0x160] sm:$0xff] }
 0x1b8   : > { %1571 = vst.msk [vmem:[#allocation3 + $0xc0] sm:$0xff] %vm1562_vm6, %v1483_v35  ;;  %2111 = vrot.lane.b32.xlu0 %v10336_v47, %s9585_s19  ;;  %2748 = vmatmul.mubr.f32.gmra.mxu0 %v2479_v34  ;;  %v10734_v35 = vld [vmem:[#allocation2 + $0x129] sm:$0xff] }
 0x1b9   : > { %1309 = vrot.lane.b32.xlu1 %v10588_v3, %s9586_s20  ;;  %9192 = vmatprep.mubr.msk.f32.mxu0 %vm522_vm2, %v2463_v60  ;;  %v2482_v3 = vld [vmem:[#allocation3 + $0xa8] sm:$0xff]  ;;  %v2508_v60 = vld [vmem:[#allocation3 + $0x178] sm:$0xff] }
 0x1ba   : > { %v2288_v54 = vpop.permute.xlu0 %2287 }
 0x1bb   : > { %v1296_v61 = vpop.permute.xlu1 %1295 }
 0x1bc   : > { %1381 = vst.msk [vmem:[#allocation3 + $0x108] sm:$0xff] %vm1369_vm5, %v1296_v61  ;;  %v2483_v63 = vld [vmem:[#allocation3 + $0xb0] sm:$0xff]  ;;  %1920 = vrot.lane.b32.xlu0 %v10327_v42, %s9586_s20  ;;  %9193 = vmatmul.mubr.msk.f32.vlgmr.msra.gmra.mxu0 %vm522_vm2, %v2466_v4  ;;  %v2514_v4 = vld [vmem:[#allocation3 + $0x1a8] sm:$0xff] }
 0x1bd   : > { %2752 = vmatprep.mubr.f32.mxu1 %v2483_v63  ;;  %1502 = vrot.lane.b32.xlu1 %v10284_v28, %s9585_s19  ;;  %v2475_v28 = vld [vmem:[#allocation3 + $0x70] sm:$0xff]  ;;  %v2517_v63 = vld [vmem:[#allocation3 + $0x1c0] sm:$0xff] }
 0x1be   : > { %2753 = vmatmul.mubr.f32.vlgmr.msra.gmra.mxu1 %v2482_v3  ;;  %9195 = vmatprep.mubr.msk.f32.mxu0 %vm522_vm2, %v2469_v5  ;;  %v1907_v22 = vpop.permute.xlu0 %1906 }
 0x1bf   : > { %v1489_v58 = vpop.permute.xlu1 %1488  ;;  %1991 = vst.msk [vmem:[#allocation3 + $0x110] sm:$0xff] %vm1369_vm5, %v1907_v22  ;;  %v2520_v22 = vld [vmem:[#allocation3 + $0x1d8] sm:$0xff] }
 0x1c0   : > { %1574 = vst.msk [vmem:[#allocation3 + $0x108] sm:$0xff] %vm1562_vm6, %v1489_v58  ;;  %2307 = vrot.lane.b32.xlu0 %v10682_v7, %s9587_s27  ;;  %9196 = vmatmul.mubr.msk.f32.gmra.mxu0 %vm522_vm2, %v2472_v17  ;;  %v2523_v58 = vld [vmem:[#allocation3 + $0x1f0] sm:$0xff] }
 0x1c1   : > { %1315 = vrot.lane.b32.xlu1 %v10620_v33, %s9586_s20  ;;  %9198 = vmatprep.mubr.msk.f32.mxu0 %vm522_vm2, %v2475_v28  ;;  %v2526_v28 = vld [vmem:[#allocation3 + $0x208] sm:$0xff] }
 0x1c2   : > { %v2094_v18 = vpop.permute.xlu0 %2093 }
 0x1c3   : > { %v1676_v12 = vpop.permute.xlu1 %1675  ;;  %2181 = vst.msk [vmem:[#allocation3 + $0xc8] sm:$0xff] %vm1562_vm6, %v2094_v18  ;;  %v2529_v18 = vld [vmem:[#allocation3 + $0x220] sm:$0xff] }
 0x1c4   : > { %1764 = vst.msk [vmem:[#allocation3 + $0xc0] sm:$0xff] %vm1755_vm7, %v1676_v12  ;;  %1926 = vrot.lane.b32.xlu0 %v10350_v53, %s9586_s20  ;;  %9199 = vmatmul.mubr.msk.f32.gmra.mxu0 %vm522_vm2, %v2478_v21 }
 0x1c5   : > { %1508 = vrot.lane.b32.xlu1 %v10316_v24, %s9585_s19  ;;  %9201 = vmatprep.mubr.msk.f32.mxu0 %vm522_vm2, %v2481_v25  ;;  %v2487_v24 = vld [vmem:[#allocation3 + $0xd0] sm:$0xff] }
 0x1c6   : > { %v2286_v49 = vpop.permute.xlu0 %2285 }
 0x1c7   : > { %v1678_v33 = vpop.permute.xlu1 %1677  ;;  %2373 = vst.msk [vmem:[#allocation3 + $0xc8] sm:$0xff] %vm1755_vm7, %v2286_v49  ;;  %v2532_v49 = vld [vmem:[#allocation3 + $0x238] sm:$0xff] }
 0x1c8   : > { %1765 = vst.msk [vmem:[#allocation3 + $0xd8] sm:$0xff] %vm1755_vm7, %v1678_v33  ;;  %2113 = vrot.lane.b32.xlu0 %v10363_v56, %s9585_s19  ;;  %9202 = vmatmul.mubr.msk.f32.gmra.mxu0 %vm522_vm2, %v2484_v30  ;;  %v2535_v30 = vld [vmem:[#allocation3 + $0x250] sm:$0xff] }
 0x1c9   : > { %1695 = vrot.lane.b32.xlu1 %v10642_v44, %s9587_s27  ;;  %9204 = vmatprep.mubr.msk.f32.mxu0 %vm522_vm2, %v2487_v24  ;;  %v2496_v44 = vld [vmem:[#allocation3 + $0x118] sm:$0xff] }
 0x1ca   : > { %v2096_v31 = vpop.permute.xlu0 %2095 }
 0x1cb   : > { %v1294_v6 = vpop.permute.xlu1 %1293  ;;  %2182 = vst.msk [vmem:[#allocation3 + $0xe0] sm:$0xff] %vm1562_vm6, %v2096_v31  ;;  %v2485_v26 = vld [vmem:[#allocation3 + $0xc0] sm:$0xff]  ;;  %v2538_v31 = vld [vmem:[#allocation3 + $0x268] sm:$0xff] }
 0x1cc   : > { %1380 = vst.msk [vmem:[#allocation3 + $0xf0] sm:$0xff] %vm1369_vm5, %v1294_v6  ;;  %2305 = vrot.lane.b32.xlu0 %v10708_v16, %s9587_s27  ;;  %9205 = vmatmul.mubr.msk.f32.gmra.mxu0 %vm522_vm2, %v2490_v36  ;;  %v2541_v36 = vld [vmem:[#allocation3 + $0x280] sm:$0xff] }
 0x1cd   : > { %2374 = vst.msk [vmem:[#allocation3 + $0xe0] sm:$0xff] %vm1755_vm7, %v2288_v54  ;;  %1697 = vrot.lane.b32.xlu1 %v10336_v47, %s9587_s27  ;;  %9207 = vmatprep.mubr.msk.f32.mxu0 %vm522_vm2, %v2493_v39  ;;  %v2499_v47 = vld [vmem:[#allocation3 + $0x130] sm:$0xff] }
 0x1ce   : > { %v1905_v40 = vpop.permute.xlu0 %1904  ;;  %v2486_v43 = vld [vmem:[#allocation3 + $0xc8] sm:$0xff] }
 0x1cf   : > { %v1487_v41 = vpop.permute.xlu1 %1486  ;;  %1990 = vst.msk [vmem:[#allocation3 + $0xf8] sm:$0xff] %vm1369_vm5, %v1905_v40  ;;  %2757 = vmatprep.mubr.f32.mxu1 %v2486_v43  ;;  %v2547_v43 = vld [vmem:[#allocation3 + $0x2b0] sm:$0xff] }
 0x1d0   : > { %1573 = vst.msk [vmem:[#allocation3 + $0xf0] sm:$0xff] %vm1562_vm6, %v1487_v41  ;;  %2115 = vrot.lane.b32.xlu0 %v10376_v0, %s9585_s19  ;;  %2758 = vmatmul.mubr.f32.gmra.mxu1 %v2485_v26  ;;  %v2544_v41 = vld [vmem:[#allocation3 + $0x298] sm:$0xff] }
 0x1d1   : > { %1313 = vrot.lane.b32.xlu1 %v10652_v10, %s9586_s20  ;;  %9208 = vmatmul.mubr.msk.f32.gmra.mxu0 %vm522_vm2, %v2496_v44  ;;  %v2488_v10 = vld [vmem:[#allocation3 + $0xd8] sm:$0xff]  ;;  %v2550_v44 = vld [vmem:[#allocation3 + $0x2c8] sm:$0xff] }
 0x1d2   : > { %9210 = vmatprep.mubr.msk.f32.mxu0 %vm522_vm2, %v2499_v47  ;;  %v2292_v46 = vpop.permute.xlu0 %2291 }
 0x1d3   : > { %v1300_v50 = vpop.permute.xlu1 %1299 }
 0x1d4   : > { %1383 = vst.msk [vmem:[#allocation3 + $0x138] sm:$0xff] %vm1369_vm5, %v1300_v50  ;;  %v2489_v51 = vld [vmem:[#allocation3 + $0xe0] sm:$0xff]  ;;  %1924 = vrot.lane.b32.xlu0 %v10361_v55, %s9586_s20 }
 0x1d5   : > { %2762 = vmatprep.mubr.f32.mxu1 %v2489_v51  ;;  %1506 = vrot.lane.b32.xlu1 %v10327_v42, %s9585_s19  ;;  %v2511_v42 = vld [vmem:[#allocation3 + $0x190] sm:$0xff] }
 0x1d6   : > { %9211 = vmatmul.mubr.msk.f32.gmra.mxu0 %vm522_vm2, %v2502_v62  ;;  %2763 = vmatmul.mubr.f32.gmra.mxu1 %v2488_v10  ;;  %v1911_v2 = vpop.permute.xlu0 %1910 }
 0x1d7   : > { %9213 = vmatprep.mubr.msk.f32.mxu0 %vm522_vm2, %v2505_v57  ;;  %v1493_v34 = vpop.permute.xlu1 %1492  ;;  %1993 = vst.msk [vmem:[#allocation3 + $0x140] sm:$0xff] %vm1369_vm5, %v1911_v2 }
 0x1d8   : > { %1576 = vst.msk [vmem:[#allocation3 + $0x138] sm:$0xff] %vm1562_vm6, %v1493_v34  ;;  %2311 = vrot.lane.b32.xlu0 %v10734_v35, %s9587_s27 }
 0x1d9   : > { %1699 = vrot.lane.b32.xlu1 %v10363_v56, %s9587_s27  ;;  %v10752_v56 = vld [vmem:[#allocation2 + $0x121] sm:$0xff] }
 0x1da   : > { %9214 = vmatmul.mubr.msk.f32.gmra.mxu0 %vm522_vm2, %v2508_v60  ;;  %v2098_v54 = vpop.permute.xlu0 %2097 }
 0x1db   : > { %9216 = vmatprep.mubr.msk.f32.mxu0 %vm522_vm2, %v2511_v42  ;;  %v1680_v61 = vpop.permute.xlu1 %1679  ;;  %2183 = vst.msk [vmem:[#allocation3 + $0xf8] sm:$0xff] %vm1562_vm6, %v2098_v54  ;;  %v10830_v42 = vld [vmem:[#allocation2 + $0x151] sm:$0xff] }
 0x1dc   : > { %1766 = vst.msk [vmem:[#allocation3 + $0xf0] sm:$0xff] %vm1755_vm7, %v1680_v61  ;;  %2117 = vrot.lane.b32.xlu0 %v10405_v20, %s9585_s19 }
 0x1dd   : > { %1701 = vrot.lane.b32.xlu1 %v10376_v0, %s9587_s27 }
 0x1de   : > { %9217 = vmatmul.mubr.msk.f32.gmra.mxu0 %vm522_vm2, %v2514_v4  ;;  %v2290_v3 = vpop.permute.xlu0 %2289 }
 0x1df   : > { %v1682_v5 = vpop.permute.xlu1 %1681  ;;  %9219 = vmatprep.mubr.msk.f32.mxu0 %vm522_vm2, %v2517_v63  ;;  %2375 = vst.msk [vmem:[#allocation3 + $0xf8] sm:$0xff] %vm1755_vm7, %v2290_v3 }
 0x1e0   : > { %1767 = vst.msk [vmem:[#allocation3 + $0x108] sm:$0xff] %vm1755_vm7, %v1682_v5  ;;  %2309 = vrot.lane.b32.xlu0 %v10752_v56, %s9587_s27 }
 0x1e1   : > { %1317 = vrot.lane.b32.xlu1 %v10708_v16, %s9586_s20 }
 0x1e2   : > { %9220 = vmatmul.mubr.msk.f32.gmra.mxu0 %vm522_vm2, %v2520_v22  ;;  %v2100_v0 = vpop.permute.xlu0 %2099 }
 0x1e3   : > { %v1298_v17 = vpop.permute.xlu1 %1297  ;;  %9222 = vmatprep.mubr.msk.f32.mxu0 %vm522_vm2, %v2523_v58  ;;  %2184 = vst.msk [vmem:[#allocation3 + $0x110] sm:$0xff] %vm1562_vm6, %v2100_v0  ;;  %v2491_v33 = vld [vmem:[#allocation3 + $0xf0] sm:$0xff] }
 0x1e4   : > { %1382 = vst.msk [vmem:[#allocation3 + $0x120] sm:$0xff] %vm1369_vm5, %v1298_v17  ;;  %2119 = vrot.lane.b32.xlu0 %v10430_v38, %s9585_s19 }
 0x1e5   : > { %2376 = vst.msk [vmem:[#allocation3 + $0x110] sm:$0xff] %vm1755_vm7, %v2292_v46  ;;  %1510 = vrot.lane.b32.xlu1 %v10361_v55, %s9585_s19 }
 0x1e6   : > { %9223 = vmatmul.mubr.msk.f32.gmra.mxu0 %vm522_vm2, %v2526_v28  ;;  %v1909_v12 = vpop.permute.xlu0 %1908  ;;  %v2492_v25 = vld [vmem:[#allocation3 + $0xf8] sm:$0xff] }
 0x1e7   : > { %v1491_v21 = vpop.permute.xlu1 %1490  ;;  %9225 = vmatprep.mubr.msk.f32.mxu0 %vm522_vm2, %v2529_v18  ;;  %1992 = vst.msk [vmem:[#allocation3 + $0x128] sm:$0xff] %vm1369_vm5, %v1909_v12  ;;  %2767 = vmatprep.mubr.f32.mxu1 %v2492_v25  ;;  %v2494_v6 = vld [vmem:[#allocation3 + $0x108] sm:$0xff]  ;;  %v10870_v18 = vld [vmem:[#allocation2 + $0x169] sm:$0xff] }
 0x1e8   : > { %1575 = vst.msk [vmem:[#allocation3 + $0x120] sm:$0xff] %vm1562_vm6, %v1491_v21  ;;  %1928 = vrot.lane.b32.xlu0 %v10403_v19, %s9586_s20  ;;  %2768 = vmatmul.mubr.f32.gmra.mxu1 %v2491_v33 }
 0x1e9   : > { %1703 = vrot.lane.b32.xlu1 %v10405_v20, %s9587_s27  ;;  %v10785_v20 = vld [vmem:[#allocation2 + $0x139] sm:$0xff] }
 0x1ea   : > { %9226 = vmatmul.mubr.msk.f32.gmra.mxu0 %vm522_vm2, %v2532_v49  ;;  %v2296_v55 = vpop.permute.xlu0 %2295 }
 0x1eb   : > { %v1304_v24 = vpop.permute.xlu1 %1303  ;;  %9228 = vmatprep.mubr.msk.f32.mxu0 %vm522_vm2, %v2535_v30 }
 0x1ec   : > { %1385 = vst.msk [vmem:[#allocation3 + $0x168] sm:$0xff] %vm1369_vm5, %v1304_v24  ;;  %v2495_v16 = vld [vmem:[#allocation3 + $0x110] sm:$0xff]  ;;  %2121 = vrot.lane.b32.xlu0 %v10459_v48, %s9585_s19 }
 0x1ed   : > { %2772 = vmatprep.mubr.f32.mxu1 %v2495_v16  ;;  %1319 = vrot.lane.b32.xlu1 %v10682_v7, %s9586_s20 }
 0x1ee   : > { %2773 = vmatmul.mubr.f32.gmra.mxu1 %v2494_v6  ;;  %v1915_v39 = vpop.permute.xlu0 %1914  ;;  %9229 = vmatmul.mubr.msk.f32.gmra.mxu0 %vm522_vm2, %v2538_v31  ;;  %v2041_v6 = vld [vmem:[#allocation2 + $0x180] sm:$0xff] }
 0x1ef   : > { %v1497_v40 = vpop.permute.xlu1 %1496  ;;  %1995 = vst.msk [vmem:[#allocation3 + $0x170] sm:$0xff] %vm1369_vm5, %v1915_v39  ;;  %9231 = vmatprep.mubr.msk.f32.mxu0 %vm522_vm2, %v2541_v36 }
 0x1f0   : > { %1578 = vst.msk [vmem:[#allocation3 + $0x168] sm:$0xff] %vm1562_vm6, %v1497_v40  ;;  %2313 = vrot.lane.b32.xlu0 %v10785_v20, %s9587_s27  ;;  %v2233_v40 = vld [vmem:[#allocation2 + $0x181] sm:$0xff] }
 0x1f1   : > { %1512 = vrot.lane.b32.xlu1 %v10350_v53, %s9585_s19  ;;  %v10810_v53 = vld [vmem:[#allocation2 + $0x141] sm:$0xff] }
 0x1f2   : > { %v2102_v7 = vpop.permute.xlu0 %2101  ;;  %9232 = vmatmul.mubr.msk.f32.gmra.mxu0 %vm522_vm2, %v2544_v41 }
 0x1f3   : > { %v1684_v26 = vpop.permute.xlu1 %1683  ;;  %2185 = vst.msk [vmem:[#allocation3 + $0x128] sm:$0xff] %vm1562_vm6, %v2102_v7  ;;  %9234 = vmatprep.mubr.msk.f32.mxu0 %vm522_vm2, %v2547_v43 }
 0x1f4   : > { %1768 = vst.msk [vmem:[#allocation3 + $0x120] sm:$0xff] %vm1755_vm7, %v1684_v26  ;;  %1930 = vrot.lane.b32.xlu0 %v10397_v15, %s9586_s20  ;;  %v3266_v26 = vld [vmem:[%s13853_s8 + $0x8] sm:$0xf] }
 0x1f5   : > { %1705 = vrot.lane.b32.xlu1 %v10430_v38, %s9587_s27  ;;  %9240 = vmatprep.subr.msk.mxu0 %vm851_vm0, %v3266_v26 }
 0x1f6   : > { %v2294_v47 = vpop.permute.xlu0 %2293  ;;  %9235 = vmatmul.mubr.msk.f32.gmra.mxu0 %vm522_vm2, %v2550_v44  ;;  %v10923_v44 = vld [vmem:[#allocation2 + $0x188] sm:$0xff] }
 0x1f7   : > { %v1686_v46 = vpop.permute.xlu1 %1685  ;;  %2377 = vst.msk [vmem:[#allocation3 + $0x128] sm:$0xff] %vm1755_vm7, %v2294_v47  ;;  %9241 = vmatpush3.msk.msra.mxu0 %vm851_vm0, %v3266_v26 }
 0x1f8   : > { %1769 = vst.msk [vmem:[#allocation3 + $0x138] sm:$0xff] %vm1755_vm7, %v1686_v46  ;;  %2123 = vrot.lane.b32.xlu0 %v10480_v59, %s9585_s19  ;;  %v2234_v46 = vld [vmem:[#allocation2 + $0x189] sm:$0xff] }
 0x1f9   : > { %1321 = vrot.lane.b32.xlu1 %v10752_v56, %s9586_s20 }
 0x1fa   : > { %v2104_v50 = vpop.permute.xlu0 %2103 }
 0x1fb   : > { %v1302_v51 = vpop.permute.xlu1 %1301  ;;  %2186 = vst.msk [vmem:[#allocation3 + $0x140] sm:$0xff] %vm1562_vm6, %v2104_v50  ;;  %v2497_v57 = vld [vmem:[#allocation3 + $0x120] sm:$0xff] }
 0x1fc   : > { %1384 = vst.msk [vmem:[#allocation3 + $0x150] sm:$0xff] %vm1369_vm5, %v1302_v51  ;;  %2315 = vrot.lane.b32.xlu0 %v10810_v53, %s9587_s27  ;;  %v2428_v51 = vld [vmem:[#allocation2 + $0x1a2] sm:$0xff] }
 0x1fd   : > { %2378 = vst.msk [vmem:[#allocation3 + $0x140] sm:$0xff] %vm1755_vm7, %v2296_v55  ;;  %1514 = vrot.lane.b32.xlu1 %v10403_v19, %s9585_s19 }
 0x1fe   : > { %v1913_v38 = vpop.permute.xlu0 %1912  ;;  %v2498_v10 = vld [vmem:[#allocation3 + $0x128] sm:$0xff]  ;;  %2460 = vst.msk [vmem:[#allocation3 + $0x2f8] sm:$0xff] %vm522_vm2, %v2428_v51 }
 0x1ff   : > { %v1495_v62 = vpop.permute.xlu1 %1494  ;;  %1994 = vst.msk [vmem:[#allocation3 + $0x158] sm:$0xff] %vm1369_vm5, %v1913_v38  ;;  %2777 = vmatprep.mubr.f32.mxu1 %v2498_v10  ;;  %v2500_v60 = vld [vmem:[#allocation3 + $0x138] sm:$0xff] }
 0x200   : > { %1577 = vst.msk [vmem:[#allocation3 + $0x150] sm:$0xff] %vm1562_vm6, %v1495_v62  ;;  %1932 = vrot.lane.b32.xlu0 %v10457_v23, %s9586_s20  ;;  %2778 = vmatmul.mubr.f32.gmra.mxu1 %v2497_v57 }
 0x201   : > { %1707 = vrot.lane.b32.xlu1 %v10459_v48, %s9587_s27 }
 0x202   : > { %v2300_v2 = vpop.permute.xlu0 %2299 }
 0x203   : > { %v1308_v34 = vpop.permute.xlu1 %1307 }
 0x204   : > { %1387 = vst.msk [vmem:[#allocation3 + $0x198] sm:$0xff] %vm1369_vm5, %v1308_v34  ;;  %v2501_v19 = vld [vmem:[#allocation3 + $0x140] sm:$0xff]  ;;  %2125 = vrot.lane.b32.xlu0 %v10528_v8, %s9585_s19 }
 0x205   : > { %2782 = vmatprep.mubr.f32.mxu1 %v2501_v19  ;;  %1323 = vrot.lane.b32.xlu1 %v10734_v35, %s9586_s20 }
 0x206   : > { %2783 = vmatmul.mubr.f32.gmra.mxu1 %v2500_v60  ;;  %v1919_v54 = vpop.permute.xlu0 %1918 }
 0x207   : > { %v1501_v61 = vpop.permute.xlu1 %1500  ;;  %1997 = vst.msk [vmem:[#allocation3 + $0x1a0] sm:$0xff] %vm1369_vm5, %v1919_v54 }
 0x208   : > { %1580 = vst.msk [vmem:[#allocation3 + $0x198] sm:$0xff] %vm1562_vm6, %v1501_v61  ;;  %2317 = vrot.lane.b32.xlu0 %v10830_v42, %s9587_s27 }
 0x209   : > { %1516 = vrot.lane.b32.xlu1 %v10397_v15, %s9585_s19  ;;  %v10850_v15 = vld [vmem:[#allocation2 + $0x159] sm:$0xff] }
 0x20a   : > { %v2106_v48 = vpop.permute.xlu0 %2105 }
 0x20b   : > { %v1688_v63 = vpop.permute.xlu1 %1687  ;;  %2187 = vst.msk [vmem:[#allocation3 + $0x158] sm:$0xff] %vm1562_vm6, %v2106_v48  ;;  %v2556_v48 = vld [vmem:[#allocation3 + $0x2f8] sm:$0xff] }
 0x20c   : > { %1770 = vst.msk [vmem:[#allocation3 + $0x150] sm:$0xff] %vm1755_vm7, %v1688_v63  ;;  %1934 = vrot.lane.b32.xlu0 %v10447_v45, %s9586_s20 }
 0x20d   : > { %1709 = vrot.lane.b32.xlu1 %v10480_v59, %s9587_s27  ;;  %5118 = vst.msk [vmem:[#allocation3 + $0x2f8] sm:$0xff] %vm522_vm2, %v2428_v51 }
 0x20e   : > { %v2298_v35 = vpop.permute.xlu0 %2297 }
 0x20f   : > { %v1690_v4 = vpop.permute.xlu1 %1689  ;;  %2379 = vst.msk [vmem:[#allocation3 + $0x158] sm:$0xff] %vm1755_vm7, %v2298_v35 }
 0x210   : > { %1771 = vst.msk [vmem:[#allocation3 + $0x168] sm:$0xff] %vm1755_vm7, %v1690_v4  ;;  %2127 = vrot.lane.b32.xlu0 %v10555_v1, %s9585_s19 }
 0x211   : > { %1325 = vrot.lane.b32.xlu1 %v10785_v20, %s9586_s20 }
 0x212   : > { %v2108_v56 = vpop.permute.xlu0 %2107 }
 0x213   : > { %v1306_v3 = vpop.permute.xlu1 %1305  ;;  %2188 = vst.msk [vmem:[#allocation3 + $0x170] sm:$0xff] %vm1562_vm6, %v2108_v56  ;;  %v2503_v58 = vld [vmem:[#allocation3 + $0x150] sm:$0xff] }
 0x214   : > { %1386 = vst.msk [vmem:[#allocation3 + $0x180] sm:$0xff] %vm1369_vm5, %v1306_v3  ;;  %2319 = vrot.lane.b32.xlu0 %v10850_v15, %s9587_s27 }
 0x215   : > { %2380 = vst.msk [vmem:[#allocation3 + $0x170] sm:$0xff] %vm1755_vm7, %v2300_v2  ;;  %1518 = vrot.lane.b32.xlu1 %v10457_v23, %s9585_s19 }
 0x216   : > { %v1917_v59 = vpop.permute.xlu0 %1916  ;;  %v2504_v22 = vld [vmem:[#allocation3 + $0x158] sm:$0xff] }
 0x217   : > { %v1499_v5 = vpop.permute.xlu1 %1498  ;;  %1996 = vst.msk [vmem:[#allocation3 + $0x188] sm:$0xff] %vm1369_vm5, %v1917_v59  ;;  %2787 = vmatprep.mubr.f32.mxu1 %v2504_v22  ;;  %v2506_v28 = vld [vmem:[#allocation3 + $0x168] sm:$0xff] }
 0x218   : > { %1579 = vst.msk [vmem:[#allocation3 + $0x180] sm:$0xff] %vm1562_vm6, %v1499_v5  ;;  %1936 = vrot.lane.b32.xlu0 %v10526_v29, %s9586_s20  ;;  %2788 = vmatmul.mubr.f32.gmra.mxu1 %v2503_v58 }
 0x219   : > { %1711 = vrot.lane.b32.xlu1 %v10528_v8, %s9587_s27 }
 0x21a   : > { %v2304_v0 = vpop.permute.xlu0 %2303 }
 0x21b   : > { %v1312_v17 = vpop.permute.xlu1 %1311 }
 0x21c   : > { %1389 = vst.msk [vmem:[#allocation3 + $0x1c8] sm:$0xff] %vm1369_vm5, %v1312_v17  ;;  %v2507_v23 = vld [vmem:[#allocation3 + $0x170] sm:$0xff]  ;;  %2129 = vrot.lane.b32.xlu0 %v10603_v14, %s9585_s19 }
 0x21d   : > { %2792 = vmatprep.mubr.f32.mxu1 %v2507_v23  ;;  %1327 = vrot.lane.b32.xlu1 %v10810_v53, %s9586_s20  ;;  %v3871_v23 = vld [vmem:[#allocation2 + $0x1] sm:$0xff] }
 0x21e   : > { %2793 = vmatmul.mubr.f32.gmra.mxu1 %v2506_v28  ;;  %v1923_v12 = vpop.permute.xlu0 %1922 }
 0x21f   : > { %v1505_v21 = vpop.permute.xlu1 %1504  ;;  %1999 = vst.msk [vmem:[#allocation3 + $0x1d0] sm:$0xff] %vm1369_vm5, %v1923_v12  ;;  %v4063_v12 = vld [vmem:[#allocation2 + $0x2] sm:$0xff] }
 0x220   : > { %1582 = vst.msk [vmem:[#allocation3 + $0x1c8] sm:$0xff] %vm1562_vm6, %v1505_v21  ;;  %2321 = vrot.lane.b32.xlu0 %v10870_v18, %s9587_s27  ;;  %v3265_v21 = vld [vmem:[%s13853_s8] sm:$0xff] }
 0x221   : > { %1520 = vrot.lane.b32.xlu1 %v10447_v45, %s9585_s19  ;;  %v10890_v45 = vld [vmem:[#allocation2 + $0x171] sm:$0xff]  ;;  %9242 = vmatprep.subr.mxu0 %v3265_v21 }
 0x222   : > { %v2110_v8 = vpop.permute.xlu0 %2109  ;;  %9243 = vmatpush3.msra.mxu0 %v3265_v21 }
 0x223   : > { %v1692_v25 = vpop.permute.xlu1 %1691  ;;  %2189 = vst.msk [vmem:[#allocation3 + $0x188] sm:$0xff] %vm1562_vm6, %v2110_v8 }
 0x224   : > { %1772 = vst.msk [vmem:[#allocation3 + $0x180] sm:$0xff] %vm1755_vm7, %v1692_v25  ;;  %1938 = vrot.lane.b32.xlu0 %v10517_v27, %s9586_s20 }
 0x225   : > { %1713 = vrot.lane.b32.xlu1 %v10555_v1, %s9587_s27 }
 0x226   : > { %v2302_v49 = vpop.permute.xlu0 %2301 }
 0x227   : > { %v1694_v33 = vpop.permute.xlu1 %1693  ;;  %2381 = vst.msk [vmem:[#allocation3 + $0x188] sm:$0xff] %vm1755_vm7, %v2302_v49 }
 0x228   : > { %1773 = vst.msk [vmem:[#allocation3 + $0x198] sm:$0xff] %vm1755_vm7, %v1694_v33  ;;  %2131 = vrot.lane.b32.xlu0 %v10624_v32, %s9585_s19  ;;  %v3872_v33 = vld [vmem:[#allocation2 + $0x9] sm:$0xff] }
 0x229   : > { %1329 = vrot.lane.b32.xlu1 %v10830_v42, %s9586_s20  ;;  %v10950_v42 = vld [vmem:[#allocation2 + $0x198] sm:$0xff] }
 0x22a   : > { %v2112_v30 = vpop.permute.xlu0 %2111 }
 0x22b   : > { %v1310_v55 = vpop.permute.xlu1 %1309  ;;  %2190 = vst.msk [vmem:[#allocation3 + $0x1a0] sm:$0xff] %vm1562_vm6, %v2112_v30  ;;  %v2509_v31 = vld [vmem:[#allocation3 + $0x180] sm:$0xff] }
 0x22c   : > { %1388 = vst.msk [vmem:[#allocation3 + $0x1b0] sm:$0xff] %vm1369_vm5, %v1310_v55  ;;  %2323 = vrot.lane.b32.xlu0 %v10890_v45, %s9587_s27 }
 0x22d   : > { %2382 = vst.msk [vmem:[#allocation3 + $0x1a0] sm:$0xff] %vm1755_vm7, %v2304_v0  ;;  %1522 = vrot.lane.b32.xlu1 %v10526_v29, %s9585_s19  ;;  %v2044_v0 = vld [vmem:[#allocation2 + $0x1a0] sm:$0xff] }
 0x22e   : > { %v1921_v1 = vpop.permute.xlu0 %1920  ;;  %v2510_v24 = vld [vmem:[#allocation3 + $0x188] sm:$0xff] }
 0x22f   : > { %1998 = vst.msk [vmem:[#allocation3 + $0x1b8] sm:$0xff] %vm1369_vm5, %v1921_v1  ;;  %v1503_v16 = vpop.permute.xlu1 %1502  ;;  %2797 = vmatprep.mubr.f32.mxu1 %v2510_v24  ;;  %v2512_v39 = vld [vmem:[#allocation3 + $0x198] sm:$0xff]  ;;  %v3807_v1 = vld [vmem:[#allocation2] sm:$0xff] }
 0x230   : > { %1581 = vst.msk [vmem:[#allocation3 + $0x1b0] sm:$0xff] %vm1562_vm6, %v1503_v16  ;;  %1940 = vrot.lane.b32.xlu0 %v10601_v9, %s9586_s20  ;;  %2798 = vmatmul.mubr.f32.gmra.mxu1 %v2509_v31  ;;  %v3808_v24 = vld [vmem:[#allocation2 + $0x8] sm:$0xff] }
 0x231   : > { %1715 = vrot.lane.b32.xlu1 %v10603_v14, %s9587_s27  ;;  %3839 = vst.msk [vmem:[#allocation3] sm:$0xff] %vm522_vm2, %v3807_v1  ;;  %3840 = vst.msk [vmem:[#allocation3 + $0x18] sm:$0xff] %vm522_vm2, %v3808_v24 }
 0x232   : > { %v2308_v36 = vpop.permute.xlu0 %2307 }
 0x233   : > { %v1316_v20 = vpop.permute.xlu1 %1315 }
 0x234   : > { %v2513_v29 = vld [vmem:[#allocation3 + $0x1a0] sm:$0xff]  ;;  %1391 = vst.msk [vmem:[#allocation3 + $0x1f8] sm:$0xff] %vm1369_vm5, %v1316_v20  ;;  %2133 = vrot.lane.b32.xlu0 %v2041_v6, %s9585_s19 }
 0x235   : > { %2802 = vmatprep.mubr.f32.mxu1 %v2513_v29  ;;  %1331 = vrot.lane.b32.xlu1 %v10850_v15, %s9586_s20  ;;  %v2235_v15 = vld [vmem:[#allocation2 + $0x199] sm:$0xff] }
 0x236   : > { %2803 = vmatmul.mubr.f32.gmra.mxu1 %v2512_v39  ;;  %v1927_v41 = vpop.permute.xlu0 %1926 }
 0x237   : > { %2001 = vst.msk [vmem:[#allocation3 + $0x200] sm:$0xff] %vm1369_vm5, %v1927_v41  ;;  %v1509_v43 = vpop.permute.xlu1 %1508 }
 0x238   : > { %1584 = vst.msk [vmem:[#allocation3 + $0x1f8] sm:$0xff] %vm1562_vm6, %v1509_v43  ;;  %2325 = vrot.lane.b32.xlu0 %v2233_v40, %s9587_s27 }
 0x239   : > { %1524 = vrot.lane.b32.xlu1 %v10517_v27, %s9585_s19 }
 0x23a   : > { %v2114_v14 = vpop.permute.xlu0 %2113 }
 0x23b   : > { %2191 = vst.msk [vmem:[#allocation3 + $0x1b8] sm:$0xff] %vm1562_vm6, %v2114_v14  ;;  %v1696_v7 = vpop.permute.xlu1 %1695 }
 0x23c   : > { %1774 = vst.msk [vmem:[#allocation3 + $0x1b0] sm:$0xff] %vm1755_vm7, %v1696_v7  ;;  %1942 = vrot.lane.b32.xlu0 %v10592_v11, %s9586_s20 }
 0x23d   : > { %1717 = vrot.lane.b32.xlu1 %v10624_v32, %s9587_s27  ;;  %v2427_v32 = vld [vmem:[#allocation2 + $0x19a] sm:$0xff] }
 0x23e   : > { %v2306_v27 = vpop.permute.xlu0 %2305  ;;  %2459 = vst.msk [vmem:[#allocation3 + $0x2e0] sm:$0xff] %vm522_vm2, %v2427_v32 }
 0x23f   : > { %2383 = vst.msk [vmem:[#allocation3 + $0x1b8] sm:$0xff] %vm1755_vm7, %v2306_v27  ;;  %v1698_v47 = vpop.permute.xlu1 %1697 }
 0x240   : > { %1775 = vst.msk [vmem:[#allocation3 + $0x1c8] sm:$0xff] %vm1755_vm7, %v1698_v47  ;;  %2135 = vrot.lane.b32.xlu0 %v10923_v44, %s9585_s19 }
 0x241   : > { %1333 = vrot.lane.b32.xlu1 %v10870_v18, %s9586_s20 }
 0x242   : > { %v10933_v53 = vpop.f32.mrf.mxu0  ;;  %v2116_v50 = vpop.permute.xlu0 %2115 }
 0x243   : > { %2192 = vst.msk [vmem:[#allocation3 + $0x1d0] sm:$0xff] %vm1562_vm6, %v2116_v50  ;;  %v1314_v38 = vpop.permute.xlu1 %1313  ;;  %v2515_v19 = vld [vmem:[#allocation3 + $0x1b0] sm:$0xff] }
 0x244   : > { %2384 = vst.msk [vmem:[#allocation3 + $0x1d0] sm:$0xff] %vm1755_vm7, %v2308_v36  ;;  %v2721_v62 = vpop.f32.mrf.mxu0  ;;  %2327 = vrot.lane.b32.xlu0 %v2234_v46, %s9587_s27 }
 0x245   : > { %1390 = vst.msk [vmem:[#allocation3 + $0x1e0] sm:$0xff] %vm1369_vm5, %v1314_v38  ;;  %1526 = vrot.lane.b32.xlu1 %v10601_v9, %s9585_s19  ;;  %v2553_v9 = vld [vmem:[#allocation3 + $0x2e0] sm:$0xff] }
 0x246   : > { %v10943_v10 = vpop.f32.mrf.mxu0  ;;  %v1925_v57 = vpop.permute.xlu0 %1924  ;;  %v2516_v2 = vld [vmem:[#allocation3 + $0x1b8] sm:$0xff]  ;;  %9237 = vmatprep.mubr.msk.f32.mxu0 %vm522_vm2, %v2553_v9  ;;  %5117 = vst.msk [vmem:[#allocation3 + $0x2e0] sm:$0xff] %vm522_vm2, %v2427_v32 }
 0x247   : > { %2000 = vst.msk [vmem:[#allocation3 + $0x1e8] sm:$0xff] %vm1369_vm5, %v1925_v57  ;;  %v1507_v34 = vpop.permute.xlu1 %1506  ;;  %2807 = vmatprep.mubr.f32.mxu1 %v2516_v2  ;;  %9238 = vmatmul.mubr.msk.f32.gmra.mxu0 %vm522_vm2, %v2556_v48  ;;  %v2518_v4 = vld [vmem:[#allocation3 + $0x1c8] sm:$0xff] }
 0x248   : > { %1583 = vst.msk [vmem:[#allocation3 + $0x1e0] sm:$0xff] %vm1562_vm6, %v1507_v34  ;;  %v2726_v60 = vpop.f32.mrf.mxu0  ;;  %1944 = vrot.lane.b32.xlu0 %v10665_v37, %s9586_s20  ;;  %2808 = vmatmul.mubr.f32.gmra.mxu1 %v2515_v19 }
 0x249   : > { %1719 = vrot.lane.b32.xlu1 %v2041_v6, %s9587_s27  ;;  %v4064_v6 = vld [vmem:[#allocation2 + $0xa] sm:$0xff] }
 0x24a   : > { %v10952_v54 = vpop.f32.mrf.mxu0  ;;  %v2312_v61 = vpop.permute.xlu0 %2311 }
 0x24b   : > { %v1700_v63 = vpop.permute.xlu1 %1699  ;;  %v2519_v35 = vld [vmem:[#allocation3 + $0x1d0] sm:$0xff] }
 0x24c   : > { %1776 = vst.msk [vmem:[#allocation3 + $0x1e0] sm:$0xff] %vm1755_vm7, %v1700_v63  ;;  %v2731_v37 = vpop.f32.mrf.mxu0  ;;  %2137 = vrot.lane.b32.xlu0 %v10950_v42, %s9585_s19  ;;  %2812 = vmatprep.mubr.f32.mxu1 %v2519_v35 }
 0x24d   : > { %1335 = vrot.lane.b32.xlu1 %v10890_v45, %s9586_s20  ;;  %2813 = vmatmul.mubr.f32.gmra.mxu1 %v2518_v4 }
 0x24e   : > { %v10963_v56 = vpop.f32.mrf.mxu0  ;;  %v2118_v3 = vpop.permute.xlu0 %2117 }
 0x24f   : > { %2193 = vst.msk [vmem:[#allocation3 + $0x1e8] sm:$0xff] %vm1562_vm6, %v2118_v3  ;;  %v1702_v59 = vpop.permute.xlu1 %1701 }
 0x250   : > { %1777 = vst.msk [vmem:[#allocation3 + $0x1f8] sm:$0xff] %vm1755_vm7, %v1702_v59  ;;  %v2736_v5 = vpop.f32.mrf.mxu0  ;;  %2329 = vrot.lane.b32.xlu0 %v2235_v15, %s9587_s27 }
 0x251   : > { %1528 = vrot.lane.b32.xlu1 %v10592_v11, %s9585_s19  ;;  %v2236_v11 = vld [vmem:[#allocation2 + $0x1a1] sm:$0xff] }
 0x252   : > { %v2310_v22 = vpop.permute.xlu0 %2309 }
 0x253   : > { %2385 = vst.msk [vmem:[#allocation3 + $0x1e8] sm:$0xff] %vm1755_vm7, %v2310_v22  ;;  %v1318_v58 = vpop.permute.xlu1 %1317  ;;  %v2521_v25 = vld [vmem:[#allocation3 + $0x1e0] sm:$0xff] }
 0x254   : > { %1392 = vst.msk [vmem:[#allocation3 + $0x210] sm:$0xff] %vm1369_vm5, %v1318_v58  ;;  %1946 = vrot.lane.b32.xlu0 %v10656_v52, %s9586_s20 }
 0x255   : > { %1721 = vrot.lane.b32.xlu1 %v10923_v44, %s9587_s27 }
 0x256   : > { %v2120_v17 = vpop.permute.xlu0 %2119 }
 0x257   : > { %2194 = vst.msk [vmem:[#allocation3 + $0x200] sm:$0xff] %vm1562_vm6, %v2120_v17  ;;  %v1511_v28 = vpop.permute.xlu1 %1510  ;;  %v2524_v55 = vld [vmem:[#allocation3 + $0x1f8] sm:$0xff] }
 0x258   : > { %2386 = vst.msk [vmem:[#allocation3 + $0x200] sm:$0xff] %vm1755_vm7, %v2312_v61  ;;  %2139 = vrot.lane.b32.xlu0 %v2044_v0, %s9585_s19 }
 0x259   : > { %1585 = vst.msk [vmem:[#allocation3 + $0x210] sm:$0xff] %vm1562_vm6, %v1511_v28  ;;  %3935 = vrot.lane.b32.xlu1 %v3871_v23, %s9586_s20 }
 0x25a   : > { %v1929_v18 = vpop.permute.xlu0 %1928  ;;  %v2522_v52 = vld [vmem:[#allocation3 + $0x1e8] sm:$0xff] }
 0x25b   : > { %2002 = vst.msk [vmem:[#allocation3 + $0x218] sm:$0xff] %vm1369_vm5, %v1929_v18  ;;  %v1704_v8 = vpop.permute.xlu1 %1703  ;;  %2817 = vmatprep.mubr.f32.mxu1 %v2522_v52 }
 0x25c   : > { %1778 = vst.msk [vmem:[#allocation3 + $0x210] sm:$0xff] %vm1755_vm7, %v1704_v8  ;;  %2331 = vrot.lane.b32.xlu0 %v2236_v11, %s9587_s27  ;;  %2818 = vmatmul.mubr.f32.gmra.mxu1 %v2521_v25 }
 0x25d   : > { %4127 = vrot.lane.b32.xlu1 %v4063_v12, %s9585_s19 }
 0x25e   : > { %v2122_v49 = vpop.permute.xlu0 %2121 }
 0x25f   : > { %2195 = vst.msk [vmem:[#allocation3 + $0x218] sm:$0xff] %vm1562_vm6, %v2122_v49  ;;  %v1320_v45 = vpop.permute.xlu1 %1319  ;;  %v2525_v30 = vld [vmem:[#allocation3 + $0x200] sm:$0xff] }
 0x260   : > { %1393 = vst.msk [vmem:[#allocation3 + $0x228] sm:$0xff] %vm1369_vm5, %v1320_v45  ;;  %2822 = vmatprep.mubr.f32.mxu1 %v2525_v30  ;;  %4795 = vrot.lane.b32.xlu0 %v10950_v42, %s9585_s19  ;;  %v10992_v16 = vpop.f32.mrf.mxu0 }
 0x261   : > { %2823 = vmatmul.mubr.f32.gmra.mxu1 %v2524_v55  ;;  %3937 = vrot.lane.b32.xlu1 %v3872_v33, %s9586_s20 }
 0x262   : > { %v2314_v31 = vpop.permute.xlu0 %2313  ;;  %v2741_v20 = vpop.f32.mrf.mxu0 }
 0x263   : > { %2387 = vst.msk [vmem:[#allocation3 + $0x218] sm:$0xff] %vm1755_vm7, %v2314_v31  ;;  %v1513_v36 = vpop.permute.xlu1 %1512  ;;  %v2527_v43 = vld [vmem:[#allocation3 + $0x210] sm:$0xff] }
 0x264   : > { %1586 = vst.msk [vmem:[#allocation3 + $0x228] sm:$0xff] %vm1562_vm6, %v1513_v36  ;;  %4987 = vrot.lane.b32.xlu0 %v2235_v15, %s9587_s27 }
 0x265   : > { %4129 = vrot.lane.b32.xlu1 %v4064_v6, %s9585_s19 }
 0x266   : > { %v11001_v29 = vpop.f32.mrf.mxu0  ;;  %v1931_v39 = vpop.permute.xlu0 %1930 }
 0x267   : > { %2003 = vst.msk [vmem:[#allocation3 + $0x230] sm:$0xff] %vm1369_vm5, %v1931_v39  ;;  %v1706_v40 = vpop.permute.xlu1 %1705 }
 0x268   : > { %1779 = vst.msk [vmem:[#allocation3 + $0x228] sm:$0xff] %vm1755_vm7, %v1706_v40  ;;  %v2746_v41 = vpop.f32.mrf.mxu0 }
 0x26a   : > { %v2124_v14 = vpop.permute.xlu0 %2123  ;;  %v2528_v7 = vld [vmem:[#allocation3 + $0x218] sm:$0xff] }
 0x26b   : > { %2196 = vst.msk [vmem:[#allocation3 + $0x230] sm:$0xff] %vm1562_vm6, %v2124_v14  ;;  %v1322_v26 = vpop.permute.xlu1 %1321  ;;  %2827 = vmatprep.mubr.f32.mxu1 %v2528_v7 }
 0x26c   : > { %1394 = vst.msk [vmem:[#allocation3 + $0x240] sm:$0xff] %vm1369_vm5, %v1322_v26  ;;  %2828 = vmatmul.mubr.f32.gmra.mxu1 %v2527_v43 }
 0x26e   : > { %v2316_v44 = vpop.permute.xlu0 %2315 }
 0x26f   : > { %2388 = vst.msk [vmem:[#allocation3 + $0x230] sm:$0xff] %vm1755_vm7, %v2316_v44  ;;  %v1515_v27 = vpop.permute.xlu1 %1514  ;;  %v2530_v38 = vld [vmem:[#allocation3 + $0x228] sm:$0xff] }
 0x270   : > { %1587 = vst.msk [vmem:[#allocation3 + $0x240] sm:$0xff] %vm1562_vm6, %v1515_v27 }
 0x272   : > { %v1933_v47 = vpop.permute.xlu0 %1932 }
 0x273   : > { %2004 = vst.msk [vmem:[#allocation3 + $0x248] sm:$0xff] %vm1369_vm5, %v1933_v47  ;;  %v1708_v46 = vpop.permute.xlu1 %1707 }
 0x274   : > { %1780 = vst.msk [vmem:[#allocation3 + $0x240] sm:$0xff] %vm1755_vm7, %v1708_v46 }
 0x276   : > { %v2126_v32 = vpop.permute.xlu0 %2125  ;;  %v2531_v50 = vld [vmem:[#allocation3 + $0x230] sm:$0xff] }
 0x277   : > { %2197 = vst.msk [vmem:[#allocation3 + $0x248] sm:$0xff] %vm1562_vm6, %v2126_v32  ;;  %v1324_v51 = vpop.permute.xlu1 %1323  ;;  %2832 = vmatprep.mubr.f32.mxu1 %v2531_v50 }
 0x278   : > { %1395 = vst.msk [vmem:[#allocation3 + $0x258] sm:$0xff] %vm1369_vm5, %v1324_v51  ;;  %2833 = vmatmul.mubr.f32.gmra.mxu1 %v2530_v38  ;;  %v2749_v62 = vpop.f32.mrf.mxu0 }
 0x27a   : > { %v2318_v57 = vpop.permute.xlu0 %2317  ;;  %v2751_v34 = vpop.f32.mrf.mxu0 }
 0x27b   : > { %2389 = vst.msk [vmem:[#allocation3 + $0x248] sm:$0xff] %vm1755_vm7, %v2318_v57  ;;  %v1517_v2 = vpop.permute.xlu1 %1516  ;;  %v2533_v5 = vld [vmem:[#allocation3 + $0x240] sm:$0xff] }
 0x27c   : > { %1588 = vst.msk [vmem:[#allocation3 + $0x258] sm:$0xff] %vm1562_vm6, %v1517_v2  ;;  %v9194_v19 = vpop.f32.mrf.mxu0 }
 0x27d   : > { %v2950_v60 = vadd.f32 %v9194_v19, %v10943_v10 }
 0x27e   : > { %v2754_v42 = vpop.f32.mrf.mxu1  ;;  %v1935_v9 = vpop.permute.xlu0 %1934 }
 0x27f   : > { %2005 = vst.msk [vmem:[#allocation3 + $0x260] sm:$0xff] %vm1369_vm5, %v1935_v9  ;;  %v1710_v61 = vpop.permute.xlu1 %1709  ;;  %v2944_v48 = vpop.f32.mrf.mxu0  ;;  %3137 = vrot.lane.b32.xlu1 %v2950_v60, %s9588_s28 }
 0x280   : > { %1781 = vst.msk [vmem:[#allocation3 + $0x258] sm:$0xff] %vm1755_vm7, %v1710_v61  ;;  %v2945_v63 = vadd.f32 %v2944_v48, %v10933_v53  ;;  %v2756_v35 = vpop.f32.mrf.mxu1 }
 0x281   : > { %v9197_v37 = vpop.f32.mrf.mxu0 }
 0x282   : > { %v2960_v4 = vadd.f32 %v9197_v37, %v10963_v56  ;;  %3135 = vrot.lane.b32.xlu0 %v2945_v63, %s9588_s28  ;;  %v2128_v10 = vpop.permute.xlu0 %2127  ;;  %v2534_v15 = vld [vmem:[#allocation3 + $0x248] sm:$0xff] }
 0x283   : > { %2198 = vst.msk [vmem:[#allocation3 + $0x260] sm:$0xff] %vm1562_vm6, %v2128_v10  ;;  %v1326_v3 = vpop.permute.xlu1 %1325  ;;  %v2954_v59 = vpop.f32.mrf.mxu0  ;;  %2837 = vmatprep.mubr.f32.mxu1 %v2534_v15 }
 0x284   : > { %1396 = vst.msk [vmem:[#allocation3 + $0x270] sm:$0xff] %vm1369_vm5, %v1326_v3  ;;  %v2955_v53 = vadd.f32 %v2954_v59, %v10952_v54  ;;  %3141 = vrot.lane.b32.xlu1 %v2960_v4, %s9588_s28  ;;  %2838 = vmatmul.mubr.f32.gmra.mxu1 %v2533_v5 }
 0x285   : > { %v9200_v22 = vpop.f32.mrf.mxu0 }
 0x286   : > { %v2970_v56 = vadd.f32 %v9200_v22, %v11001_v29  ;;  %3139 = vrot.lane.b32.xlu0 %v2955_v53, %s9588_s28  ;;  %v2320_v58 = vpop.permute.xlu0 %2319 }
 0x287   : > { %2390 = vst.msk [vmem:[#allocation3 + $0x260] sm:$0xff] %vm1755_vm7, %v2320_v58  ;;  %v1519_v0 = vpop.permute.xlu1 %1518  ;;  %v2964_v17 = vpop.f32.mrf.mxu0  ;;  %v2536_v33 = vld [vmem:[#allocation3 + $0x258] sm:$0xff] }
 0x288   : > { %1589 = vst.msk [vmem:[#allocation3 + $0x270] sm:$0xff] %vm1562_vm6, %v1519_v0  ;;  %v2965_v23 = vadd.f32 %v2964_v17, %v10992_v16  ;;  %3145 = vrot.lane.b32.xlu1 %v2970_v56, %s9588_s28 }
 0x289   : > { %v9203_v54 = vpop.f32.mrf.mxu0 }
 0x28a   : > { %v2980_v28 = vadd.f32 %v9203_v54, %v2754_v42  ;;  %3143 = vrot.lane.b32.xlu0 %v2965_v23, %s9588_s28  ;;  %v1937_v11 = vpop.permute.xlu0 %1936 }
 0x28b   : > { %2006 = vst.msk [vmem:[#allocation3 + $0x278] sm:$0xff] %vm1369_vm5, %v1937_v11  ;;  %v1712_v18 = vpop.permute.xlu1 %1711  ;;  %v2974_v52 = vpop.f32.mrf.mxu0 }
 0x28c   : > { %1782 = vst.msk [vmem:[#allocation3 + $0x270] sm:$0xff] %vm1755_vm7, %v1712_v18  ;;  %v2975_v12 = vadd.f32 %v2974_v52, %v2749_v62  ;;  %3149 = vrot.lane.b32.xlu1 %v2980_v28, %s9588_s28 }
 0x28d   : > { %v9206_v21 = vpop.f32.mrf.mxu0 }
 0x28e   : > { %3147 = vrot.lane.b32.xlu0 %v2975_v12, %s9588_s28  ;;  %v2130_v8 = vpop.permute.xlu0 %2129  ;;  %v2537_v25 = vld [vmem:[#allocation3 + $0x260] sm:$0xff] }
 0x28f   : > { %2199 = vst.msk [vmem:[#allocation3 + $0x278] sm:$0xff] %vm1562_vm6, %v2130_v8  ;;  %v1328_v49 = vpop.permute.xlu1 %1327  ;;  %2842 = vmatprep.mubr.f32.mxu1 %v2537_v25  ;;  %v2984_v45 = vpop.f32.mrf.mxu0 }
 0x290   : > { %1397 = vst.msk [vmem:[#allocation3 + $0x288] sm:$0xff] %vm1369_vm5, %v1328_v49  ;;  %v2759_v30 = vpop.f32.mrf.mxu1  ;;  %2843 = vmatmul.mubr.f32.gmra.mxu1 %v2536_v33 }
 0x291   : > { %v2985_v55 = vadd.f32 %v2984_v45, %v2759_v30  ;;  %v9209_v27 = vpop.f32.mrf.mxu0 }
 0x292   : > { %v2322_v1 = vpop.permute.xlu0 %2321  ;;  %v2761_v24 = vpop.f32.mrf.mxu1 }
 0x293   : > { %2391 = vst.msk [vmem:[#allocation3 + $0x278] sm:$0xff] %vm1755_vm7, %v2322_v1  ;;  %v1521_v16 = vpop.permute.xlu1 %1520  ;;  %3151 = vrot.lane.b32.xlu0 %v2985_v55, %s9588_s28  ;;  %v2539_v43 = vld [vmem:[#allocation3 + $0x270] sm:$0xff]  ;;  %v2994_v51 = vpop.f32.mrf.mxu0 }
 0x294   : > { %1590 = vst.msk [vmem:[#allocation3 + $0x288] sm:$0xff] %vm1562_vm6, %v1521_v16 }
 0x296   : > { %v2764_v31 = vpop.f32.mrf.mxu1  ;;  %v1939_v6 = vpop.permute.xlu0 %1938 }
 0x297   : > { %v2990_v36 = vadd.f32 %v9206_v21, %v2764_v31  ;;  %2007 = vst.msk [vmem:[#allocation3 + $0x290] sm:$0xff] %vm1369_vm5, %v1939_v6  ;;  %v1714_v20 = vpop.permute.xlu1 %1713  ;;  %v9212_v59 = vpop.f32.mrf.mxu0 }
 0x298   : > { %1783 = vst.msk [vmem:[#allocation3 + $0x288] sm:$0xff] %vm1755_vm7, %v1714_v20  ;;  %v2766_v29 = vpop.f32.mrf.mxu1 }
 0x299   : > { %3153 = vrot.lane.b32.xlu1 %v2990_v36, %s9588_s28  ;;  %v3004_v58 = vpop.f32.mrf.mxu0 }
 0x29a   : > { %v2132_v39 = vpop.permute.xlu0 %2131  ;;  %v2540_v40 = vld [vmem:[#allocation3 + $0x278] sm:$0xff] }
 0x29b   : > { %2200 = vst.msk [vmem:[#allocation3 + $0x290] sm:$0xff] %vm1562_vm6, %v2132_v39  ;;  %v1330_v41 = vpop.permute.xlu1 %1329  ;;  %2847 = vmatprep.mubr.f32.mxu1 %v2540_v40  ;;  %v9215_v1 = vpop.f32.mrf.mxu0 }
 0x29c   : > { %1398 = vst.msk [vmem:[#allocation3 + $0x2a0] sm:$0xff] %vm1369_vm5, %v1330_v41  ;;  %2848 = vmatmul.mubr.f32.gmra.mxu1 %v2539_v43 }
 0x29d   : > { %v3014_v6 = vpop.f32.mrf.mxu0 }
 0x29e   : > { %v2324_v14 = vpop.permute.xlu0 %2323 }
 0x29f   : > { %2392 = vst.msk [vmem:[#allocation3 + $0x290] sm:$0xff] %vm1755_vm7, %v2324_v14  ;;  %v1523_v7 = vpop.permute.xlu1 %1522  ;;  %v2542_v50 = vld [vmem:[#allocation3 + $0x288] sm:$0xff]  ;;  %v9218_v14 = vpop.f32.mrf.mxu0 }
 0x2a0   : > { %1591 = vst.msk [vmem:[#allocation3 + $0x2a0] sm:$0xff] %vm1562_vm6, %v1523_v7 }
 0x2a2   : > { %v1941_v26 = vpop.permute.xlu0 %1940 }
 0x2a3   : > { %2008 = vst.msk [vmem:[#allocation3 + $0x2a8] sm:$0xff] %vm1369_vm5, %v1941_v26  ;;  %v1716_v44 = vpop.permute.xlu1 %1715  ;;  %v3024_v26 = vpop.f32.mrf.mxu0 }
 0x2a4   : > { %1784 = vst.msk [vmem:[#allocation3 + $0x2a0] sm:$0xff] %vm1755_vm7, %v1716_v44 }
 0x2a6   : > { %v2134_v47 = vpop.permute.xlu0 %2133  ;;  %v2543_v46 = vld [vmem:[#allocation3 + $0x290] sm:$0xff] }
 0x2a7   : > { %2201 = vst.msk [vmem:[#allocation3 + $0x2a8] sm:$0xff] %vm1562_vm6, %v2134_v47  ;;  %v1332_v32 = vpop.permute.xlu1 %1331  ;;  %2852 = vmatprep.mubr.f32.mxu1 %v2543_v46  ;;  %v11088_v47 = vld [vmem:[%s13851_s6] ss:$0 sm:$0xff] }
 0x2a8   : > { %1399 = vst.msk [vmem:[#allocation3 + $0x2b8] sm:$0xff] %vm1369_vm5, %v1332_v32  ;;  %v2769_v38 = vpop.f32.mrf.mxu1  ;;  %2853 = vmatmul.mubr.f32.gmra.mxu1 %v2542_v50  ;;  %v9538_v50 = vld [vmem:[%s9700_s0 + $0x8] sm:$0xff] }
 0x2a9   : > { %v2995_v62 = vadd.f32 %v2994_v51, %v2769_v38  ;;  %v11098_v38 = vld [vmem:[%s13852_s7] ss:$0 sm:$0xff] }
 0x2aa   : > { %v2326_v57 = vpop.permute.xlu0 %2325  ;;  %v2771_v2 = vpop.f32.mrf.mxu1 }
 0x2ab   : > { %2393 = vst.msk [vmem:[#allocation3 + $0x2a8] sm:$0xff] %vm1755_vm7, %v2326_v57  ;;  %v1525_v34 = vpop.permute.xlu1 %1524  ;;  %3155 = vrot.lane.b32.xlu0 %v2995_v62, %s9588_s28  ;;  %v2545_v37 = vld [vmem:[#allocation3 + $0x2a0] sm:$0xff]  ;;  %v9539_v2 = vld [vmem:[%s9700_s0] sm:$0xff] }
 0x2ac   : > { %1592 = vst.msk [vmem:[#allocation3 + $0x2b8] sm:$0xff] %vm1562_vm6, %v1525_v34 }
 0x2ae   : > { %v2774_v19 = vpop.f32.mrf.mxu1  ;;  %v1943_v42 = vpop.permute.xlu0 %1942 }
 0x2af   : > { %v3000_v60 = vadd.f32 %v9209_v27, %v2774_v19  ;;  %2009 = vst.msk [vmem:[#allocation3 + $0x2c0] sm:$0xff] %vm1369_vm5, %v1943_v42  ;;  %v1718_v9 = vpop.permute.xlu1 %1717 }
 0x2b0   : > { %v2776_v61 = vpop.f32.mrf.mxu1  ;;  %1785 = vst.msk [vmem:[#allocation3 + $0x2b8] sm:$0xff] %vm1755_vm7, %v1718_v9 }
 0x2b1   : > { %3157 = vrot.lane.b32.xlu1 %v3000_v60, %s9588_s28 }
 0x2b2   : > { %v2136_v48 = vpop.permute.xlu0 %2135  ;;  %v2546_v63 = vld [vmem:[#allocation3 + $0x2a8] sm:$0xff] }
 0x2b3   : > { %2202 = vst.msk [vmem:[#allocation3 + $0x2c0] sm:$0xff] %vm1562_vm6, %v2136_v48  ;;  %v1334_v35 = vpop.permute.xlu1 %1333  ;;  %2857 = vmatprep.mubr.f32.mxu1 %v2546_v63  ;;  %v9540_v48 = vld [vmem:[%s9700_s0 + $0x18] sm:$0xff] }
 0x2b4   : > { %1400 = vst.msk [vmem:[#allocation3 + $0x2d0] sm:$0xff] %vm1369_vm5, %v1334_v35  ;;  %2858 = vmatmul.mubr.f32.gmra.mxu1 %v2545_v37 }
 0x2b6   : > { %v2328_v4 = vpop.permute.xlu0 %2327 }
 0x2b7   : > { %2394 = vst.msk [vmem:[#allocation3 + $0x2c0] sm:$0xff] %vm1755_vm7, %v2328_v4  ;;  %v1527_v10 = vpop.permute.xlu1 %1526  ;;  %v2548_v56 = vld [vmem:[#allocation3 + $0x2b8] sm:$0xff] }
 0x2b8   : > { %1593 = vst.msk [vmem:[#allocation3 + $0x2d0] sm:$0xff] %vm1562_vm6, %v1527_v10 }
 0x2ba   : > { %v1945_v15 = vpop.permute.xlu0 %1944 }
 0x2bb   : > { %2010 = vst.msk [vmem:[#allocation3 + $0x2d8] sm:$0xff] %vm1369_vm5, %v1945_v15  ;;  %v1720_v3 = vpop.permute.xlu1 %1719  ;;  %v9541_v15 = vld [vmem:[%s9700_s0 + $0x10] sm:$0xff] }
 0x2bc   : > { %1786 = vst.msk [vmem:[#allocation3 + $0x2d0] sm:$0xff] %vm1755_vm7, %v1720_v3 }
 0x2be   : > { %v2138_v5 = vpop.permute.xlu0 %2137  ;;  %v2549_v53 = vld [vmem:[#allocation3 + $0x2c0] sm:$0xff] }
 0x2bf   : > { %2203 = vst.msk [vmem:[#allocation3 + $0x2d8] sm:$0xff] %vm1562_vm6, %v2138_v5  ;;  %v1336_v22 = vpop.permute.xlu1 %1335  ;;  %2862 = vmatprep.mubr.f32.mxu1 %v2549_v53 }
 0x2c0   : > { %1401 = vst.msk [vmem:[#allocation3 + $0x2e8] sm:$0xff] %vm1369_vm5, %v1336_v22  ;;  %v2779_v0 = vpop.f32.mrf.mxu1  ;;  %2863 = vmatmul.mubr.f32.gmra.mxu1 %v2548_v56 }
 0x2c1   : > { %v3005_v17 = vadd.f32 %v3004_v58, %v2779_v0  ;;  %v9542_v58 = vld [vmem:[%s9700_s0 + $0x28] sm:$0xff] }
 0x2c2   : > { %v2330_v23 = vpop.permute.xlu0 %2329  ;;  %v2781_v54 = vpop.f32.mrf.mxu1 }
 0x2c3   : > { %2395 = vst.msk [vmem:[#allocation3 + $0x2d8] sm:$0xff] %vm1755_vm7, %v2330_v23  ;;  %v1529_v28 = vpop.permute.xlu1 %1528  ;;  %3159 = vrot.lane.b32.xlu0 %v3005_v17, %s9588_s28  ;;  %v2551_v49 = vld [vmem:[#allocation3 + $0x2d0] sm:$0xff] }
 0x2c4   : > { %1594 = vst.msk [vmem:[#allocation3 + $0x2e8] sm:$0xff] %vm1562_vm6, %v1529_v28  ;;  %v9543_v28 = vld [vmem:[%s9700_s0 + $0x20] sm:$0xff] }
 0x2c6   : > { %v2784_v11 = vpop.f32.mrf.mxu1  ;;  %v1947_v52 = vpop.permute.xlu0 %1946 }
 0x2c7   : > { %v3010_v18 = vadd.f32 %v9212_v59, %v2784_v11  ;;  %2011 = vst.msk [vmem:[#allocation3 + $0x2f0] sm:$0xff] %vm1369_vm5, %v1947_v52  ;;  %v1722_v12 = vpop.permute.xlu1 %1721 }
 0x2c8   : > { %v2786_v21 = vpop.f32.mrf.mxu1  ;;  %1787 = vst.msk [vmem:[#allocation3 + $0x2e8] sm:$0xff] %vm1755_vm7, %v1722_v12 }
 0x2c9   : > { %3161 = vrot.lane.b32.xlu1 %v3010_v18, %s9588_s28 }
 0x2ca   : > { %v2140_v8 = vpop.permute.xlu0 %2139  ;;  %v2552_v25 = vld [vmem:[#allocation3 + $0x2d8] sm:$0xff] }
 0x2cb   : > { %2204 = vst.msk [vmem:[#allocation3 + $0x2f0] sm:$0xff] %vm1562_vm6, %v2140_v8  ;;  %2867 = vmatprep.mubr.f32.mxu1 %v2552_v25  ;;  %v3936_v33 = vpop.permute.xlu1 %3935  ;;  %v9544_v25 = vld [vmem:[%s9700_s0 + $0x38] sm:$0xff] }
 0x2cc   : > { %2868 = vmatmul.mubr.f32.gmra.mxu1 %v2551_v49  ;;  %4031 = vst.msk [vmem:[#allocation3] sm:$0xff] %vm1369_vm5, %v3936_v33 }
 0x2ce   : > { %v2332_v45 = vpop.permute.xlu0 %2331 }
 0x2cf   : > { %2396 = vst.msk [vmem:[#allocation3 + $0x2f0] sm:$0xff] %vm1755_vm7, %v2332_v45  ;;  %v4128_v30 = vpop.permute.xlu1 %4127  ;;  %v2554_v16 = vld [vmem:[#allocation3 + $0x2e8] sm:$0xff] }
 0x2d0   : > { %4223 = vst.msk [vmem:[#allocation3] sm:$0xff] %vm1562_vm6, %v4128_v30 }
 0x2d2   : > { %v11081_v43 = vpop.permute.xlu0 %4795 }
 0x2d3   : > { %v3938_v55 = vpop.permute.xlu1 %3937 }
 0x2d4   : > { %4032 = vst.msk [vmem:[#allocation3 + $0x18] sm:$0xff] %vm1369_vm5, %v3938_v55  ;;  %v9545_v55 = vld [vmem:[%s9700_s0 + $0x30] sm:$0xff] }
 0x2d6   : > { %v2555_v24 = vld [vmem:[#allocation3 + $0x2f0] sm:$0xff]  ;;  %v11083_v7 = vpop.permute.xlu0 %4987 }
 0x2d7   : > { %2872 = vmatprep.mubr.f32.mxu1 %v2555_v24  ;;  %v4130_v31 = vpop.permute.xlu1 %4129 }
 0x2d8   : > { %v2789_v36 = vpop.f32.mrf.mxu1  ;;  %2873 = vmatmul.mubr.f32.gmra.mxu1 %v2554_v16  ;;  %4224 = vst.msk [vmem:[#allocation3 + $0x18] sm:$0xff] %vm1562_vm6, %v4130_v31 }
 0x2d9   : > { %v3015_v20 = vadd.f32 %v3014_v6, %v2789_v36  ;;  %v9221_v36 = vpop.f32.mrf.mxu0 }
 0x2da   : > { %v2791_v29 = vpop.f32.mrf.mxu1 }
 0x2db   : > { %3163 = vrot.lane.b32.xlu0 %v3015_v20, %s9588_s28 }
 0x2de   : > { %v2794_v39 = vpop.f32.mrf.mxu1 }
 0x2df   : > { %v3020_v40 = vadd.f32 %v9215_v1, %v2794_v39 }
 0x2e0   : > { %v2796_v41 = vpop.f32.mrf.mxu1 }
 0x2e1   : > { %3165 = vrot.lane.b32.xlu1 %v3020_v40, %s9588_s28  ;;  %v9546_v40 = vld [vmem:[%s9700_s0 + $0x40] sm:$0xff] }
 0x2f0   : > { %v2799_v44 = vpop.f32.mrf.mxu1 }
 0x2f1   : > { %v3025_v27 = vadd.f32 %v3024_v26, %v2799_v44  ;;  %v3138_v46 = vpop.permute.xlu1 %3137  ;;  %v3034_v44 = vpop.f32.mrf.mxu0 }
 0x2f2   : > { %v2801_v32 = vpop.f32.mrf.mxu1  ;;  %v11092_v51 = vsel %vm754_vm1, %v9538_v50, %v3138_v46 }
 0x2f3   : > { %3167 = vrot.lane.b32.xlu0 %v3025_v27, %s9588_s28  ;;  %v3311_v62 = vmul.f32 %v11088_v47, %v11092_v51 }
 0x2f4   : > { %v3136_v57 = vpop.permute.xlu0 %3135 }
 0x2f5   : > { %v11104_v34 = vsel %vm754_vm1, %v9539_v2, %v3136_v57  ;;  %v3349_v61 = vadd.f32 %v11098_v38, %v3311_v62  ;;  %v9547_v2 = vld [vmem:[%s9700_s0 + $0x48] sm:$0xff] }
 0x2f6   : > { %v2804_v19 = vpop.f32.mrf.mxu1  ;;  %v3310_v60 = vmul.f32 %v11088_v47, %v11104_v34  ;;  %v3142_v9 = vpop.permute.xlu1 %3141 }
 0x2f7   : > { %v3030_v42 = vadd.f32 %v9218_v14, %v2804_v19  ;;  %v11111_v63 = vsel %vm754_vm1, %v9540_v48, %v3142_v9  ;;  %v3381_v22 = vmax.f32 %v3349_v61, 0.0 }
 0x2f8   : > { %v2806_v35 = vpop.f32.mrf.mxu1  ;;  %v3348_v37 = vadd.f32 %v11098_v38, %v3310_v60  ;;  %v3313_v4 = vmul.f32 %v11088_v47, %v11111_v63  ;;  %v3140_v10 = vpop.permute.xlu0 %3139 }
 0x2f9   : > { %3169 = vrot.lane.b32.xlu1 %v3030_v42, %s9588_s28  ;;  %v11119_v3 = vsel %vm754_vm1, %v9541_v15, %v3140_v10 }
 0x2fa   : > { %v3380_v59 = vmax.f32 %v3348_v37, 0.0  ;;  %v3312_v5 = vmul.f32 %v11088_v47, %v11119_v3  ;;  %v3146_v53 = vpop.permute.xlu1 %3145  ;;  %v3351_v56 = vadd.f32 %v11098_v38, %v3313_v4  ;;  %v9224_v37 = vpop.f32.mrf.mxu0 }
 0x2fb   : > { %v11126_v0 = vsel %vm754_vm1, %v9542_v58, %v3146_v53 }
 0x2fc   : > { %v3350_v17 = vadd.f32 %v11098_v38, %v3312_v5  ;;  %v3315_v23 = vmul.f32 %v11088_v47, %v11126_v0  ;;  %9244 = vmatprep.mubr.msk.f32.mxu0 %vm3418_vm8, %v3380_v59  ;;  %v3144_v54 = vpop.permute.xlu0 %3143  ;;  %v3383_v21 = vmax.f32 %v3351_v56, 0.0  ;;  %v3044_v4 = vpop.f32.mrf.mxu0  ;;  %v9548_v5 = vld [vmem:[%s9700_s0 + $0x50] sm:$0xff] }
 0x2fd   : > { %v11134_v11 = vsel %vm754_vm1, %v9543_v28, %v3144_v54  ;;  %9245 = vmatmul.mubr.msk.f32.vlgmr.msra.gmra.mxu0 %vm3418_vm8, %v3381_v22 }
 0x2fe   : > { %v3382_v18 = vmax.f32 %v3350_v17, 0.0  ;;  %v3314_v52 = vmul.f32 %v11088_v47, %v11134_v11  ;;  %v3150_v12 = vpop.permute.xlu1 %3149  ;;  %v3353_v8 = vadd.f32 %v11098_v38, %v3315_v23 }
 0x2ff   : > { %v11142_v49 = vsel %vm754_vm1, %v9544_v25, %v3150_v12  ;;  %v9227_v25 = vpop.f32.mrf.mxu0 }
 0x300   : > { %v3352_v33 = vadd.f32 %v11098_v38, %v3314_v52  ;;  %v3317_v45 = vmul.f32 %v11088_v47, %v11142_v49  ;;  %9247 = vmatprep.mubr.msk.f32.mxu0 %vm3418_vm8, %v3382_v18  ;;  %v3148_v30 = vpop.permute.xlu0 %3147  ;;  %v3385_v31 = vmax.f32 %v3353_v8, 0.0  ;;  %v9549_v18 = vld [vmem:[%s9700_s0 + $0x58] sm:$0xff] }
 0x301   : > { %v11150_v1 = vsel %vm754_vm1, %v9545_v55, %v3148_v30  ;;  %9248 = vmatmul.mubr.msk.f32.gmra.mxu0 %vm3418_vm8, %v3383_v21 }
 0x302   : > { %v3384_v24 = vmax.f32 %v3352_v33, 0.0  ;;  %v3316_v16 = vmul.f32 %v11088_v47, %v11150_v1  ;;  %v3355_v6 = vadd.f32 %v11098_v38, %v3317_v45  ;;  %v3054_v45 = vpop.f32.mrf.mxu0 }
 0x304   : > { %v3354_v20 = vadd.f32 %v11098_v38, %v3316_v16  ;;  %9250 = vmatprep.mubr.msk.f32.mxu0 %vm3418_vm8, %v3384_v24  ;;  %v3387_v14 = vmax.f32 %v3355_v6, 0.0 }
 0x305   : > { %9251 = vmatmul.mubr.msk.f32.gmra.mxu0 %vm3418_vm8, %v3385_v31  ;;  %v3152_v29 = vpop.permute.xlu0 %3151  ;;  %v9550_v31 = vld [vmem:[%s9700_s0 + $0x60] sm:$0xff] }
 0x306   : > { %v3386_v39 = vmax.f32 %v3354_v20, 0.0  ;;  %v11161_v41 = vsel %vm754_vm1, %v9546_v40, %v3152_v29 }
 0x307   : > { %v3318_v26 = vmul.f32 %v11088_v47, %v11161_v41 }
 0x308   : > { %9253 = vmatprep.mubr.msk.f32.mxu0 %vm3418_vm8, %v3386_v39  ;;  %v2809_v27 = vpop.f32.mrf.mxu1 }
 0x309   : > { %v3356_v46 = vadd.f32 %v11098_v38, %v3318_v26  ;;  %v3035_v32 = vadd.f32 %v3034_v44, %v2809_v27  ;;  %9254 = vmatmul.mubr.msk.f32.gmra.mxu0 %vm3418_vm8, %v3387_v14  ;;  %v9551_v44 = vld [vmem:[%s9700_s0 + $0x68] sm:$0xff] }
 0x30a   : > { %v2811_v50 = vpop.f32.mrf.mxu1 }
 0x30b   : > { %v3388_v62 = vmax.f32 %v3356_v46, 0.0  ;;  %v3154_v57 = vpop.permute.xlu1 %3153  ;;  %3171 = vrot.lane.b32.xlu0 %v3035_v32, %s9588_s28  ;;  %v9230_v50 = vpop.f32.mrf.mxu0 }
 0x30c   : > { %v11171_v19 = vsel %vm754_vm1, %v9547_v2, %v3154_v57 }
 0x30d   : > { %v3319_v60 = vmul.f32 %v11088_v47, %v11171_v19  ;;  %v2814_v42 = vpop.f32.mrf.mxu1  ;;  %9256 = vmatprep.mubr.msk.f32.mxu0 %vm3418_vm8, %v3388_v62  ;;  %v3064_v57 = vpop.f32.mrf.mxu0 }
 0x30e   : > { %v3040_v9 = vadd.f32 %v9221_v36, %v2814_v42 }
 0x30f   : > { %v3357_v61 = vadd.f32 %v11098_v38, %v3319_v60  ;;  %v2816_v48 = vpop.f32.mrf.mxu1 }
 0x310   : > { %3173 = vrot.lane.b32.xlu1 %v3040_v9, %s9588_s28 }
 0x311   : > { %v3389_v35 = vmax.f32 %v3357_v61, 0.0  ;;  %v9552_v61 = vld [vmem:[%s9700_s0 + $0x70] sm:$0xff] }
 0x313   : > { %9257 = vmatmul.mubr.msk.f32.gmra.mxu0 %vm3418_vm8, %v3389_v35 }
 0x31c   : > { %v2819_v10 = vpop.f32.mrf.mxu1 }
 0x31d   : > { %v3045_v15 = vadd.f32 %v3044_v4, %v2819_v10  ;;  %v3156_v59 = vpop.permute.xlu0 %3155 }
 0x31e   : > { %v11181_v53 = vsel %vm754_vm1, %v9548_v5, %v3156_v59  ;;  %v2821_v22 = vpop.f32.mrf.mxu1 }
 0x31f   : > { %v3320_v56 = vmul.f32 %v11088_v47, %v11181_v53  ;;  %3175 = vrot.lane.b32.xlu0 %v3045_v15, %s9588_s28  ;;  %v9553_v22 = vld [vmem:[%s9700_s0 + $0x78] sm:$0xff] }
 0x321   : > { %v3358_v58 = vadd.f32 %v11098_v38, %v3320_v56  ;;  %v2824_v17 = vpop.f32.mrf.mxu1 }
 0x322   : > { %v3050_v23 = vadd.f32 %v9224_v37, %v2824_v17 }
 0x323   : > { %v3158_v54 = vpop.permute.xlu1 %3157  ;;  %v3390_v28 = vmax.f32 %v3358_v58, 0.0  ;;  %v2826_v12 = vpop.f32.mrf.mxu1 }
 0x324   : > { %v11189_v52 = vsel %vm754_vm1, %v9549_v18, %v3158_v54  ;;  %3177 = vrot.lane.b32.xlu1 %v3050_v23, %s9588_s28  ;;  %v9233_v23 = vpop.f32.mrf.mxu0 }
 0x325   : > { %v3321_v21 = vmul.f32 %v11088_v47, %v11189_v52  ;;  %9259 = vmatprep.mubr.msk.f32.mxu0 %vm3418_vm8, %v3390_v28 }
 0x326   : > { %v3074_v28 = vpop.f32.mrf.mxu0 }
 0x327   : > { %v3359_v8 = vadd.f32 %v11098_v38, %v3321_v21 }
 0x329   : > { %v3391_v33 = vmax.f32 %v3359_v8, 0.0 }
 0x32b   : > { %9260 = vmatmul.mubr.msk.f32.gmra.mxu0 %vm3418_vm8, %v3391_v33 }
 0x32c   : > { %v2829_v30 = vpop.f32.mrf.mxu1 }
 0x32d   : > { %v3055_v55 = vadd.f32 %v3054_v45, %v2829_v30 }
 0x32e   : > { %v2831_v24 = vpop.f32.mrf.mxu1 }
 0x32f   : > { %3179 = vrot.lane.b32.xlu0 %v3055_v55, %s9588_s28 }
 0x335   : > { %v3160_v16 = vpop.permute.xlu0 %3159 }
 0x336   : > { %v11200_v6 = vsel %vm754_vm1, %v9550_v31, %v3160_v16 }
 0x337   : > { %v3322_v36 = vmul.f32 %v11088_v47, %v11200_v6 }
 0x338   : > { %v2834_v20 = vpop.f32.mrf.mxu1 }
 0x339   : > { %v3360_v29 = vadd.f32 %v11098_v38, %v3322_v36  ;;  %v3060_v39 = vadd.f32 %v9227_v25, %v2834_v20  ;;  %v9554_v25 = vld [vmem:[%s9700_s0 + $0x80] sm:$0xff]  ;;  %v9555_v20 = vld [vmem:[%s9700_s0 + $0x88] sm:$0xff] }
 0x33a   : > { %v2836_v40 = vpop.f32.mrf.mxu1 }
 0x33b   : > { %v3162_v14 = vpop.permute.xlu1 %3161  ;;  %v3392_v26 = vmax.f32 %v3360_v29, 0.0  ;;  %3181 = vrot.lane.b32.xlu1 %v3060_v39, %s9588_s28 }
 0x33c   : > { %v11207_v27 = vsel %vm754_vm1, %v9551_v44, %v3162_v14  ;;  %v9236_v14 = vpop.f32.mrf.mxu0 }
 0x33d   : > { %v3323_v46 = vmul.f32 %v11088_v47, %v11207_v27  ;;  %9262 = vmatprep.mubr.msk.f32.mxu0 %vm3418_vm8, %v3392_v26 }
 0x33e   : > { %v3084_v44 = vpop.f32.mrf.mxu0 }
 0x33f   : > { %v3361_v32 = vadd.f32 %v11098_v38, %v3323_v46 }
 0x341   : > { %v3393_v62 = vmax.f32 %v3361_v32, 0.0 }
 0x343   : > { %9263 = vmatmul.mubr.msk.f32.gmra.mxu0 %vm3418_vm8, %v3393_v62 }
 0x344   : > { %v2839_v2 = vpop.f32.mrf.mxu1 }
 0x345   : > { %v3065_v60 = vadd.f32 %v3064_v57, %v2839_v2  ;;  %v9556_v57 = vld [vmem:[%s9700_s0 + $0x90] sm:$0xff] }
 0x346   : > { %v2841_v42 = vpop.f32.mrf.mxu1 }
 0x347   : > { %3183 = vrot.lane.b32.xlu0 %v3065_v60, %s9588_s28 }
 0x34d   : > { %v3164_v9 = vpop.permute.xlu0 %3163 }
 0x34e   : > { %v11218_v48 = vsel %vm754_vm1, %v9552_v61, %v3164_v9 }
 0x34f   : > { %v3324_v35 = vmul.f32 %v11088_v47, %v11218_v48 }
 0x350   : > { %v2844_v37 = vpop.f32.mrf.mxu1 }
 0x351   : > { %v3362_v4 = vadd.f32 %v11098_v38, %v3324_v35  ;;  %v3070_v10 = vadd.f32 %v9230_v50, %v2844_v37 }
 0x352   : > { %v2846_v15 = vpop.f32.mrf.mxu1 }
 0x353   : > { %v3166_v59 = vpop.permute.xlu1 %3165  ;;  %v3394_v5 = vmax.f32 %v3362_v4, 0.0  ;;  %3185 = vrot.lane.b32.xlu1 %v3070_v10, %s9588_s28  ;;  %v9557_v10 = vld [vmem:[%s9700_s0 + $0x98] sm:$0xff] }
 0x354   : > { %v11225_v56 = vsel %vm754_vm1, %v9553_v22, %v3166_v59  ;;  %v9239_v22 = vpop.f32.mrf.mxu0 }
 0x355   : > { %v3325_v58 = vmul.f32 %v11088_v47, %v11225_v56  ;;  %9265 = vmatprep.mubr.msk.f32.mxu0 %vm3418_vm8, %v3394_v5 }
 0x357   : > { %v3363_v17 = vadd.f32 %v11098_v38, %v3325_v58 }
 0x359   : > { %v3395_v54 = vmax.f32 %v3363_v17, 0.0  ;;  %v3094_v17 = vpop.f32.mrf.mxu0 }
 0x35b   : > { %9266 = vmatmul.mubr.msk.f32.gmra.mxu0 %vm3418_vm8, %v3395_v54 }
 0x35c   : > { %v2849_v18 = vpop.f32.mrf.mxu1 }
 0x35d   : > { %v3075_v12 = vadd.f32 %v3074_v28, %v2849_v18 }
 0x35e   : > { %v2851_v21 = vpop.f32.mrf.mxu1 }
 0x35f   : > { %3187 = vrot.lane.b32.xlu0 %v3075_v12, %s9588_s28  ;;  %v9558_v12 = vld [vmem:[%s9700_s0 + $0xa0] sm:$0xff] }
 0x365   : > { %v3168_v8 = vpop.permute.xlu0 %3167 }
 0x366   : > { %v11236_v33 = vsel %vm754_vm1, %v9554_v25, %v3168_v8  ;;  %v3303_v8 = vld [vmem:[%s13855_s10 + $0x118] sm:$0xff] }
 0x367   : > { %v3326_v45 = vmul.f32 %v11088_v47, %v11236_v33  ;;  %9292 = vmatprep.subr.mxu0 %v3303_v8 }
 0x368   : > { %v2854_v30 = vpop.f32.mrf.mxu1  ;;  %9293 = vmatpush3.msra.mxu0 %v3303_v8 }
 0x369   : > { %v3364_v55 = vadd.f32 %v11098_v38, %v3326_v45  ;;  %v3080_v24 = vadd.f32 %v9233_v23, %v2854_v30  ;;  %v3302_v45 = vld [vmem:[%s13855_s10 + $0x110] sm:$0xff]  ;;  %v3301_v30 = vld [vmem:[%s13855_s10 + $0x108] sm:$0xff] }
 0x36a   : > { %v2856_v16 = vpop.f32.mrf.mxu1  ;;  %9294 = vmatprep.subr.mxu0 %v3302_v45 }
 0x36b   : > { %v3170_v31 = vpop.permute.xlu1 %3169  ;;  %v3396_v36 = vmax.f32 %v3364_v55, 0.0  ;;  %3189 = vrot.lane.b32.xlu1 %v3080_v24, %s9588_s28  ;;  %9295 = vmatpush3.msra.mxu0 %v3302_v45  ;;  %v3271_v45 = vld [vmem:[%s13855_s10 + $0x18] sm:$0xff] }
 0x36c   : > { %v11243_v29 = vsel %vm754_vm1, %v9555_v20, %v3170_v31  ;;  %v9559_v31 = vld [vmem:[%s9700_s0 + $0xa8] sm:$0xff]  ;;  %9296 = vmatprep.subr.mxu0 %v3301_v30  ;;  %v3300_v20 = vld [vmem:[%s13855_s10 + $0x100] sm:$0xff] }
 0x36d   : > { %v3327_v39 = vmul.f32 %v11088_v47, %v11243_v29  ;;  %9268 = vmatprep.mubr.msk.f32.mxu0 %vm3418_vm8, %v3396_v36  ;;  %9297 = vmatpush3.msra.mxu0 %v3301_v30  ;;  %v3270_v30 = vld [vmem:[%s13855_s10 + $0x10] sm:$0xff] }
 0x36e   : > { %9298 = vmatprep.subr.mxu0 %v3300_v20 }
 0x36f   : > { %v3365_v40 = vadd.f32 %v11098_v38, %v3327_v39  ;;  %9299 = vmatpush3.msra.mxu0 %v3300_v20 }
 0x371   : > { %v3397_v26 = vmax.f32 %v3365_v40, 0.0 }
 0x373   : > { %9269 = vmatmul.mubr.msk.f32.gmra.mxu0 %vm3418_vm8, %v3397_v26 }
 0x374   : > { %v2859_v46 = vpop.f32.mrf.mxu1 }
 0x375   : > { %v3085_v32 = vadd.f32 %v3084_v44, %v2859_v46  ;;  %v3283_v46 = vld [vmem:[%s13855_s10 + $0x78] sm:$0xff] }
 0x376   : > { %v2861_v50 = vpop.f32.mrf.mxu1  ;;  %5312 = vmatpush1.msra.mxu1 %v3283_v46  ;;  %v3298_v46 = vld [vmem:[%s13855_s10 + $0xf0] sm:$0xff] }
 0x377   : > { %3191 = vrot.lane.b32.xlu0 %v3085_v32, %s9588_s28  ;;  %5313 = vmatprep.subr.mxu1 %v13862_v13  ;;  %v3282_v50 = vld [vmem:[%s13855_s10 + $0x70] sm:$0xff] }
 0x378   : > { %5314 = vmatpush1.msra.mxu1 %v3282_v50  ;;  %v3297_v50 = vld [vmem:[%s13855_s10 + $0xe8] sm:$0xff] }
 0x379   : > { %5315 = vmatprep.subr.mxu1 %v13862_v13 }
 0x37d   : > { %v3172_v62 = vpop.permute.xlu0 %3171 }
 0x37e   : > { %v11254_v2 = vsel %vm754_vm1, %v9556_v57, %v3172_v62  ;;  %v3281_v62 = vld [vmem:[%s13855_s10 + $0x68] sm:$0xff] }
 0x37f   : > { %v3328_v60 = vmul.f32 %v11088_v47, %v11254_v2  ;;  %5316 = vmatpush1.msra.mxu1 %v3281_v62 }
 0x380   : > { %v2864_v42 = vpop.f32.mrf.mxu1  ;;  %5317 = vmatprep.subr.mxu1 %v13862_v13 }
 0x381   : > { %v3366_v9 = vadd.f32 %v11098_v38, %v3328_v60  ;;  %v3090_v61 = vadd.f32 %v9236_v14, %v2864_v42  ;;  %v3280_v60 = vld [vmem:[%s13855_s10 + $0x60] sm:$0xff]  ;;  %v9560_v42 = vld [vmem:[%s9700_s0 + $0xb0] sm:$0xff] }
 0x382   : > { %v2866_v35 = vpop.f32.mrf.mxu1  ;;  %v3174_v37 = vpop.permute.xlu1 %3173  ;;  %5318 = vmatpush1.msra.mxu1 %v3280_v60 }
 0x383   : > { %v3398_v4 = vmax.f32 %v3366_v9, 0.0  ;;  %v11261_v15 = vsel %vm754_vm1, %v9557_v10, %v3174_v37  ;;  %3193 = vrot.lane.b32.xlu1 %v3090_v61, %s9588_s28  ;;  %v3279_v61 = vld [vmem:[%s13855_s10 + $0x58] sm:$0xff]  ;;  %5319 = vmatprep.subr.mxu1 %v13862_v13  ;;  %v3278_v37 = vld [vmem:[%s13855_s10 + $0x50] sm:$0xff]  ;;  %v3277_v10 = vld [vmem:[%s13855_s10 + $0x48] sm:$0xff] }
 0x384   : > { %v3329_v59 = vmul.f32 %v11088_v47, %v11261_v15  ;;  %5320 = vmatpush1.msra.mxu1 %v3279_v61 }
 0x385   : > { %9271 = vmatprep.mubr.msk.f32.mxu0 %vm3418_vm8, %v3398_v4  ;;  %5321 = vmatprep.subr.mxu1 %v13862_v13 }
 0x386   : > { %v3367_v5 = vadd.f32 %v11098_v38, %v3329_v59  ;;  %5322 = vmatpush1.msra.mxu1 %v3278_v37 }
 0x387   : > { %5323 = vmatprep.subr.mxu1 %v13862_v13 }
 0x388   : > { %v3399_v58 = vmax.f32 %v3367_v5, 0.0  ;;  %v3276_v5 = vld [vmem:[%s13855_s10 + $0x40] sm:$0xff]  ;;  %5324 = vmatpush1.msra.mxu1 %v3277_v10  ;;  %v3295_v10 = vld [vmem:[%s13855_s10 + $0xd8] sm:$0xff] }
 0x389   : > { %5325 = vmatprep.subr.mxu1 %v13862_v13 }
 0x38a   : > { %9272 = vmatmul.mubr.msk.f32.gmra.mxu0 %vm3418_vm8, %v3399_v58  ;;  %5326 = vmatpush1.msra.mxu1 %v3276_v5  ;;  %v3274_v58 = vld [vmem:[%s13855_s10 + $0x30] sm:$0xff] }
 0x38b   : > { %5327 = vmatprep.subr.mxu1 %v13862_v13 }
 0x38c   : > { %v2869_v23 = vpop.f32.mrf.mxu1 }
 0x38d   : > { %v3095_v54 = vadd.f32 %v3094_v17, %v2869_v23  ;;  %v9561_v23 = vld [vmem:[%s9700_s0 + $0xb8] sm:$0xff] }
 0x38e   : > { %v2871_v28 = vpop.f32.mrf.mxu1 }
 0x38f   : > { %3195 = vrot.lane.b32.xlu0 %v3095_v54, %s9588_s28  ;;  %v3273_v28 = vld [vmem:[%s13855_s10 + $0x28] sm:$0xff] }
 0x391   : > { %v3176_v18 = vpop.permute.xlu0 %3175 }
 0x392   : > { %v11272_v21 = vsel %vm754_vm1, %v9558_v12, %v3176_v18  ;;  %v3272_v12 = vld [vmem:[%s13855_s10 + $0x20] sm:$0xff] }
 0x393   : > { %v3330_v25 = vmul.f32 %v11088_v47, %v11272_v21 }
 0x395   : > { %v3368_v55 = vadd.f32 %v11098_v38, %v3330_v25 }
 0x396   : > { %v3178_v24 = vpop.permute.xlu1 %3177 }
 0x397   : > { %v3400_v16 = vmax.f32 %v3368_v55, 0.0  ;;  %v11288_v36 = vsel %vm754_vm1, %v9559_v31, %v3178_v24  ;;  %v3269_v55 = vld [vmem:[%s13855_s10 + $0x8] sm:$0xff]  ;;  %v9562_v31 = vld [vmem:[%s9700_s0 + $0xc0] sm:$0xff] }
 0x398   : > { %v3331_v39 = vmul.f32 %v11088_v47, %v11288_v36  ;;  %v2874_v40 = vpop.f32.mrf.mxu1 }
 0x399   : > { %v3100_v14 = vadd.f32 %v9239_v22, %v2874_v40  ;;  %9274 = vmatprep.mubr.msk.f32.mxu0 %vm3418_vm8, %v3400_v16  ;;  %v3275_v22 = vld [vmem:[%s13855_s10 + $0x38] sm:$0xff]  ;;  %v3268_v16 = vld [vmem:[%s13855_s10] sm:$0xff] }
 0x39a   : > { %v3369_v26 = vadd.f32 %v11098_v38, %v3331_v39  ;;  %v2876_v44 = vpop.f32.mrf.mxu1  ;;  %5328 = vmatpush1.msra.mxu1 %v3275_v22  ;;  %v3299_v39 = vld [vmem:[%s13855_s10 + $0xf8] sm:$0xff] }
 0x39b   : > { %3197 = vrot.lane.b32.xlu1 %v3100_v14, %s9588_s28  ;;  %5329 = vmatprep.subr.mxu1 %v13862_v13  ;;  %v11390_v14 = vld [vmem:[%s13854_s9] ss:$0 sm:$0xff] }
 0x39c   : > { %v3401_v32 = vmax.f32 %v3369_v26, 0.0  ;;  %5330 = vmatpush1.msra.mxu1 %v3274_v58 }
 0x39d   : > { %5331 = vmatprep.subr.mxu1 %v13862_v13 }
 0x39e   : > { %9275 = vmatmul.mubr.msk.f32.gmra.mxu0 %vm3418_vm8, %v3401_v32  ;;  %5332 = vmatpush1.msra.mxu1 %v3273_v28 }
 0x39f   : > { %5333 = vmatprep.subr.mxu1 %v13862_v13 }
 0x3a0   : > { %5334 = vmatpush1.msra.mxu1 %v3272_v12  ;;  %v9563_v12 = vld [vmem:[%s9700_s0 + $0xc8] sm:$0xff] }
 0x3a1   : > { %v3180_v57 = vpop.permute.xlu0 %3179  ;;  %5335 = vmatprep.subr.mxu1 %v13862_v13 }
 0x3a2   : > { %v11316_v9 = vsel %vm754_vm1, %v9560_v42, %v3180_v57  ;;  %5336 = vmatpush1.msra.mxu1 %v3271_v45 }
 0x3a3   : > { %v3332_v35 = vmul.f32 %v11088_v47, %v11316_v9  ;;  %5337 = vmatprep.subr.mxu1 %v13862_v13 }
 0x3a4   : > { %5338 = vmatpush1.msra.mxu1 %v3270_v30 }
 0x3a5   : > { %v3370_v4 = vadd.f32 %v11098_v38, %v3332_v35  ;;  %5339 = vmatprep.subr.mxu1 %v13862_v13  ;;  %v3296_v35 = vld [vmem:[%s13855_s10 + $0xe0] sm:$0xff] }
 0x3a6   : > { %5340 = vmatpush1.msra.mxu1 %v3269_v55 }
 0x3a7   : > { %v3402_v59 = vmax.f32 %v3370_v4, 0.0  ;;  %5341 = vmatprep.subr.mxu1 %v13862_v13 }
 0x3a8   : > { %5342 = vmatpush1.msra.mxu1 %v3268_v16 }
 0x3a9   : > { %9277 = vmatprep.mubr.msk.f32.mxu0 %vm3418_vm8, %v3402_v59  ;;  %5343 = vmatprep.subr.mxu1 %v13862_v13 }
 0x3aa   : > { %5344 = vmatpush2.msra.mxu1 %v3299_v39 }
 0x3ab   : > { %5345 = vmatprep.subr.mxu1 %v13862_v13 }
 0x3ac   : > { %5346 = vmatpush2.msra.mxu1 %v3298_v46 }
 0x3ad   : > { %v3182_v17 = vpop.permute.xlu1 %3181  ;;  %5347 = vmatprep.subr.mxu1 %v13862_v13 }
 0x3ae   : > { %v11348_v54 = vsel %vm754_vm1, %v9561_v23, %v3182_v17  ;;  %5348 = vmatpush2.msra.mxu1 %v3297_v50  ;;  %v3294_v23 = vld [vmem:[%s13855_s10 + $0xd0] sm:$0xff] }
 0x3af   : > { %v3333_v18 = vmul.f32 %v11088_v47, %v11348_v54  ;;  %5349 = vmatprep.subr.mxu1 %v13862_v13 }
 0x3b0   : > { %5350 = vmatpush2.msra.mxu1 %v3296_v35 }
 0x3b1   : > { %v3371_v8 = vadd.f32 %v11098_v38, %v3333_v18  ;;  %5351 = vmatprep.subr.mxu1 %v13862_v13 }
 0x3b2   : > { %5352 = vmatpush2.msra.mxu1 %v3295_v10 }
 0x3b3   : > { %v3403_v25 = vmax.f32 %v3371_v8, 0.0  ;;  %5353 = vmatprep.subr.mxu1 %v13862_v13 }
 0x3b4   : > { %5354 = vmatpush2.msra.mxu1 %v3294_v23 }
 0x3b5   : > { %9278 = vmatmul.mubr.msk.f32.gmra.mxu0 %vm3418_vm8, %v3403_v25  ;;  %v3293_v25 = vld [vmem:[%s13855_s10 + $0xc8] sm:$0xff]  ;;  %5355 = vmatprep.subr.mxu1 %v13862_v13 }
 0x3b6   : > { %5356 = vmatpush2.msra.mxu1 %v3293_v25  ;;  %v3288_v25 = vld [vmem:[%s13855_s10 + $0xa0] sm:$0xff] }
 0x3b7   : > { %5357 = vmatprep.subr.mxu1 %v13862_v13 }
 0x3b9   : > { %v3184_v24 = vpop.permute.xlu0 %3183 }
 0x3ba   : > { %v11380_v20 = vsel %vm754_vm1, %v9562_v31, %v3184_v24 }
 0x3bb   : > { %v3334_v40 = vmul.f32 %v11088_v47, %v11380_v20 }
 0x3bd   : > { %v3372_v26 = vadd.f32 %v11098_v38, %v3334_v40  ;;  %v9246_v44 = vpop.f32.mrf.mxu0 }
 0x3be   : > { %v3590_v32 = vadd.f32 %v9246_v44, %v11390_v14 }
 0x3bf   : > { %v3404_v62 = vmax.f32 %v3372_v26, 0.0  ;;  %v3584_v57 = vpop.f32.mrf.mxu0  ;;  %v3292_v26 = vld [vmem:[%s13855_s10 + $0xc0] sm:$0xff] }
 0x3c0   : > { %v3744_v60 = vmax.f32 %v3590_v32, 0.0  ;;  %v3585_v42 = vadd.f32 %v11390_v14, %v3584_v57  ;;  %5358 = vmatpush2.msra.mxu1 %v3292_v26 }
 0x3c1   : > { %v9249_v61 = vpop.f32.mrf.mxu0  ;;  %9280 = vmatprep.mubr.msk.f32.mxu0 %vm3418_vm8, %v3404_v62  ;;  %5359 = vmatprep.subr.mxu1 %v13862_v13 }
 0x3c2   : > { %3776 = vst.msk [vmem:[#allocation2 + $0x21] sm:$0xff] %vm522_vm2, %v3744_v60  ;;  %4448 = vst.msk [vmem:[#allocation3 + $0x20] sm:$0xff] %vm522_vm2, %v3744_v60  ;;  %v3743_v37 = vmax.f32 %v3585_v42, 0.0  ;;  %v3600_v4 = vadd.f32 %v9249_v61, %v11390_v14  ;;  %v3291_v61 = vld [vmem:[%s13855_s10 + $0xb8] sm:$0xff] }
 0x3c3   : > { %v3594_v59 = vpop.f32.mrf.mxu0  ;;  %5360 = vmatpush2.msra.mxu1 %v3291_v61 }
 0x3c4   : > { %3775 = vst.msk [vmem:[#allocation2 + $0x19] sm:$0xff] %vm522_vm2, %v3743_v37  ;;  %4447 = vst.msk [vmem:[#allocation3 + $0x8] sm:$0xff] %vm522_vm2, %v3743_v37  ;;  %v3746_v5 = vmax.f32 %v3600_v4, 0.0  ;;  %v3595_v22 = vadd.f32 %v11390_v14, %v3594_v59  ;;  %v3290_v4 = vld [vmem:[%s13855_s10 + $0xb0] sm:$0xff]  ;;  %5361 = vmatprep.subr.mxu1 %v13862_v13 }
 0x3c5   : > { %v9252_v58 = vpop.f32.mrf.mxu0  ;;  %v3186_v17 = vpop.permute.xlu1 %3185  ;;  %5362 = vmatpush2.msra.mxu1 %v3290_v4 }
 0x3c6   : > { %3778 = vst.msk [vmem:[#allocation2 + $0x39] sm:$0xff] %vm522_vm2, %v3746_v5  ;;  %4450 = vst.msk [vmem:[#allocation3 + $0x50] sm:$0xff] %vm522_vm2, %v3746_v5  ;;  %v3745_v28 = vmax.f32 %v3595_v22, 0.0  ;;  %v3610_v18 = vadd.f32 %v9252_v58, %v11390_v14  ;;  %v11428_v8 = vsel %vm754_vm1, %v9563_v12, %v3186_v17  ;;  %v3289_v58 = vld [vmem:[%s13855_s10 + $0xa8] sm:$0xff]  ;;  %5363 = vmatprep.subr.mxu1 %v13862_v13 }
 0x3c7   : > { %v3335_v45 = vmul.f32 %v11088_v47, %v11428_v8  ;;  %v3604_v30 = vpop.f32.mrf.mxu0  ;;  %5364 = vmatpush2.msra.mxu1 %v3289_v58 }
 0x3c8   : > { %3777 = vst.msk [vmem:[#allocation2 + $0x31] sm:$0xff] %vm522_vm2, %v3745_v28  ;;  %4449 = vst.msk [vmem:[#allocation3 + $0x38] sm:$0xff] %vm522_vm2, %v3745_v28  ;;  %v3748_v55 = vmax.f32 %v3610_v18, 0.0  ;;  %v3605_v24 = vadd.f32 %v11390_v14, %v3604_v30  ;;  %v9564_v18 = vld [vmem:[%s9700_s0 + $0xd0] sm:$0xff]  ;;  %5365 = vmatprep.subr.mxu1 %v13862_v13 }
 0x3c9   : > { %v3373_v16 = vadd.f32 %v11098_v38, %v3335_v45  ;;  %v9255_v31 = vpop.f32.mrf.mxu0  ;;  %v4480_v39 = vld [vmem:[#allocation2 + $0x22] sm:$0xff]  ;;  %5366 = vmatpush2.msra.mxu1 %v3288_v25  ;;  %v9565_v25 = vld [vmem:[%s9700_s0 + $0xd8] sm:$0xff] }
 0x3ca   : > { %v3874_v40 = vld [vmem:[#allocation2 + $0x21] sm:$0xff]  ;;  %3780 = vst.msk [vmem:[#allocation2 + $0x51] sm:$0xff] %vm522_vm2, %v3748_v55  ;;  %4452 = vst.msk [vmem:[#allocation3 + $0x80] sm:$0xff] %vm522_vm2, %v3748_v55  ;;  %v3747_v44 = vmax.f32 %v3605_v24, 0.0  ;;  %v3620_v46 = vadd.f32 %v9255_v31, %v11390_v14  ;;  %4545 = vrot.lane.b32.xlu0 %v4480_v39, %s9586_s20  ;;  %5367 = vmatprep.subr.mxu1 %v13862_v13 }
 0x3cb   : > { %3941 = vrot.lane.b32.xlu1 %v3874_v40, %s9586_s20  ;;  %v3405_v32 = vmax.f32 %v3373_v16, 0.0  ;;  %v3614_v50 = vpop.f32.mrf.mxu0  ;;  %v4255_v62 = vld [vmem:[#allocation2 + $0x18] sm:$0xff]  ;;  %v4256_v57 = vld [vmem:[#allocation2 + $0x20] sm:$0xff] }
 0x3cc   : > { %3779 = vst.msk [vmem:[#allocation2 + $0x49] sm:$0xff] %vm522_vm2, %v3747_v44  ;;  %4451 = vst.msk [vmem:[#allocation3 + $0x68] sm:$0xff] %vm522_vm2, %v3747_v44  ;;  %v3750_v60 = vmax.f32 %v3620_v46, 0.0  ;;  %v3615_v42 = vadd.f32 %v11390_v14, %v3614_v50  ;;  %v11458_v35 = vld [vmem:[#allocation2 + $0x1a] sm:$0xff] }
 0x3cd   : > { %3842 = vst.msk [vmem:[#allocation3 + $0x48] sm:$0xff] %vm522_vm2, %v4256_v57  ;;  %3841 = vst.msk [vmem:[#allocation3 + $0x30] sm:$0xff] %vm522_vm2, %v4255_v62  ;;  %9281 = vmatmul.mubr.msk.f32.gmra.mxu0 %vm3418_vm8, %v3405_v32  ;;  %v11461_v37 = vld [vmem:[#allocation2 + $0x3a] sm:$0xff] }
 0x3ce   : > { %3782 = vst.msk [vmem:[#allocation2 + $0x69] sm:$0xff] %vm522_vm2, %v3750_v60  ;;  %4454 = vst.msk [vmem:[#allocation3 + $0xb0] sm:$0xff] %vm522_vm2, %v3750_v60  ;;  %v3749_v10 = vmax.f32 %v3615_v42, 0.0  ;;  %4543 = vrot.lane.b32.xlu0 %v11458_v35, %s9586_s20  ;;  %v11489_v17 = vld [vmem:[#allocation2 + $0x39] sm:$0xff] }
 0x3cf   : > { %4133 = vrot.lane.b32.xlu1 %v4480_v39, %s9585_s19  ;;  %5088 = vst.msk [vmem:[#allocation3 + $0x28] sm:$0xff] %vm522_vm2, %v11461_v37  ;;  %v11473_v59 = vld [vmem:[#allocation2 + $0x30] sm:$0xff]  ;;  %v11475_v5 = vld [vmem:[#allocation2 + $0x38] sm:$0xff] }
 0x3d0   : > { %3781 = vst.msk [vmem:[#allocation2 + $0x61] sm:$0xff] %vm522_vm2, %v3749_v10  ;;  %4453 = vst.msk [vmem:[#allocation3 + $0x98] sm:$0xff] %vm522_vm2, %v3749_v10  ;;  %v11480_v22 = vld [vmem:[#allocation2 + $0x32] sm:$0xff]  ;;  %v3285_v10 = vld [vmem:[%s13855_s10 + $0x88] sm:$0xff] }
 0x3d1   : > { %3844 = vst.msk [vmem:[#allocation3 + $0x78] sm:$0xff] %vm522_vm2, %v11475_v5  ;;  %3843 = vst.msk [vmem:[#allocation3 + $0x60] sm:$0xff] %vm522_vm2, %v11473_v59  ;;  %v3188_v23 = vpop.permute.xlu0 %3187  ;;  %v11491_v28 = vld [vmem:[#allocation2 + $0x52] sm:$0xff] }
 0x3d2   : > { %5087 = vst.msk [vmem:[#allocation3 + $0x10] sm:$0xff] %vm522_vm2, %v11480_v22  ;;  %4929 = vrot.lane.b32.xlu0 %v11489_v17, %s9587_s27  ;;  %v11501_v12 = vsel %vm754_vm1, %v9564_v18, %v3188_v23  ;;  %5090 = vst.msk [vmem:[#allocation3 + $0x58] sm:$0xff] %vm522_vm2, %v11491_v28  ;;  %v3287_v44 = vld [vmem:[%s13855_s10 + $0x98] sm:$0xff]  ;;  %v3284_v18 = vld [vmem:[%s13855_s10 + $0x80] sm:$0xff] }
 0x3d3   : > { %4319 = vrot.lane.b32.xlu1 %v4255_v62, %s9587_s27  ;;  %v3336_v45 = vmul.f32 %v11088_v47, %v11501_v12  ;;  %v9258_v30 = vpop.f32.mrf.mxu0  ;;  %v11510_v55 = vld [vmem:[#allocation2 + $0x48] sm:$0xff]  ;;  %v11512_v24 = vld [vmem:[#allocation2 + $0x50] sm:$0xff]  ;;  %5368 = vmatpush2.msra.mxu1 %v3287_v44  ;;  %v3873_v4 = vld [vmem:[#allocation2 + $0x19] sm:$0xff] }
 0x3d4   : > { %v3630_v16 = vadd.f32 %v9258_v30, %v11390_v14  ;;  %v11515_v31 = vld [vmem:[#allocation2 + $0x4a] sm:$0xff]  ;;  %3846 = vst.msk [vmem:[#allocation3 + $0xa8] sm:$0xff] %vm522_vm2, %v11512_v24  ;;  %3845 = vst.msk [vmem:[#allocation3 + $0x90] sm:$0xff] %vm522_vm2, %v11510_v55  ;;  %5369 = vmatprep.subr.mxu1 %v13862_v13 }
 0x3d5   : > { %v3374_v39 = vadd.f32 %v11098_v38, %v3336_v45  ;;  %v3624_v40 = vpop.f32.mrf.mxu0  ;;  %v11523_v26 = vld [vmem:[#allocation2 + $0x6a] sm:$0xff]  ;;  %5089 = vst.msk [vmem:[#allocation3 + $0x40] sm:$0xff] %vm522_vm2, %v11515_v31 }
 0x3d6   : > { %v3752_v46 = vmax.f32 %v3630_v16, 0.0  ;;  %v3625_v32 = vadd.f32 %v11390_v14, %v3624_v40  ;;  %4549 = vrot.lane.b32.xlu0 %v11461_v37, %s9586_s20  ;;  %5092 = vst.msk [vmem:[#allocation3 + $0x88] sm:$0xff] %vm522_vm2, %v11523_v26  ;;  %v4863_v23 = vld [vmem:[#allocation2 + $0x31] sm:$0xff] }
 0x3d7   : > { %4321 = vrot.lane.b32.xlu1 %v4256_v57, %s9587_s27  ;;  %v3406_v50 = vmax.f32 %v3374_v39, 0.0  ;;  %v11536_v62 = vld [vmem:[#allocation2 + $0x68] sm:$0xff]  ;;  %v3286_v57 = vld [vmem:[%s13855_s10 + $0x90] sm:$0xff]  ;;  %v3815_v61 = vld [vmem:[#allocation2 + $0x60] sm:$0xff] }
 0x3d8   : > { %3784 = vst.msk [vmem:[#allocation2 + $0x81] sm:$0xff] %vm522_vm2, %v3752_v46  ;;  %4456 = vst.msk [vmem:[#allocation3 + $0xe0] sm:$0xff] %vm522_vm2, %v3752_v46  ;;  %v3751_v60 = vmax.f32 %v3625_v32, 0.0  ;;  %v11541_v42 = vld [vmem:[#allocation2 + $0x62] sm:$0xff]  ;;  %5370 = vmatpush2.msra.mxu1 %v3286_v57 }
 0x3d9   : > { %3848 = vst.msk [vmem:[#allocation3 + $0xd8] sm:$0xff] %vm522_vm2, %v11536_v62  ;;  %9283 = vmatprep.mubr.msk.f32.mxu0 %vm3418_vm8, %v3406_v50  ;;  %5091 = vst.msk [vmem:[#allocation3 + $0x70] sm:$0xff] %vm522_vm2, %v11541_v42  ;;  %5371 = vmatprep.subr.mxu1 %v13862_v13  ;;  %v9566_v50 = vld [vmem:[%s9700_s0 + $0xe0] sm:$0xff] }
 0x3da   : > { %3847 = vst.msk [vmem:[#allocation3 + $0xc0] sm:$0xff] %vm522_vm2, %v3815_v61  ;;  %3783 = vst.msk [vmem:[#allocation2 + $0x79] sm:$0xff] %vm522_vm2, %v3751_v60  ;;  %4735 = vrot.lane.b32.xlu0 %v11473_v59, %s9585_s19  ;;  %5372 = vmatpush2.msra.mxu1 %v3285_v10 }
 0x3db   : > { %4455 = vst.msk [vmem:[#allocation3 + $0xc8] sm:$0xff] %vm522_vm2, %v3751_v60  ;;  %3939 = vrot.lane.b32.xlu1 %v3873_v4, %s9586_s20  ;;  %5373 = vmatprep.subr.mxu1 %v13862_v13 }
 0x3dc   : > { %5374 = vmatpush2.msra.mxu1 %v3284_v18 }
 0x3dd   : > { %v3190_v58 = vpop.permute.xlu1 %3189  ;;  %7970 = vmatprep.subr.mxu1 %v13862_v13 }
 0x3de   : > { %v11567_v45 = vsel %vm754_vm1, %v9565_v25, %v3190_v58  ;;  %4927 = vrot.lane.b32.xlu0 %v4863_v23, %s9587_s27 }
 0x3df   : > { %4131 = vrot.lane.b32.xlu1 %v11458_v35, %s9585_s19  ;;  %v3337_v30 = vmul.f32 %v11088_v47, %v11567_v45  ;;  %v11574_v16 = vld [vmem:[#allocation2 + $0x82] sm:$0xff] }
 0x3e0   : > { %5094 = vst.msk [vmem:[#allocation3 + $0xb8] sm:$0xff] %vm522_vm2, %v11574_v16 }
 0x3e1   : > { %v3375_v39 = vadd.f32 %v11098_v38, %v3337_v30  ;;  %v11580_v40 = vld [vmem:[#allocation2 + $0x7a] sm:$0xff]  ;;  %v4865_v30 = vld [vmem:[#allocation2 + $0x49] sm:$0xff] }
 0x3e2   : > { %4737 = vrot.lane.b32.xlu0 %v11475_v5, %s9585_s19  ;;  %5093 = vst.msk [vmem:[#allocation3 + $0xa0] sm:$0xff] %vm522_vm2, %v11580_v40  ;;  %v11589_v35 = vld [vmem:[#allocation2 + $0x80] sm:$0xff]  ;;  %v3817_v44 = vld [vmem:[#allocation2 + $0x78] sm:$0xff] }
 0x3e3   : > { %3945 = vrot.lane.b32.xlu1 %v11489_v17, %s9586_s20  ;;  %v3407_v46 = vmax.f32 %v3375_v39, 0.0  ;;  %3850 = vst.msk [vmem:[#allocation3 + $0x108] sm:$0xff] %vm522_vm2, %v11589_v35  ;;  %3849 = vst.msk [vmem:[#allocation3 + $0xf0] sm:$0xff] %vm522_vm2, %v3817_v44  ;;  %v4866_v17 = vld [vmem:[#allocation2 + $0x51] sm:$0xff]  ;;  %v9567_v39 = vld [vmem:[%s9700_s0 + $0xe8] sm:$0xff] }
 0x3e5   : > { %9284 = vmatmul.mubr.msk.f32.gmra.mxu0 %vm3418_vm8, %v3407_v46 }
 0x3e6   : > { %4547 = vrot.lane.b32.xlu0 %v11480_v22, %s9586_s20 }
 0x3e7   : > { %4137 = vrot.lane.b32.xlu1 %v11461_v37, %s9585_s19 }
 0x3e9   : > { %v3192_v32 = vpop.permute.xlu0 %3191 }
 0x3ea   : > { %4933 = vrot.lane.b32.xlu0 %v4866_v17, %s9587_s27  ;;  %v11604_v60 = vsel %vm754_vm1, %v9566_v50, %v3192_v32 }
 0x3eb   : > { %4323 = vrot.lane.b32.xlu1 %v11473_v59, %s9587_s27  ;;  %v9261_v57 = vpop.f32.mrf.mxu0  ;;  %v3338_v61 = vmul.f32 %v11088_v47, %v11604_v60 }
 0x3ec   : > { %v3640_v37 = vadd.f32 %v9261_v57, %v11390_v14 }
 0x3ed   : > { %v3634_v4 = vpop.f32.mrf.mxu0  ;;  %v3376_v10 = vadd.f32 %v11098_v38, %v3338_v61 }
 0x3ee   : > { %v3754_v58 = vmax.f32 %v3640_v37, 0.0  ;;  %v3635_v18 = vadd.f32 %v11390_v14, %v3634_v4  ;;  %4553 = vrot.lane.b32.xlu0 %v11491_v28, %s9586_s20 }
 0x3ef   : > { %4325 = vrot.lane.b32.xlu1 %v11475_v5, %s9587_s27  ;;  %v3408_v59 = vmax.f32 %v3376_v10, 0.0  ;;  %v9569_v10 = vld [vmem:[%s13851_s6] ss:$0 sm:$0xff] }
 0x3f0   : > { %3786 = vst.msk [vmem:[#allocation2 + $0x99] sm:$0xff] %vm522_vm2, %v3754_v58  ;;  %4458 = vst.msk [vmem:[#allocation3 + $0x110] sm:$0xff] %vm522_vm2, %v3754_v58  ;;  %v3753_v25 = vmax.f32 %v3635_v18, 0.0 }
 0x3f1   : > { %9286 = vmatprep.mubr.msk.f32.mxu0 %vm3418_vm8, %v3408_v59 }
 0x3f2   : > { %3785 = vst.msk [vmem:[#allocation2 + $0x91] sm:$0xff] %vm522_vm2, %v3753_v25  ;;  %4457 = vst.msk [vmem:[#allocation3 + $0xf8] sm:$0xff] %vm522_vm2, %v3753_v25  ;;  %4739 = vrot.lane.b32.xlu0 %v11510_v55, %s9585_s19 }
 0x3f3   : > { %3943 = vrot.lane.b32.xlu1 %v4863_v23, %s9586_s20 }
 0x3f5   : > { %v3194_v5 = vpop.permute.xlu1 %3193 }
 0x3f6   : > { %v11625_v44 = vsel %vm754_vm1, %v9567_v39, %v3194_v5  ;;  %4931 = vrot.lane.b32.xlu0 %v4865_v30, %s9587_s27 }
 0x3f7   : > { %4135 = vrot.lane.b32.xlu1 %v11480_v22, %s9585_s19  ;;  %v11630_v46 = vld [vmem:[#allocation2 + $0x9a] sm:$0xff]  ;;  %v3339_v32 = vmul.f32 %v11088_v47, %v11625_v44 }
 0x3f8   : > { %5096 = vst.msk [vmem:[#allocation3 + $0xe8] sm:$0xff] %vm522_vm2, %v11630_v46 }
 0x3f9   : > { %v11636_v23 = vld [vmem:[#allocation2 + $0x92] sm:$0xff]  ;;  %v3377_v57 = vadd.f32 %v11098_v38, %v3339_v32  ;;  %v4868_v38 = vld [vmem:[#allocation2 + $0x69] sm:$0xff] }
 0x3fa   : > { %v11638_v50 = vld [vmem:[#allocation2 + $0x90] sm:$0xff]  ;;  %5095 = vst.msk [vmem:[#allocation3 + $0xd0] sm:$0xff] %vm522_vm2, %v11636_v23  ;;  %v11643_v22 = vld [vmem:[#allocation2 + $0x98] sm:$0xff]  ;;  %4741 = vrot.lane.b32.xlu0 %v11512_v24, %s9585_s19 }
 0x3fb   : > { %3851 = vst.msk [vmem:[#allocation3 + $0x120] sm:$0xff] %vm522_vm2, %v11638_v50  ;;  %3949 = vrot.lane.b32.xlu1 %v4866_v17, %s9586_s20  ;;  %3852 = vst.msk [vmem:[#allocation3 + $0x138] sm:$0xff] %vm522_vm2, %v11643_v22  ;;  %v3409_v47 = vmax.f32 %v3377_v57, 0.0  ;;  %v9568_v17 = vld [vmem:[%s9700_s0 + $0xf0] sm:$0xff]  ;;  %v4675_v57 = vld [vmem:[#allocation2 + $0x60] sm:$0xff] }
 0x3fd   : > { %9287 = vmatmul.mubr.msk.f32.gmra.mxu0 %vm3418_vm8, %v3409_v47  ;;  %v4867_v47 = vld [vmem:[#allocation2 + $0x61] sm:$0xff] }
 0x3fe   : > { %4551 = vrot.lane.b32.xlu0 %v11515_v31, %s9586_s20 }
 0x3ff   : > { %4141 = vrot.lane.b32.xlu1 %v11491_v28, %s9585_s19 }
 0x401   : > { %v3196_v61 = vpop.permute.xlu0 %3195 }
 0x402   : > { %4937 = vrot.lane.b32.xlu0 %v4868_v38, %s9587_s27  ;;  %v11662_v37 = vsel %vm754_vm1, %v9568_v17, %v3196_v61  ;;  %v9571_v61 = vld [vmem:[%s9700_s0 + $0xf8] sm:$0xff] }
 0x403   : > { %4327 = vrot.lane.b32.xlu1 %v11510_v55, %s9587_s27  ;;  %v9264_v4 = vpop.f32.mrf.mxu0  ;;  %v3340_v28 = vmul.f32 %v9569_v10, %v11662_v37  ;;  %v9570_v55 = vld [vmem:[%s13852_s7] ss:$0 sm:$0xff] }
 0x404   : > { %v3650_v58 = vadd.f32 %v9264_v4, %v11390_v14 }
 0x405   : > { %v3644_v18 = vpop.f32.mrf.mxu0  ;;  %v3378_v59 = vadd.f32 %v9570_v55, %v3340_v28 }
 0x406   : > { %v3756_v25 = vmax.f32 %v3650_v58, 0.0  ;;  %v3645_v5 = vadd.f32 %v11390_v14, %v3644_v18  ;;  %4557 = vrot.lane.b32.xlu0 %v11523_v26, %s9586_s20 }
 0x407   : > { %4329 = vrot.lane.b32.xlu1 %v11512_v24, %s9587_s27  ;;  %v3410_v39 = vmax.f32 %v3378_v59, 0.0 }
 0x408   : > { %3788 = vst.msk [vmem:[#allocation2 + $0xb1] sm:$0xff] %vm522_vm2, %v3756_v25  ;;  %4460 = vst.msk [vmem:[#allocation3 + $0x140] sm:$0xff] %vm522_vm2, %v3756_v25  ;;  %v3755_v32 = vmax.f32 %v3645_v5, 0.0  ;;  %v5127_v5 = vld [vmem:[#allocation3 + $0x40] sm:$0xff] }
 0x409   : > { %9289 = vmatprep.mubr.msk.f32.mxu0 %vm3418_vm8, %v3410_v39 }
 0x40a   : > { %3787 = vst.msk [vmem:[#allocation2 + $0xa9] sm:$0xff] %vm522_vm2, %v3755_v32  ;;  %4459 = vst.msk [vmem:[#allocation3 + $0x128] sm:$0xff] %vm522_vm2, %v3755_v32  ;;  %4743 = vrot.lane.b32.xlu0 %v4675_v57, %s9585_s19  ;;  %v5130_v32 = vld [vmem:[#allocation3 + $0x58] sm:$0xff] }
 0x40b   : > { %3947 = vrot.lane.b32.xlu1 %v4865_v30, %s9586_s20 }
 0x40d   : > { %v3198_v24 = vpop.permute.xlu1 %3197 }
 0x40e   : > { %v11686_v17 = vsel %vm754_vm1, %v9571_v61, %v3198_v24  ;;  %4935 = vrot.lane.b32.xlu0 %v4867_v47, %s9587_s27 }
 0x40f   : > { %4139 = vrot.lane.b32.xlu1 %v11515_v31, %s9585_s19  ;;  %v11691_v4 = vld [vmem:[#allocation2 + $0xb2] sm:$0xff]  ;;  %v3341_v28 = vmul.f32 %v9569_v10, %v11686_v17  ;;  %v5121_v10 = vld [vmem:[#allocation3 + $0x10] sm:$0xff] }
 0x410   : > { %5098 = vst.msk [vmem:[#allocation3 + $0x118] sm:$0xff] %vm522_vm2, %v11691_v4 }
 0x411   : > { %v11696_v30 = vld [vmem:[#allocation2 + $0xaa] sm:$0xff]  ;;  %v3379_v18 = vadd.f32 %v9570_v55, %v3341_v28  ;;  %v5124_v55 = vld [vmem:[#allocation3 + $0x28] sm:$0xff] }
 0x412   : > { %v11698_v58 = vld [vmem:[#allocation2 + $0xa8] sm:$0xff]  ;;  %5097 = vst.msk [vmem:[#allocation3 + $0x100] sm:$0xff] %vm522_vm2, %v11696_v30  ;;  %v11702_v59 = vld [vmem:[#allocation2 + $0xb0] sm:$0xff]  ;;  %4745 = vrot.lane.b32.xlu0 %v11536_v62, %s9585_s19 }
 0x413   : > { %3853 = vst.msk [vmem:[#allocation3 + $0x150] sm:$0xff] %vm522_vm2, %v11698_v58  ;;  %3953 = vrot.lane.b32.xlu1 %v4868_v38, %s9586_s20  ;;  %3854 = vst.msk [vmem:[#allocation3 + $0x168] sm:$0xff] %vm522_vm2, %v11702_v59  ;;  %v3411_v31 = vmax.f32 %v3379_v18, 0.0  ;;  %v4870_v38 = vld [vmem:[#allocation2 + $0x81] sm:$0xff]  ;;  %v5136_v18 = vld [vmem:[#allocation3 + $0x88] sm:$0xff] }
 0x415   : > { %9290 = vmatmul.mubr.msk.f32.gmra.mxu0 %vm3418_vm8, %v3411_v31  ;;  %v4677_v31 = vld [vmem:[#allocation2 + $0x78] sm:$0xff] }
 0x416   : > { %4555 = vrot.lane.b32.xlu0 %v11541_v42, %s9586_s20  ;;  %9300 = vmatprep.mubr.msk.f32.mxu0 %vm522_vm2, %v5121_v10  ;;  %v5142_v10 = vld [vmem:[#allocation3 + $0xb8] sm:$0xff] }
 0x417   : > { %4145 = vrot.lane.b32.xlu1 %v11523_v26, %s9585_s19 }
 0x419   : > { %9301 = vmatmul.mubr.msk.f32.vlgmr.msra.gmra.mxu0 %vm522_vm2, %v5124_v55  ;;  %v4869_v55 = vld [vmem:[#allocation2 + $0x79] sm:$0xff] }
 0x41a   : > { %4941 = vrot.lane.b32.xlu0 %v4870_v38, %s9587_s27  ;;  %9303 = vmatprep.mubr.msk.f32.mxu0 %vm522_vm2, %v5127_v5 }
 0x41b   : > { %4331 = vrot.lane.b32.xlu1 %v4675_v57, %s9587_s27  ;;  %v9267_v25 = vpop.f32.mrf.mxu0  ;;  %v5133_v57 = vld [vmem:[#allocation3 + $0x70] sm:$0xff] }
 0x41c   : > { %v3660_v39 = vadd.f32 %v9267_v25, %v11390_v14  ;;  %v5145_v25 = vld [vmem:[#allocation3 + $0xd0] sm:$0xff] }
 0x41d   : > { %v3654_v26 = vpop.f32.mrf.mxu0  ;;  %9304 = vmatmul.mubr.msk.f32.gmra.mxu0 %vm522_vm2, %v5130_v32  ;;  %v5151_v32 = vld [vmem:[#allocation3 + $0x100] sm:$0xff] }
 0x41e   : > { %v3758_v24 = vmax.f32 %v3660_v39, 0.0  ;;  %v3655_v61 = vadd.f32 %v11390_v14, %v3654_v26  ;;  %4561 = vrot.lane.b32.xlu0 %v11574_v16, %s9586_s20  ;;  %9306 = vmatprep.mubr.msk.f32.mxu0 %vm522_vm2, %v5133_v57 }
 0x41f   : > { %4333 = vrot.lane.b32.xlu1 %v11536_v62, %s9587_s27  ;;  %v5139_v62 = vld [vmem:[#allocation3 + $0xa0] sm:$0xff] }
 0x420   : > { %3790 = vst.msk [vmem:[#allocation2 + $0xc9] sm:$0xff] %vm522_vm2, %v3758_v24  ;;  %4462 = vst.msk [vmem:[#allocation3 + $0x170] sm:$0xff] %vm522_vm2, %v3758_v24  ;;  %v3757_v28 = vmax.f32 %v3655_v61, 0.0  ;;  %v5154_v24 = vld [vmem:[#allocation3 + $0x118] sm:$0xff] }
 0x421   : > { %9307 = vmatmul.mubr.msk.f32.gmra.mxu0 %vm522_vm2, %v5136_v18 }
 0x422   : > { %3789 = vst.msk [vmem:[#allocation2 + $0xc1] sm:$0xff] %vm522_vm2, %v3757_v28  ;;  %4461 = vst.msk [vmem:[#allocation3 + $0x158] sm:$0xff] %vm522_vm2, %v3757_v28  ;;  %4747 = vrot.lane.b32.xlu0 %v4677_v31, %s9585_s19  ;;  %9309 = vmatprep.mubr.msk.f32.mxu0 %vm522_vm2, %v5139_v62 }
 0x423   : > { %3951 = vrot.lane.b32.xlu1 %v4867_v47, %s9586_s20  ;;  %v5148_v47 = vld [vmem:[#allocation3 + $0xe8] sm:$0xff] }
 0x425   : > { %9310 = vmatmul.mubr.msk.f32.gmra.mxu0 %vm522_vm2, %v5142_v10 }
 0x426   : > { %4939 = vrot.lane.b32.xlu0 %v4869_v55, %s9587_s27  ;;  %9312 = vmatprep.mubr.msk.f32.mxu0 %vm522_vm2, %v5145_v25 }
 0x427   : > { %4143 = vrot.lane.b32.xlu1 %v11541_v42, %s9585_s19  ;;  %v11741_v5 = vld [vmem:[#allocation2 + $0xca] sm:$0xff] }
 0x428   : > { %5100 = vst.msk [vmem:[#allocation3 + $0x148] sm:$0xff] %vm522_vm2, %v11741_v5 }
 0x429   : > { %v11746_v39 = vld [vmem:[#allocation2 + $0xc2] sm:$0xff]  ;;  %9313 = vmatmul.mubr.msk.f32.gmra.mxu0 %vm522_vm2, %v5148_v47 }
 0x42a   : > { %v11748_v26 = vld [vmem:[#allocation2 + $0xc0] sm:$0xff]  ;;  %5099 = vst.msk [vmem:[#allocation3 + $0x130] sm:$0xff] %vm522_vm2, %v11746_v39  ;;  %v11753_v42 = vld [vmem:[#allocation2 + $0xc8] sm:$0xff]  ;;  %4749 = vrot.lane.b32.xlu0 %v11589_v35, %s9585_s19  ;;  %9315 = vmatprep.mubr.msk.f32.mxu0 %vm522_vm2, %v5151_v32 }
 0x42b   : > { %3855 = vst.msk [vmem:[#allocation3 + $0x180] sm:$0xff] %vm522_vm2, %v11748_v26  ;;  %3957 = vrot.lane.b32.xlu1 %v4870_v38, %s9586_s20  ;;  %3856 = vst.msk [vmem:[#allocation3 + $0x198] sm:$0xff] %vm522_vm2, %v11753_v42  ;;  %v4872_v38 = vld [vmem:[#allocation2 + $0x99] sm:$0xff] }
 0x42d   : > { %9316 = vmatmul.mubr.msk.f32.gmra.mxu0 %vm522_vm2, %v5154_v24 }
 0x42e   : > { %4559 = vrot.lane.b32.xlu0 %v11580_v40, %s9586_s20 }
 0x42f   : > { %4149 = vrot.lane.b32.xlu1 %v11574_v16, %s9585_s19  ;;  %v5160_v28 = vld [vmem:[#allocation3 + $0x148] sm:$0xff] }
 0x431   : > { %v5157_v61 = vld [vmem:[#allocation3 + $0x130] sm:$0xff] }
 0x432   : > { %9318 = vmatprep.mubr.msk.f32.mxu0 %vm522_vm2, %v5157_v61  ;;  %4945 = vrot.lane.b32.xlu0 %v4872_v38, %s9587_s27 }
 0x433   : > { %4335 = vrot.lane.b32.xlu1 %v4677_v31, %s9587_s27  ;;  %v9270_v57 = vpop.f32.mrf.mxu0  ;;  %9319 = vmatmul.mubr.msk.f32.gmra.mxu0 %vm522_vm2, %v5160_v28 }
 0x434   : > { %v3670_v18 = vadd.f32 %v9270_v57, %v11390_v14 }
 0x435   : > { %v3664_v62 = vpop.f32.mrf.mxu0 }
 0x436   : > { %v3760_v10 = vmax.f32 %v3670_v18, 0.0  ;;  %v3665_v16 = vadd.f32 %v11390_v14, %v3664_v62  ;;  %4565 = vrot.lane.b32.xlu0 %v11630_v46, %s9586_s20 }
 0x437   : > { %4337 = vrot.lane.b32.xlu1 %v11589_v35, %s9587_s27  ;;  %v4871_v35 = vld [vmem:[#allocation2 + $0x91] sm:$0xff] }
 0x438   : > { %3792 = vst.msk [vmem:[#allocation2 + $0xe1] sm:$0xff] %vm522_vm2, %v3760_v10  ;;  %4464 = vst.msk [vmem:[#allocation3 + $0x1a0] sm:$0xff] %vm522_vm2, %v3760_v10  ;;  %v3759_v31 = vmax.f32 %v3665_v16, 0.0 }
 0x43a   : > { %3791 = vst.msk [vmem:[#allocation2 + $0xd9] sm:$0xff] %vm522_vm2, %v3759_v31  ;;  %4463 = vst.msk [vmem:[#allocation3 + $0x188] sm:$0xff] %vm522_vm2, %v3759_v31  ;;  %4751 = vrot.lane.b32.xlu0 %v11638_v50, %s9585_s19 }
 0x43b   : > { %3955 = vrot.lane.b32.xlu1 %v4869_v55, %s9586_s20 }
 0x43c   : > { %v4546_v47 = vpop.permute.xlu0 %4545 }
 0x43d   : > { %v3942_v25 = vpop.permute.xlu1 %3941  ;;  %4640 = vst.msk [vmem:[#allocation3 + $0x20] sm:$0xff] %vm1369_vm5, %v4546_v47 }
 0x43e   : > { %4034 = vst.msk [vmem:[#allocation3 + $0x48] sm:$0xff] %vm1369_vm5, %v3942_v25  ;;  %4943 = vrot.lane.b32.xlu0 %v4871_v35, %s9587_s27 }
 0x43f   : > { %4147 = vrot.lane.b32.xlu1 %v11580_v40, %s9585_s19  ;;  %v11790_v32 = vld [vmem:[#allocation2 + $0xe2] sm:$0xff] }
 0x440   : > { %5102 = vst.msk [vmem:[#allocation3 + $0x178] sm:$0xff] %vm522_vm2, %v11790_v32  ;;  %v4544_v24 = vpop.permute.xlu0 %4543 }
 0x441   : > { %v4134_v55 = vpop.permute.xlu1 %4133  ;;  %v11794_v61 = vld [vmem:[#allocation2 + $0xda] sm:$0xff]  ;;  %4639 = vst.msk [vmem:[#allocation3 + $0x8] sm:$0xff] %vm1369_vm5, %v4544_v24 }
 0x442   : > { %v11796_v57 = vld [vmem:[#allocation2 + $0xd8] sm:$0xff]  ;;  %4226 = vst.msk [vmem:[#allocation3 + $0x48] sm:$0xff] %vm1562_vm6, %v4134_v55  ;;  %v11802_v40 = vld [vmem:[#allocation2 + $0xe0] sm:$0xff]  ;;  %4753 = vrot.lane.b32.xlu0 %v11643_v22, %s9585_s19 }
 0x443   : > { %5101 = vst.msk [vmem:[#allocation3 + $0x160] sm:$0xff] %vm522_vm2, %v11794_v61  ;;  %3857 = vst.msk [vmem:[#allocation3 + $0x1b0] sm:$0xff] %vm522_vm2, %v11796_v57  ;;  %3961 = vrot.lane.b32.xlu1 %v4872_v38, %s9586_s20  ;;  %v4874_v38 = vld [vmem:[#allocation2 + $0xb1] sm:$0xff] }
 0x444   : > { %3858 = vst.msk [vmem:[#allocation3 + $0x1c8] sm:$0xff] %vm522_vm2, %v11802_v40  ;;  %v4930_v18 = vpop.permute.xlu0 %4929 }
 0x445   : > { %v4320_v28 = vpop.permute.xlu1 %4319 }
 0x446   : > { %4415 = vst.msk [vmem:[#allocation3] sm:$0xff] %vm1755_vm7, %v4320_v28  ;;  %4563 = vrot.lane.b32.xlu0 %v11636_v23, %s9586_s20 }
 0x447   : > { %4153 = vrot.lane.b32.xlu1 %v11630_v46, %s9585_s19  ;;  %v5166_v46 = vld [vmem:[#allocation3 + $0x178] sm:$0xff] }
 0x448   : > { %v4550_v10 = vpop.permute.xlu0 %4549 }
 0x449   : > { %v4322_v62 = vpop.permute.xlu1 %4321  ;;  %4642 = vst.msk [vmem:[#allocation3 + $0x50] sm:$0xff] %vm1369_vm5, %v4550_v10 }
 0x44a   : > { %v5163_v16 = vld [vmem:[#allocation3 + $0x160] sm:$0xff]  ;;  %4416 = vst.msk [vmem:[#allocation3 + $0x18] sm:$0xff] %vm1755_vm7, %v4322_v62  ;;  %4949 = vrot.lane.b32.xlu0 %v4874_v38, %s9587_s27  ;;  %v9273_v31 = vpop.f32.mrf.mxu0 }
 0x44b   : > { %9321 = vmatprep.mubr.msk.f32.mxu0 %vm522_vm2, %v5163_v16  ;;  %4339 = vrot.lane.b32.xlu1 %v11638_v50, %s9587_s27  ;;  %v3680_v25 = vadd.f32 %v9273_v31, %v11390_v14 }
 0x44c   : > { %9322 = vmatmul.mubr.msk.f32.gmra.mxu0 %vm522_vm2, %v5166_v46  ;;  %v4736_v55 = vpop.permute.xlu0 %4735  ;;  %v3674_v28 = vpop.f32.mrf.mxu0  ;;  %v4873_v46 = vld [vmem:[#allocation2 + $0xa9] sm:$0xff] }
 0x44d   : > { %v3940_v47 = vpop.permute.xlu1 %3939  ;;  %v3762_v24 = vmax.f32 %v3680_v25, 0.0  ;;  %4831 = vst.msk [vmem:[#allocation3 + $0x8] sm:$0xff] %vm1562_vm6, %v4736_v55  ;;  %v3675_v62 = vadd.f32 %v11390_v14, %v3674_v28 }
 0x44e   : > { %4033 = vst.msk [vmem:[#allocation3 + $0x30] sm:$0xff] %vm1369_vm5, %v3940_v47  ;;  %4569 = vrot.lane.b32.xlu0 %v11691_v4, %s9586_s20 }
 0x44f   : > { %4341 = vrot.lane.b32.xlu1 %v11643_v22, %s9587_s27  ;;  %3794 = vst.msk [vmem:[#allocation2 + $0xf9] sm:$0xff] %vm522_vm2, %v3762_v24  ;;  %4466 = vst.msk [vmem:[#allocation3 + $0x1d0] sm:$0xff] %vm522_vm2, %v3762_v24  ;;  %v3761_v50 = vmax.f32 %v3675_v62, 0.0 }
 0x450   : > { %v4928_v16 = vpop.permute.xlu0 %4927 }
 0x451   : > { %v4132_v10 = vpop.permute.xlu1 %4131  ;;  %5023 = vst.msk [vmem:[#allocation3 + $0x8] sm:$0xff] %vm1755_vm7, %v4928_v16 }
 0x452   : > { %4225 = vst.msk [vmem:[#allocation3 + $0x30] sm:$0xff] %vm1562_vm6, %v4132_v10  ;;  %4755 = vrot.lane.b32.xlu0 %v11698_v58, %s9585_s19 }
 0x453   : > { %3793 = vst.msk [vmem:[#allocation2 + $0xf1] sm:$0xff] %vm522_vm2, %v3761_v50  ;;  %4465 = vst.msk [vmem:[#allocation3 + $0x1b8] sm:$0xff] %vm522_vm2, %v3761_v50  ;;  %3959 = vrot.lane.b32.xlu1 %v4871_v35, %s9586_s20 }
 0x454   : > { %v4738_v31 = vpop.permute.xlu0 %4737 }
 0x455   : > { %v3946_v22 = vpop.permute.xlu1 %3945  ;;  %4832 = vst.msk [vmem:[#allocation3 + $0x20] sm:$0xff] %vm1562_vm6, %v4738_v31 }
 0x456   : > { %4036 = vst.msk [vmem:[#allocation3 + $0x78] sm:$0xff] %vm1369_vm5, %v3946_v22  ;;  %4947 = vrot.lane.b32.xlu0 %v4873_v46, %s9587_s27  ;;  %v11846_v25 = vld [vmem:[#allocation2 + $0xfa] sm:$0xff]  ;;  %v5122_v22 = vld [vmem:[#allocation3 + $0x18] sm:$0xff] }
 0x457   : > { %5024 = vst.msk [vmem:[#allocation3 + $0x20] sm:$0xff] %vm1755_vm7, %v4930_v18  ;;  %4151 = vrot.lane.b32.xlu1 %v11636_v23, %s9585_s19  ;;  %v5119_v23 = vld [vmem:[#allocation3] sm:$0xff] }
 0x458   : > { %5104 = vst.msk [vmem:[#allocation3 + $0x1a8] sm:$0xff] %vm522_vm2, %v11846_v25  ;;  %v4548_v47 = vpop.permute.xlu0 %4547  ;;  %v5120_v55 = vld [vmem:[#allocation3 + $0x8] sm:$0xff] }
 0x459   : > { %v4138_v35 = vpop.permute.xlu1 %4137  ;;  %4641 = vst.msk [vmem:[#allocation3 + $0x38] sm:$0xff] %vm1369_vm5, %v4548_v47  ;;  %5375 = vmatprep.mubr.f32.mxu1 %v5120_v55 }
 0x45a   : > { %4228 = vst.msk [vmem:[#allocation3 + $0x78] sm:$0xff] %vm1562_vm6, %v4138_v35  ;;  %v11852_v24 = vld [vmem:[#allocation2 + $0xf2] sm:$0xff]  ;;  %4757 = vrot.lane.b32.xlu0 %v11702_v59, %s9585_s19  ;;  %5376 = vmatmul.mubr.f32.vlgmr.msra.gmra.mxu1 %v5119_v23  ;;  %v4876_v23 = vld [vmem:[#allocation2 + $0xc9] sm:$0xff] }
 0x45b   : > { %v11854_v18 = vld [vmem:[#allocation2 + $0xf0] sm:$0xff]  ;;  %3965 = vrot.lane.b32.xlu1 %v4874_v38, %s9586_s20  ;;  %5103 = vst.msk [vmem:[#allocation3 + $0x190] sm:$0xff] %vm522_vm2, %v11852_v24  ;;  %v11861_v28 = vld [vmem:[#allocation2 + $0xf8] sm:$0xff] }
 0x45c   : > { %3859 = vst.msk [vmem:[#allocation3 + $0x1e0] sm:$0xff] %vm522_vm2, %v11854_v18  ;;  %3860 = vst.msk [vmem:[#allocation3 + $0x1f8] sm:$0xff] %vm522_vm2, %v11861_v28  ;;  %v4934_v50 = vpop.permute.xlu0 %4933 }
 0x45d   : > { %v4324_v62 = vpop.permute.xlu1 %4323 }
 0x45e   : > { %4417 = vst.msk [vmem:[#allocation3 + $0x30] sm:$0xff] %vm1755_vm7, %v4324_v62  ;;  %v5123_v38 = vld [vmem:[#allocation3 + $0x20] sm:$0xff]  ;;  %4567 = vrot.lane.b32.xlu0 %v11696_v30, %s9586_s20  ;;  %v9276_v10 = vpop.f32.mrf.mxu0 }
 0x45f   : > { %4157 = vrot.lane.b32.xlu1 %v11691_v4, %s9585_s19  ;;  %5380 = vmatprep.mubr.f32.mxu1 %v5123_v38  ;;  %v3690_v16 = vadd.f32 %v9276_v10, %v11390_v14  ;;  %v5172_v38 = vld [vmem:[#allocation3 + $0x1a8] sm:$0xff] }
 0x460   : > { %5381 = vmatmul.mubr.f32.gmra.mxu1 %v5122_v22  ;;  %v4554_v35 = vpop.permute.xlu0 %4553  ;;  %v3684_v55 = vpop.f32.mrf.mxu0 }
 0x461   : > { %v4326_v31 = vpop.permute.xlu1 %4325  ;;  %v3764_v47 = vmax.f32 %v3690_v16, 0.0  ;;  %4644 = vst.msk [vmem:[#allocation3 + $0x80] sm:$0xff] %vm1369_vm5, %v4554_v35  ;;  %v3685_v4 = vadd.f32 %v11390_v14, %v3684_v55  ;;  %v4875_v55 = vld [vmem:[#allocation2 + $0xc1] sm:$0xff] }
 0x462   : > { %4418 = vst.msk [vmem:[#allocation3 + $0x48] sm:$0xff] %vm1755_vm7, %v4326_v31  ;;  %v5169_v62 = vld [vmem:[#allocation3 + $0x190] sm:$0xff]  ;;  %4953 = vrot.lane.b32.xlu0 %v4876_v23, %s9587_s27 }
 0x463   : > { %4343 = vrot.lane.b32.xlu1 %v11698_v58, %s9587_s27  ;;  %3796 = vst.msk [vmem:[#allocation2 + $0x111] sm:$0xff] %vm522_vm2, %v3764_v47  ;;  %4468 = vst.msk [vmem:[#allocation3 + $0x200] sm:$0xff] %vm522_vm2, %v3764_v47  ;;  %9324 = vmatprep.mubr.msk.f32.mxu0 %vm522_vm2, %v5169_v62  ;;  %v3763_v10 = vmax.f32 %v3685_v4, 0.0 }
 0x464   : > { %9325 = vmatmul.mubr.msk.f32.gmra.mxu0 %vm522_vm2, %v5172_v38  ;;  %v4740_v22 = vpop.permute.xlu0 %4739 }
 0x465   : > { %v3944_v16 = vpop.permute.xlu1 %3943  ;;  %4833 = vst.msk [vmem:[#allocation3 + $0x38] sm:$0xff] %vm1562_vm6, %v4740_v22 }
 0x466   : > { %4035 = vst.msk [vmem:[#allocation3 + $0x60] sm:$0xff] %vm1369_vm5, %v3944_v16  ;;  %4573 = vrot.lane.b32.xlu0 %v11741_v5, %s9586_s20 }
 0x467   : > { %3795 = vst.msk [vmem:[#allocation2 + $0x109] sm:$0xff] %vm522_vm2, %v3763_v10  ;;  %4467 = vst.msk [vmem:[#allocation3 + $0x1e8] sm:$0xff] %vm522_vm2, %v3763_v10  ;;  %4345 = vrot.lane.b32.xlu1 %v11702_v59, %s9587_s27 }
 0x468   : > { %v4932_v31 = vpop.permute.xlu0 %4931 }
 0x469   : > { %v4136_v58 = vpop.permute.xlu1 %4135  ;;  %5025 = vst.msk [vmem:[#allocation3 + $0x38] sm:$0xff] %vm1755_vm7, %v4932_v31 }
 0x46a   : > { %4227 = vst.msk [vmem:[#allocation3 + $0x60] sm:$0xff] %vm1562_vm6, %v4136_v58  ;;  %4759 = vrot.lane.b32.xlu0 %v11748_v26, %s9585_s19  ;;  %v11896_v35 = vld [vmem:[#allocation2 + $0x112] sm:$0xff] }
 0x46b   : > { %3963 = vrot.lane.b32.xlu1 %v4873_v46, %s9586_s20  ;;  %5106 = vst.msk [vmem:[#allocation3 + $0x1d8] sm:$0xff] %vm522_vm2, %v11896_v35 }
 0x46c   : > { %v4742_v47 = vpop.permute.xlu0 %4741 }
 0x46d   : > { %v3950_v59 = vpop.permute.xlu1 %3949  ;;  %4834 = vst.msk [vmem:[#allocation3 + $0x50] sm:$0xff] %vm1562_vm6, %v4742_v47  ;;  %v5128_v47 = vld [vmem:[#allocation3 + $0x48] sm:$0xff] }
 0x46e   : > { %4038 = vst.msk [vmem:[#allocation3 + $0xa8] sm:$0xff] %vm1369_vm5, %v3950_v59  ;;  %v11902_v62 = vld [vmem:[#allocation2 + $0x10a] sm:$0xff]  ;;  %4951 = vrot.lane.b32.xlu0 %v4875_v55, %s9587_s27 }
 0x46f   : > { %v11904_v4 = vld [vmem:[#allocation2 + $0x108] sm:$0xff]  ;;  %5026 = vst.msk [vmem:[#allocation3 + $0x50] sm:$0xff] %vm1755_vm7, %v4934_v50  ;;  %4155 = vrot.lane.b32.xlu1 %v11696_v30, %s9585_s19  ;;  %v11912_v46 = vld [vmem:[#allocation2 + $0x110] sm:$0xff]  ;;  %v5125_v30 = vld [vmem:[#allocation3 + $0x30] sm:$0xff] }
 0x470   : > { %5105 = vst.msk [vmem:[#allocation3 + $0x1c0] sm:$0xff] %vm522_vm2, %v11902_v62  ;;  %3861 = vst.msk [vmem:[#allocation3 + $0x210] sm:$0xff] %vm522_vm2, %v11904_v4  ;;  %v4552_v10 = vpop.permute.xlu0 %4551  ;;  %v5126_v16 = vld [vmem:[#allocation3 + $0x38] sm:$0xff] }
 0x471   : > { %3862 = vst.msk [vmem:[#allocation3 + $0x228] sm:$0xff] %vm522_vm2, %v11912_v46  ;;  %v4142_v38 = vpop.permute.xlu1 %4141  ;;  %5385 = vmatprep.mubr.f32.mxu1 %v5126_v16 }
 0x472   : > { %4230 = vst.msk [vmem:[#allocation3 + $0xa8] sm:$0xff] %vm1562_vm6, %v4142_v38  ;;  %4761 = vrot.lane.b32.xlu0 %v11753_v42, %s9585_s19  ;;  %5386 = vmatmul.mubr.f32.gmra.mxu1 %v5125_v30  ;;  %v5178_v38 = vld [vmem:[#allocation3 + $0x1d8] sm:$0xff] }
 0x473   : > { %4643 = vst.msk [vmem:[#allocation3 + $0x68] sm:$0xff] %vm1369_vm5, %v4552_v10  ;;  %3969 = vrot.lane.b32.xlu1 %v4876_v23, %s9586_s20 }
 0x474   : > { %v4938_v22 = vpop.permute.xlu0 %4937 }
 0x475   : > { %v4328_v50 = vpop.permute.xlu1 %4327  ;;  %v9279_v58 = vpop.f32.mrf.mxu0 }
 0x476   : > { %4419 = vst.msk [vmem:[#allocation3 + $0x60] sm:$0xff] %vm1755_vm7, %v4328_v50  ;;  %v5129_v31 = vld [vmem:[#allocation3 + $0x50] sm:$0xff]  ;;  %4571 = vrot.lane.b32.xlu0 %v11746_v39, %s9586_s20  ;;  %v3700_v23 = vadd.f32 %v9279_v58, %v11390_v14 }
 0x477   : > { %v5175_v59 = vld [vmem:[#allocation3 + $0x1c0] sm:$0xff]  ;;  %4161 = vrot.lane.b32.xlu1 %v11741_v5, %s9585_s19  ;;  %5390 = vmatprep.mubr.f32.mxu1 %v5129_v31  ;;  %v3694_v10 = vpop.f32.mrf.mxu0  ;;  %v11934_v5 = vld [vmem:[%s13854_s9] ss:$0 sm:$0xff]  ;;  %v4878_v14 = vld [vmem:[#allocation2 + $0xe1] sm:$0xff] }
 0x478   : > { %9327 = vmatprep.mubr.msk.f32.mxu0 %vm522_vm2, %v5175_v59  ;;  %v3766_v16 = vmax.f32 %v3700_v23, 0.0  ;;  %5391 = vmatmul.mubr.f32.gmra.mxu1 %v5128_v47  ;;  %v3695_v50 = vadd.f32 %v11934_v5, %v3694_v10  ;;  %v4558_v13 = vpop.permute.xlu0 %4557 }
 0x479   : > { %9328 = vmatmul.mubr.msk.f32.gmra.mxu0 %vm522_vm2, %v5178_v38  ;;  %v4330_v30 = vpop.permute.xlu1 %4329  ;;  %4646 = vst.msk [vmem:[#allocation3 + $0xb0] sm:$0xff] %vm1369_vm5, %v4558_v13 }
 0x47a   : > { %4420 = vst.msk [vmem:[#allocation3 + $0x78] sm:$0xff] %vm1755_vm7, %v4330_v30  ;;  %v3765_v58 = vmax.f32 %v3695_v50, 0.0  ;;  %4957 = vrot.lane.b32.xlu0 %v4878_v14, %s9587_s27 }
 0x47b   : > { %3798 = vst.msk [vmem:[#allocation2 + $0x129] sm:$0xff] %vm522_vm2, %v3766_v16  ;;  %4470 = vst.msk [vmem:[#allocation3 + $0x230] sm:$0xff] %vm522_vm2, %v3766_v16  ;;  %4347 = vrot.lane.b32.xlu1 %v11748_v26, %s9587_s27 }
 0x47c   : > { %3797 = vst.msk [vmem:[#allocation2 + $0x121] sm:$0xff] %vm522_vm2, %v3765_v58  ;;  %4469 = vst.msk [vmem:[#allocation3 + $0x218] sm:$0xff] %vm522_vm2, %v3765_v58  ;;  %v4744_v59 = vpop.permute.xlu0 %4743 }
 0x47d   : > { %v3948_v31 = vpop.permute.xlu1 %3947  ;;  %4835 = vst.msk [vmem:[#allocation3 + $0x68] sm:$0xff] %vm1562_vm6, %v4744_v59 }
 0x47e   : > { %4037 = vst.msk [vmem:[#allocation3 + $0x90] sm:$0xff] %vm1369_vm5, %v3948_v31  ;;  %4577 = vrot.lane.b32.xlu0 %v11790_v32, %s9586_s20  ;;  %v5131_v31 = vld [vmem:[#allocation3 + $0x60] sm:$0xff] }
 0x47f   : > { %4349 = vrot.lane.b32.xlu1 %v11753_v42, %s9587_s27 }
 0x480   : > { %v4936_v26 = vpop.permute.xlu0 %4935 }
 0x481   : > { %v4140_v13 = vpop.permute.xlu1 %4139  ;;  %5027 = vst.msk [vmem:[#allocation3 + $0x68] sm:$0xff] %vm1755_vm7, %v4936_v26 }
 0x482   : > { %4229 = vst.msk [vmem:[#allocation3 + $0x90] sm:$0xff] %vm1562_vm6, %v4140_v13  ;;  %v11954_v23 = vld [vmem:[#allocation2 + $0x12a] sm:$0xff]  ;;  %4763 = vrot.lane.b32.xlu0 %v11796_v57, %s9585_s19 }
 0x483   : > { %3967 = vrot.lane.b32.xlu1 %v4875_v55, %s9586_s20  ;;  %5108 = vst.msk [vmem:[#allocation3 + $0x208] sm:$0xff] %vm522_vm2, %v11954_v23  ;;  %v11961_v42 = vld [vmem:[#allocation2 + $0x122] sm:$0xff]  ;;  %v4877_v55 = vld [vmem:[#allocation2 + $0xd9] sm:$0xff] }
 0x484   : > { %v11963_v47 = vld [vmem:[#allocation2 + $0x120] sm:$0xff]  ;;  %v4746_v10 = vpop.permute.xlu0 %4745  ;;  %5107 = vst.msk [vmem:[#allocation3 + $0x1f0] sm:$0xff] %vm522_vm2, %v11961_v42  ;;  %v11967_v16 = vld [vmem:[#allocation2 + $0x128] sm:$0xff] }
 0x485   : > { %v3954_v38 = vpop.permute.xlu1 %3953  ;;  %3863 = vst.msk [vmem:[#allocation3 + $0x240] sm:$0xff] %vm522_vm2, %v11963_v47  ;;  %3864 = vst.msk [vmem:[#allocation3 + $0x258] sm:$0xff] %vm522_vm2, %v11967_v16 }
 0x486   : > { %4040 = vst.msk [vmem:[#allocation3 + $0xd8] sm:$0xff] %vm1369_vm5, %v3954_v38  ;;  %4955 = vrot.lane.b32.xlu0 %v4877_v55, %s9587_s27 }
 0x487   : > { %4836 = vst.msk [vmem:[#allocation3 + $0x80] sm:$0xff] %vm1562_vm6, %v4746_v10  ;;  %4159 = vrot.lane.b32.xlu1 %v11746_v39, %s9585_s19  ;;  %v5134_v10 = vld [vmem:[#allocation3 + $0x78] sm:$0xff] }
 0x488   : > { %5028 = vst.msk [vmem:[#allocation3 + $0x80] sm:$0xff] %vm1755_vm7, %v4938_v22  ;;  %v4556_v50 = vpop.permute.xlu0 %4555  ;;  %v5132_v58 = vld [vmem:[#allocation3 + $0x68] sm:$0xff] }
 0x489   : > { %v4146_v30 = vpop.permute.xlu1 %4145  ;;  %4645 = vst.msk [vmem:[#allocation3 + $0x98] sm:$0xff] %vm1369_vm5, %v4556_v50  ;;  %5395 = vmatprep.mubr.f32.mxu1 %v5132_v58 }
 0x48a   : > { %4232 = vst.msk [vmem:[#allocation3 + $0xd8] sm:$0xff] %vm1562_vm6, %v4146_v30  ;;  %4765 = vrot.lane.b32.xlu0 %v11802_v40, %s9585_s19  ;;  %5396 = vmatmul.mubr.f32.gmra.mxu1 %v5131_v31  ;;  %v5184_v13 = vld [vmem:[#allocation3 + $0x208] sm:$0xff] }
 0x48b   : > { %3973 = vrot.lane.b32.xlu1 %v4878_v14, %s9586_s20  ;;  %v5181_v22 = vld [vmem:[#allocation3 + $0x1f0] sm:$0xff] }
 0x48c   : > { %v4942_v39 = vpop.permute.xlu0 %4941  ;;  %9330 = vmatprep.mubr.msk.f32.mxu0 %vm522_vm2, %v5181_v22 }
 0x48d   : > { %v4332_v59 = vpop.permute.xlu1 %4331  ;;  %v9282_v26 = vpop.f32.mrf.mxu0  ;;  %9331 = vmatmul.mubr.msk.f32.gmra.mxu0 %vm522_vm2, %v5184_v13 }
 0x48e   : > { %4421 = vst.msk [vmem:[#allocation3 + $0x90] sm:$0xff] %vm1755_vm7, %v4332_v59  ;;  %v3710_v14 = vadd.f32 %v11934_v5, %v9282_v26  ;;  %4575 = vrot.lane.b32.xlu0 %v11794_v61, %s9586_s20  ;;  %v4880_v59 = vld [vmem:[#allocation2 + $0xf9] sm:$0xff] }
 0x48f   : > { %v5135_v38 = vld [vmem:[#allocation3 + $0x80] sm:$0xff]  ;;  %4165 = vrot.lane.b32.xlu1 %v11790_v32, %s9585_s19  ;;  %v3704_v30 = vpop.f32.mrf.mxu0 }
 0x490   : > { %5400 = vmatprep.mubr.f32.mxu1 %v5135_v38  ;;  %v3768_v50 = vmax.f32 %v3710_v14, 0.0  ;;  %v3705_v31 = vadd.f32 %v11934_v5, %v3704_v30  ;;  %v4562_v22 = vpop.permute.xlu0 %4561 }
 0x491   : > { %5401 = vmatmul.mubr.f32.gmra.mxu1 %v5134_v10  ;;  %v4334_v58 = vpop.permute.xlu1 %4333  ;;  %4648 = vst.msk [vmem:[#allocation3 + $0xe0] sm:$0xff] %vm1369_vm5, %v4562_v22 }
 0x492   : > { %4422 = vst.msk [vmem:[#allocation3 + $0xa8] sm:$0xff] %vm1755_vm7, %v4334_v58  ;;  %v3767_v32 = vmax.f32 %v3705_v31, 0.0  ;;  %4961 = vrot.lane.b32.xlu0 %v4880_v59, %s9587_s27 }
 0x493   : > { %3800 = vst.msk [vmem:[#allocation2 + $0x141] sm:$0xff] %vm522_vm2, %v3768_v50  ;;  %4472 = vst.msk [vmem:[#allocation3 + $0x260] sm:$0xff] %vm522_vm2, %v3768_v50  ;;  %4351 = vrot.lane.b32.xlu1 %v11796_v57, %s9587_s27 }
 0x494   : > { %3799 = vst.msk [vmem:[#allocation2 + $0x139] sm:$0xff] %vm522_vm2, %v3767_v32  ;;  %4471 = vst.msk [vmem:[#allocation3 + $0x248] sm:$0xff] %vm522_vm2, %v3767_v32  ;;  %v4748_v26 = vpop.permute.xlu0 %4747 }
 0x495   : > { %v3952_v13 = vpop.permute.xlu1 %3951  ;;  %4837 = vst.msk [vmem:[#allocation3 + $0x98] sm:$0xff] %vm1562_vm6, %v4748_v26 }
 0x496   : > { %4039 = vst.msk [vmem:[#allocation3 + $0xc0] sm:$0xff] %vm1369_vm5, %v3952_v13  ;;  %4581 = vrot.lane.b32.xlu0 %v11846_v25, %s9586_s20  ;;  %v5137_v13 = vld [vmem:[#allocation3 + $0x90] sm:$0xff] }
 0x497   : > { %4353 = vrot.lane.b32.xlu1 %v11802_v40, %s9587_s27 }
 0x498   : > { %v4940_v57 = vpop.permute.xlu0 %4939 }
 0x499   : > { %v4144_v38 = vpop.permute.xlu1 %4143  ;;  %5029 = vst.msk [vmem:[#allocation3 + $0x98] sm:$0xff] %vm1755_vm7, %v4940_v57 }
 0x49a   : > { %4231 = vst.msk [vmem:[#allocation3 + $0xc0] sm:$0xff] %vm1562_vm6, %v4144_v38  ;;  %v12010_v14 = vld [vmem:[#allocation2 + $0x142] sm:$0xff]  ;;  %4767 = vrot.lane.b32.xlu0 %v11854_v18, %s9585_s19 }
 0x49b   : > { %3971 = vrot.lane.b32.xlu1 %v4877_v55, %s9586_s20  ;;  %5110 = vst.msk [vmem:[#allocation3 + $0x238] sm:$0xff] %vm522_vm2, %v12010_v14  ;;  %v12017_v40 = vld [vmem:[#allocation2 + $0x13a] sm:$0xff]  ;;  %v4879_v55 = vld [vmem:[#allocation2 + $0xf1] sm:$0xff] }
 0x49c   : > { %v12019_v10 = vld [vmem:[#allocation2 + $0x138] sm:$0xff]  ;;  %v4750_v50 = vpop.permute.xlu0 %4749  ;;  %5109 = vst.msk [vmem:[#allocation3 + $0x220] sm:$0xff] %vm522_vm2, %v12017_v40  ;;  %v12023_v58 = vld [vmem:[#allocation2 + $0x140] sm:$0xff] }
 0x49d   : > { %v3958_v30 = vpop.permute.xlu1 %3957  ;;  %3865 = vst.msk [vmem:[#allocation3 + $0x270] sm:$0xff] %vm522_vm2, %v12019_v10  ;;  %3866 = vst.msk [vmem:[#allocation3 + $0x288] sm:$0xff] %vm522_vm2, %v12023_v58 }
 0x49e   : > { %4042 = vst.msk [vmem:[#allocation3 + $0x108] sm:$0xff] %vm1369_vm5, %v3958_v30  ;;  %4959 = vrot.lane.b32.xlu0 %v4879_v55, %s9587_s27 }
 0x49f   : > { %4838 = vst.msk [vmem:[#allocation3 + $0xb0] sm:$0xff] %vm1562_vm6, %v4750_v50  ;;  %4163 = vrot.lane.b32.xlu1 %v11794_v61, %s9585_s19  ;;  %v5140_v50 = vld [vmem:[#allocation3 + $0xa8] sm:$0xff] }
 0x4a0   : > { %5030 = vst.msk [vmem:[#allocation3 + $0xb0] sm:$0xff] %vm1755_vm7, %v4942_v39  ;;  %v4560_v22 = vpop.permute.xlu0 %4559  ;;  %v5138_v32 = vld [vmem:[#allocation3 + $0x98] sm:$0xff] }
 0x4a1   : > { %v4150_v31 = vpop.permute.xlu1 %4149  ;;  %4647 = vst.msk [vmem:[#allocation3 + $0xc8] sm:$0xff] %vm1369_vm5, %v4560_v22  ;;  %5405 = vmatprep.mubr.f32.mxu1 %v5138_v32 }
 0x4a2   : > { %4234 = vst.msk [vmem:[#allocation3 + $0x108] sm:$0xff] %vm1562_vm6, %v4150_v31  ;;  %4769 = vrot.lane.b32.xlu0 %v11861_v28, %s9585_s19  ;;  %5406 = vmatmul.mubr.f32.gmra.mxu1 %v5137_v13  ;;  %v5190_v38 = vld [vmem:[#allocation3 + $0x238] sm:$0xff] }
 0x4a3   : > { %3977 = vrot.lane.b32.xlu1 %v4880_v59, %s9586_s20  ;;  %v5187_v39 = vld [vmem:[#allocation3 + $0x220] sm:$0xff] }
 0x4a4   : > { %v4946_v61 = vpop.permute.xlu0 %4945  ;;  %9333 = vmatprep.mubr.msk.f32.mxu0 %vm522_vm2, %v5187_v39 }
 0x4a5   : > { %v4336_v26 = vpop.permute.xlu1 %4335  ;;  %v9285_v57 = vpop.f32.mrf.mxu0  ;;  %9334 = vmatmul.mubr.msk.f32.gmra.mxu0 %vm522_vm2, %v5190_v38 }
 0x4a6   : > { %4423 = vst.msk [vmem:[#allocation3 + $0xc0] sm:$0xff] %vm1755_vm7, %v4336_v26  ;;  %v3720_v59 = vadd.f32 %v11934_v5, %v9285_v57  ;;  %4579 = vrot.lane.b32.xlu0 %v11852_v24, %s9586_s20  ;;  %v4882_v26 = vld [vmem:[#allocation2 + $0x111] sm:$0xff] }
 0x4a7   : > { %v5141_v30 = vld [vmem:[#allocation3 + $0xb0] sm:$0xff]  ;;  %4169 = vrot.lane.b32.xlu1 %v11846_v25, %s9585_s19  ;;  %v3714_v31 = vpop.f32.mrf.mxu0 }
 0x4a8   : > { %5410 = vmatprep.mubr.f32.mxu1 %v5141_v30  ;;  %v3770_v22 = vmax.f32 %v3720_v59, 0.0  ;;  %v3715_v13 = vadd.f32 %v11934_v5, %v3714_v31  ;;  %v4566_v39 = vpop.permute.xlu0 %4565 }
 0x4a9   : > { %5411 = vmatmul.mubr.f32.gmra.mxu1 %v5140_v50  ;;  %v4338_v32 = vpop.permute.xlu1 %4337  ;;  %4650 = vst.msk [vmem:[#allocation3 + $0x110] sm:$0xff] %vm1369_vm5, %v4566_v39 }
 0x4aa   : > { %4424 = vst.msk [vmem:[#allocation3 + $0xd8] sm:$0xff] %vm1755_vm7, %v4338_v32  ;;  %v3769_v25 = vmax.f32 %v3715_v13, 0.0  ;;  %4965 = vrot.lane.b32.xlu0 %v4882_v26, %s9587_s27 }
 0x4ab   : > { %3802 = vst.msk [vmem:[#allocation2 + $0x159] sm:$0xff] %vm522_vm2, %v3770_v22  ;;  %4474 = vst.msk [vmem:[#allocation3 + $0x290] sm:$0xff] %vm522_vm2, %v3770_v22  ;;  %4355 = vrot.lane.b32.xlu1 %v11854_v18, %s9587_s27 }
 0x4ac   : > { %3801 = vst.msk [vmem:[#allocation2 + $0x151] sm:$0xff] %vm522_vm2, %v3769_v25  ;;  %4473 = vst.msk [vmem:[#allocation3 + $0x278] sm:$0xff] %vm522_vm2, %v3769_v25  ;;  %v4752_v57 = vpop.permute.xlu0 %4751 }
 0x4ad   : > { %v3956_v38 = vpop.permute.xlu1 %3955  ;;  %4839 = vst.msk [vmem:[#allocation3 + $0xc8] sm:$0xff] %vm1562_vm6, %v4752_v57 }
 0x4ae   : > { %4041 = vst.msk [vmem:[#allocation3 + $0xf0] sm:$0xff] %vm1369_vm5, %v3956_v38  ;;  %4585 = vrot.lane.b32.xlu0 %v11896_v35, %s9586_s20  ;;  %v5143_v38 = vld [vmem:[#allocation3 + $0xc0] sm:$0xff] }
 0x4af   : > { %4357 = vrot.lane.b32.xlu1 %v11861_v28, %s9587_s27 }
 0x4b0   : > { %v4944_v18 = vpop.permute.xlu0 %4943 }
 0x4b1   : > { %v4148_v30 = vpop.permute.xlu1 %4147  ;;  %5031 = vst.msk [vmem:[#allocation3 + $0xc8] sm:$0xff] %vm1755_vm7, %v4944_v18 }
 0x4b2   : > { %4233 = vst.msk [vmem:[#allocation3 + $0xf0] sm:$0xff] %vm1562_vm6, %v4148_v30  ;;  %v12066_v59 = vld [vmem:[#allocation2 + $0x15a] sm:$0xff]  ;;  %4771 = vrot.lane.b32.xlu0 %v11904_v4, %s9585_s19 }
 0x4b3   : > { %3975 = vrot.lane.b32.xlu1 %v4879_v55, %s9586_s20  ;;  %5112 = vst.msk [vmem:[#allocation3 + $0x268] sm:$0xff] %vm522_vm2, %v12066_v59  ;;  %v12073_v28 = vld [vmem:[#allocation2 + $0x152] sm:$0xff]  ;;  %v4881_v55 = vld [vmem:[#allocation2 + $0x109] sm:$0xff] }
 0x4b4   : > { %v12075_v50 = vld [vmem:[#allocation2 + $0x150] sm:$0xff]  ;;  %v4754_v22 = vpop.permute.xlu0 %4753  ;;  %5111 = vst.msk [vmem:[#allocation3 + $0x250] sm:$0xff] %vm522_vm2, %v12073_v28  ;;  %v12079_v32 = vld [vmem:[#allocation2 + $0x158] sm:$0xff] }
 0x4b5   : > { %v3962_v31 = vpop.permute.xlu1 %3961  ;;  %3867 = vst.msk [vmem:[#allocation3 + $0x2a0] sm:$0xff] %vm522_vm2, %v12075_v50  ;;  %3868 = vst.msk [vmem:[#allocation3 + $0x2b8] sm:$0xff] %vm522_vm2, %v12079_v32 }
 0x4b6   : > { %4044 = vst.msk [vmem:[#allocation3 + $0x138] sm:$0xff] %vm1369_vm5, %v3962_v31  ;;  %4963 = vrot.lane.b32.xlu0 %v4881_v55, %s9587_s27 }
 0x4b7   : > { %4840 = vst.msk [vmem:[#allocation3 + $0xe0] sm:$0xff] %vm1562_vm6, %v4754_v22  ;;  %4167 = vrot.lane.b32.xlu1 %v11852_v24, %s9585_s19  ;;  %v5146_v22 = vld [vmem:[#allocation3 + $0xd8] sm:$0xff] }
 0x4b8   : > { %5032 = vst.msk [vmem:[#allocation3 + $0xe0] sm:$0xff] %vm1755_vm7, %v4946_v61  ;;  %v4564_v39 = vpop.permute.xlu0 %4563  ;;  %v5144_v25 = vld [vmem:[#allocation3 + $0xc8] sm:$0xff] }
 0x4b9   : > { %v4154_v13 = vpop.permute.xlu1 %4153  ;;  %4649 = vst.msk [vmem:[#allocation3 + $0xf8] sm:$0xff] %vm1369_vm5, %v4564_v39  ;;  %5415 = vmatprep.mubr.f32.mxu1 %v5144_v25 }
 0x4ba   : > { %4236 = vst.msk [vmem:[#allocation3 + $0x138] sm:$0xff] %vm1562_vm6, %v4154_v13  ;;  %4773 = vrot.lane.b32.xlu0 %v11912_v46, %s9585_s19  ;;  %5416 = vmatmul.mubr.f32.gmra.mxu1 %v5143_v38  ;;  %v5196_v30 = vld [vmem:[#allocation3 + $0x268] sm:$0xff] }
 0x4bb   : > { %3981 = vrot.lane.b32.xlu1 %v4882_v26, %s9586_s20  ;;  %v5193_v61 = vld [vmem:[#allocation3 + $0x250] sm:$0xff] }
 0x4bc   : > { %v4950_v24 = vpop.permute.xlu0 %4949  ;;  %9336 = vmatprep.mubr.msk.f32.mxu0 %vm522_vm2, %v5193_v61 }
 0x4bd   : > { %v4340_v57 = vpop.permute.xlu1 %4339  ;;  %v9288_v18 = vpop.f32.mrf.mxu0  ;;  %9337 = vmatmul.mubr.msk.f32.gmra.mxu0 %vm522_vm2, %v5196_v30 }
 0x4be   : > { %4425 = vst.msk [vmem:[#allocation3 + $0xf0] sm:$0xff] %vm1755_vm7, %v4340_v57  ;;  %v3730_v26 = vadd.f32 %v11934_v5, %v9288_v18  ;;  %4583 = vrot.lane.b32.xlu0 %v11902_v62, %s9586_s20  ;;  %v4884_v57 = vld [vmem:[#allocation2 + $0x129] sm:$0xff] }
 0x4bf   : > { %v5147_v31 = vld [vmem:[#allocation3 + $0xe0] sm:$0xff]  ;;  %4173 = vrot.lane.b32.xlu1 %v11896_v35, %s9585_s19  ;;  %v3724_v13 = vpop.f32.mrf.mxu0 }
 0x4c0   : > { %5420 = vmatprep.mubr.f32.mxu1 %v5147_v31  ;;  %v3772_v39 = vmax.f32 %v3730_v26, 0.0  ;;  %v3725_v38 = vadd.f32 %v11934_v5, %v3724_v13  ;;  %v4570_v61 = vpop.permute.xlu0 %4569 }
 0x4c1   : > { %5421 = vmatmul.mubr.f32.gmra.mxu1 %v5146_v22  ;;  %v4342_v25 = vpop.permute.xlu1 %4341  ;;  %4652 = vst.msk [vmem:[#allocation3 + $0x140] sm:$0xff] %vm1369_vm5, %v4570_v61 }
 0x4c2   : > { %4426 = vst.msk [vmem:[#allocation3 + $0x108] sm:$0xff] %vm1755_vm7, %v4342_v25  ;;  %v3771_v35 = vmax.f32 %v3725_v38, 0.0  ;;  %4969 = vrot.lane.b32.xlu0 %v4884_v57, %s9587_s27 }
 0x4c3   : > { %3804 = vst.msk [vmem:[#allocation2 + $0x171] sm:$0xff] %vm522_vm2, %v3772_v39  ;;  %4476 = vst.msk [vmem:[#allocation3 + $0x2c0] sm:$0xff] %vm522_vm2, %v3772_v39  ;;  %4359 = vrot.lane.b32.xlu1 %v11904_v4, %s9587_s27 }
 0x4c4   : > { %3803 = vst.msk [vmem:[#allocation2 + $0x169] sm:$0xff] %vm522_vm2, %v3771_v35  ;;  %4475 = vst.msk [vmem:[#allocation3 + $0x2a8] sm:$0xff] %vm522_vm2, %v3771_v35  ;;  %v4756_v18 = vpop.permute.xlu0 %4755 }
 0x4c5   : > { %v3960_v30 = vpop.permute.xlu1 %3959  ;;  %4841 = vst.msk [vmem:[#allocation3 + $0xf8] sm:$0xff] %vm1562_vm6, %v4756_v18 }
 0x4c6   : > { %4043 = vst.msk [vmem:[#allocation3 + $0x120] sm:$0xff] %vm1369_vm5, %v3960_v30  ;;  %4589 = vrot.lane.b32.xlu0 %v11954_v23, %s9586_s20  ;;  %v5149_v30 = vld [vmem:[#allocation3 + $0xf0] sm:$0xff] }
 0x4c7   : > { %4361 = vrot.lane.b32.xlu1 %v11912_v46, %s9587_s27 }
 0x4c8   : > { %v4948_v4 = vpop.permute.xlu0 %4947 }
 0x4c9   : > { %v4152_v31 = vpop.permute.xlu1 %4151  ;;  %5033 = vst.msk [vmem:[#allocation3 + $0xf8] sm:$0xff] %vm1755_vm7, %v4948_v4 }
 0x4ca   : > { %4235 = vst.msk [vmem:[#allocation3 + $0x120] sm:$0xff] %vm1562_vm6, %v4152_v31  ;;  %v12122_v26 = vld [vmem:[#allocation2 + $0x172] sm:$0xff]  ;;  %4775 = vrot.lane.b32.xlu0 %v11963_v47, %s9585_s19 }
 0x4cb   : > { %3979 = vrot.lane.b32.xlu1 %v4881_v55, %s9586_s20  ;;  %5114 = vst.msk [vmem:[#allocation3 + $0x298] sm:$0xff] %vm522_vm2, %v12122_v26  ;;  %v12129_v46 = vld [vmem:[#allocation2 + $0x16a] sm:$0xff]  ;;  %v4883_v55 = vld [vmem:[#allocation2 + $0x121] sm:$0xff] }
 0x4cc   : > { %v12131_v22 = vld [vmem:[#allocation2 + $0x168] sm:$0xff]  ;;  %v4758_v39 = vpop.permute.xlu0 %4757  ;;  %5113 = vst.msk [vmem:[#allocation3 + $0x280] sm:$0xff] %vm522_vm2, %v12129_v46  ;;  %v12135_v25 = vld [vmem:[#allocation2 + $0x170] sm:$0xff] }
 0x4cd   : > { %v3966_v13 = vpop.permute.xlu1 %3965  ;;  %3869 = vst.msk [vmem:[#allocation3 + $0x2d0] sm:$0xff] %vm522_vm2, %v12131_v22  ;;  %3870 = vst.msk [vmem:[#allocation3 + $0x2e8] sm:$0xff] %vm522_vm2, %v12135_v25 }
 0x4ce   : > { %4046 = vst.msk [vmem:[#allocation3 + $0x168] sm:$0xff] %vm1369_vm5, %v3966_v13  ;;  %4967 = vrot.lane.b32.xlu0 %v4883_v55, %s9587_s27 }
 0x4cf   : > { %4842 = vst.msk [vmem:[#allocation3 + $0x110] sm:$0xff] %vm1562_vm6, %v4758_v39  ;;  %4171 = vrot.lane.b32.xlu1 %v11902_v62, %s9585_s19  ;;  %v5152_v39 = vld [vmem:[#allocation3 + $0x108] sm:$0xff] }
 0x4d0   : > { %5034 = vst.msk [vmem:[#allocation3 + $0x110] sm:$0xff] %vm1755_vm7, %v4950_v24  ;;  %v4568_v61 = vpop.permute.xlu0 %4567  ;;  %v5150_v35 = vld [vmem:[#allocation3 + $0xf8] sm:$0xff] }
 0x4d1   : > { %v4158_v38 = vpop.permute.xlu1 %4157  ;;  %4651 = vst.msk [vmem:[#allocation3 + $0x128] sm:$0xff] %vm1369_vm5, %v4568_v61  ;;  %5425 = vmatprep.mubr.f32.mxu1 %v5150_v35 }
 0x4d2   : > { %4238 = vst.msk [vmem:[#allocation3 + $0x168] sm:$0xff] %vm1562_vm6, %v4158_v38  ;;  %4777 = vrot.lane.b32.xlu0 %v11967_v16, %s9585_s19  ;;  %5426 = vmatmul.mubr.f32.gmra.mxu1 %v5149_v30  ;;  %v5202_v31 = vld [vmem:[#allocation3 + $0x298] sm:$0xff] }
 0x4d3   : > { %3985 = vrot.lane.b32.xlu1 %v4884_v57, %s9586_s20  ;;  %v5199_v24 = vld [vmem:[#allocation3 + $0x280] sm:$0xff] }
 0x4d4   : > { %v4954_v62 = vpop.permute.xlu0 %4953  ;;  %9339 = vmatprep.mubr.msk.f32.mxu0 %vm522_vm2, %v5199_v24 }
 0x4d5   : > { %v4344_v18 = vpop.permute.xlu1 %4343  ;;  %v9291_v4 = vpop.f32.mrf.mxu0  ;;  %9340 = vmatmul.mubr.msk.f32.gmra.mxu0 %vm522_vm2, %v5202_v31 }
 0x4d6   : > { %4427 = vst.msk [vmem:[#allocation3 + $0x120] sm:$0xff] %vm1755_vm7, %v4344_v18  ;;  %v3740_v57 = vadd.f32 %v11934_v5, %v9291_v4  ;;  %4587 = vrot.lane.b32.xlu0 %v11961_v42, %s9586_s20  ;;  %v4886_v18 = vld [vmem:[#allocation2 + $0x141] sm:$0xff] }
 0x4d7   : > { %v5153_v13 = vld [vmem:[#allocation3 + $0x110] sm:$0xff]  ;;  %4177 = vrot.lane.b32.xlu1 %v11954_v23, %s9585_s19  ;;  %v3734_v38 = vpop.f32.mrf.mxu0 }
 0x4d8   : > { %5430 = vmatprep.mubr.f32.mxu1 %v5153_v13  ;;  %v3774_v61 = vmax.f32 %v3740_v57, 0.0  ;;  %v3735_v30 = vadd.f32 %v11934_v5, %v3734_v38  ;;  %v4574_v24 = vpop.permute.xlu0 %4573  ;;  %v4885_v38 = vld [vmem:[#allocation2 + $0x139] sm:$0xff] }
 0x4d9   : > { %5431 = vmatmul.mubr.f32.gmra.mxu1 %v5152_v39  ;;  %v4346_v35 = vpop.permute.xlu1 %4345  ;;  %4654 = vst.msk [vmem:[#allocation3 + $0x170] sm:$0xff] %vm1369_vm5, %v4574_v24 }
 0x4da   : > { %4428 = vst.msk [vmem:[#allocation3 + $0x138] sm:$0xff] %vm1755_vm7, %v4346_v35  ;;  %v3773_v23 = vmax.f32 %v3735_v30, 0.0  ;;  %4973 = vrot.lane.b32.xlu0 %v4886_v18, %s9587_s27 }
 0x4db   : > { %3806 = vst.msk [vmem:[#allocation2 + $0x189] sm:$0xff] %vm522_vm2, %v3774_v61  ;;  %4478 = vst.msk [vmem:[#allocation3 + $0x2f0] sm:$0xff] %vm522_vm2, %v3774_v61  ;;  %4363 = vrot.lane.b32.xlu1 %v11963_v47, %s9587_s27 }
 0x4dc   : > { %3805 = vst.msk [vmem:[#allocation2 + $0x181] sm:$0xff] %vm522_vm2, %v3773_v23  ;;  %4477 = vst.msk [vmem:[#allocation3 + $0x2d8] sm:$0xff] %vm522_vm2, %v3773_v23  ;;  %v4760_v31 = vpop.permute.xlu0 %4759 }
 0x4dd   : > { %v3964_v5 = vpop.permute.xlu1 %3963  ;;  %4843 = vst.msk [vmem:[#allocation3 + $0x128] sm:$0xff] %vm1562_vm6, %v4760_v31  ;;  %v5155_v30 = vld [vmem:[#allocation3 + $0x120] sm:$0xff] }
 0x4de   : > { %4045 = vst.msk [vmem:[#allocation3 + $0x150] sm:$0xff] %vm1369_vm5, %v3964_v5  ;;  %4593 = vrot.lane.b32.xlu0 %v12010_v14, %s9586_s20 }
 0x4df   : > { %4365 = vrot.lane.b32.xlu1 %v11967_v16, %s9587_s27 }
 0x4e0   : > { %v4952_v47 = vpop.permute.xlu0 %4951 }
 0x4e1   : > { %v4156_v4 = vpop.permute.xlu1 %4155  ;;  %5035 = vst.msk [vmem:[#allocation3 + $0x128] sm:$0xff] %vm1755_vm7, %v4952_v47  ;;  %v4888_v47 = vld [vmem:[#allocation2 + $0x159] sm:$0xff] }
 0x4e2   : > { %4237 = vst.msk [vmem:[#allocation3 + $0x150] sm:$0xff] %vm1562_vm6, %v4156_v4  ;;  %v12178_v13 = vld [vmem:[#allocation2 + $0x18a] sm:$0xff]  ;;  %4779 = vrot.lane.b32.xlu0 %v12019_v10, %s9585_s19 }
 0x4e3   : > { %3983 = vrot.lane.b32.xlu1 %v4883_v55, %s9586_s20  ;;  %5116 = vst.msk [vmem:[#allocation3 + $0x2c8] sm:$0xff] %vm522_vm2, %v12178_v13  ;;  %v12185_v16 = vld [vmem:[#allocation2 + $0x182] sm:$0xff] }
 0x4e4   : > { %v4762_v39 = vpop.permute.xlu0 %4761  ;;  %5115 = vst.msk [vmem:[#allocation3 + $0x2b0] sm:$0xff] %vm522_vm2, %v12185_v16 }
 0x4e5   : > { %v3970_v57 = vpop.permute.xlu1 %3969  ;;  %4844 = vst.msk [vmem:[#allocation3 + $0x140] sm:$0xff] %vm1562_vm6, %v4762_v39 }
 0x4e6   : > { %4048 = vst.msk [vmem:[#allocation3 + $0x198] sm:$0xff] %vm1369_vm5, %v3970_v57  ;;  %4971 = vrot.lane.b32.xlu0 %v4885_v38, %s9587_s27 }
 0x4e7   : > { %5036 = vst.msk [vmem:[#allocation3 + $0x140] sm:$0xff] %vm1755_vm7, %v4954_v62  ;;  %4175 = vrot.lane.b32.xlu1 %v11961_v42, %s9585_s19 }
 0x4e8   : > { %v4572_v61 = vpop.permute.xlu0 %4571  ;;  %v5156_v35 = vld [vmem:[#allocation3 + $0x128] sm:$0xff] }
 0x4e9   : > { %v4162_v55 = vpop.permute.xlu1 %4161  ;;  %4653 = vst.msk [vmem:[#allocation3 + $0x158] sm:$0xff] %vm1369_vm5, %v4572_v61  ;;  %5435 = vmatprep.mubr.f32.mxu1 %v5156_v35 }
 0x4ea   : > { %4240 = vst.msk [vmem:[#allocation3 + $0x198] sm:$0xff] %vm1562_vm6, %v4162_v55  ;;  %4781 = vrot.lane.b32.xlu0 %v12023_v58, %s9585_s19  ;;  %5436 = vmatmul.mubr.f32.gmra.mxu1 %v5155_v30  ;;  %v5208_v23 = vld [vmem:[#allocation3 + $0x2c8] sm:$0xff] }
 0x4eb   : > { %3989 = vrot.lane.b32.xlu1 %v4886_v18, %s9586_s20  ;;  %v5205_v62 = vld [vmem:[#allocation3 + $0x2b0] sm:$0xff]  ;;  %v5158_v18 = vld [vmem:[#allocation3 + $0x138] sm:$0xff] }
 0x4ec   : > { %v4958_v42 = vpop.permute.xlu0 %4957  ;;  %9342 = vmatprep.mubr.msk.f32.mxu0 %vm522_vm2, %v5205_v62 }
 0x4ed   : > { %v4348_v24 = vpop.permute.xlu1 %4347  ;;  %9343 = vmatmul.mubr.msk.f32.gmra.mxu0 %vm522_vm2, %v5208_v23 }
 0x4ee   : > { %4429 = vst.msk [vmem:[#allocation3 + $0x150] sm:$0xff] %vm1755_vm7, %v4348_v24  ;;  %v5159_v5 = vld [vmem:[#allocation3 + $0x140] sm:$0xff]  ;;  %4591 = vrot.lane.b32.xlu0 %v12017_v40, %s9586_s20 }
 0x4ef   : > { %4181 = vrot.lane.b32.xlu1 %v12010_v14, %s9585_s19  ;;  %5440 = vmatprep.mubr.f32.mxu1 %v5159_v5 }
 0x4f0   : > { %5441 = vmatmul.mubr.f32.gmra.mxu1 %v5158_v18  ;;  %v4578_v4 = vpop.permute.xlu0 %4577 }
 0x4f1   : > { %v4350_v31 = vpop.permute.xlu1 %4349  ;;  %4656 = vst.msk [vmem:[#allocation3 + $0x1a0] sm:$0xff] %vm1369_vm5, %v4578_v4 }
 0x4f2   : > { %4430 = vst.msk [vmem:[#allocation3 + $0x168] sm:$0xff] %vm1755_vm7, %v4350_v31  ;;  %4977 = vrot.lane.b32.xlu0 %v4888_v47, %s9587_s27  ;;  %v4890_v31 = vld [vmem:[#allocation2 + $0x171] sm:$0xff] }
 0x4f3   : > { %4367 = vrot.lane.b32.xlu1 %v12019_v10, %s9587_s27 }
 0x4f4   : > { %v4764_v14 = vpop.permute.xlu0 %4763 }
 0x4f5   : > { %v3968_v57 = vpop.permute.xlu1 %3967  ;;  %4845 = vst.msk [vmem:[#allocation3 + $0x158] sm:$0xff] %vm1562_vm6, %v4764_v14  ;;  %v5161_v62 = vld [vmem:[#allocation3 + $0x150] sm:$0xff] }
 0x4f6   : > { %4047 = vst.msk [vmem:[#allocation3 + $0x180] sm:$0xff] %vm1369_vm5, %v3968_v57  ;;  %4597 = vrot.lane.b32.xlu0 %v12066_v59, %s9586_s20 }
 0x4f7   : > { %4369 = vrot.lane.b32.xlu1 %v12023_v58, %s9587_s27  ;;  %v4887_v58 = vld [vmem:[#allocation2 + $0x151] sm:$0xff] }
 0x4f8   : > { %v4956_v55 = vpop.permute.xlu0 %4955 }
 0x4f9   : > { %v4160_v39 = vpop.permute.xlu1 %4159  ;;  %5037 = vst.msk [vmem:[#allocation3 + $0x158] sm:$0xff] %vm1755_vm7, %v4956_v55  ;;  %v5164_v23 = vld [vmem:[#allocation3 + $0x168] sm:$0xff] }
 0x4fa   : > { %4239 = vst.msk [vmem:[#allocation3 + $0x180] sm:$0xff] %vm1562_vm6, %v4160_v39  ;;  %4783 = vrot.lane.b32.xlu0 %v12075_v50, %s9585_s19 }
 0x4fb   : > { %3987 = vrot.lane.b32.xlu1 %v4885_v38, %s9586_s20 }
 0x4fc   : > { %v4766_v61 = vpop.permute.xlu0 %4765 }
 0x4fd   : > { %v3974_v10 = vpop.permute.xlu1 %3973  ;;  %4846 = vst.msk [vmem:[#allocation3 + $0x170] sm:$0xff] %vm1562_vm6, %v4766_v61 }
 0x4fe   : > { %4050 = vst.msk [vmem:[#allocation3 + $0x1c8] sm:$0xff] %vm1369_vm5, %v3974_v10  ;;  %4975 = vrot.lane.b32.xlu0 %v4887_v58, %s9587_s27 }
 0x4ff   : > { %5038 = vst.msk [vmem:[#allocation3 + $0x170] sm:$0xff] %vm1755_vm7, %v4958_v42  ;;  %4179 = vrot.lane.b32.xlu1 %v12017_v40, %s9585_s19 }
 0x500   : > { %v4576_v30 = vpop.permute.xlu0 %4575  ;;  %v5162_v38 = vld [vmem:[#allocation3 + $0x158] sm:$0xff] }
 0x501   : > { %v4166_v35 = vpop.permute.xlu1 %4165  ;;  %4655 = vst.msk [vmem:[#allocation3 + $0x188] sm:$0xff] %vm1369_vm5, %v4576_v30  ;;  %5445 = vmatprep.mubr.f32.mxu1 %v5162_v38 }
 0x502   : > { %4242 = vst.msk [vmem:[#allocation3 + $0x1c8] sm:$0xff] %vm1562_vm6, %v4166_v35  ;;  %4785 = vrot.lane.b32.xlu0 %v12079_v32, %s9585_s19  ;;  %5446 = vmatmul.mubr.f32.gmra.mxu1 %v5161_v62 }
 0x503   : > { %3993 = vrot.lane.b32.xlu1 %v4888_v47, %s9586_s20 }
 0x504   : > { %v4962_v42 = vpop.permute.xlu0 %4961 }
 0x505   : > { %v4352_v24 = vpop.permute.xlu1 %4351 }
 0x506   : > { %4431 = vst.msk [vmem:[#allocation3 + $0x180] sm:$0xff] %vm1755_vm7, %v4352_v24  ;;  %v5165_v40 = vld [vmem:[#allocation3 + $0x170] sm:$0xff]  ;;  %4595 = vrot.lane.b32.xlu0 %v12073_v28, %s9586_s20 }
 0x507   : > { %4185 = vrot.lane.b32.xlu1 %v12066_v59, %s9585_s19  ;;  %5450 = vmatprep.mubr.f32.mxu1 %v5165_v40  ;;  %v5925_v59 = vld [vmem:[%s13858_s13 + $0x10] sm:$0xf] }
 0x508   : > { %5451 = vmatmul.mubr.f32.gmra.mxu1 %v5164_v23  ;;  %v4582_v18 = vpop.permute.xlu0 %4581  ;;  %9348 = vmatprep.subr.msk.mxu0 %vm851_vm0, %v5925_v59 }
 0x509   : > { %v4354_v5 = vpop.permute.xlu1 %4353  ;;  %4658 = vst.msk [vmem:[#allocation3 + $0x1d0] sm:$0xff] %vm1369_vm5, %v4582_v18  ;;  %9349 = vmatpush3.msk.msra.mxu0 %vm851_vm0, %v5925_v59 }
 0x50a   : > { %4432 = vst.msk [vmem:[#allocation3 + $0x198] sm:$0xff] %vm1755_vm7, %v4354_v5  ;;  %4981 = vrot.lane.b32.xlu0 %v4890_v31, %s9587_s27  ;;  %v4892_v5 = vld [vmem:[#allocation2 + $0x189] sm:$0xff] }
 0x50b   : > { %4371 = vrot.lane.b32.xlu1 %v12075_v50, %s9587_s27 }
 0x50c   : > { %v4768_v47 = vpop.permute.xlu0 %4767 }
 0x50d   : > { %v3972_v4 = vpop.permute.xlu1 %3971  ;;  %4847 = vst.msk [vmem:[#allocation3 + $0x188] sm:$0xff] %vm1562_vm6, %v4768_v47  ;;  %v4699_v47 = vld [vmem:[#allocation2 + $0x180] sm:$0xff] }
 0x50e   : > { %4049 = vst.msk [vmem:[#allocation3 + $0x1b0] sm:$0xff] %vm1369_vm5, %v3972_v4  ;;  %4601 = vrot.lane.b32.xlu0 %v12122_v26, %s9586_s20 }
 0x50f   : > { %4373 = vrot.lane.b32.xlu1 %v12079_v32, %s9587_s27  ;;  %v4889_v32 = vld [vmem:[#allocation2 + $0x169] sm:$0xff] }
 0x510   : > { %v4960_v57 = vpop.permute.xlu0 %4959 }
 0x511   : > { %v4164_v50 = vpop.permute.xlu1 %4163  ;;  %5039 = vst.msk [vmem:[#allocation3 + $0x188] sm:$0xff] %vm1755_vm7, %v4960_v57  ;;  %v5170_v24 = vld [vmem:[#allocation3 + $0x198] sm:$0xff] }
 0x512   : > { %4241 = vst.msk [vmem:[#allocation3 + $0x1b0] sm:$0xff] %vm1562_vm6, %v4164_v50  ;;  %4787 = vrot.lane.b32.xlu0 %v12131_v22, %s9585_s19 }
 0x513   : > { %3991 = vrot.lane.b32.xlu1 %v4887_v58, %s9586_s20  ;;  %v5167_v58 = vld [vmem:[#allocation3 + $0x180] sm:$0xff] }
 0x514   : > { %v4770_v39 = vpop.permute.xlu0 %4769 }
 0x515   : > { %v3978_v14 = vpop.permute.xlu1 %3977  ;;  %4848 = vst.msk [vmem:[#allocation3 + $0x1a0] sm:$0xff] %vm1562_vm6, %v4770_v39  ;;  %v6467_v39 = vld [vmem:[#allocation2 + $0x8] sm:$0xff] }
 0x516   : > { %4052 = vst.msk [vmem:[#allocation3 + $0x1f8] sm:$0xff] %vm1369_vm5, %v3978_v14  ;;  %4979 = vrot.lane.b32.xlu0 %v4889_v32, %s9587_s27  ;;  %v4891_v14 = vld [vmem:[#allocation2 + $0x181] sm:$0xff] }
 0x517   : > { %5040 = vst.msk [vmem:[#allocation3 + $0x1a0] sm:$0xff] %vm1755_vm7, %v4962_v42  ;;  %4183 = vrot.lane.b32.xlu1 %v12073_v28, %s9585_s19 }
 0x518   : > { %v4580_v10 = vpop.permute.xlu0 %4579  ;;  %v5168_v61 = vld [vmem:[#allocation3 + $0x188] sm:$0xff]  ;;  %6499 = vst.msk [vmem:[#allocation3 + $0x18] sm:$0xff] %vm522_vm2, %v6467_v39 }
 0x519   : > { %v4170_v55 = vpop.permute.xlu1 %4169  ;;  %4657 = vst.msk [vmem:[#allocation3 + $0x1b8] sm:$0xff] %vm1369_vm5, %v4580_v10  ;;  %5455 = vmatprep.mubr.f32.mxu1 %v5168_v61  ;;  %v5211_v61 = vld [vmem:[#allocation3 + $0x2e0] sm:$0xff] }
 0x51a   : > { %4244 = vst.msk [vmem:[#allocation3 + $0x1f8] sm:$0xff] %vm1562_vm6, %v4170_v55  ;;  %4789 = vrot.lane.b32.xlu0 %v12135_v25, %s9585_s19  ;;  %v12271_v35 = vpop.f32.mrf.mxu1  ;;  %5456 = vmatmul.mubr.f32.gmra.mxu1 %v5167_v58  ;;  %v4700_v55 = vld [vmem:[#allocation2 + $0x188] sm:$0xff]  ;;  %v7744_v58 = vld [vmem:[#allocation2 + $0x19a] sm:$0xff] }
 0x51b   : > { %3997 = vrot.lane.b32.xlu1 %v4890_v31, %s9586_s20  ;;  %9345 = vmatprep.mubr.msk.f32.mxu0 %vm522_vm2, %v5211_v61  ;;  %7776 = vst.msk [vmem:[#allocation3 + $0x2e0] sm:$0xff] %vm522_vm2, %v7744_v58 }
 0x51c   : > { %v4966_v30 = vpop.permute.xlu0 %4965  ;;  %v5379_v38 = vpop.f32.mrf.mxu1 }
 0x51d   : > { %v4356_v28 = vpop.permute.xlu1 %4355 }
 0x51e   : > { %4433 = vst.msk [vmem:[#allocation3 + $0x1b0] sm:$0xff] %vm1755_vm7, %v4356_v28  ;;  %v5171_v62 = vld [vmem:[#allocation3 + $0x1a0] sm:$0xff]  ;;  %4599 = vrot.lane.b32.xlu0 %v12129_v46, %s9586_s20  ;;  %v5214_v28 = vld [vmem:[#allocation3 + $0x2f8] sm:$0xff] }
 0x51f   : > { %4375 = vrot.lane.b32.xlu1 %v12131_v22, %s9587_s27  ;;  %5460 = vmatprep.mubr.f32.mxu1 %v5171_v62  ;;  %v5924_v22 = vld [vmem:[%s13858_s13 + $0x8] sm:$0xff] }
 0x520   : > { %v12278_v42 = vpop.f32.mrf.mxu1  ;;  %5461 = vmatmul.mubr.f32.gmra.mxu1 %v5170_v24  ;;  %v4586_v23 = vpop.permute.xlu0 %4585  ;;  %9350 = vmatprep.subr.mxu0 %v5924_v22 }
 0x521   : > { %v4358_v40 = vpop.permute.xlu1 %4357  ;;  %4660 = vst.msk [vmem:[#allocation3 + $0x200] sm:$0xff] %vm1369_vm5, %v4586_v23  ;;  %9351 = vmatpush3.msra.mxu0 %v5924_v22 }
 0x522   : > { %4434 = vst.msk [vmem:[#allocation3 + $0x1c8] sm:$0xff] %vm1755_vm7, %v4358_v40  ;;  %v5384_v18 = vpop.f32.mrf.mxu1  ;;  %4985 = vrot.lane.b32.xlu0 %v4892_v5, %s9587_s27  ;;  %9346 = vmatmul.mubr.msk.f32.gmra.mxu0 %vm522_vm2, %v5214_v28  ;;  %v6466_v40 = vld [vmem:[#allocation2] sm:$0xff] }
 0x523   : > { %4377 = vrot.lane.b32.xlu1 %v12135_v25, %s9587_s27  ;;  %6498 = vst.msk [vmem:[#allocation3] sm:$0xff] %vm522_vm2, %v6466_v40  ;;  %v6531_v18 = vld [vmem:[#allocation2 + $0x9] sm:$0xff] }
 0x524   : > { %v4772_v59 = vpop.permute.xlu0 %4771  ;;  %v6722_v28 = vld [vmem:[#allocation2 + $0x2] sm:$0xff] }
 0x525   : > { %v3976_v31 = vpop.permute.xlu1 %3975  ;;  %4849 = vst.msk [vmem:[#allocation3 + $0x1b8] sm:$0xff] %vm1562_vm6, %v4772_v59  ;;  %v5173_v10 = vld [vmem:[#allocation3 + $0x1b0] sm:$0xff] }
 0x526   : > { %4051 = vst.msk [vmem:[#allocation3 + $0x1e0] sm:$0xff] %vm1369_vm5, %v3976_v31  ;;  %4605 = vrot.lane.b32.xlu0 %v12178_v13, %s9586_s20  ;;  %v4702_v31 = vld [vmem:[#allocation2 + $0x1a0] sm:$0xff] }
 0x527   : > { %3995 = vrot.lane.b32.xlu1 %v4889_v32, %s9586_s20 }
 0x528   : > { %v4964_v4 = vpop.permute.xlu0 %4963 }
 0x529   : > { %v4168_v25 = vpop.permute.xlu1 %4167  ;;  %5041 = vst.msk [vmem:[#allocation3 + $0x1b8] sm:$0xff] %vm1755_vm7, %v4964_v4  ;;  %v5176_v5 = vld [vmem:[#allocation3 + $0x1c8] sm:$0xff] }
 0x52a   : > { %4243 = vst.msk [vmem:[#allocation3 + $0x1e0] sm:$0xff] %vm1562_vm6, %v4168_v25  ;;  %4791 = vrot.lane.b32.xlu0 %v4699_v47, %s9585_s19 }
 0x52b   : > { %4187 = vrot.lane.b32.xlu1 %v12129_v46, %s9585_s19 }
 0x52c   : > { %v4774_v57 = vpop.permute.xlu0 %4773 }
 0x52d   : > { %v3982_v50 = vpop.permute.xlu1 %3981  ;;  %4850 = vst.msk [vmem:[#allocation3 + $0x1d0] sm:$0xff] %vm1562_vm6, %v4774_v57  ;;  %v4894_v57 = vld [vmem:[#allocation2 + $0x1a1] sm:$0xff] }
 0x52e   : > { %4054 = vst.msk [vmem:[#allocation3 + $0x228] sm:$0xff] %vm1369_vm5, %v3982_v50  ;;  %4983 = vrot.lane.b32.xlu0 %v4891_v14, %s9587_s27  ;;  %v6723_v50 = vld [vmem:[#allocation2 + $0xa] sm:$0xff] }
 0x52f   : > { %4189 = vrot.lane.b32.xlu1 %v12122_v26, %s9585_s19  ;;  %5042 = vst.msk [vmem:[#allocation3 + $0x1d0] sm:$0xff] %vm1755_vm7, %v4966_v30  ;;  %v7745_v30 = vld [vmem:[#allocation2 + $0x1a2] sm:$0xff] }
 0x530   : > { %v4584_v13 = vpop.permute.xlu0 %4583  ;;  %v5174_v32 = vld [vmem:[#allocation3 + $0x1b8] sm:$0xff]  ;;  %7777 = vst.msk [vmem:[#allocation3 + $0x2f8] sm:$0xff] %vm522_vm2, %v7745_v30 }
 0x531   : > { %v4174_v46 = vpop.permute.xlu1 %4173  ;;  %4659 = vst.msk [vmem:[#allocation3 + $0x1e8] sm:$0xff] %vm1369_vm5, %v4584_v13  ;;  %5465 = vmatprep.mubr.f32.mxu1 %v5174_v32  ;;  %v6530_v32 = vld [vmem:[#allocation2 + $0x1] sm:$0xff] }
 0x532   : > { %4246 = vst.msk [vmem:[#allocation3 + $0x228] sm:$0xff] %vm1562_vm6, %v4174_v46  ;;  %v12308_v26 = vpop.f32.mrf.mxu1  ;;  %4793 = vrot.lane.b32.xlu0 %v4700_v55, %s9585_s19  ;;  %5466 = vmatmul.mubr.f32.gmra.mxu1 %v5173_v10 }
 0x533   : > { %4379 = vrot.lane.b32.xlu1 %v4699_v47, %s9587_s27  ;;  %v9302_v47 = vpop.f32.mrf.mxu0 }
 0x534   : > { %v5389_v62 = vpop.f32.mrf.mxu1  ;;  %v4970_v24 = vpop.permute.xlu0 %4969  ;;  %v5608_v13 = vadd.f32 %v9302_v47, %v12278_v42  ;;  %v7360_v42 = vld [vmem:[#allocation2 + $0x198] sm:$0xff] }
 0x535   : > { %v4360_v38 = vpop.permute.xlu1 %4359  ;;  %v5602_v46 = vpop.f32.mrf.mxu0 }
 0x536   : > { %4435 = vst.msk [vmem:[#allocation3 + $0x1e0] sm:$0xff] %vm1755_vm7, %v4360_v38  ;;  %v5177_v23 = vld [vmem:[#allocation3 + $0x1d0] sm:$0xff]  ;;  %4603 = vrot.lane.b32.xlu0 %v12185_v16, %s9586_s20 }
 0x537   : > { %4381 = vrot.lane.b32.xlu1 %v4700_v55, %s9587_s27  ;;  %5470 = vmatprep.mubr.f32.mxu1 %v5177_v23  ;;  %v5923_v16 = vld [vmem:[%s13858_s13] sm:$0xff]  ;;  %v9305_v61 = vpop.f32.mrf.mxu0 }
 0x538   : > { %v5392_v22 = vpop.f32.mrf.mxu1  ;;  %5471 = vmatmul.mubr.f32.gmra.mxu1 %v5176_v5  ;;  %v4590_v25 = vpop.permute.xlu0 %4589  ;;  %9352 = vmatprep.subr.mxu0 %v5923_v16 }
 0x539   : > { %v4362_v59 = vpop.permute.xlu1 %4361  ;;  %4662 = vst.msk [vmem:[#allocation3 + $0x230] sm:$0xff] %vm1369_vm5, %v4590_v25  ;;  %9353 = vmatpush3.msra.mxu0 %v5923_v16  ;;  %v5618_v58 = vadd.f32 %v9305_v61, %v5392_v22  ;;  %v5612_v22 = vpop.f32.mrf.mxu0 }
 0x53a   : > { %4436 = vst.msk [vmem:[#allocation3 + $0x1f8] sm:$0xff] %vm1755_vm7, %v4362_v59  ;;  %v5394_v4 = vpop.f32.mrf.mxu1  ;;  %4797 = vrot.lane.b32.xlu0 %v4702_v31, %s9585_s19  ;;  %v7552_v31 = vld [vmem:[#allocation2 + $0x199] sm:$0xff] }
 0x53b   : > { %6596 = vrot.lane.b32.xlu1 %v6531_v18, %s9586_s20 }
 0x53c   : > { %v4776_v39 = vpop.permute.xlu0 %4775 }
 0x53d   : > { %v3980_v14 = vpop.permute.xlu1 %3979  ;;  %4851 = vst.msk [vmem:[#allocation3 + $0x1e8] sm:$0xff] %vm1562_vm6, %v4776_v39  ;;  %v5179_v5 = vld [vmem:[#allocation3 + $0x1e0] sm:$0xff] }
 0x53e   : > { %4053 = vst.msk [vmem:[#allocation3 + $0x210] sm:$0xff] %vm1369_vm5, %v3980_v14  ;;  %4989 = vrot.lane.b32.xlu0 %v4894_v57, %s9587_s27  ;;  %v5603_v57 = vadd.f32 %v5602_v46, %v12271_v35 }
 0x53f   : > { %6788 = vrot.lane.b32.xlu1 %v6723_v50, %s9585_s19  ;;  %v9308_v50 = vpop.f32.mrf.mxu0 }
 0x540   : > { %v4968_v10 = vpop.permute.xlu0 %4967 }
 0x541   : > { %v4172_v55 = vpop.permute.xlu1 %4171  ;;  %5043 = vst.msk [vmem:[#allocation3 + $0x1e8] sm:$0xff] %vm1755_vm7, %v4968_v10  ;;  %v5182_v47 = vld [vmem:[#allocation3 + $0x1f8] sm:$0xff]  ;;  %v5622_v35 = vpop.f32.mrf.mxu0 }
 0x542   : > { %4245 = vst.msk [vmem:[#allocation3 + $0x210] sm:$0xff] %vm1562_vm6, %v4172_v55  ;;  %6594 = vrot.lane.b32.xlu0 %v6530_v32, %s9586_s20  ;;  %v5613_v55 = vadd.f32 %v5612_v22, %v12308_v26 }
 0x543   : > { %5795 = vrot.lane.b32.xlu1 %v5608_v13, %s9589_s30 }
 0x544   : > { %v4778_v38 = vpop.permute.xlu0 %4777 }
 0x545   : > { %v3986_v30 = vpop.permute.xlu1 %3985  ;;  %4852 = vst.msk [vmem:[#allocation3 + $0x200] sm:$0xff] %vm1562_vm6, %v4778_v38  ;;  %v9311_v38 = vpop.f32.mrf.mxu0 }
 0x546   : > { %4056 = vst.msk [vmem:[#allocation3 + $0x258] sm:$0xff] %vm1369_vm5, %v3986_v30  ;;  %6786 = vrot.lane.b32.xlu0 %v6722_v28, %s9585_s19 }
 0x547   : > { %5799 = vrot.lane.b32.xlu1 %v5618_v58, %s9589_s30  ;;  %5044 = vst.msk [vmem:[#allocation3 + $0x200] sm:$0xff] %vm1755_vm7, %v4970_v24 }
 0x548   : > { %v4588_v40 = vpop.permute.xlu0 %4587  ;;  %v5180_v23 = vld [vmem:[#allocation3 + $0x1e8] sm:$0xff] }
 0x549   : > { %v4178_v62 = vpop.permute.xlu1 %4177  ;;  %4661 = vst.msk [vmem:[#allocation3 + $0x218] sm:$0xff] %vm1369_vm5, %v4588_v40  ;;  %5475 = vmatprep.mubr.f32.mxu1 %v5180_v23  ;;  %v5632_v23 = vpop.f32.mrf.mxu0 }
 0x54a   : > { %4248 = vst.msk [vmem:[#allocation3 + $0x258] sm:$0xff] %vm1562_vm6, %v4178_v62  ;;  %v5397_v18 = vpop.f32.mrf.mxu1  ;;  %7454 = vrot.lane.b32.xlu0 %v7360_v42, %s9585_s19  ;;  %5476 = vmatmul.mubr.f32.gmra.mxu1 %v5179_v5 }
 0x54b   : > { %v5623_v46 = vadd.f32 %v5622_v35, %v5397_v18  ;;  %v9314_v35 = vpop.f32.mrf.mxu0 }
 0x54c   : > { %v5399_v24 = vpop.f32.mrf.mxu1  ;;  %v4974_v25 = vpop.permute.xlu0 %4973 }
 0x54d   : > { %v4364_v59 = vpop.permute.xlu1 %4363 }
 0x54e   : > { %4437 = vst.msk [vmem:[#allocation3 + $0x210] sm:$0xff] %vm1755_vm7, %v4364_v59  ;;  %v5183_v4 = vld [vmem:[#allocation3 + $0x200] sm:$0xff]  ;;  %7646 = vrot.lane.b32.xlu0 %v7552_v31, %s9587_s27 }
 0x54f   : > { %5480 = vmatprep.mubr.f32.mxu1 %v5183_v4 }
 0x550   : > { %5481 = vmatmul.mubr.f32.gmra.mxu1 %v5182_v47  ;;  %v4594_v13 = vpop.permute.xlu0 %4593 }
 0x551   : > { %v5402_v16 = vpop.f32.mrf.mxu1  ;;  %v4366_v39 = vpop.permute.xlu1 %4365  ;;  %4664 = vst.msk [vmem:[#allocation3 + $0x260] sm:$0xff] %vm1369_vm5, %v4594_v13 }
 0x552   : > { %v5628_v14 = vadd.f32 %v9308_v50, %v5402_v16  ;;  %4438 = vst.msk [vmem:[#allocation3 + $0x228] sm:$0xff] %vm1755_vm7, %v4366_v39  ;;  %5793 = vrot.lane.b32.xlu0 %v5603_v57, %s9589_s30 }
 0x553   : > { %v5404_v32 = vpop.f32.mrf.mxu1 }
 0x554   : > { %5803 = vrot.lane.b32.xlu1 %v5628_v14, %s9589_s30  ;;  %v4780_v61 = vpop.permute.xlu0 %4779 }
 0x555   : > { %v3984_v10 = vpop.permute.xlu1 %3983  ;;  %4853 = vst.msk [vmem:[#allocation3 + $0x218] sm:$0xff] %vm1562_vm6, %v4780_v61  ;;  %v5185_v18 = vld [vmem:[#allocation3 + $0x210] sm:$0xff] }
 0x556   : > { %4055 = vst.msk [vmem:[#allocation3 + $0x240] sm:$0xff] %vm1369_vm5, %v3984_v10  ;;  %5797 = vrot.lane.b32.xlu0 %v5613_v55, %s9589_s30 }
 0x558   : > { %v4972_v28 = vpop.permute.xlu0 %4971 }
 0x559   : > { %v4176_v58 = vpop.permute.xlu1 %4175  ;;  %5045 = vst.msk [vmem:[#allocation3 + $0x218] sm:$0xff] %vm1755_vm7, %v4972_v28  ;;  %v5188_v47 = vld [vmem:[#allocation3 + $0x228] sm:$0xff] }
 0x55a   : > { %4247 = vst.msk [vmem:[#allocation3 + $0x240] sm:$0xff] %vm1562_vm6, %v4176_v58  ;;  %5801 = vrot.lane.b32.xlu0 %v5623_v46, %s9589_s30 }
 0x55c   : > { %v4782_v26 = vpop.permute.xlu0 %4781 }
 0x55d   : > { %v3990_v30 = vpop.permute.xlu1 %3989  ;;  %4854 = vst.msk [vmem:[#allocation3 + $0x230] sm:$0xff] %vm1562_vm6, %v4782_v26 }
 0x55e   : > { %4058 = vst.msk [vmem:[#allocation3 + $0x288] sm:$0xff] %vm1369_vm5, %v3990_v30  ;;  %v5642_v30 = vpop.f32.mrf.mxu0 }
 0x55f   : > { %5046 = vst.msk [vmem:[#allocation3 + $0x230] sm:$0xff] %vm1755_vm7, %v4974_v25 }
 0x560   : > { %v4592_v62 = vpop.permute.xlu0 %4591  ;;  %v5186_v40 = vld [vmem:[#allocation3 + $0x218] sm:$0xff] }
 0x561   : > { %v4182_v42 = vpop.permute.xlu1 %4181  ;;  %4663 = vst.msk [vmem:[#allocation3 + $0x248] sm:$0xff] %vm1369_vm5, %v4592_v62  ;;  %5485 = vmatprep.mubr.f32.mxu1 %v5186_v40 }
 0x562   : > { %4250 = vst.msk [vmem:[#allocation3 + $0x288] sm:$0xff] %vm1562_vm6, %v4182_v42  ;;  %v5407_v5 = vpop.f32.mrf.mxu1  ;;  %5486 = vmatmul.mubr.f32.gmra.mxu1 %v5185_v18 }
 0x563   : > { %v5633_v22 = vadd.f32 %v5632_v23, %v5407_v5 }
 0x564   : > { %v5409_v59 = vpop.f32.mrf.mxu1  ;;  %v4978_v24 = vpop.permute.xlu0 %4977 }
 0x565   : > { %v4368_v31 = vpop.permute.xlu1 %4367  ;;  %5805 = vrot.lane.b32.xlu0 %v5633_v22, %s9589_s30 }
 0x566   : > { %4439 = vst.msk [vmem:[#allocation3 + $0x240] sm:$0xff] %vm1755_vm7, %v4368_v31  ;;  %v5189_v25 = vld [vmem:[#allocation3 + $0x230] sm:$0xff] }
 0x567   : > { %5490 = vmatprep.mubr.f32.mxu1 %v5189_v25 }
 0x568   : > { %5491 = vmatmul.mubr.f32.gmra.mxu1 %v5188_v47  ;;  %v4598_v57 = vpop.permute.xlu0 %4597 }
 0x569   : > { %v5412_v4 = vpop.f32.mrf.mxu1  ;;  %v4370_v16 = vpop.permute.xlu1 %4369  ;;  %4666 = vst.msk [vmem:[#allocation3 + $0x290] sm:$0xff] %vm1369_vm5, %v4598_v57 }
 0x56a   : > { %v5638_v50 = vadd.f32 %v9311_v38, %v5412_v4  ;;  %4440 = vst.msk [vmem:[#allocation3 + $0x258] sm:$0xff] %vm1755_vm7, %v4370_v16 }
 0x56b   : > { %v5414_v14 = vpop.f32.mrf.mxu1 }
 0x56c   : > { %5807 = vrot.lane.b32.xlu1 %v5638_v50, %s9589_s30  ;;  %v4784_v13 = vpop.permute.xlu0 %4783 }
 0x56d   : > { %v3988_v39 = vpop.permute.xlu1 %3987  ;;  %4855 = vst.msk [vmem:[#allocation3 + $0x248] sm:$0xff] %vm1562_vm6, %v4784_v13  ;;  %v5191_v38 = vld [vmem:[#allocation3 + $0x240] sm:$0xff] }
 0x56e   : > { %4057 = vst.msk [vmem:[#allocation3 + $0x270] sm:$0xff] %vm1369_vm5, %v3988_v39  ;;  %v9317_v39 = vpop.f32.mrf.mxu0 }
 0x570   : > { %v4976_v55 = vpop.permute.xlu0 %4975 }
 0x571   : > { %v4180_v32 = vpop.permute.xlu1 %4179  ;;  %5047 = vst.msk [vmem:[#allocation3 + $0x248] sm:$0xff] %vm1755_vm7, %v4976_v55  ;;  %v5194_v22 = vld [vmem:[#allocation3 + $0x258] sm:$0xff] }
 0x572   : > { %4249 = vst.msk [vmem:[#allocation3 + $0x270] sm:$0xff] %vm1562_vm6, %v4180_v32 }
 0x574   : > { %v4786_v61 = vpop.permute.xlu0 %4785 }
 0x575   : > { %v3994_v10 = vpop.permute.xlu1 %3993  ;;  %4856 = vst.msk [vmem:[#allocation3 + $0x260] sm:$0xff] %vm1562_vm6, %v4786_v61 }
 0x576   : > { %4060 = vst.msk [vmem:[#allocation3 + $0x2b8] sm:$0xff] %vm1369_vm5, %v3994_v10  ;;  %v5652_v10 = vpop.f32.mrf.mxu0 }
 0x577   : > { %5048 = vst.msk [vmem:[#allocation3 + $0x260] sm:$0xff] %vm1755_vm7, %v4978_v24 }
 0x578   : > { %v4596_v58 = vpop.permute.xlu0 %4595  ;;  %v5192_v28 = vld [vmem:[#allocation3 + $0x248] sm:$0xff] }
 0x579   : > { %v4186_v46 = vpop.permute.xlu1 %4185  ;;  %4665 = vst.msk [vmem:[#allocation3 + $0x278] sm:$0xff] %vm1369_vm5, %v4596_v58  ;;  %5495 = vmatprep.mubr.f32.mxu1 %v5192_v28 }
 0x57a   : > { %4252 = vst.msk [vmem:[#allocation3 + $0x2b8] sm:$0xff] %vm1562_vm6, %v4186_v46  ;;  %v5417_v26 = vpop.f32.mrf.mxu1  ;;  %5496 = vmatmul.mubr.f32.gmra.mxu1 %v5191_v38 }
 0x57b   : > { %v5643_v42 = vadd.f32 %v5642_v30, %v5417_v26 }
 0x57c   : > { %v5419_v40 = vpop.f32.mrf.mxu1  ;;  %v4982_v23 = vpop.permute.xlu0 %4981 }
 0x57d   : > { %v4372_v62 = vpop.permute.xlu1 %4371  ;;  %5809 = vrot.lane.b32.xlu0 %v5643_v42, %s9589_s30 }
 0x57e   : > { %4441 = vst.msk [vmem:[#allocation3 + $0x270] sm:$0xff] %vm1755_vm7, %v4372_v62  ;;  %v5195_v5 = vld [vmem:[#allocation3 + $0x260] sm:$0xff] }
 0x57f   : > { %5500 = vmatprep.mubr.f32.mxu1 %v5195_v5 }
 0x580   : > { %5501 = vmatmul.mubr.f32.gmra.mxu1 %v5194_v22  ;;  %v4602_v24 = vpop.permute.xlu0 %4601 }
 0x581   : > { %v5422_v18 = vpop.f32.mrf.mxu1  ;;  %v4374_v59 = vpop.permute.xlu1 %4373  ;;  %4668 = vst.msk [vmem:[#allocation3 + $0x2c0] sm:$0xff] %vm1369_vm5, %v4602_v24 }
 0x582   : > { %v5648_v31 = vadd.f32 %v9314_v35, %v5422_v18  ;;  %4442 = vst.msk [vmem:[#allocation3 + $0x288] sm:$0xff] %vm1755_vm7, %v4374_v59 }
 0x583   : > { %v5424_v25 = vpop.f32.mrf.mxu1 }
 0x584   : > { %5811 = vrot.lane.b32.xlu1 %v5648_v31, %s9589_s30  ;;  %v4788_v47 = vpop.permute.xlu0 %4787 }
 0x585   : > { %v3992_v4 = vpop.permute.xlu1 %3991  ;;  %4857 = vst.msk [vmem:[#allocation3 + $0x278] sm:$0xff] %vm1562_vm6, %v4788_v47  ;;  %v5197_v35 = vld [vmem:[#allocation3 + $0x270] sm:$0xff] }
 0x586   : > { %4059 = vst.msk [vmem:[#allocation3 + $0x2a0] sm:$0xff] %vm1369_vm5, %v3992_v4  ;;  %v9320_v4 = vpop.f32.mrf.mxu0 }
 0x588   : > { %v4980_v16 = vpop.permute.xlu0 %4979 }
 0x589   : > { %v4184_v50 = vpop.permute.xlu1 %4183  ;;  %5049 = vst.msk [vmem:[#allocation3 + $0x278] sm:$0xff] %vm1755_vm7, %v4980_v16  ;;  %v5200_v42 = vld [vmem:[#allocation3 + $0x288] sm:$0xff] }
 0x58a   : > { %4251 = vst.msk [vmem:[#allocation3 + $0x2a0] sm:$0xff] %vm1562_vm6, %v4184_v50 }
 0x58c   : > { %v4790_v14 = vpop.permute.xlu0 %4789 }
 0x58d   : > { %v3998_v57 = vpop.permute.xlu1 %3997  ;;  %4858 = vst.msk [vmem:[#allocation3 + $0x290] sm:$0xff] %vm1562_vm6, %v4790_v14 }
 0x58e   : > { %4062 = vst.msk [vmem:[#allocation3 + $0x2e8] sm:$0xff] %vm1369_vm5, %v3998_v57  ;;  %v5662_v57 = vpop.f32.mrf.mxu0 }
 0x58f   : > { %5050 = vst.msk [vmem:[#allocation3 + $0x290] sm:$0xff] %vm1755_vm7, %v4982_v23 }
 0x590   : > { %v4600_v32 = vpop.permute.xlu0 %4599  ;;  %v5198_v55 = vld [vmem:[#allocation3 + $0x278] sm:$0xff] }
 0x591   : > { %v4376_v13 = vpop.permute.xlu1 %4375  ;;  %4667 = vst.msk [vmem:[#allocation3 + $0x2a8] sm:$0xff] %vm1369_vm5, %v4600_v32  ;;  %5505 = vmatprep.mubr.f32.mxu1 %v5198_v55 }
 0x592   : > { %4443 = vst.msk [vmem:[#allocation3 + $0x2a0] sm:$0xff] %vm1755_vm7, %v4376_v13  ;;  %v5427_v61 = vpop.f32.mrf.mxu1  ;;  %5506 = vmatmul.mubr.f32.gmra.mxu1 %v5197_v35 }
 0x593   : > { %v5653_v46 = vadd.f32 %v5652_v10, %v5427_v61 }
 0x594   : > { %v5429_v28 = vpop.f32.mrf.mxu1  ;;  %v4986_v30 = vpop.permute.xlu0 %4985 }
 0x595   : > { %v4378_v58 = vpop.permute.xlu1 %4377  ;;  %5813 = vrot.lane.b32.xlu0 %v5653_v46, %s9589_s30 }
 0x596   : > { %4444 = vst.msk [vmem:[#allocation3 + $0x2b8] sm:$0xff] %vm1755_vm7, %v4378_v58  ;;  %v5201_v26 = vld [vmem:[#allocation3 + $0x290] sm:$0xff] }
 0x597   : > { %5510 = vmatprep.mubr.f32.mxu1 %v5201_v26 }
 0x598   : > { %5511 = vmatmul.mubr.f32.gmra.mxu1 %v5200_v42  ;;  %v4606_v23 = vpop.permute.xlu0 %4605 }
 0x599   : > { %v5432_v38 = vpop.f32.mrf.mxu1  ;;  %v3996_v40 = vpop.permute.xlu1 %3995  ;;  %4670 = vst.msk [vmem:[#allocation3 + $0x2f0] sm:$0xff] %vm1369_vm5, %v4606_v23 }
 0x59a   : > { %v5658_v62 = vadd.f32 %v9317_v39, %v5432_v38  ;;  %4061 = vst.msk [vmem:[#allocation3 + $0x2d0] sm:$0xff] %vm1369_vm5, %v3996_v40  ;;  %v5203_v39 = vld [vmem:[#allocation3 + $0x2a0] sm:$0xff] }
 0x59b   : > { %v5434_v5 = vpop.f32.mrf.mxu1 }
 0x59c   : > { %5815 = vrot.lane.b32.xlu1 %v5658_v62, %s9589_s30  ;;  %v4792_v22 = vpop.permute.xlu0 %4791  ;;  %v9323_v5 = vpop.f32.mrf.mxu0 }
 0x59d   : > { %v4188_v18 = vpop.permute.xlu1 %4187  ;;  %4859 = vst.msk [vmem:[#allocation3 + $0x2a8] sm:$0xff] %vm1562_vm6, %v4792_v22  ;;  %v5206_v46 = vld [vmem:[#allocation3 + $0x2b8] sm:$0xff] }
 0x59e   : > { %4253 = vst.msk [vmem:[#allocation3 + $0x2d0] sm:$0xff] %vm1562_vm6, %v4188_v18  ;;  %v5672_v22 = vpop.f32.mrf.mxu0 }
 0x5a0   : > { %v4984_v59 = vpop.permute.xlu0 %4983 }
 0x5a1   : > { %v4190_v31 = vpop.permute.xlu1 %4189  ;;  %5051 = vst.msk [vmem:[#allocation3 + $0x2a8] sm:$0xff] %vm1755_vm7, %v4984_v59 }
 0x5a2   : > { %4254 = vst.msk [vmem:[#allocation3 + $0x2e8] sm:$0xff] %vm1562_vm6, %v4190_v31  ;;  %v12422_v31 = vld [vmem:[%s13856_s11] ss:$0 sm:$0xff] }
 0x5a4   : > { %v4794_v25 = vpop.permute.xlu0 %4793 }
 0x5a5   : > { %v4380_v24 = vpop.permute.xlu1 %4379  ;;  %4860 = vst.msk [vmem:[#allocation3 + $0x2c0] sm:$0xff] %vm1562_vm6, %v4794_v25 }
 0x5a6   : > { %4445 = vst.msk [vmem:[#allocation3 + $0x2d0] sm:$0xff] %vm1755_vm7, %v4380_v24  ;;  %5052 = vst.msk [vmem:[#allocation3 + $0x2c0] sm:$0xff] %vm1755_vm7, %v4986_v30 }
 0x5a8   : > { %v4604_v50 = vpop.permute.xlu0 %4603  ;;  %v5204_v16 = vld [vmem:[#allocation3 + $0x2a8] sm:$0xff] }
 0x5a9   : > { %v4382_v47 = vpop.permute.xlu1 %4381  ;;  %4669 = vst.msk [vmem:[#allocation3 + $0x2d8] sm:$0xff] %vm1369_vm5, %v4604_v50  ;;  %5515 = vmatprep.mubr.f32.mxu1 %v5204_v16 }
 0x5aa   : > { %4446 = vst.msk [vmem:[#allocation3 + $0x2e8] sm:$0xff] %vm1755_vm7, %v4382_v47  ;;  %v5437_v14 = vpop.f32.mrf.mxu1  ;;  %5516 = vmatmul.mubr.f32.gmra.mxu1 %v5203_v39 }
 0x5ab   : > { %4861 = vst.msk [vmem:[#allocation3 + $0x2d8] sm:$0xff] %vm1562_vm6, %v11081_v43  ;;  %v5663_v13 = vadd.f32 %v5662_v57, %v5437_v14  ;;  %v12435_v57 = vld [vmem:[%s13857_s12] ss:$0 sm:$0xff] }
 0x5ac   : > { %5053 = vst.msk [vmem:[#allocation3 + $0x2d8] sm:$0xff] %vm1755_vm7, %v11083_v7  ;;  %v5439_v55 = vpop.f32.mrf.mxu1  ;;  %v4798_v10 = vpop.permute.xlu0 %4797 }
 0x5ad   : > { %v6597_v32 = vpop.permute.xlu1 %6596  ;;  %5817 = vrot.lane.b32.xlu0 %v5663_v13, %s9589_s30  ;;  %4862 = vst.msk [vmem:[#allocation3 + $0x2f0] sm:$0xff] %vm1562_vm6, %v4798_v10  ;;  %v5207_v61 = vld [vmem:[#allocation3 + $0x2c0] sm:$0xff]  ;;  %v5209_v26 = vld [vmem:[#allocation3 + $0x2d0] sm:$0xff] }
 0x5ae   : > { %6691 = vst.msk [vmem:[#allocation3 + $0x18] sm:$0xff] %vm1369_vm5, %v6597_v32  ;;  %5520 = vmatprep.mubr.f32.mxu1 %v5207_v61 }
 0x5af   : > { %5521 = vmatmul.mubr.f32.gmra.mxu1 %v5206_v46 }
 0x5b0   : > { %v5442_v35 = vpop.f32.mrf.mxu1  ;;  %v4990_v28 = vpop.permute.xlu0 %4989 }
 0x5b1   : > { %v5668_v58 = vadd.f32 %v9320_v4, %v5442_v35  ;;  %v6789_v43 = vpop.permute.xlu1 %6788  ;;  %5054 = vst.msk [vmem:[#allocation3 + $0x2f0] sm:$0xff] %vm1755_vm7, %v4990_v28  ;;  %v5212_v40 = vld [vmem:[#allocation3 + $0x2e8] sm:$0xff] }
 0x5b2   : > { %6883 = vst.msk [vmem:[#allocation3 + $0x18] sm:$0xff] %vm1562_vm6, %v6789_v43  ;;  %v5444_v7 = vpop.f32.mrf.mxu1 }
 0x5b3   : > { %5819 = vrot.lane.b32.xlu1 %v5668_v58, %s9589_s30  ;;  %v5210_v30 = vld [vmem:[#allocation3 + $0x2d8] sm:$0xff] }
 0x5b4   : > { %5525 = vmatprep.mubr.f32.mxu1 %v5210_v30  ;;  %v6595_v38 = vpop.permute.xlu0 %6594 }
 0x5b5   : > { %5526 = vmatmul.mubr.f32.gmra.mxu1 %v5209_v26  ;;  %6690 = vst.msk [vmem:[#allocation3] sm:$0xff] %vm1369_vm5, %v6595_v38  ;;  %v5796_v23 = vpop.permute.xlu1 %5795 }
 0x5b6   : > { %v12426_v59 = vsel %vm3418_vm8, %v11092_v51, %v5796_v23 }
 0x5b7   : > { %v5970_v50 = vmul.f32 %v12422_v31, %v12426_v59 }
 0x5b8   : > { %v6787_v42 = vpop.permute.xlu0 %6786  ;;  %v5213_v62 = vld [vmem:[#allocation3 + $0x2f0] sm:$0xff] }
 0x5b9   : > { %6882 = vst.msk [vmem:[#allocation3] sm:$0xff] %vm1562_vm6, %v6787_v42  ;;  %5530 = vmatprep.mubr.f32.mxu1 %v5213_v62  ;;  %v5800_v25 = vpop.permute.xlu1 %5799  ;;  %v6008_v10 = vadd.f32 %v12435_v57, %v5970_v50 }
 0x5ba   : > { %5531 = vmatmul.mubr.f32.gmra.mxu1 %v5212_v40  ;;  %v12439_v14 = vsel %vm3418_vm8, %v11111_v63, %v5800_v25 }
 0x5bb   : > { %v5972_v61 = vmul.f32 %v12422_v31, %v12439_v14  ;;  %v6040_v30 = vmax.f32 %v6008_v10, 0.0 }
 0x5bc   : > { %v12417_v18 = vpop.permute.xlu0 %7454 }
 0x5bd   : > { %v6010_v26 = vadd.f32 %v12435_v57, %v5972_v61 }
 0x5bf   : > { %v6042_v23 = vmax.f32 %v6010_v26, 0.0 }
 0x5c0   : > { %v12428_v24 = vpop.permute.xlu0 %7646 }
 0x5c2   : > { %v5447_v4 = vpop.f32.mrf.mxu1 }
 0x5c3   : > { %v5673_v47 = vadd.f32 %v5672_v22, %v5447_v4 }
 0x5c4   : > { %v5449_v16 = vpop.f32.mrf.mxu1  ;;  %v5794_v51 = vpop.permute.xlu0 %5793 }
 0x5c5   : > { %5821 = vrot.lane.b32.xlu0 %v5673_v47, %s9589_s30  ;;  %v12444_v13 = vsel %vm3418_vm8, %v11104_v34, %v5794_v51 }
 0x5c6   : > { %v5804_v39 = vpop.permute.xlu1 %5803  ;;  %v5969_v32 = vmul.f32 %v12422_v31, %v12444_v13 }
 0x5c7   : > { %v12453_v63 = vsel %vm3418_vm8, %v11126_v0, %v5804_v39 }
 0x5c8   : > { %v5452_v55 = vpop.f32.mrf.mxu1  ;;  %v6007_v46 = vadd.f32 %v12435_v57, %v5969_v32  ;;  %v5798_v58 = vpop.permute.xlu0 %5797  ;;  %v5974_v0 = vmul.f32 %v12422_v31, %v12453_v63 }
 0x5c9   : > { %v5678_v35 = vadd.f32 %v9323_v5, %v5452_v55  ;;  %v12458_v34 = vsel %vm3418_vm8, %v11119_v3, %v5798_v58 }
 0x5ca   : > { %v5454_v43 = vpop.f32.mrf.mxu1  ;;  %v6039_v28 = vmax.f32 %v6007_v46, 0.0  ;;  %v5971_v7 = vmul.f32 %v12422_v31, %v12458_v34  ;;  %v6012_v5 = vadd.f32 %v12435_v57, %v5974_v0 }
 0x5cb   : > { %5823 = vrot.lane.b32.xlu1 %v5678_v35, %s9589_s30 }
 0x5cc   : > { %v6009_v38 = vadd.f32 %v12435_v57, %v5971_v7  ;;  %9354 = vmatprep.mubr.msk.f32.mxu0 %vm6077_vm9, %v6039_v28  ;;  %v5802_v42 = vpop.permute.xlu0 %5801  ;;  %v6044_v4 = vmax.f32 %v6012_v5, 0.0 }
 0x5cd   : > { %v12470_v3 = vsel %vm3418_vm8, %v11134_v11, %v5802_v42  ;;  %9355 = vmatmul.mubr.msk.f32.vlgmr.msra.gmra.mxu0 %vm6077_vm9, %v6040_v30  ;;  %v9326_v11 = vpop.f32.mrf.mxu0 }
 0x5ce   : > { %v6041_v62 = vmax.f32 %v6009_v38, 0.0  ;;  %v5973_v40 = vmul.f32 %v12422_v31, %v12470_v3 }
 0x5cf   : > { %v5682_v51 = vpop.f32.mrf.mxu0 }
 0x5d0   : > { %v6011_v22 = vadd.f32 %v12435_v57, %v5973_v40  ;;  %9357 = vmatprep.mubr.msk.f32.mxu0 %vm6077_vm9, %v6041_v62 }
 0x5d1   : > { %9358 = vmatmul.mubr.msk.f32.gmra.mxu0 %vm6077_vm9, %v6042_v23  ;;  %v9329_v26 = vpop.f32.mrf.mxu0 }
 0x5d2   : > { %v6043_v25 = vmax.f32 %v6011_v22, 0.0 }
 0x5d3   : > { %v5692_v42 = vpop.f32.mrf.mxu0 }
 0x5d4   : > { %9360 = vmatprep.mubr.msk.f32.mxu0 %vm6077_vm9, %v6043_v25 }
 0x5d5   : > { %9361 = vmatmul.mubr.msk.f32.gmra.mxu0 %vm6077_vm9, %v6044_v4 }
 0x5d7   : > { %v5806_v47 = vpop.permute.xlu0 %5805 }
 0x5d8   : > { %v12483_v50 = vsel %vm3418_vm8, %v11150_v1, %v5806_v47 }
 0x5d9   : > { %v5975_v16 = vmul.f32 %v12422_v31, %v12483_v50 }
 0x5da   : > { %v5457_v39 = vpop.f32.mrf.mxu1 }
 0x5db   : > { %v6013_v32 = vadd.f32 %v12435_v57, %v5975_v16  ;;  %v5683_v55 = vadd.f32 %v5682_v51, %v5457_v39 }
 0x5dc   : > { %v5459_v61 = vpop.f32.mrf.mxu1 }
 0x5dd   : > { %v6045_v35 = vmax.f32 %v6013_v32, 0.0  ;;  %5825 = vrot.lane.b32.xlu0 %v5683_v55, %s9589_s30  ;;  %v9332_v32 = vpop.f32.mrf.mxu0 }
 0x5de   : > { %v5808_v10 = vpop.permute.xlu1 %5807 }
 0x5df   : > { %v12490_v46 = vsel %vm3418_vm8, %v11142_v49, %v5808_v10  ;;  %9363 = vmatprep.mubr.msk.f32.mxu0 %vm6077_vm9, %v6045_v35  ;;  %v5702_v61 = vpop.f32.mrf.mxu0 }
 0x5e0   : > { %v5976_v1 = vmul.f32 %v12422_v31, %v12490_v46  ;;  %v5462_v58 = vpop.f32.mrf.mxu1 }
 0x5e1   : > { %v5688_v28 = vadd.f32 %v9326_v11, %v5462_v58 }
 0x5e2   : > { %v6014_v43 = vadd.f32 %v12435_v57, %v5976_v1  ;;  %v5464_v7 = vpop.f32.mrf.mxu1 }
 0x5e3   : > { %5827 = vrot.lane.b32.xlu1 %v5688_v28, %s9589_s30 }
 0x5e4   : > { %v6046_v30 = vmax.f32 %v6014_v43, 0.0 }
 0x5e6   : > { %9364 = vmatmul.mubr.msk.f32.gmra.mxu0 %vm6077_vm9, %v6046_v30 }
 0x5ef   : > { %v5810_v49 = vpop.permute.xlu0 %5809 }
 0x5f0   : > { %v12501_v0 = vsel %vm3418_vm8, %v11161_v41, %v5810_v49 }
 0x5f1   : > { %v5977_v38 = vmul.f32 %v12422_v31, %v12501_v0 }
 0x5f2   : > { %v5467_v62 = vpop.f32.mrf.mxu1 }
 0x5f3   : > { %v6015_v40 = vadd.f32 %v12435_v57, %v5977_v38  ;;  %v5693_v23 = vadd.f32 %v5692_v42, %v5467_v62 }
 0x5f4   : > { %v5469_v22 = vpop.f32.mrf.mxu1 }
 0x5f5   : > { %v6047_v25 = vmax.f32 %v6015_v40, 0.0  ;;  %5829 = vrot.lane.b32.xlu0 %v5693_v23, %s9589_s30  ;;  %v9335_v40 = vpop.f32.mrf.mxu0 }
 0x5f6   : > { %v5812_v5 = vpop.permute.xlu1 %5811 }
 0x5f7   : > { %v12508_v4 = vsel %vm3418_vm8, %v11171_v19, %v5812_v5  ;;  %9366 = vmatprep.mubr.msk.f32.mxu0 %vm6077_vm9, %v6047_v25  ;;  %v5712_v22 = vpop.f32.mrf.mxu0 }
 0x5f8   : > { %v5978_v41 = vmul.f32 %v12422_v31, %v12508_v4  ;;  %v5472_v11 = vpop.f32.mrf.mxu1 }
 0x5f9   : > { %v5698_v16 = vadd.f32 %v9329_v26, %v5472_v11 }
 0x5fa   : > { %v6016_v47 = vadd.f32 %v12435_v57, %v5978_v41  ;;  %v5474_v51 = vpop.f32.mrf.mxu1 }
 0x5fb   : > { %5831 = vrot.lane.b32.xlu1 %v5698_v16, %s9589_s30 }
 0x5fc   : > { %v6048_v39 = vmax.f32 %v6016_v47, 0.0 }
 0x5fe   : > { %9367 = vmatmul.mubr.msk.f32.gmra.mxu0 %vm6077_vm9, %v6048_v39 }
 0x607   : > { %v5814_v19 = vpop.permute.xlu0 %5813 }
 0x608   : > { %v12519_v55 = vsel %vm3418_vm8, %v11181_v53, %v5814_v19 }
 0x609   : > { %v5979_v10 = vmul.f32 %v12422_v31, %v12519_v55 }
 0x60a   : > { %v5477_v35 = vpop.f32.mrf.mxu1 }
 0x60b   : > { %v6017_v1 = vadd.f32 %v12435_v57, %v5979_v10  ;;  %v5703_v58 = vadd.f32 %v5702_v61, %v5477_v35 }
 0x60c   : > { %v5479_v28 = vpop.f32.mrf.mxu1 }
 0x60d   : > { %v6049_v7 = vmax.f32 %v6017_v1, 0.0  ;;  %5833 = vrot.lane.b32.xlu0 %v5703_v58, %s9589_s30 }
 0x60e   : > { %v5816_v43 = vpop.permute.xlu1 %5815 }
 0x60f   : > { %v12526_v30 = vsel %vm3418_vm8, %v11189_v52, %v5816_v43  ;;  %9369 = vmatprep.mubr.msk.f32.mxu0 %vm6077_vm9, %v6049_v7 }
 0x610   : > { %v5980_v53 = vmul.f32 %v12422_v31, %v12526_v30  ;;  %v5482_v26 = vpop.f32.mrf.mxu1 }
 0x611   : > { %v5708_v38 = vadd.f32 %v9332_v32, %v5482_v26 }
 0x612   : > { %v6018_v49 = vadd.f32 %v12435_v57, %v5980_v53  ;;  %v5484_v42 = vpop.f32.mrf.mxu1 }
 0x613   : > { %5835 = vrot.lane.b32.xlu1 %v5708_v38, %s9589_s30 }
 0x614   : > { %v6050_v62 = vmax.f32 %v6018_v49, 0.0 }
 0x616   : > { %9370 = vmatmul.mubr.msk.f32.gmra.mxu0 %vm6077_vm9, %v6050_v62 }
 0x61f   : > { %v5818_v52 = vpop.permute.xlu0 %5817 }
 0x620   : > { %v12537_v23 = vsel %vm3418_vm8, %v11200_v6, %v5818_v52 }
 0x621   : > { %v5981_v5 = vmul.f32 %v12422_v31, %v12537_v23 }
 0x622   : > { %v5487_v41 = vpop.f32.mrf.mxu1 }
 0x623   : > { %v6019_v25 = vadd.f32 %v12435_v57, %v5981_v5  ;;  %v5713_v11 = vadd.f32 %v5712_v22, %v5487_v41 }
 0x624   : > { %v5489_v39 = vpop.f32.mrf.mxu1 }
 0x625   : > { %v5820_v47 = vpop.permute.xlu1 %5819  ;;  %v6051_v16 = vmax.f32 %v6019_v25, 0.0  ;;  %5837 = vrot.lane.b32.xlu0 %v5713_v11, %s9589_s30 }
 0x626   : > { %v12544_v51 = vsel %vm3418_vm8, %v11207_v27, %v5820_v47  ;;  %v9338_v27 = vpop.f32.mrf.mxu0 }
 0x627   : > { %v5982_v32 = vmul.f32 %v12422_v31, %v12544_v51  ;;  %9372 = vmatprep.mubr.msk.f32.mxu0 %vm6077_vm9, %v6051_v16 }
 0x628   : > { %v5492_v19 = vpop.f32.mrf.mxu1  ;;  %v5722_v28 = vpop.f32.mrf.mxu0 }
 0x629   : > { %v6020_v6 = vadd.f32 %v12435_v57, %v5982_v32  ;;  %v5718_v10 = vadd.f32 %v9335_v40, %v5492_v19 }
 0x62a   : > { %v5494_v35 = vpop.f32.mrf.mxu1 }
 0x62b   : > { %v6052_v61 = vmax.f32 %v6020_v6, 0.0  ;;  %5839 = vrot.lane.b32.xlu1 %v5718_v10, %s9589_s30 }
 0x62d   : > { %9373 = vmatmul.mubr.msk.f32.gmra.mxu0 %vm6077_vm9, %v6052_v61 }
 0x637   : > { %v5822_v1 = vpop.permute.xlu0 %5821 }
 0x638   : > { %v12555_v58 = vsel %vm3418_vm8, %v11218_v48, %v5822_v1 }
 0x639   : > { %v5983_v43 = vmul.f32 %v12422_v31, %v12555_v58 }
 0x63a   : > { %v5497_v53 = vpop.f32.mrf.mxu1 }
 0x63b   : > { %v6021_v7 = vadd.f32 %v12435_v57, %v5983_v43  ;;  %v5723_v26 = vadd.f32 %v5722_v28, %v5497_v53 }
 0x63c   : > { %v5499_v62 = vpop.f32.mrf.mxu1 }
 0x63d   : > { %v5824_v49 = vpop.permute.xlu1 %5823  ;;  %v6053_v38 = vmax.f32 %v6021_v7, 0.0  ;;  %5841 = vrot.lane.b32.xlu0 %v5723_v26, %s9589_s30 }
 0x63e   : > { %v12562_v42 = vsel %vm3418_vm8, %v11225_v56, %v5824_v49  ;;  %v9341_v56 = vpop.f32.mrf.mxu0 }
 0x63f   : > { %v5984_v40 = vmul.f32 %v12422_v31, %v12562_v42  ;;  %9375 = vmatprep.mubr.msk.f32.mxu0 %vm6077_vm9, %v6053_v38 }
 0x640   : > { %v5502_v52 = vpop.f32.mrf.mxu1  ;;  %v5732_v16 = vpop.f32.mrf.mxu0 }
 0x641   : > { %v6022_v48 = vadd.f32 %v12435_v57, %v5984_v40  ;;  %v5728_v5 = vadd.f32 %v9338_v27, %v5502_v52 }
 0x642   : > { %v5504_v25 = vpop.f32.mrf.mxu1 }
 0x643   : > { %v6054_v22 = vmax.f32 %v6022_v48, 0.0  ;;  %5843 = vrot.lane.b32.xlu1 %v5728_v5, %s9589_s30 }
 0x645   : > { %9376 = vmatmul.mubr.msk.f32.gmra.mxu0 %vm6077_vm9, %v6054_v22 }
 0x64f   : > { %v5826_v41 = vpop.permute.xlu0 %5825 }
 0x650   : > { %v12573_v11 = vsel %vm3418_vm8, %v11236_v33, %v5826_v41 }
 0x651   : > { %v5985_v47 = vmul.f32 %v12422_v31, %v12573_v11 }
 0x652   : > { %v5507_v32 = vpop.f32.mrf.mxu1 }
 0x653   : > { %v6023_v39 = vadd.f32 %v12435_v57, %v5985_v47  ;;  %v5733_v6 = vadd.f32 %v5732_v16, %v5507_v32 }
 0x654   : > { %v5509_v35 = vpop.f32.mrf.mxu1 }
 0x655   : > { %v5828_v19 = vpop.permute.xlu1 %5827  ;;  %v6055_v10 = vmax.f32 %v6023_v39, 0.0  ;;  %5845 = vrot.lane.b32.xlu0 %v5733_v6, %s9589_s30  ;;  %v5961_v35 = vld [vmem:[%s13860_s15 + $0x110] sm:$0xff] }
 0x656   : > { %v12580_v61 = vsel %vm3418_vm8, %v11243_v29, %v5828_v19  ;;  %v9344_v29 = vpop.f32.mrf.mxu0 }
 0x657   : > { %v5986_v27 = vmul.f32 %v12422_v31, %v12580_v61  ;;  %9378 = vmatprep.mubr.msk.f32.mxu0 %vm6077_vm9, %v6055_v10 }
 0x658   : > { %v5512_v1 = vpop.f32.mrf.mxu1  ;;  %v5742_v38 = vpop.f32.mrf.mxu0 }
 0x659   : > { %v6024_v33 = vadd.f32 %v12435_v57, %v5986_v27  ;;  %v5738_v43 = vadd.f32 %v9341_v56, %v5512_v1  ;;  %v5960_v1 = vld [vmem:[%s13860_s15 + $0x108] sm:$0xff] }
 0x65a   : > { %v5514_v7 = vpop.f32.mrf.mxu1 }
 0x65b   : > { %v6056_v28 = vmax.f32 %v6024_v33, 0.0  ;;  %5847 = vrot.lane.b32.xlu1 %v5738_v43, %s9589_s30  ;;  %v5942_v33 = vld [vmem:[%s13860_s15 + $0x78] sm:$0xff]  ;;  %v5941_v43 = vld [vmem:[%s13860_s15 + $0x70] sm:$0xff]  ;;  %v13866_v7 = vmov 0.0  }
 0x65c   : > { %7971 = vmatpush1.msra.mxu1 %v5942_v33 }
 0x65d   : > { %9379 = vmatmul.mubr.msk.f32.gmra.mxu0 %vm6077_vm9, %v6056_v28  ;;  %v5959_v28 = vld [vmem:[%s13860_s15 + $0x100] sm:$0xff]  ;;  %7972 = vmatprep.subr.mxu1 %v13866_v7 }
 0x65e   : > { %7973 = vmatpush1.msra.mxu1 %v5941_v43  ;;  %v5930_v43 = vld [vmem:[%s13860_s15 + $0x18] sm:$0xff] }
 0x65f   : > { %7974 = vmatprep.subr.mxu1 %v13866_v7 }
 0x667   : > { %v5830_v53 = vpop.permute.xlu0 %5829 }
 0x668   : > { %v12591_v26 = vsel %vm3418_vm8, %v11254_v2, %v5830_v53  ;;  %v9347_v2 = vpop.f32.mrf.mxu0  ;;  %v5940_v53 = vld [vmem:[%s13860_s15 + $0x68] sm:$0xff] }
 0x669   : > { %v5987_v49 = vmul.f32 %v12422_v31, %v12591_v26  ;;  %7975 = vmatpush1.msra.mxu1 %v5940_v53 }
 0x66a   : > { %v5517_v40 = vpop.f32.mrf.mxu1  ;;  %v5752_v6 = vpop.f32.mrf.mxu0  ;;  %7976 = vmatprep.subr.mxu1 %v13866_v7 }
 0x66b   : > { %v6025_v62 = vadd.f32 %v12435_v57, %v5987_v49  ;;  %v5743_v48 = vadd.f32 %v5742_v38, %v5517_v40 }
 0x66c   : > { %v5519_v25 = vpop.f32.mrf.mxu1 }
 0x66d   : > { %v5832_v52 = vpop.permute.xlu1 %5831  ;;  %v6057_v5 = vmax.f32 %v6025_v62, 0.0  ;;  %5849 = vrot.lane.b32.xlu0 %v5743_v48, %s9589_s30  ;;  %v5939_v62 = vld [vmem:[%s13860_s15 + $0x60] sm:$0xff]  ;;  %v5938_v48 = vld [vmem:[%s13860_s15 + $0x58] sm:$0xff]  ;;  %v5937_v25 = vld [vmem:[%s13860_s15 + $0x50] sm:$0xff] }
 0x66e   : > { %v12598_v22 = vsel %vm3418_vm8, %v11261_v15, %v5832_v52  ;;  %v5962_v15 = vld [vmem:[%s13860_s15 + $0x118] sm:$0xff]  ;;  %7977 = vmatpush1.msra.mxu1 %v5939_v62 }
 0x66f   : > { %v5988_v56 = vmul.f32 %v12422_v31, %v12598_v22  ;;  %9381 = vmatprep.mubr.msk.f32.mxu0 %vm6077_vm9, %v6057_v5  ;;  %v5522_v47 = vpop.f32.mrf.mxu1  ;;  %9402 = vmatprep.subr.mxu0 %v5962_v15 }
 0x670   : > { %v5748_v16 = vadd.f32 %v9344_v29, %v5522_v47  ;;  %9403 = vmatpush3.msra.mxu0 %v5962_v15  ;;  %7978 = vmatprep.subr.mxu1 %v13866_v7  ;;  %v5933_v15 = vld [vmem:[%s13860_s15 + $0x30] sm:$0xff] }
 0x671   : > { %v6026_v41 = vadd.f32 %v12435_v57, %v5988_v56  ;;  %v5524_v32 = vpop.f32.mrf.mxu1  ;;  %9404 = vmatprep.subr.mxu0 %v5961_v35  ;;  %7979 = vmatpush1.msra.mxu1 %v5938_v48  ;;  %v5928_v48 = vld [vmem:[%s13860_s15 + $0x8] sm:$0xff] }
 0x672   : > { %5851 = vrot.lane.b32.xlu1 %v5748_v16, %s9589_s30  ;;  %9405 = vmatpush3.msra.mxu0 %v5961_v35 }
 0x673   : > { %v6058_v39 = vmax.f32 %v6026_v41, 0.0  ;;  %9406 = vmatprep.subr.mxu0 %v5960_v1  ;;  %7980 = vmatprep.subr.mxu1 %v13866_v7 }
 0x674   : > { %9407 = vmatpush3.msra.mxu0 %v5960_v1  ;;  %7981 = vmatpush1.msra.mxu1 %v5937_v25 }
 0x675   : > { %9382 = vmatmul.mubr.msk.f32.gmra.mxu0 %vm6077_vm9, %v6058_v39  ;;  %v5527_v19 = vpop.f32.mrf.mxu1  ;;  %9408 = vmatprep.subr.mxu0 %v5959_v28  ;;  %v5935_v39 = vld [vmem:[%s13860_s15 + $0x40] sm:$0xff] }
 0x676   : > { %v5753_v10 = vadd.f32 %v5752_v6, %v5527_v19  ;;  %9409 = vmatpush3.msra.mxu0 %v5959_v28  ;;  %7982 = vmatprep.subr.mxu1 %v13866_v7  ;;  %v5932_v19 = vld [vmem:[%s13860_s15 + $0x28] sm:$0xff] }
 0x677   : > { %v5529_v27 = vpop.f32.mrf.mxu1 }
 0x678   : > { %5853 = vrot.lane.b32.xlu0 %v5753_v10, %s9589_s30  ;;  %v12682_v10 = vld [vmem:[%s13859_s14] ss:$0 sm:$0xff] }
 0x679   : > { %v5931_v27 = vld [vmem:[%s13860_s15 + $0x20] sm:$0xff] }
 0x67a   : > { %v5532_v29 = vpop.f32.mrf.mxu1 }
 0x67b   : > { %v5758_v49 = vadd.f32 %v9347_v2, %v5532_v29 }
 0x67c   : > { %v5534_v38 = vpop.f32.mrf.mxu1 }
 0x67d   : > { %5855 = vrot.lane.b32.xlu1 %v5758_v49, %s9589_s30  ;;  %v5929_v49 = vld [vmem:[%s13860_s15 + $0x10] sm:$0xff] }
 0x67f   : > { %v5834_v40 = vpop.permute.xlu0 %5833 }
 0x680   : > { %v12641_v52 = vsel %vm3418_vm8, %v11272_v21, %v5834_v40  ;;  %v5936_v21 = vld [vmem:[%s13860_s15 + $0x48] sm:$0xff] }
 0x681   : > { %v5989_v5 = vmul.f32 %v12422_v31, %v12641_v52  ;;  %7983 = vmatpush1.msra.mxu1 %v5936_v21  ;;  %v5927_v21 = vld [vmem:[%s13860_s15] sm:$0xff] }
 0x682   : > { %7984 = vmatprep.subr.mxu1 %v13866_v7 }
 0x683   : > { %v6027_v56 = vadd.f32 %v12435_v57, %v5989_v5  ;;  %7985 = vmatpush1.msra.mxu1 %v5935_v39 }
 0x684   : > { %7986 = vmatprep.subr.mxu1 %v13866_v7 }
 0x685   : > { %v5836_v2 = vpop.permute.xlu1 %5835  ;;  %v6059_v41 = vmax.f32 %v6027_v56, 0.0 }
 0x686   : > { %v12657_v47 = vsel %vm3418_vm8, %v11288_v36, %v5836_v2  ;;  %v5934_v36 = vld [vmem:[%s13860_s15 + $0x38] sm:$0xff] }
 0x687   : > { %v5990_v16 = vmul.f32 %v12422_v31, %v12657_v47  ;;  %9384 = vmatprep.mubr.msk.f32.mxu0 %vm6077_vm9, %v6059_v41  ;;  %7987 = vmatpush1.msra.mxu1 %v5934_v36 }
 0x688   : > { %7988 = vmatprep.subr.mxu1 %v13866_v7 }
 0x689   : > { %v6028_v32 = vadd.f32 %v12435_v57, %v5990_v16  ;;  %7989 = vmatpush1.msra.mxu1 %v5933_v15 }
 0x68a   : > { %7990 = vmatprep.subr.mxu1 %v13866_v7 }
 0x68b   : > { %v6060_v6 = vmax.f32 %v6028_v32, 0.0  ;;  %7991 = vmatpush1.msra.mxu1 %v5932_v19  ;;  %v5958_v32 = vld [vmem:[%s13860_s15 + $0xf8] sm:$0xff] }
 0x68c   : > { %7992 = vmatprep.subr.mxu1 %v13866_v7 }
 0x68d   : > { %9385 = vmatmul.mubr.msk.f32.gmra.mxu0 %vm6077_vm9, %v6060_v6  ;;  %v9356_v35 = vpop.f32.mrf.mxu0  ;;  %7993 = vmatpush1.msra.mxu1 %v5931_v27  ;;  %v5957_v27 = vld [vmem:[%s13860_s15 + $0xf0] sm:$0xff] }
 0x68e   : > { %v6249_v33 = vadd.f32 %v9356_v35, %v12682_v10  ;;  %7994 = vmatprep.subr.mxu1 %v13866_v7 }
 0x68f   : > { %v6243_v1 = vpop.f32.mrf.mxu0  ;;  %7995 = vmatpush1.msra.mxu1 %v5930_v43 }
 0x690   : > { %v6403_v28 = vmax.f32 %v6249_v33, 0.0  ;;  %v6244_v29 = vadd.f32 %v12682_v10, %v6243_v1  ;;  %7996 = vmatprep.subr.mxu1 %v13866_v7 }
 0x691   : > { %v9359_v53 = vpop.f32.mrf.mxu0  ;;  %7997 = vmatpush1.msra.mxu1 %v5929_v49 }
 0x692   : > { %6435 = vst.msk [vmem:[#allocation2 + $0x21] sm:$0xff] %vm522_vm2, %v6403_v28  ;;  %7107 = vst.msk [vmem:[#allocation3 + $0x20] sm:$0xff] %vm522_vm2, %v6403_v28  ;;  %v6402_v38 = vmax.f32 %v6244_v29, 0.0  ;;  %v6259_v62 = vadd.f32 %v9359_v53, %v12682_v10  ;;  %7998 = vmatprep.subr.mxu1 %v13866_v7  ;;  %v5956_v53 = vld [vmem:[%s13860_s15 + $0xe8] sm:$0xff] }
 0x693   : > { %v6253_v40 = vpop.f32.mrf.mxu0  ;;  %7999 = vmatpush1.msra.mxu1 %v5928_v48  ;;  %v5955_v48 = vld [vmem:[%s13860_s15 + $0xe0] sm:$0xff] }
 0x694   : > { %6434 = vst.msk [vmem:[#allocation2 + $0x19] sm:$0xff] %vm522_vm2, %v6402_v38  ;;  %7106 = vst.msk [vmem:[#allocation3 + $0x8] sm:$0xff] %vm522_vm2, %v6402_v38  ;;  %v6405_v5 = vmax.f32 %v6259_v62, 0.0  ;;  %v6254_v25 = vadd.f32 %v12682_v10, %v6253_v40  ;;  %8000 = vmatprep.subr.mxu1 %v13866_v7 }
 0x695   : > { %v9362_v56 = vpop.f32.mrf.mxu0  ;;  %8001 = vmatpush1.msra.mxu1 %v5927_v21 }
 0x696   : > { %6437 = vst.msk [vmem:[#allocation2 + $0x39] sm:$0xff] %vm522_vm2, %v6405_v5  ;;  %7109 = vst.msk [vmem:[#allocation3 + $0x50] sm:$0xff] %vm522_vm2, %v6405_v5  ;;  %v6404_v2 = vmax.f32 %v6254_v25, 0.0  ;;  %v6269_v41 = vadd.f32 %v9362_v56, %v12682_v10  ;;  %8002 = vmatprep.subr.mxu1 %v13866_v7 }
 0x697   : > { %v6263_v16 = vpop.f32.mrf.mxu0  ;;  %v5838_v39 = vpop.permute.xlu0 %5837  ;;  %8003 = vmatpush2.msra.mxu1 %v5958_v32 }
 0x698   : > { %6436 = vst.msk [vmem:[#allocation2 + $0x31] sm:$0xff] %vm522_vm2, %v6404_v2  ;;  %7108 = vst.msk [vmem:[#allocation3 + $0x38] sm:$0xff] %vm522_vm2, %v6404_v2  ;;  %v6407_v36 = vmax.f32 %v6269_v41, 0.0  ;;  %v6264_v6 = vadd.f32 %v12682_v10, %v6263_v16  ;;  %v12725_v15 = vsel %vm3418_vm8, %v11316_v9, %v5838_v39  ;;  %8004 = vmatprep.subr.mxu1 %v13866_v7  ;;  %v5954_v41 = vld [vmem:[%s13860_s15 + $0xd8] sm:$0xff]  ;;  %v5953_v39 = vld [vmem:[%s13860_s15 + $0xd0] sm:$0xff] }
 0x699   : > { %v5991_v19 = vmul.f32 %v12422_v31, %v12725_v15  ;;  %v6533_v35 = vld [vmem:[#allocation2 + $0x21] sm:$0xff]  ;;  %8005 = vmatpush2.msra.mxu1 %v5957_v27 }
 0x69a   : > { %6439 = vst.msk [vmem:[#allocation2 + $0x51] sm:$0xff] %vm522_vm2, %v6407_v36  ;;  %7111 = vst.msk [vmem:[#allocation3 + $0x80] sm:$0xff] %vm522_vm2, %v6407_v36  ;;  %v6406_v33 = vmax.f32 %v6264_v6, 0.0  ;;  %6600 = vrot.lane.b32.xlu1 %v6533_v35, %s9586_s20  ;;  %8006 = vmatprep.subr.mxu1 %v13866_v7  ;;  %v7139_v62 = vld [vmem:[#allocation2 + $0x22] sm:$0xff] }
 0x69b   : > { %v6029_v9 = vadd.f32 %v12435_v57, %v5991_v19  ;;  %v6532_v1 = vld [vmem:[#allocation2 + $0x19] sm:$0xff]  ;;  %8007 = vmatpush2.msra.mxu1 %v5956_v53 }
 0x69c   : > { %v6914_v43 = vld [vmem:[#allocation2 + $0x18] sm:$0xff]  ;;  %6438 = vst.msk [vmem:[#allocation2 + $0x49] sm:$0xff] %vm522_vm2, %v6406_v33  ;;  %7110 = vst.msk [vmem:[#allocation3 + $0x68] sm:$0xff] %vm522_vm2, %v6406_v33  ;;  %6598 = vrot.lane.b32.xlu0 %v6532_v1, %s9586_s20  ;;  %v6915_v29 = vld [vmem:[#allocation2 + $0x20] sm:$0xff]  ;;  %8008 = vmatprep.subr.mxu1 %v13866_v7 }
 0x69d   : > { %v5840_v28 = vpop.permute.xlu1 %5839  ;;  %6500 = vst.msk [vmem:[#allocation3 + $0x30] sm:$0xff] %vm522_vm2, %v6914_v43  ;;  %v6061_v49 = vmax.f32 %v6029_v9, 0.0  ;;  %v12749_v40 = vld [vmem:[#allocation2 + $0x3a] sm:$0xff]  ;;  %6501 = vst.msk [vmem:[#allocation3 + $0x48] sm:$0xff] %vm522_vm2, %v6915_v29  ;;  %8009 = vmatpush2.msra.mxu1 %v5955_v48  ;;  %v5952_v33 = vld [vmem:[%s13860_s15 + $0xc8] sm:$0xff] }
 0x69e   : > { %v12747_v38 = vsel %vm3418_vm8, %v11348_v54, %v5840_v28  ;;  %7204 = vrot.lane.b32.xlu1 %v7139_v62, %s9586_s20  ;;  %7747 = vst.msk [vmem:[#allocation3 + $0x28] sm:$0xff] %vm522_vm2, %v12749_v40  ;;  %v7138_v54 = vld [vmem:[#allocation2 + $0x1a] sm:$0xff]  ;;  %8010 = vmatprep.subr.mxu1 %v13866_v7  ;;  %v5948_v48 = vld [vmem:[%s13860_s15 + $0xa8] sm:$0xff] }
 0x69f   : > { %v5992_v5 = vmul.f32 %v12422_v31, %v12747_v38  ;;  %9387 = vmatprep.mubr.msk.f32.mxu0 %vm6077_vm9, %v6061_v49  ;;  %v12762_v25 = vld [vmem:[#allocation2 + $0x38] sm:$0xff]  ;;  %v12764_v56 = vld [vmem:[#allocation2 + $0x30] sm:$0xff]  ;;  %8011 = vmatpush2.msra.mxu1 %v5954_v41  ;;  %v5951_v1 = vld [vmem:[%s13860_s15 + $0xc0] sm:$0xff] }
 0x6a0   : > { %7202 = vrot.lane.b32.xlu0 %v7138_v54, %s9586_s20  ;;  %v12768_v2 = vld [vmem:[#allocation2 + $0x32] sm:$0xff]  ;;  %6503 = vst.msk [vmem:[#allocation3 + $0x78] sm:$0xff] %vm522_vm2, %v12762_v25  ;;  %6502 = vst.msk [vmem:[#allocation3 + $0x60] sm:$0xff] %vm522_vm2, %v12764_v56  ;;  %8012 = vmatprep.subr.mxu1 %v13866_v7 }
 0x6a1   : > { %v6030_v21 = vadd.f32 %v12435_v57, %v5992_v5  ;;  %v12778_v16 = vld [vmem:[#allocation2 + $0x52] sm:$0xff]  ;;  %7746 = vst.msk [vmem:[#allocation3 + $0x10] sm:$0xff] %vm522_vm2, %v12768_v2  ;;  %8013 = vmatpush2.msra.mxu1 %v5953_v39  ;;  %v5947_v5 = vld [vmem:[%s13860_s15 + $0xa0] sm:$0xff] }
 0x6a2   : > { %6792 = vrot.lane.b32.xlu1 %v7139_v62, %s9585_s19  ;;  %7749 = vst.msk [vmem:[#allocation3 + $0x58] sm:$0xff] %vm522_vm2, %v12778_v16  ;;  %8014 = vmatprep.subr.mxu1 %v13866_v7  ;;  %v5950_v53 = vld [vmem:[%s13860_s15 + $0xb8] sm:$0xff] }
 0x6a3   : > { %v6062_v32 = vmax.f32 %v6030_v21, 0.0  ;;  %v12789_v6 = vld [vmem:[#allocation2 + $0x50] sm:$0xff]  ;;  %v12791_v19 = vld [vmem:[#allocation2 + $0x48] sm:$0xff]  ;;  %8015 = vmatpush2.msra.mxu1 %v5952_v33  ;;  %v6535_v62 = vld [vmem:[#allocation2 + $0x39] sm:$0xff] }
 0x6a4   : > { %6978 = vrot.lane.b32.xlu0 %v6914_v43, %s9587_s27  ;;  %v12796_v27 = vld [vmem:[#allocation2 + $0x4a] sm:$0xff]  ;;  %6505 = vst.msk [vmem:[#allocation3 + $0xa8] sm:$0xff] %vm522_vm2, %v12789_v6  ;;  %6504 = vst.msk [vmem:[#allocation3 + $0x90] sm:$0xff] %vm522_vm2, %v12791_v19  ;;  %8016 = vmatprep.subr.mxu1 %v13866_v7  ;;  %v5946_v39 = vld [vmem:[%s13860_s15 + $0x98] sm:$0xff] }
 0x6a5   : > { %9388 = vmatmul.mubr.msk.f32.gmra.mxu0 %vm6077_vm9, %v6062_v32  ;;  %7748 = vst.msk [vmem:[#allocation3 + $0x40] sm:$0xff] %vm522_vm2, %v12796_v27  ;;  %8017 = vmatpush2.msra.mxu1 %v5951_v1  ;;  %v6534_v21 = vld [vmem:[#allocation2 + $0x31] sm:$0xff] }
 0x6a6   : > { %v9365_v36 = vpop.f32.mrf.mxu0  ;;  %6980 = vrot.lane.b32.xlu1 %v6915_v29, %s9587_s27  ;;  %8018 = vmatprep.subr.mxu1 %v13866_v7  ;;  %v5949_v29 = vld [vmem:[%s13860_s15 + $0xb0] sm:$0xff] }
 0x6a7   : > { %v6279_v35 = vadd.f32 %v9365_v36, %v12682_v10  ;;  %8019 = vmatpush2.msra.mxu1 %v5950_v53 }
 0x6a8   : > { %v6273_v9 = vpop.f32.mrf.mxu0  ;;  %6790 = vrot.lane.b32.xlu0 %v7138_v54, %s9585_s19  ;;  %8020 = vmatprep.subr.mxu1 %v13866_v7 }
 0x6a9   : > { %v6409_v43 = vmax.f32 %v6279_v35, 0.0  ;;  %v6274_v28 = vadd.f32 %v12682_v10, %v6273_v9  ;;  %8021 = vmatpush2.msra.mxu1 %v5949_v29  ;;  %v5945_v9 = vld [vmem:[%s13860_s15 + $0x90] sm:$0xff] }
 0x6aa   : > { %6604 = vrot.lane.b32.xlu1 %v6535_v62, %s9586_s20  ;;  %8022 = vmatprep.subr.mxu1 %v13866_v7 }
 0x6ab   : > { %6441 = vst.msk [vmem:[#allocation2 + $0x69] sm:$0xff] %vm522_vm2, %v6409_v43  ;;  %7113 = vst.msk [vmem:[#allocation3 + $0xb0] sm:$0xff] %vm522_vm2, %v6409_v43  ;;  %v6408_v49 = vmax.f32 %v6274_v28, 0.0  ;;  %8023 = vmatpush2.msra.mxu1 %v5948_v48 }
 0x6ac   : > { %7588 = vrot.lane.b32.xlu0 %v6535_v62, %s9587_s27  ;;  %8024 = vmatprep.subr.mxu1 %v13866_v7 }
 0x6ad   : > { %6440 = vst.msk [vmem:[#allocation2 + $0x61] sm:$0xff] %vm522_vm2, %v6408_v49  ;;  %7112 = vst.msk [vmem:[#allocation3 + $0x98] sm:$0xff] %vm522_vm2, %v6408_v49  ;;  %8025 = vmatpush2.msra.mxu1 %v5947_v5  ;;  %v5943_v49 = vld [vmem:[%s13860_s15 + $0x80] sm:$0xff] }
 0x6ae   : > { %7208 = vrot.lane.b32.xlu1 %v12749_v40, %s9586_s20  ;;  %8026 = vmatprep.subr.mxu1 %v13866_v7 }
 0x6af   : > { %v5842_v54 = vpop.permute.xlu0 %5841  ;;  %8027 = vmatpush2.msra.mxu1 %v5946_v39 }
 0x6b0   : > { %v12846_v32 = vsel %vm3418_vm8, %v11380_v20, %v5842_v54  ;;  %6602 = vrot.lane.b32.xlu0 %v6534_v21, %s9586_s20  ;;  %8028 = vmatprep.subr.mxu1 %v13866_v7 }
 0x6b1   : > { %v5993_v36 = vmul.f32 %v12422_v31, %v12846_v32  ;;  %8029 = vmatpush2.msra.mxu1 %v5945_v9 }
 0x6b2   : > { %v12838_v41 = vld [vmem:[#allocation2 + $0x6a] sm:$0xff]  ;;  %6796 = vrot.lane.b32.xlu1 %v12749_v40, %s9585_s19  ;;  %8030 = vmatprep.subr.mxu1 %v13866_v7 }
 0x6b3   : > { %7751 = vst.msk [vmem:[#allocation3 + $0x88] sm:$0xff] %vm522_vm2, %v12838_v41  ;;  %v6031_v1 = vadd.f32 %v12435_v57, %v5993_v36  ;;  %v5944_v40 = vld [vmem:[%s13860_s15 + $0x88] sm:$0xff] }
 0x6b4   : > { %v12853_v35 = vld [vmem:[#allocation2 + $0x68] sm:$0xff]  ;;  %v12855_v33 = vld [vmem:[#allocation2 + $0x60] sm:$0xff]  ;;  %7396 = vrot.lane.b32.xlu0 %v12762_v25, %s9585_s19  ;;  %8031 = vmatpush2.msra.mxu1 %v5944_v40 }
 0x6b5   : > { %v12860_v20 = vld [vmem:[#allocation2 + $0x62] sm:$0xff]  ;;  %6507 = vst.msk [vmem:[#allocation3 + $0xd8] sm:$0xff] %vm522_vm2, %v12853_v35  ;;  %6506 = vst.msk [vmem:[#allocation3 + $0xc0] sm:$0xff] %vm522_vm2, %v12855_v33  ;;  %v5844_v43 = vpop.permute.xlu1 %5843  ;;  %v6063_v28 = vmax.f32 %v6031_v1, 0.0  ;;  %8032 = vmatprep.subr.mxu1 %v13866_v7 }
 0x6b6   : > { %7750 = vst.msk [vmem:[#allocation3 + $0x70] sm:$0xff] %vm522_vm2, %v12860_v20  ;;  %v12880_v53 = vsel %vm3418_vm8, %v11428_v8, %v5844_v43  ;;  %7394 = vrot.lane.b32.xlu1 %v12764_v56, %s9585_s19  ;;  %8033 = vmatpush2.msra.mxu1 %v5943_v49  ;;  %v6536_v36 = vld [vmem:[#allocation2 + $0x49] sm:$0xff] }
 0x6b7   : > { %v5994_v62 = vmul.f32 %v12422_v31, %v12880_v53  ;;  %9390 = vmatprep.mubr.msk.f32.mxu0 %vm6077_vm9, %v6063_v28 }
 0x6b8   : > { %7206 = vrot.lane.b32.xlu0 %v12768_v2, %s9586_s20 }
 0x6b9   : > { %v6032_v8 = vadd.f32 %v12435_v57, %v5994_v62 }
 0x6ba   : > { %7586 = vrot.lane.b32.xlu1 %v6534_v21, %s9587_s27 }
 0x6bb   : > { %v6064_v29 = vmax.f32 %v6032_v8, 0.0 }
 0x6bc   : > { %6982 = vrot.lane.b32.xlu0 %v12764_v56, %s9587_s27  ;;  %v6537_v56 = vld [vmem:[#allocation2 + $0x51] sm:$0xff] }
 0x6bd   : > { %9391 = vmatmul.mubr.msk.f32.gmra.mxu0 %vm6077_vm9, %v6064_v29 }
 0x6be   : > { %v9368_v48 = vpop.f32.mrf.mxu0  ;;  %6984 = vrot.lane.b32.xlu1 %v12762_v25, %s9587_s27 }
 0x6bf   : > { %v6289_v5 = vadd.f32 %v9368_v48, %v12682_v10 }
 0x6c0   : > { %v6283_v54 = vpop.f32.mrf.mxu0  ;;  %6794 = vrot.lane.b32.xlu0 %v12768_v2, %s9585_s19 }
 0x6c1   : > { %v6411_v39 = vmax.f32 %v6289_v5, 0.0  ;;  %v6284_v7 = vadd.f32 %v12682_v10, %v6283_v54 }
 0x6c2   : > { %6608 = vrot.lane.b32.xlu1 %v6537_v56, %s9586_s20 }
 0x6c3   : > { %6443 = vst.msk [vmem:[#allocation2 + $0x81] sm:$0xff] %vm522_vm2, %v6411_v39  ;;  %7115 = vst.msk [vmem:[#allocation3 + $0xe0] sm:$0xff] %vm522_vm2, %v6411_v39  ;;  %v6410_v21 = vmax.f32 %v6284_v7, 0.0  ;;  %v6538_v7 = vld [vmem:[#allocation2 + $0x61] sm:$0xff] }
 0x6c4   : > { %7592 = vrot.lane.b32.xlu0 %v6537_v56, %s9587_s27 }
 0x6c5   : > { %6442 = vst.msk [vmem:[#allocation2 + $0x79] sm:$0xff] %vm522_vm2, %v6410_v21  ;;  %7114 = vst.msk [vmem:[#allocation3 + $0xc8] sm:$0xff] %vm522_vm2, %v6410_v21 }
 0x6c6   : > { %7212 = vrot.lane.b32.xlu1 %v12778_v16, %s9586_s20 }
 0x6c7   : > { %v5846_v25 = vpop.permute.xlu0 %5845 }
 0x6c8   : > { %v12917_v1 = vsel %vm3418_vm8, %v11501_v12, %v5846_v25  ;;  %6606 = vrot.lane.b32.xlu0 %v6536_v36, %s9586_s20 }
 0x6c9   : > { %v5995_v2 = vmul.f32 %v12422_v31, %v12917_v1 }
 0x6ca   : > { %v12913_v9 = vld [vmem:[#allocation2 + $0x82] sm:$0xff]  ;;  %6800 = vrot.lane.b32.xlu1 %v12778_v16, %s9585_s19 }
 0x6cb   : > { %7753 = vst.msk [vmem:[#allocation3 + $0xb8] sm:$0xff] %vm522_vm2, %v12913_v9  ;;  %v6033_v12 = vadd.f32 %v12435_v57, %v5995_v2 }
 0x6cc   : > { %v12924_v40 = vld [vmem:[#allocation2 + $0x80] sm:$0xff]  ;;  %v12926_v43 = vld [vmem:[#allocation2 + $0x78] sm:$0xff]  ;;  %7400 = vrot.lane.b32.xlu0 %v12789_v6, %s9585_s19 }
 0x6cd   : > { %v12930_v28 = vld [vmem:[#allocation2 + $0x7a] sm:$0xff]  ;;  %6509 = vst.msk [vmem:[#allocation3 + $0x108] sm:$0xff] %vm522_vm2, %v12924_v40  ;;  %6508 = vst.msk [vmem:[#allocation3 + $0xf0] sm:$0xff] %vm522_vm2, %v12926_v43  ;;  %v5848_v49 = vpop.permute.xlu1 %5847  ;;  %v6065_v62 = vmax.f32 %v6033_v12, 0.0 }
 0x6ce   : > { %7752 = vst.msk [vmem:[#allocation3 + $0xa0] sm:$0xff] %vm522_vm2, %v12930_v28  ;;  %v12943_v16 = vsel %vm3418_vm8, %v11567_v45, %v5848_v49  ;;  %7398 = vrot.lane.b32.xlu1 %v12791_v19, %s9585_s19  ;;  %v9574_v12 = vld [vmem:[%s13857_s12] ss:$0 sm:$0xff] }
 0x6cf   : > { %v5996_v8 = vmul.f32 %v12422_v31, %v12943_v16  ;;  %9393 = vmatprep.mubr.msk.f32.mxu0 %vm6077_vm9, %v6065_v62 }
 0x6d0   : > { %7210 = vrot.lane.b32.xlu0 %v12796_v27, %s9586_s20 }
 0x6d1   : > { %v6034_v29 = vadd.f32 %v12435_v57, %v5996_v8 }
 0x6d2   : > { %7590 = vrot.lane.b32.xlu1 %v6536_v36, %s9587_s27 }
 0x6d3   : > { %v6066_v48 = vmax.f32 %v6034_v29, 0.0 }
 0x6d4   : > { %6986 = vrot.lane.b32.xlu0 %v12791_v19, %s9587_s27  ;;  %v6539_v19 = vld [vmem:[#allocation2 + $0x69] sm:$0xff] }
 0x6d5   : > { %9394 = vmatmul.mubr.msk.f32.gmra.mxu0 %vm6077_vm9, %v6066_v48 }
 0x6d6   : > { %v9371_v5 = vpop.f32.mrf.mxu0  ;;  %6988 = vrot.lane.b32.xlu1 %v12789_v6, %s9587_s27 }
 0x6d7   : > { %v6299_v45 = vadd.f32 %v9371_v5, %v12682_v10 }
 0x6d8   : > { %v6293_v31 = vpop.f32.mrf.mxu0  ;;  %6798 = vrot.lane.b32.xlu0 %v12796_v27, %s9585_s19  ;;  %v9573_v27 = vld [vmem:[%s13856_s11] ss:$0 sm:$0xff] }
 0x6d9   : > { %v6413_v54 = vmax.f32 %v6299_v45, 0.0  ;;  %v6294_v57 = vadd.f32 %v12682_v10, %v6293_v31 }
 0x6da   : > { %6612 = vrot.lane.b32.xlu1 %v6539_v19, %s9586_s20 }
 0x6db   : > { %6445 = vst.msk [vmem:[#allocation2 + $0x99] sm:$0xff] %vm522_vm2, %v6413_v54  ;;  %7117 = vst.msk [vmem:[#allocation3 + $0x110] sm:$0xff] %vm522_vm2, %v6413_v54  ;;  %v6412_v39 = vmax.f32 %v6294_v57, 0.0 }
 0x6dc   : > { %7596 = vrot.lane.b32.xlu0 %v6539_v19, %s9587_s27 }
 0x6dd   : > { %6444 = vst.msk [vmem:[#allocation2 + $0x91] sm:$0xff] %vm522_vm2, %v6412_v39  ;;  %7116 = vst.msk [vmem:[#allocation3 + $0xf8] sm:$0xff] %vm522_vm2, %v6412_v39 }
 0x6de   : > { %7216 = vrot.lane.b32.xlu1 %v12838_v41, %s9586_s20 }
 0x6df   : > { %v5850_v6 = vpop.permute.xlu0 %5849 }
 0x6e0   : > { %v12975_v56 = vsel %vm3418_vm8, %v11604_v60, %v5850_v6  ;;  %6610 = vrot.lane.b32.xlu0 %v6538_v7, %s9586_s20 }
 0x6e1   : > { %v5997_v25 = vmul.f32 %v9573_v27, %v12975_v56 }
 0x6e2   : > { %v12971_v21 = vld [vmem:[#allocation2 + $0x9a] sm:$0xff]  ;;  %6804 = vrot.lane.b32.xlu1 %v12838_v41, %s9585_s19 }
 0x6e3   : > { %7755 = vst.msk [vmem:[#allocation3 + $0xe8] sm:$0xff] %vm522_vm2, %v12971_v21  ;;  %v6035_v49 = vadd.f32 %v9574_v12, %v5997_v25 }
 0x6e4   : > { %v12984_v36 = vld [vmem:[#allocation2 + $0x92] sm:$0xff]  ;;  %v5852_v62 = vpop.permute.xlu1 %5851  ;;  %7404 = vrot.lane.b32.xlu0 %v12853_v35, %s9585_s19 }
 0x6e5   : > { %v12986_v2 = vld [vmem:[#allocation2 + $0x98] sm:$0xff]  ;;  %7754 = vst.msk [vmem:[#allocation3 + $0xd0] sm:$0xff] %vm522_vm2, %v12984_v36  ;;  %v12992_v60 = vld [vmem:[#allocation2 + $0x90] sm:$0xff]  ;;  %v6067_v41 = vmax.f32 %v6035_v49, 0.0  ;;  %v13005_v8 = vsel %vm3418_vm8, %v11625_v44, %v5852_v62 }
 0x6e6   : > { %6511 = vst.msk [vmem:[#allocation3 + $0x138] sm:$0xff] %vm522_vm2, %v12986_v2  ;;  %6510 = vst.msk [vmem:[#allocation3 + $0x120] sm:$0xff] %vm522_vm2, %v12992_v60  ;;  %v5998_v29 = vmul.f32 %v9573_v27, %v13005_v8  ;;  %7402 = vrot.lane.b32.xlu1 %v12855_v33, %s9585_s19 }
 0x6e7   : > { %9396 = vmatprep.mubr.msk.f32.mxu0 %vm6077_vm9, %v6067_v41 }
 0x6e8   : > { %v6036_v48 = vadd.f32 %v9574_v12, %v5998_v29  ;;  %7214 = vrot.lane.b32.xlu0 %v12860_v20, %s9586_s20 }
 0x6ea   : > { %v5854_v5 = vpop.permute.xlu0 %5853  ;;  %v6068_v45 = vmax.f32 %v6036_v48, 0.0  ;;  %7594 = vrot.lane.b32.xlu1 %v6538_v7, %s9587_s27 }
 0x6eb   : > { %v13015_v31 = vsel %vm3418_vm8, %v11662_v37, %v5854_v5  ;;  %v7783_v5 = vld [vmem:[#allocation3 + $0x28] sm:$0xff] }
 0x6ec   : > { %v5999_v44 = vmul.f32 %v9573_v27, %v13015_v31  ;;  %6990 = vrot.lane.b32.xlu0 %v12855_v33, %s9587_s27  ;;  %9397 = vmatmul.mubr.msk.f32.gmra.mxu0 %vm6077_vm9, %v6068_v45 }
 0x6ed   : > { %v9374_v54 = vpop.f32.mrf.mxu0 }
 0x6ee   : > { %v6309_v57 = vadd.f32 %v9374_v54, %v12682_v10  ;;  %v6037_v39 = vadd.f32 %v9574_v12, %v5999_v44  ;;  %6992 = vrot.lane.b32.xlu1 %v12853_v35, %s9587_s27  ;;  %v6541_v35 = vld [vmem:[#allocation2 + $0x81] sm:$0xff]  ;;  %v7786_v44 = vld [vmem:[#allocation3 + $0x40] sm:$0xff] }
 0x6ef   : > { %v6303_v19 = vpop.f32.mrf.mxu0  ;;  %v5856_v7 = vpop.permute.xlu1 %5855  ;;  %v7792_v54 = vld [vmem:[#allocation3 + $0x70] sm:$0xff] }
 0x6f0   : > { %v6415_v6 = vmax.f32 %v6309_v57, 0.0  ;;  %v6304_v37 = vadd.f32 %v12682_v10, %v6303_v19  ;;  %v6069_v25 = vmax.f32 %v6037_v39, 0.0  ;;  %v13030_v33 = vsel %vm3418_vm8, %v11686_v17, %v5856_v7  ;;  %6802 = vrot.lane.b32.xlu0 %v12860_v20, %s9585_s19  ;;  %v6540_v17 = vld [vmem:[#allocation2 + $0x79] sm:$0xff]  ;;  %v7798_v19 = vld [vmem:[#allocation3 + $0xa0] sm:$0xff] }
 0x6f1   : > { %v6000_v62 = vmul.f32 %v9573_v27, %v13030_v33  ;;  %v7780_v20 = vld [vmem:[#allocation3 + $0x10] sm:$0xff]  ;;  %v7795_v57 = vld [vmem:[#allocation3 + $0x88] sm:$0xff] }
 0x6f2   : > { %6447 = vst.msk [vmem:[#allocation2 + $0xb1] sm:$0xff] %vm522_vm2, %v6415_v6  ;;  %7119 = vst.msk [vmem:[#allocation3 + $0x140] sm:$0xff] %vm522_vm2, %v6415_v6  ;;  %v6414_v49 = vmax.f32 %v6304_v37, 0.0  ;;  %9399 = vmatprep.mubr.msk.f32.mxu0 %vm6077_vm9, %v6069_v25  ;;  %6616 = vrot.lane.b32.xlu1 %v6541_v35, %s9586_s20 }
 0x6f3   : > { %v6038_v41 = vadd.f32 %v9574_v12, %v6000_v62  ;;  %v7804_v62 = vld [vmem:[#allocation3 + $0xd0] sm:$0xff] }
 0x6f4   : > { %6446 = vst.msk [vmem:[#allocation2 + $0xa9] sm:$0xff] %vm522_vm2, %v6414_v49  ;;  %7118 = vst.msk [vmem:[#allocation3 + $0x128] sm:$0xff] %vm522_vm2, %v6414_v49  ;;  %7600 = vrot.lane.b32.xlu0 %v6541_v35, %s9587_s27  ;;  %v7801_v49 = vld [vmem:[#allocation3 + $0xb8] sm:$0xff]  ;;  %v6543_v35 = vld [vmem:[#allocation2 + $0x99] sm:$0xff] }
 0x6f5   : > { %v6070_v29 = vmax.f32 %v6038_v41, 0.0 }
 0x6f6   : > { %7220 = vrot.lane.b32.xlu1 %v12913_v9, %s9586_s20 }
 0x6f7   : > { %9400 = vmatmul.mubr.msk.f32.gmra.mxu0 %vm6077_vm9, %v6070_v29 }
 0x6f8   : > { %6614 = vrot.lane.b32.xlu0 %v6540_v17, %s9586_s20  ;;  %9410 = vmatprep.mubr.msk.f32.mxu0 %vm522_vm2, %v7780_v20  ;;  %v6542_v20 = vld [vmem:[#allocation2 + $0x91] sm:$0xff] }
 0x6f9   : > { %v13043_v27 = vld [vmem:[#allocation2 + $0xb2] sm:$0xff] }
 0x6fa   : > { %7757 = vst.msk [vmem:[#allocation3 + $0x118] sm:$0xff] %vm522_vm2, %v13043_v27  ;;  %6808 = vrot.lane.b32.xlu1 %v12913_v9, %s9585_s19  ;;  %v7789_v9 = vld [vmem:[#allocation3 + $0x58] sm:$0xff] }
 0x6fb   : > { %v13049_v12 = vld [vmem:[#allocation2 + $0xaa] sm:$0xff]  ;;  %9411 = vmatmul.mubr.msk.f32.vlgmr.msra.gmra.mxu0 %vm522_vm2, %v7783_v5 }
 0x6fc   : > { %v13051_v48 = vld [vmem:[#allocation2 + $0xb0] sm:$0xff]  ;;  %7756 = vst.msk [vmem:[#allocation3 + $0x100] sm:$0xff] %vm522_vm2, %v13049_v12  ;;  %v13057_v45 = vld [vmem:[#allocation2 + $0xa8] sm:$0xff]  ;;  %7408 = vrot.lane.b32.xlu0 %v12924_v40, %s9585_s19  ;;  %9413 = vmatprep.mubr.msk.f32.mxu0 %vm522_vm2, %v7786_v44 }
 0x6fd   : > { %6513 = vst.msk [vmem:[#allocation3 + $0x168] sm:$0xff] %vm522_vm2, %v13051_v48  ;;  %6512 = vst.msk [vmem:[#allocation3 + $0x150] sm:$0xff] %vm522_vm2, %v13057_v45 }
 0x6fe   : > { %7406 = vrot.lane.b32.xlu1 %v12926_v43, %s9585_s19 }
 0x6ff   : > { %9414 = vmatmul.mubr.msk.f32.gmra.mxu0 %vm522_vm2, %v7789_v9 }
 0x700   : > { %7218 = vrot.lane.b32.xlu0 %v12930_v28, %s9586_s20  ;;  %9416 = vmatprep.mubr.msk.f32.mxu0 %vm522_vm2, %v7792_v54 }
 0x702   : > { %7598 = vrot.lane.b32.xlu1 %v6540_v17, %s9587_s27  ;;  %v7813_v17 = vld [vmem:[#allocation3 + $0x118] sm:$0xff] }
 0x703   : > { %9417 = vmatmul.mubr.msk.f32.gmra.mxu0 %vm522_vm2, %v7795_v57  ;;  %v7810_v41 = vld [vmem:[#allocation3 + $0x100] sm:$0xff] }
 0x704   : > { %6994 = vrot.lane.b32.xlu0 %v12926_v43, %s9587_s27  ;;  %9419 = vmatprep.mubr.msk.f32.mxu0 %vm522_vm2, %v7798_v19 }
 0x705   : > { %v9377_v39 = vpop.f32.mrf.mxu0 }
 0x706   : > { %v6319_v6 = vadd.f32 %v9377_v39, %v12682_v10  ;;  %6996 = vrot.lane.b32.xlu1 %v12924_v40, %s9587_s27  ;;  %v7807_v40 = vld [vmem:[#allocation3 + $0xe8] sm:$0xff] }
 0x707   : > { %v6313_v37 = vpop.f32.mrf.mxu0  ;;  %9420 = vmatmul.mubr.msk.f32.gmra.mxu0 %vm522_vm2, %v7801_v49 }
 0x708   : > { %v6417_v25 = vmax.f32 %v6319_v6, 0.0  ;;  %v6314_v7 = vadd.f32 %v12682_v10, %v6313_v37  ;;  %6806 = vrot.lane.b32.xlu0 %v12930_v28, %s9585_s19  ;;  %9422 = vmatprep.mubr.msk.f32.mxu0 %vm522_vm2, %v7804_v62 }
 0x70a   : > { %6449 = vst.msk [vmem:[#allocation2 + $0xc9] sm:$0xff] %vm522_vm2, %v6417_v25  ;;  %7121 = vst.msk [vmem:[#allocation3 + $0x170] sm:$0xff] %vm522_vm2, %v6417_v25  ;;  %v6416_v43 = vmax.f32 %v6314_v7, 0.0  ;;  %6620 = vrot.lane.b32.xlu1 %v6543_v35, %s9586_s20 }
 0x70b   : > { %9423 = vmatmul.mubr.msk.f32.gmra.mxu0 %vm522_vm2, %v7807_v40 }
 0x70c   : > { %6448 = vst.msk [vmem:[#allocation2 + $0xc1] sm:$0xff] %vm522_vm2, %v6416_v43  ;;  %7120 = vst.msk [vmem:[#allocation3 + $0x158] sm:$0xff] %vm522_vm2, %v6416_v43  ;;  %v6601_v29 = vpop.permute.xlu1 %6600  ;;  %7604 = vrot.lane.b32.xlu0 %v6543_v35, %s9587_s27  ;;  %9425 = vmatprep.mubr.msk.f32.mxu0 %vm522_vm2, %v7810_v41 }
 0x70d   : > { %6693 = vst.msk [vmem:[#allocation3 + $0x48] sm:$0xff] %vm1369_vm5, %v6601_v29 }
 0x70e   : > { %7224 = vrot.lane.b32.xlu1 %v12971_v21, %s9586_s20  ;;  %v6599_v28 = vpop.permute.xlu0 %6598 }
 0x70f   : > { %6692 = vst.msk [vmem:[#allocation3 + $0x30] sm:$0xff] %vm1369_vm5, %v6599_v28  ;;  %9426 = vmatmul.mubr.msk.f32.gmra.mxu0 %vm522_vm2, %v7813_v17 }
 0x710   : > { %v7205_v44 = vpop.permute.xlu1 %7204  ;;  %6618 = vrot.lane.b32.xlu0 %v6542_v20, %s9586_s20 }
 0x711   : > { %v13099_v5 = vld [vmem:[#allocation2 + $0xca] sm:$0xff]  ;;  %7299 = vst.msk [vmem:[#allocation3 + $0x20] sm:$0xff] %vm1369_vm5, %v7205_v44 }
 0x712   : > { %7759 = vst.msk [vmem:[#allocation3 + $0x148] sm:$0xff] %vm522_vm2, %v13099_v5  ;;  %6812 = vrot.lane.b32.xlu1 %v12971_v21, %s9585_s19  ;;  %v7203_v57 = vpop.permute.xlu0 %7202  ;;  %v6544_v44 = vld [vmem:[#allocation2 + $0xa9] sm:$0xff] }
 0x713   : > { %v13105_v9 = vld [vmem:[#allocation2 + $0xc2] sm:$0xff]  ;;  %7298 = vst.msk [vmem:[#allocation3 + $0x8] sm:$0xff] %vm1369_vm5, %v7203_v57 }
 0x714   : > { %v13107_v54 = vld [vmem:[#allocation2 + $0xc8] sm:$0xff]  ;;  %7758 = vst.msk [vmem:[#allocation3 + $0x130] sm:$0xff] %vm522_vm2, %v13105_v9  ;;  %v13113_v39 = vld [vmem:[#allocation2 + $0xc0] sm:$0xff]  ;;  %v6793_v19 = vpop.permute.xlu1 %6792  ;;  %7412 = vrot.lane.b32.xlu0 %v12986_v2, %s9585_s19 }
 0x715   : > { %6515 = vst.msk [vmem:[#allocation3 + $0x198] sm:$0xff] %vm522_vm2, %v13107_v54  ;;  %6514 = vst.msk [vmem:[#allocation3 + $0x180] sm:$0xff] %vm522_vm2, %v13113_v39 }
 0x716   : > { %6885 = vst.msk [vmem:[#allocation3 + $0x48] sm:$0xff] %vm1562_vm6, %v6793_v19  ;;  %7410 = vrot.lane.b32.xlu1 %v12992_v60, %s9585_s19  ;;  %v6979_v21 = vpop.permute.xlu0 %6978 }
 0x717   : > { %7074 = vst.msk [vmem:[#allocation3] sm:$0xff] %vm1755_vm7, %v6979_v21 }
 0x718   : > { %v6981_v6 = vpop.permute.xlu1 %6980  ;;  %7222 = vrot.lane.b32.xlu0 %v12984_v36, %s9586_s20 }
 0x719   : > { %7075 = vst.msk [vmem:[#allocation3 + $0x18] sm:$0xff] %vm1755_vm7, %v6981_v6  ;;  %v7819_v7 = vld [vmem:[#allocation3 + $0x148] sm:$0xff] }
 0x71a   : > { %7602 = vrot.lane.b32.xlu1 %v6542_v20, %s9587_s27  ;;  %v6791_v25 = vpop.permute.xlu0 %6790 }
 0x71b   : > { %v7816_v37 = vld [vmem:[#allocation3 + $0x130] sm:$0xff]  ;;  %6884 = vst.msk [vmem:[#allocation3 + $0x30] sm:$0xff] %vm1562_vm6, %v6791_v25 }
 0x71c   : > { %9428 = vmatprep.mubr.msk.f32.mxu0 %vm522_vm2, %v7816_v37  ;;  %v6605_v62 = vpop.permute.xlu1 %6604  ;;  %6998 = vrot.lane.b32.xlu0 %v12992_v60, %s9587_s27  ;;  %v6545_v60 = vld [vmem:[#allocation2 + $0xb1] sm:$0xff] }
 0x71d   : > { %v9380_v49 = vpop.f32.mrf.mxu0  ;;  %9429 = vmatmul.mubr.msk.f32.gmra.mxu0 %vm522_vm2, %v7819_v7  ;;  %6695 = vst.msk [vmem:[#allocation3 + $0x78] sm:$0xff] %vm1369_vm5, %v6605_v62 }
 0x71e   : > { %v6329_v43 = vadd.f32 %v9380_v49, %v12682_v10  ;;  %7000 = vrot.lane.b32.xlu1 %v12986_v2, %s9587_s27  ;;  %v7589_v29 = vpop.permute.xlu0 %7588 }
 0x71f   : > { %v6323_v35 = vpop.f32.mrf.mxu0 }
 0x720   : > { %v6419_v40 = vmax.f32 %v6329_v43, 0.0  ;;  %v6324_v41 = vadd.f32 %v12682_v10, %v6323_v35  ;;  %v7209_v17 = vpop.permute.xlu1 %7208  ;;  %6810 = vrot.lane.b32.xlu0 %v12984_v36, %s9585_s19 }
 0x721   : > { %7301 = vst.msk [vmem:[#allocation3 + $0x50] sm:$0xff] %vm1369_vm5, %v7209_v17 }
 0x722   : > { %6451 = vst.msk [vmem:[#allocation2 + $0xe1] sm:$0xff] %vm522_vm2, %v6419_v40  ;;  %7123 = vst.msk [vmem:[#allocation3 + $0x1a0] sm:$0xff] %vm522_vm2, %v6419_v40  ;;  %v6418_v28 = vmax.f32 %v6324_v41, 0.0  ;;  %6624 = vrot.lane.b32.xlu1 %v6545_v60, %s9586_s20  ;;  %v6603_v2 = vpop.permute.xlu0 %6602 }
 0x723   : > { %6694 = vst.msk [vmem:[#allocation3 + $0x60] sm:$0xff] %vm1369_vm5, %v6603_v2 }
 0x724   : > { %6450 = vst.msk [vmem:[#allocation2 + $0xd9] sm:$0xff] %vm522_vm2, %v6418_v28  ;;  %7122 = vst.msk [vmem:[#allocation3 + $0x188] sm:$0xff] %vm522_vm2, %v6418_v28  ;;  %v6797_v20 = vpop.permute.xlu1 %6796  ;;  %7608 = vrot.lane.b32.xlu0 %v6545_v60, %s9587_s27  ;;  %v7778_v60 = vld [vmem:[#allocation3] sm:$0xff] }
 0x725   : > { %6887 = vst.msk [vmem:[#allocation3 + $0x78] sm:$0xff] %vm1562_vm6, %v6797_v20 }
 0x726   : > { %7228 = vrot.lane.b32.xlu1 %v13043_v27, %s9586_s20  ;;  %v7397_v36 = vpop.permute.xlu0 %7396 }
 0x727   : > { %7491 = vst.msk [vmem:[#allocation3 + $0x20] sm:$0xff] %vm1562_vm6, %v7397_v36 }
 0x728   : > { %7683 = vst.msk [vmem:[#allocation3 + $0x20] sm:$0xff] %vm1755_vm7, %v7589_v29  ;;  %v7395_v19 = vpop.permute.xlu1 %7394  ;;  %6622 = vrot.lane.b32.xlu0 %v6544_v44, %s9586_s20 }
 0x729   : > { %v13154_v57 = vld [vmem:[#allocation2 + $0xe2] sm:$0xff]  ;;  %7490 = vst.msk [vmem:[#allocation3 + $0x8] sm:$0xff] %vm1562_vm6, %v7395_v19 }
 0x72a   : > { %7761 = vst.msk [vmem:[#allocation3 + $0x178] sm:$0xff] %vm522_vm2, %v13154_v57  ;;  %6816 = vrot.lane.b32.xlu1 %v13043_v27, %s9585_s19  ;;  %v7207_v37 = vpop.permute.xlu0 %7206 }
 0x72b   : > { %v13161_v21 = vld [vmem:[#allocation2 + $0xda] sm:$0xff]  ;;  %7300 = vst.msk [vmem:[#allocation3 + $0x38] sm:$0xff] %vm1369_vm5, %v7207_v37  ;;  %v6547_v37 = vld [vmem:[#allocation2 + $0xc9] sm:$0xff] }
 0x72c   : > { %v13163_v6 = vld [vmem:[#allocation2 + $0xe0] sm:$0xff]  ;;  %7760 = vst.msk [vmem:[#allocation3 + $0x160] sm:$0xff] %vm522_vm2, %v13161_v21  ;;  %v13169_v25 = vld [vmem:[#allocation2 + $0xd8] sm:$0xff]  ;;  %v7587_v7 = vpop.permute.xlu1 %7586  ;;  %7416 = vrot.lane.b32.xlu0 %v13051_v48, %s9585_s19 }
 0x72d   : > { %6517 = vst.msk [vmem:[#allocation3 + $0x1c8] sm:$0xff] %vm522_vm2, %v13163_v6  ;;  %6516 = vst.msk [vmem:[#allocation3 + $0x1b0] sm:$0xff] %vm522_vm2, %v13169_v25 }
 0x72e   : > { %7682 = vst.msk [vmem:[#allocation3 + $0x8] sm:$0xff] %vm1755_vm7, %v7587_v7  ;;  %7414 = vrot.lane.b32.xlu1 %v13057_v45, %s9585_s19  ;;  %v6983_v27 = vpop.permute.xlu0 %6982  ;;  %v7781_v7 = vld [vmem:[#allocation3 + $0x18] sm:$0xff] }
 0x72f   : > { %7076 = vst.msk [vmem:[#allocation3 + $0x30] sm:$0xff] %vm1755_vm7, %v6983_v27  ;;  %v6546_v27 = vld [vmem:[#allocation2 + $0xc1] sm:$0xff] }
 0x730   : > { %v6985_v49 = vpop.permute.xlu1 %6984  ;;  %7226 = vrot.lane.b32.xlu0 %v13049_v12, %s9586_s20 }
 0x731   : > { %7077 = vst.msk [vmem:[#allocation3 + $0x48] sm:$0xff] %vm1755_vm7, %v6985_v49  ;;  %v7825_v35 = vld [vmem:[#allocation3 + $0x178] sm:$0xff] }
 0x732   : > { %7606 = vrot.lane.b32.xlu1 %v6544_v44, %s9587_s27  ;;  %v6795_v43 = vpop.permute.xlu0 %6794  ;;  %v7782_v44 = vld [vmem:[#allocation3 + $0x20] sm:$0xff] }
 0x733   : > { %v7822_v62 = vld [vmem:[#allocation3 + $0x160] sm:$0xff]  ;;  %6886 = vst.msk [vmem:[#allocation3 + $0x60] sm:$0xff] %vm1562_vm6, %v6795_v43 }
 0x734   : > { %9431 = vmatprep.mubr.msk.f32.mxu0 %vm522_vm2, %v7822_v62  ;;  %v6609_v41 = vpop.permute.xlu1 %6608  ;;  %7002 = vrot.lane.b32.xlu0 %v13057_v45, %s9587_s27 }
 0x735   : > { %v9383_v40 = vpop.f32.mrf.mxu0  ;;  %9432 = vmatmul.mubr.msk.f32.gmra.mxu0 %vm522_vm2, %v7825_v35  ;;  %v7779_v28 = vld [vmem:[#allocation3 + $0x8] sm:$0xff]  ;;  %6697 = vst.msk [vmem:[#allocation3 + $0xa8] sm:$0xff] %vm1369_vm5, %v6609_v41 }
 0x736   : > { %v6339_v29 = vadd.f32 %v9383_v40, %v12682_v10  ;;  %8034 = vmatprep.mubr.f32.mxu1 %v7779_v28  ;;  %7004 = vrot.lane.b32.xlu1 %v13051_v48, %s9587_s27  ;;  %v7593_v36 = vpop.permute.xlu0 %7592 }
 0x737   : > { %v6333_v17 = vpop.f32.mrf.mxu0  ;;  %8035 = vmatmul.mubr.f32.vlgmr.msra.gmra.mxu1 %v7778_v60 }
 0x738   : > { %v6421_v2 = vmax.f32 %v6339_v29, 0.0  ;;  %v6334_v20 = vadd.f32 %v12682_v10, %v6333_v17  ;;  %8039 = vmatprep.mubr.f32.mxu1 %v7782_v44  ;;  %v7213_v19 = vpop.permute.xlu1 %7212  ;;  %6814 = vrot.lane.b32.xlu0 %v13049_v12, %s9585_s19  ;;  %v13248_v44 = vld [vmem:[%s13859_s14] ss:$0 sm:$0xff] }
 0x739   : > { %7303 = vst.msk [vmem:[#allocation3 + $0x80] sm:$0xff] %vm1369_vm5, %v7213_v19 }
 0x73a   : > { %6453 = vst.msk [vmem:[#allocation2 + $0xf9] sm:$0xff] %vm522_vm2, %v6421_v2  ;;  %7125 = vst.msk [vmem:[#allocation3 + $0x1d0] sm:$0xff] %vm522_vm2, %v6421_v2  ;;  %v6420_v45 = vmax.f32 %v6334_v20, 0.0  ;;  %6628 = vrot.lane.b32.xlu1 %v6547_v37, %s9586_s20  ;;  %v6607_v10 = vpop.permute.xlu0 %6606 }
 0x73b   : > { %8040 = vmatmul.mubr.f32.gmra.mxu1 %v7781_v7  ;;  %6696 = vst.msk [vmem:[#allocation3 + $0x90] sm:$0xff] %vm1369_vm5, %v6607_v10  ;;  %v7784_v7 = vld [vmem:[#allocation3 + $0x30] sm:$0xff] }
 0x73c   : > { %6452 = vst.msk [vmem:[#allocation2 + $0xf1] sm:$0xff] %vm522_vm2, %v6420_v45  ;;  %7124 = vst.msk [vmem:[#allocation3 + $0x1b8] sm:$0xff] %vm522_vm2, %v6420_v45  ;;  %v6801_v48 = vpop.permute.xlu1 %6800  ;;  %7612 = vrot.lane.b32.xlu0 %v6547_v37, %s9587_s27 }
 0x73d   : > { %6889 = vst.msk [vmem:[#allocation3 + $0xa8] sm:$0xff] %vm1562_vm6, %v6801_v48 }
 0x73e   : > { %7232 = vrot.lane.b32.xlu1 %v13099_v5, %s9586_s20  ;;  %v7401_v12 = vpop.permute.xlu0 %7400 }
 0x73f   : > { %7493 = vst.msk [vmem:[#allocation3 + $0x50] sm:$0xff] %vm1562_vm6, %v7401_v12 }
 0x740   : > { %7685 = vst.msk [vmem:[#allocation3 + $0x50] sm:$0xff] %vm1755_vm7, %v7593_v36  ;;  %v7399_v62 = vpop.permute.xlu1 %7398  ;;  %6626 = vrot.lane.b32.xlu0 %v6546_v27, %s9586_s20 }
 0x741   : > { %v13210_v49 = vld [vmem:[#allocation2 + $0xfa] sm:$0xff]  ;;  %7492 = vst.msk [vmem:[#allocation3 + $0x38] sm:$0xff] %vm1562_vm6, %v7399_v62 }
 0x742   : > { %7763 = vst.msk [vmem:[#allocation3 + $0x1a8] sm:$0xff] %vm522_vm2, %v13210_v49  ;;  %6820 = vrot.lane.b32.xlu1 %v13099_v5, %s9585_s19  ;;  %v7211_v41 = vpop.permute.xlu0 %7210 }
 0x743   : > { %v13217_v43 = vld [vmem:[#allocation2 + $0xf2] sm:$0xff]  ;;  %7302 = vst.msk [vmem:[#allocation3 + $0x68] sm:$0xff] %vm1369_vm5, %v7211_v41  ;;  %v6549_v41 = vld [vmem:[#allocation2 + $0xe1] sm:$0xff] }
 0x744   : > { %v13219_v35 = vld [vmem:[#allocation2 + $0xf8] sm:$0xff]  ;;  %v13221_v40 = vld [vmem:[#allocation2 + $0xf0] sm:$0xff]  ;;  %7762 = vst.msk [vmem:[#allocation3 + $0x190] sm:$0xff] %vm522_vm2, %v13217_v43  ;;  %v7591_v29 = vpop.permute.xlu1 %7590  ;;  %7420 = vrot.lane.b32.xlu0 %v13107_v54, %s9585_s19 }
 0x745   : > { %6519 = vst.msk [vmem:[#allocation3 + $0x1f8] sm:$0xff] %vm522_vm2, %v13219_v35  ;;  %6518 = vst.msk [vmem:[#allocation3 + $0x1e0] sm:$0xff] %vm522_vm2, %v13221_v40 }
 0x746   : > { %7684 = vst.msk [vmem:[#allocation3 + $0x38] sm:$0xff] %vm1755_vm7, %v7591_v29  ;;  %7418 = vrot.lane.b32.xlu1 %v13113_v39, %s9585_s19  ;;  %v6987_v5 = vpop.permute.xlu0 %6986  ;;  %v7787_v29 = vld [vmem:[#allocation3 + $0x48] sm:$0xff] }
 0x747   : > { %7078 = vst.msk [vmem:[#allocation3 + $0x60] sm:$0xff] %vm1755_vm7, %v6987_v5 }
 0x748   : > { %v6989_v28 = vpop.permute.xlu1 %6988  ;;  %7230 = vrot.lane.b32.xlu0 %v13105_v9, %s9586_s20 }
 0x749   : > { %7079 = vst.msk [vmem:[#allocation3 + $0x78] sm:$0xff] %vm1755_vm7, %v6989_v28  ;;  %v7831_v2 = vld [vmem:[#allocation3 + $0x1a8] sm:$0xff] }
 0x74a   : > { %7610 = vrot.lane.b32.xlu1 %v6546_v27, %s9587_s27  ;;  %v6799_v60 = vpop.permute.xlu0 %6798  ;;  %v7788_v27 = vld [vmem:[#allocation3 + $0x50] sm:$0xff] }
 0x74b   : > { %v7828_v17 = vld [vmem:[#allocation3 + $0x190] sm:$0xff]  ;;  %6888 = vst.msk [vmem:[#allocation3 + $0x90] sm:$0xff] %vm1562_vm6, %v6799_v60 }
 0x74c   : > { %9434 = vmatprep.mubr.msk.f32.mxu0 %vm522_vm2, %v7828_v17  ;;  %v6613_v36 = vpop.permute.xlu1 %6612  ;;  %7006 = vrot.lane.b32.xlu0 %v13113_v39, %s9587_s27  ;;  %v6548_v28 = vld [vmem:[#allocation2 + $0xd9] sm:$0xff] }
 0x74d   : > { %v9386_v20 = vpop.f32.mrf.mxu0  ;;  %9435 = vmatmul.mubr.msk.f32.gmra.mxu0 %vm522_vm2, %v7831_v2  ;;  %v7785_v19 = vld [vmem:[#allocation3 + $0x38] sm:$0xff]  ;;  %6699 = vst.msk [vmem:[#allocation3 + $0xd8] sm:$0xff] %vm1369_vm5, %v6613_v36 }
 0x74e   : > { %v6349_v45 = vadd.f32 %v13248_v44, %v9386_v20  ;;  %8044 = vmatprep.mubr.f32.mxu1 %v7785_v19  ;;  %7008 = vrot.lane.b32.xlu1 %v13107_v54, %s9587_s27  ;;  %v7597_v12 = vpop.permute.xlu0 %7596 }
 0x74f   : > { %v6343_v37 = vpop.f32.mrf.mxu0  ;;  %8045 = vmatmul.mubr.f32.gmra.mxu1 %v7784_v7 }
 0x750   : > { %v6423_v10 = vmax.f32 %v6349_v45, 0.0  ;;  %v6344_v48 = vadd.f32 %v13248_v44, %v6343_v37  ;;  %8049 = vmatprep.mubr.f32.mxu1 %v7788_v27  ;;  %v7217_v62 = vpop.permute.xlu1 %7216  ;;  %6818 = vrot.lane.b32.xlu0 %v13105_v9, %s9585_s19 }
 0x751   : > { %7305 = vst.msk [vmem:[#allocation3 + $0xb0] sm:$0xff] %vm1369_vm5, %v7217_v62 }
 0x752   : > { %6455 = vst.msk [vmem:[#allocation2 + $0x111] sm:$0xff] %vm522_vm2, %v6423_v10  ;;  %7127 = vst.msk [vmem:[#allocation3 + $0x200] sm:$0xff] %vm522_vm2, %v6423_v10  ;;  %v6422_v39 = vmax.f32 %v6344_v48, 0.0  ;;  %6632 = vrot.lane.b32.xlu1 %v6549_v41, %s9586_s20  ;;  %v6611_v54 = vpop.permute.xlu0 %6610 }
 0x753   : > { %8050 = vmatmul.mubr.f32.gmra.mxu1 %v7787_v29  ;;  %6698 = vst.msk [vmem:[#allocation3 + $0xc0] sm:$0xff] %vm1369_vm5, %v6611_v54 }
 0x754   : > { %6454 = vst.msk [vmem:[#allocation2 + $0x109] sm:$0xff] %vm522_vm2, %v6422_v39  ;;  %7126 = vst.msk [vmem:[#allocation3 + $0x1e8] sm:$0xff] %vm522_vm2, %v6422_v39  ;;  %v6805_v5 = vpop.permute.xlu1 %6804  ;;  %7616 = vrot.lane.b32.xlu0 %v6549_v41, %s9587_s27  ;;  %v7790_v41 = vld [vmem:[#allocation3 + $0x60] sm:$0xff] }
 0x755   : > { %6891 = vst.msk [vmem:[#allocation3 + $0xd8] sm:$0xff] %vm1562_vm6, %v6805_v5 }
 0x756   : > { %7236 = vrot.lane.b32.xlu1 %v13154_v57, %s9586_s20  ;;  %v7405_v9 = vpop.permute.xlu0 %7404 }
 0x757   : > { %7495 = vst.msk [vmem:[#allocation3 + $0x80] sm:$0xff] %vm1562_vm6, %v7405_v9 }
 0x758   : > { %7687 = vst.msk [vmem:[#allocation3 + $0x80] sm:$0xff] %vm1755_vm7, %v7597_v12  ;;  %v7403_v60 = vpop.permute.xlu1 %7402  ;;  %6630 = vrot.lane.b32.xlu0 %v6548_v28, %s9586_s20 }
 0x759   : > { %v13271_v17 = vld [vmem:[#allocation2 + $0x112] sm:$0xff]  ;;  %7494 = vst.msk [vmem:[#allocation3 + $0x68] sm:$0xff] %vm1562_vm6, %v7403_v60 }
 0x75a   : > { %7765 = vst.msk [vmem:[#allocation3 + $0x1d8] sm:$0xff] %vm522_vm2, %v13271_v17  ;;  %6824 = vrot.lane.b32.xlu1 %v13154_v57, %s9585_s19  ;;  %v7215_v45 = vpop.permute.xlu0 %7214 }
 0x75b   : > { %v13278_v2 = vld [vmem:[#allocation2 + $0x10a] sm:$0xff]  ;;  %7304 = vst.msk [vmem:[#allocation3 + $0x98] sm:$0xff] %vm1369_vm5, %v7215_v45 }
 0x75c   : > { %v13280_v20 = vld [vmem:[#allocation2 + $0x110] sm:$0xff]  ;;  %v13282_v36 = vld [vmem:[#allocation2 + $0x108] sm:$0xff]  ;;  %7764 = vst.msk [vmem:[#allocation3 + $0x1c0] sm:$0xff] %vm522_vm2, %v13278_v2  ;;  %v7595_v19 = vpop.permute.xlu1 %7594  ;;  %7424 = vrot.lane.b32.xlu0 %v13163_v6, %s9585_s19 }
 0x75d   : > { %6521 = vst.msk [vmem:[#allocation3 + $0x228] sm:$0xff] %vm522_vm2, %v13280_v20  ;;  %6520 = vst.msk [vmem:[#allocation3 + $0x210] sm:$0xff] %vm522_vm2, %v13282_v36 }
 0x75e   : > { %7686 = vst.msk [vmem:[#allocation3 + $0x68] sm:$0xff] %vm1755_vm7, %v7595_v19  ;;  %7422 = vrot.lane.b32.xlu1 %v13169_v25, %s9585_s19  ;;  %v6991_v57 = vpop.permute.xlu0 %6990 }
 0x75f   : > { %7080 = vst.msk [vmem:[#allocation3 + $0x90] sm:$0xff] %vm1755_vm7, %v6991_v57  ;;  %v7794_v5 = vld [vmem:[#allocation3 + $0x80] sm:$0xff] }
 0x760   : > { %v6993_v37 = vpop.permute.xlu1 %6992  ;;  %7234 = vrot.lane.b32.xlu0 %v13161_v21, %s9586_s20 }
 0x761   : > { %7081 = vst.msk [vmem:[#allocation3 + $0xa8] sm:$0xff] %vm1755_vm7, %v6993_v37  ;;  %v7837_v48 = vld [vmem:[#allocation3 + $0x1d8] sm:$0xff] }
 0x762   : > { %7614 = vrot.lane.b32.xlu1 %v6548_v28, %s9587_s27  ;;  %v6803_v10 = vpop.permute.xlu0 %6802 }
 0x763   : > { %v7834_v7 = vld [vmem:[#allocation3 + $0x1c0] sm:$0xff]  ;;  %6890 = vst.msk [vmem:[#allocation3 + $0xc0] sm:$0xff] %vm1562_vm6, %v6803_v10 }
 0x764   : > { %9437 = vmatprep.mubr.msk.f32.mxu0 %vm522_vm2, %v7834_v7  ;;  %v6617_v12 = vpop.permute.xlu1 %6616  ;;  %7010 = vrot.lane.b32.xlu0 %v13169_v25, %s9587_s27 }
 0x765   : > { %9438 = vmatmul.mubr.msk.f32.gmra.mxu0 %vm522_vm2, %v7837_v48  ;;  %v9389_v27 = vpop.f32.mrf.mxu0  ;;  %v7791_v39 = vld [vmem:[#allocation3 + $0x68] sm:$0xff]  ;;  %6701 = vst.msk [vmem:[#allocation3 + $0x108] sm:$0xff] %vm1369_vm5, %v6617_v12 }
 0x766   : > { %v6359_v62 = vadd.f32 %v13248_v44, %v9389_v27  ;;  %8054 = vmatprep.mubr.f32.mxu1 %v7791_v39  ;;  %7012 = vrot.lane.b32.xlu1 %v13163_v6, %s9587_s27  ;;  %v7601_v54 = vpop.permute.xlu0 %7600  ;;  %v7793_v6 = vld [vmem:[#allocation3 + $0x78] sm:$0xff] }
 0x767   : > { %v6353_v29 = vpop.f32.mrf.mxu0  ;;  %8055 = vmatmul.mubr.f32.gmra.mxu1 %v7790_v41  ;;  %v7538_v41 = vld [vmem:[#allocation2 + $0xf1] sm:$0xff] }
 0x768   : > { %v6425_v9 = vmax.f32 %v6359_v62, 0.0  ;;  %v6354_v28 = vadd.f32 %v13248_v44, %v6353_v29  ;;  %8059 = vmatprep.mubr.f32.mxu1 %v7794_v5  ;;  %v7221_v60 = vpop.permute.xlu1 %7220  ;;  %6822 = vrot.lane.b32.xlu0 %v13161_v21, %s9585_s19  ;;  %v7539_v21 = vld [vmem:[#allocation2 + $0xf9] sm:$0xff] }
 0x769   : > { %7307 = vst.msk [vmem:[#allocation3 + $0xe0] sm:$0xff] %vm1369_vm5, %v7221_v60 }
 0x76a   : > { %6457 = vst.msk [vmem:[#allocation2 + $0x129] sm:$0xff] %vm522_vm2, %v6425_v9  ;;  %7129 = vst.msk [vmem:[#allocation3 + $0x230] sm:$0xff] %vm522_vm2, %v6425_v9  ;;  %v6424_v25 = vmax.f32 %v6354_v28, 0.0  ;;  %7240 = vrot.lane.b32.xlu1 %v13210_v49, %s9586_s20  ;;  %v6615_v45 = vpop.permute.xlu0 %6614  ;;  %v7541_v9 = vld [vmem:[#allocation2 + $0x111] sm:$0xff] }
 0x76b   : > { %8060 = vmatmul.mubr.f32.gmra.mxu1 %v7793_v6  ;;  %6700 = vst.msk [vmem:[#allocation3 + $0xf0] sm:$0xff] %vm1369_vm5, %v6615_v45  ;;  %v7796_v6 = vld [vmem:[#allocation3 + $0x90] sm:$0xff] }
 0x76c   : > { %6456 = vst.msk [vmem:[#allocation2 + $0x121] sm:$0xff] %vm522_vm2, %v6424_v25  ;;  %7128 = vst.msk [vmem:[#allocation3 + $0x218] sm:$0xff] %vm522_vm2, %v6424_v25  ;;  %v6809_v19 = vpop.permute.xlu1 %6808  ;;  %7620 = vrot.lane.b32.xlu0 %v7539_v21, %s9587_s27 }
 0x76d   : > { %6893 = vst.msk [vmem:[#allocation3 + $0x108] sm:$0xff] %vm1562_vm6, %v6809_v19 }
 0x76e   : > { %6636 = vrot.lane.b32.xlu1 %v7539_v21, %s9586_s20  ;;  %v7409_v57 = vpop.permute.xlu0 %7408 }
 0x76f   : > { %7497 = vst.msk [vmem:[#allocation3 + $0xb0] sm:$0xff] %vm1562_vm6, %v7409_v57 }
 0x770   : > { %7689 = vst.msk [vmem:[#allocation3 + $0xb0] sm:$0xff] %vm1755_vm7, %v7601_v54  ;;  %v7407_v37 = vpop.permute.xlu1 %7406  ;;  %7428 = vrot.lane.b32.xlu0 %v13219_v35, %s9585_s19 }
 0x771   : > { %v13330_v7 = vld [vmem:[#allocation2 + $0x12a] sm:$0xff]  ;;  %7496 = vst.msk [vmem:[#allocation3 + $0x98] sm:$0xff] %vm1562_vm6, %v7407_v37 }
 0x772   : > { %7767 = vst.msk [vmem:[#allocation3 + $0x208] sm:$0xff] %vm522_vm2, %v13330_v7  ;;  %6828 = vrot.lane.b32.xlu1 %v13210_v49, %s9585_s19  ;;  %v7219_v10 = vpop.permute.xlu0 %7218 }
 0x773   : > { %v13337_v48 = vld [vmem:[#allocation2 + $0x122] sm:$0xff]  ;;  %7306 = vst.msk [vmem:[#allocation3 + $0xc8] sm:$0xff] %vm1369_vm5, %v7219_v10 }
 0x774   : > { %v13339_v12 = vld [vmem:[#allocation2 + $0x120] sm:$0xff]  ;;  %7766 = vst.msk [vmem:[#allocation3 + $0x1f0] sm:$0xff] %vm522_vm2, %v13337_v48  ;;  %v13344_v27 = vld [vmem:[#allocation2 + $0x128] sm:$0xff]  ;;  %v7599_v39 = vpop.permute.xlu1 %7598  ;;  %7238 = vrot.lane.b32.xlu0 %v13217_v43, %s9586_s20 }
 0x775   : > { %6522 = vst.msk [vmem:[#allocation3 + $0x240] sm:$0xff] %vm522_vm2, %v13339_v12  ;;  %6523 = vst.msk [vmem:[#allocation3 + $0x258] sm:$0xff] %vm522_vm2, %v13344_v27 }
 0x776   : > { %7688 = vst.msk [vmem:[#allocation3 + $0x98] sm:$0xff] %vm1755_vm7, %v7599_v39  ;;  %7426 = vrot.lane.b32.xlu1 %v13221_v40, %s9585_s19  ;;  %v6995_v49 = vpop.permute.xlu0 %6994 }
 0x777   : > { %7082 = vst.msk [vmem:[#allocation3 + $0xc0] sm:$0xff] %vm1755_vm7, %v6995_v49  ;;  %v7800_v19 = vld [vmem:[#allocation3 + $0xb0] sm:$0xff] }
 0x778   : > { %v6997_v62 = vpop.permute.xlu1 %6996  ;;  %7014 = vrot.lane.b32.xlu0 %v13221_v40, %s9587_s27 }
 0x779   : > { %7083 = vst.msk [vmem:[#allocation3 + $0xd8] sm:$0xff] %vm1755_vm7, %v6997_v62  ;;  %v7843_v5 = vld [vmem:[#allocation3 + $0x208] sm:$0xff] }
 0x77a   : > { %7618 = vrot.lane.b32.xlu1 %v7538_v41, %s9587_s27  ;;  %v6807_v29 = vpop.permute.xlu0 %6806 }
 0x77b   : > { %v7840_v54 = vld [vmem:[#allocation3 + $0x1f0] sm:$0xff]  ;;  %6892 = vst.msk [vmem:[#allocation3 + $0xf0] sm:$0xff] %vm1562_vm6, %v6807_v29 }
 0x77c   : > { %9440 = vmatprep.mubr.msk.f32.mxu0 %vm522_vm2, %v7840_v54  ;;  %v6621_v28 = vpop.permute.xlu1 %6620  ;;  %7624 = vrot.lane.b32.xlu0 %v7541_v9, %s9587_s27 }
 0x77d   : > { %v9392_v60 = vpop.f32.mrf.mxu0  ;;  %9441 = vmatmul.mubr.msk.f32.gmra.mxu0 %vm522_vm2, %v7843_v5  ;;  %v7797_v40 = vld [vmem:[#allocation3 + $0x98] sm:$0xff]  ;;  %6703 = vst.msk [vmem:[#allocation3 + $0x138] sm:$0xff] %vm1369_vm5, %v6621_v28 }
 0x77e   : > { %v6369_v25 = vadd.f32 %v13248_v44, %v9392_v60  ;;  %8064 = vmatprep.mubr.f32.mxu1 %v7797_v40  ;;  %7016 = vrot.lane.b32.xlu1 %v13219_v35, %s9587_s27  ;;  %v7605_v21 = vpop.permute.xlu0 %7604  ;;  %v7799_v35 = vld [vmem:[#allocation3 + $0xa8] sm:$0xff]  ;;  %v13398_v60 = vld [vmem:[#allocation2 + $0x129] sm:$0xff] }
 0x77f   : > { %v6363_v45 = vpop.f32.mrf.mxu0  ;;  %8065 = vmatmul.mubr.f32.gmra.mxu1 %v7796_v6 }
 0x780   : > { %v6427_v57 = vmax.f32 %v6369_v25, 0.0  ;;  %v6364_v37 = vadd.f32 %v13248_v44, %v6363_v45  ;;  %8069 = vmatprep.mubr.f32.mxu1 %v7800_v19  ;;  %v7225_v10 = vpop.permute.xlu1 %7224  ;;  %7244 = vrot.lane.b32.xlu0 %v13271_v17, %s9586_s20 }
 0x781   : > { %7309 = vst.msk [vmem:[#allocation3 + $0x110] sm:$0xff] %vm1369_vm5, %v7225_v10 }
 0x782   : > { %6459 = vst.msk [vmem:[#allocation2 + $0x141] sm:$0xff] %vm522_vm2, %v6427_v57  ;;  %7131 = vst.msk [vmem:[#allocation3 + $0x260] sm:$0xff] %vm522_vm2, %v6427_v57  ;;  %v6426_v39 = vmax.f32 %v6364_v37, 0.0  ;;  %6634 = vrot.lane.b32.xlu1 %v7538_v41, %s9586_s20  ;;  %v6619_v49 = vpop.permute.xlu0 %6618 }
 0x783   : > { %8070 = vmatmul.mubr.f32.gmra.mxu1 %v7799_v35  ;;  %6702 = vst.msk [vmem:[#allocation3 + $0x120] sm:$0xff] %vm1369_vm5, %v6619_v49  ;;  %v7802_v35 = vld [vmem:[#allocation3 + $0xc0] sm:$0xff] }
 0x784   : > { %6458 = vst.msk [vmem:[#allocation2 + $0x139] sm:$0xff] %vm522_vm2, %v6426_v39  ;;  %7130 = vst.msk [vmem:[#allocation3 + $0x248] sm:$0xff] %vm522_vm2, %v6426_v39  ;;  %v6813_v62 = vpop.permute.xlu1 %6812  ;;  %7432 = vrot.lane.b32.xlu0 %v13280_v20, %s9585_s19  ;;  %v7540_v39 = vld [vmem:[#allocation2 + $0x109] sm:$0xff] }
 0x785   : > { %6895 = vst.msk [vmem:[#allocation3 + $0x138] sm:$0xff] %vm1562_vm6, %v6813_v62 }
 0x786   : > { %6826 = vrot.lane.b32.xlu1 %v13217_v43, %s9585_s19  ;;  %v7413_v29 = vpop.permute.xlu0 %7412 }
 0x787   : > { %7499 = vst.msk [vmem:[#allocation3 + $0xe0] sm:$0xff] %vm1562_vm6, %v7413_v29 }
 0x788   : > { %7691 = vst.msk [vmem:[#allocation3 + $0xe0] sm:$0xff] %vm1755_vm7, %v7605_v21  ;;  %v7411_v41 = vpop.permute.xlu1 %7410  ;;  %7242 = vrot.lane.b32.xlu0 %v13278_v2, %s9586_s20 }
 0x789   : > { %v13387_v54 = vld [vmem:[#allocation2 + $0x142] sm:$0xff]  ;;  %7498 = vst.msk [vmem:[#allocation3 + $0xc8] sm:$0xff] %vm1562_vm6, %v7411_v41 }
 0x78a   : > { %7769 = vst.msk [vmem:[#allocation3 + $0x238] sm:$0xff] %vm522_vm2, %v13387_v54  ;;  %6640 = vrot.lane.b32.xlu1 %v7541_v9, %s9586_s20  ;;  %v7223_v5 = vpop.permute.xlu0 %7222 }
 0x78b   : > { %v13393_v43 = vld [vmem:[#allocation2 + $0x13a] sm:$0xff]  ;;  %7308 = vst.msk [vmem:[#allocation3 + $0xf8] sm:$0xff] %vm1369_vm5, %v7223_v5 }
 0x78c   : > { %v13395_v28 = vld [vmem:[#allocation2 + $0x138] sm:$0xff]  ;;  %7768 = vst.msk [vmem:[#allocation3 + $0x220] sm:$0xff] %vm522_vm2, %v13393_v43  ;;  %v13402_v40 = vld [vmem:[#allocation2 + $0x140] sm:$0xff]  ;;  %v7603_v25 = vpop.permute.xlu1 %7602  ;;  %7628 = vrot.lane.b32.xlu0 %v13398_v60, %s9587_s27 }
 0x78d   : > { %6524 = vst.msk [vmem:[#allocation3 + $0x270] sm:$0xff] %vm522_vm2, %v13395_v28  ;;  %6525 = vst.msk [vmem:[#allocation3 + $0x288] sm:$0xff] %vm522_vm2, %v13402_v40 }
 0x78e   : > { %7690 = vst.msk [vmem:[#allocation3 + $0xc8] sm:$0xff] %vm1755_vm7, %v7603_v25  ;;  %6832 = vrot.lane.b32.xlu1 %v13271_v17, %s9585_s19  ;;  %v6999_v9 = vpop.permute.xlu0 %6998  ;;  %v13428_v25 = vld [vmem:[#allocation2 + $0x121] sm:$0xff] }
 0x78f   : > { %7084 = vst.msk [vmem:[#allocation3 + $0xf0] sm:$0xff] %vm1755_vm7, %v6999_v9  ;;  %v7806_v29 = vld [vmem:[#allocation3 + $0xe0] sm:$0xff] }
 0x790   : > { %v7001_v6 = vpop.permute.xlu1 %7000  ;;  %7248 = vrot.lane.b32.xlu0 %v13330_v7, %s9586_s20 }
 0x791   : > { %7085 = vst.msk [vmem:[#allocation3 + $0x108] sm:$0xff] %vm1755_vm7, %v7001_v6  ;;  %v7849_v19 = vld [vmem:[#allocation3 + $0x238] sm:$0xff] }
 0x792   : > { %7430 = vrot.lane.b32.xlu1 %v13282_v36, %s9585_s19  ;;  %v6811_v45 = vpop.permute.xlu0 %6810 }
 0x793   : > { %v7846_v21 = vld [vmem:[#allocation3 + $0x220] sm:$0xff]  ;;  %6894 = vst.msk [vmem:[#allocation3 + $0x120] sm:$0xff] %vm1562_vm6, %v6811_v45  ;;  %v7805_v45 = vld [vmem:[#allocation3 + $0xd8] sm:$0xff] }
 0x794   : > { %9443 = vmatprep.mubr.msk.f32.mxu0 %vm522_vm2, %v7846_v21  ;;  %v6625_v17 = vpop.permute.xlu1 %6624  ;;  %7434 = vrot.lane.b32.xlu0 %v13339_v12, %s9585_s19 }
 0x795   : > { %v9395_v57 = vpop.f32.mrf.mxu0  ;;  %9444 = vmatmul.mubr.msk.f32.gmra.mxu0 %vm522_vm2, %v7849_v19  ;;  %v7803_v37 = vld [vmem:[#allocation3 + $0xc8] sm:$0xff]  ;;  %6705 = vst.msk [vmem:[#allocation3 + $0x168] sm:$0xff] %vm1369_vm5, %v6625_v17 }
 0x796   : > { %v6379_v10 = vadd.f32 %v13248_v44, %v9395_v57  ;;  %8074 = vmatprep.mubr.f32.mxu1 %v7803_v37  ;;  %7622 = vrot.lane.b32.xlu1 %v7540_v39, %s9587_s27  ;;  %v7609_v62 = vpop.permute.xlu0 %7608 }
 0x797   : > { %v6373_v49 = vpop.f32.mrf.mxu0  ;;  %8075 = vmatmul.mubr.f32.gmra.mxu1 %v7802_v35  ;;  %v13460_v35 = vld [vmem:[#allocation2 + $0x141] sm:$0xff] }
 0x798   : > { %v6429_v41 = vmax.f32 %v6379_v10, 0.0  ;;  %v6374_v5 = vadd.f32 %v13248_v44, %v6373_v49  ;;  %8079 = vmatprep.mubr.f32.mxu1 %v7806_v29  ;;  %v7229_v9 = vpop.permute.xlu1 %7228  ;;  %7626 = vrot.lane.b32.xlu0 %v13428_v25, %s9587_s27 }
 0x799   : > { %7311 = vst.msk [vmem:[#allocation3 + $0x140] sm:$0xff] %vm1369_vm5, %v7229_v9 }
 0x79a   : > { %6461 = vst.msk [vmem:[#allocation2 + $0x159] sm:$0xff] %vm522_vm2, %v6429_v41  ;;  %7133 = vst.msk [vmem:[#allocation3 + $0x290] sm:$0xff] %vm522_vm2, %v6429_v41  ;;  %v6428_v6 = vmax.f32 %v6374_v5, 0.0  ;;  %7018 = vrot.lane.b32.xlu1 %v13282_v36, %s9587_s27  ;;  %v6623_v21 = vpop.permute.xlu0 %6622 }
 0x79b   : > { %8080 = vmatmul.mubr.f32.gmra.mxu1 %v7805_v45  ;;  %6704 = vst.msk [vmem:[#allocation3 + $0x150] sm:$0xff] %vm1369_vm5, %v6623_v21 }
 0x79c   : > { %6460 = vst.msk [vmem:[#allocation2 + $0x151] sm:$0xff] %vm522_vm2, %v6428_v6  ;;  %7132 = vst.msk [vmem:[#allocation3 + $0x278] sm:$0xff] %vm522_vm2, %v6428_v6  ;;  %v6817_v19 = vpop.permute.xlu1 %6816  ;;  %7436 = vrot.lane.b32.xlu0 %v13344_v27, %s9585_s19 }
 0x79d   : > { %6897 = vst.msk [vmem:[#allocation3 + $0x168] sm:$0xff] %vm1562_vm6, %v6817_v19 }
 0x79e   : > { %7020 = vrot.lane.b32.xlu1 %v13280_v20, %s9587_s27  ;;  %v7417_v17 = vpop.permute.xlu0 %7416 }
 0x79f   : > { %7501 = vst.msk [vmem:[#allocation3 + $0x110] sm:$0xff] %vm1562_vm6, %v7417_v17 }
 0x7a0   : > { %7693 = vst.msk [vmem:[#allocation3 + $0x110] sm:$0xff] %vm1755_vm7, %v7609_v62  ;;  %v7415_v36 = vpop.permute.xlu1 %7414  ;;  %7246 = vrot.lane.b32.xlu0 %v13337_v48, %s9586_s20 }
 0x7a1   : > { %v13449_v57 = vld [vmem:[#allocation2 + $0x15a] sm:$0xff]  ;;  %7500 = vst.msk [vmem:[#allocation3 + $0xf8] sm:$0xff] %vm1562_vm6, %v7415_v36 }
 0x7a2   : > { %7771 = vst.msk [vmem:[#allocation3 + $0x268] sm:$0xff] %vm522_vm2, %v13449_v57  ;;  %6638 = vrot.lane.b32.xlu1 %v7540_v39, %s9586_s20  ;;  %v7227_v37 = vpop.permute.xlu0 %7226 }
 0x7a3   : > { %v13455_v20 = vld [vmem:[#allocation2 + $0x152] sm:$0xff]  ;;  %7310 = vst.msk [vmem:[#allocation3 + $0x128] sm:$0xff] %vm1369_vm5, %v7227_v37 }
 0x7a4   : > { %v13457_v10 = vld [vmem:[#allocation2 + $0x150] sm:$0xff]  ;;  %7770 = vst.msk [vmem:[#allocation3 + $0x250] sm:$0xff] %vm522_vm2, %v13455_v20  ;;  %v13464_v49 = vld [vmem:[#allocation2 + $0x158] sm:$0xff]  ;;  %v7607_v62 = vpop.permute.xlu1 %7606  ;;  %7632 = vrot.lane.b32.xlu0 %v13460_v35, %s9587_s27 }
 0x7a5   : > { %6526 = vst.msk [vmem:[#allocation3 + $0x2a0] sm:$0xff] %vm522_vm2, %v13457_v10  ;;  %6527 = vst.msk [vmem:[#allocation3 + $0x2b8] sm:$0xff] %vm522_vm2, %v13464_v49 }
 0x7a6   : > { %7692 = vst.msk [vmem:[#allocation3 + $0xf8] sm:$0xff] %vm1755_vm7, %v7607_v62  ;;  %6830 = vrot.lane.b32.xlu1 %v13278_v2, %s9585_s19  ;;  %v7003_v39 = vpop.permute.xlu0 %7002 }
 0x7a7   : > { %7086 = vst.msk [vmem:[#allocation3 + $0x120] sm:$0xff] %vm1755_vm7, %v7003_v39  ;;  %v7812_v36 = vld [vmem:[#allocation3 + $0x110] sm:$0xff] }
 0x7a8   : > { %v7005_v29 = vpop.permute.xlu1 %7004  ;;  %7252 = vrot.lane.b32.xlu0 %v13387_v54, %s9586_s20  ;;  %v13491_v39 = vld [vmem:[#allocation2 + $0x139] sm:$0xff] }
 0x7a9   : > { %7087 = vst.msk [vmem:[#allocation3 + $0x138] sm:$0xff] %vm1755_vm7, %v7005_v29  ;;  %v7855_v9 = vld [vmem:[#allocation3 + $0x268] sm:$0xff] }
 0x7aa   : > { %6644 = vrot.lane.b32.xlu1 %v13398_v60, %s9586_s20  ;;  %v6815_v41 = vpop.permute.xlu0 %6814  ;;  %v7808_v60 = vld [vmem:[#allocation3 + $0xf0] sm:$0xff] }
 0x7ab   : > { %v7852_v5 = vld [vmem:[#allocation3 + $0x250] sm:$0xff]  ;;  %6896 = vst.msk [vmem:[#allocation3 + $0x150] sm:$0xff] %vm1562_vm6, %v6815_v41 }
 0x7ac   : > { %9446 = vmatprep.mubr.msk.f32.mxu0 %vm522_vm2, %v7852_v5  ;;  %v6629_v2 = vpop.permute.xlu1 %6628  ;;  %v9398_v6 = vpop.f32.mrf.mxu0  ;;  %7438 = vrot.lane.b32.xlu0 %v13395_v28, %s9585_s19 }
 0x7ad   : > { %9447 = vmatmul.mubr.msk.f32.gmra.mxu0 %vm522_vm2, %v7855_v9  ;;  %v7809_v45 = vld [vmem:[#allocation3 + $0xf8] sm:$0xff]  ;;  %6707 = vst.msk [vmem:[#allocation3 + $0x198] sm:$0xff] %vm1369_vm5, %v6629_v2  ;;  %v6389_v21 = vadd.f32 %v13248_v44, %v9398_v6 }
 0x7ae   : > { %8084 = vmatprep.mubr.f32.mxu1 %v7809_v45  ;;  %6836 = vrot.lane.b32.xlu1 %v13330_v7, %s9585_s19  ;;  %v6383_v19 = vpop.f32.mrf.mxu0  ;;  %v7613_v17 = vpop.permute.xlu0 %7612  ;;  %v7811_v7 = vld [vmem:[#allocation3 + $0x108] sm:$0xff] }
 0x7af   : > { %8085 = vmatmul.mubr.f32.gmra.mxu1 %v7808_v60  ;;  %v6431_v37 = vmax.f32 %v6389_v21, 0.0  ;;  %v6384_v62 = vadd.f32 %v13248_v44, %v6383_v19 }
 0x7b0   : > { %8089 = vmatprep.mubr.f32.mxu1 %v7812_v36  ;;  %v7233_v29 = vpop.permute.xlu1 %7232  ;;  %7630 = vrot.lane.b32.xlu0 %v13491_v39, %s9587_s27 }
 0x7b1   : > { %6463 = vst.msk [vmem:[#allocation2 + $0x171] sm:$0xff] %vm522_vm2, %v6431_v37  ;;  %7135 = vst.msk [vmem:[#allocation3 + $0x2c0] sm:$0xff] %vm522_vm2, %v6431_v37  ;;  %v6430_v41 = vmax.f32 %v6384_v62, 0.0  ;;  %v13526_v62 = vld [vmem:[#allocation2 + $0x159] sm:$0xff] }
 0x7b2   : > { %7313 = vst.msk [vmem:[#allocation3 + $0x170] sm:$0xff] %vm1369_vm5, %v7233_v29  ;;  %7022 = vrot.lane.b32.xlu1 %v13339_v12, %s9587_s27  ;;  %v6627_v5 = vpop.permute.xlu0 %6626 }
 0x7b3   : > { %8090 = vmatmul.mubr.f32.gmra.mxu1 %v7811_v7  ;;  %6462 = vst.msk [vmem:[#allocation2 + $0x169] sm:$0xff] %vm522_vm2, %v6430_v41  ;;  %7134 = vst.msk [vmem:[#allocation3 + $0x2a8] sm:$0xff] %vm522_vm2, %v6430_v41 }
 0x7b4   : > { %6706 = vst.msk [vmem:[#allocation3 + $0x180] sm:$0xff] %vm1369_vm5, %v6627_v5  ;;  %v6821_v9 = vpop.permute.xlu1 %6820  ;;  %7440 = vrot.lane.b32.xlu0 %v13402_v40, %s9585_s19 }
 0x7b5   : > { %6899 = vst.msk [vmem:[#allocation3 + $0x198] sm:$0xff] %vm1562_vm6, %v6821_v9 }
 0x7b6   : > { %7024 = vrot.lane.b32.xlu1 %v13344_v27, %s9587_s27  ;;  %v7421_v2 = vpop.permute.xlu0 %7420 }
 0x7b7   : > { %7503 = vst.msk [vmem:[#allocation3 + $0x140] sm:$0xff] %vm1562_vm6, %v7421_v2  ;;  %v9401_v12 = vpop.f32.mrf.mxu0 }
 0x7b8   : > { %7695 = vst.msk [vmem:[#allocation3 + $0x140] sm:$0xff] %vm1755_vm7, %v7613_v17  ;;  %v6399_v6 = vadd.f32 %v13248_v44, %v9401_v12  ;;  %v7419_v45 = vpop.permute.xlu1 %7418  ;;  %7250 = vrot.lane.b32.xlu0 %v13393_v43, %s9586_s20  ;;  %v13513_v21 = vld [vmem:[#allocation2 + $0x172] sm:$0xff] }
 0x7b9   : > { %7502 = vst.msk [vmem:[#allocation3 + $0x128] sm:$0xff] %vm1562_vm6, %v7419_v45  ;;  %v6393_v60 = vpop.f32.mrf.mxu0 }
 0x7ba   : > { %7773 = vst.msk [vmem:[#allocation3 + $0x298] sm:$0xff] %vm522_vm2, %v13513_v21  ;;  %v6433_v27 = vmax.f32 %v6399_v6, 0.0  ;;  %v6394_v19 = vadd.f32 %v13248_v44, %v6393_v60  ;;  %6642 = vrot.lane.b32.xlu1 %v13428_v25, %s9586_s20  ;;  %v7231_v17 = vpop.permute.xlu0 %7230  ;;  %v13521_v36 = vld [vmem:[#allocation2 + $0x16a] sm:$0xff] }
 0x7bb   : > { %v13523_v37 = vld [vmem:[#allocation2 + $0x168] sm:$0xff]  ;;  %7312 = vst.msk [vmem:[#allocation3 + $0x158] sm:$0xff] %vm1369_vm5, %v7231_v17  ;;  %v13530_v29 = vld [vmem:[#allocation2 + $0x170] sm:$0xff] }
 0x7bc   : > { %7772 = vst.msk [vmem:[#allocation3 + $0x280] sm:$0xff] %vm522_vm2, %v13521_v36  ;;  %6528 = vst.msk [vmem:[#allocation3 + $0x2d0] sm:$0xff] %vm522_vm2, %v13523_v37  ;;  %v6432_v44 = vmax.f32 %v6394_v19, 0.0  ;;  %v7611_v25 = vpop.permute.xlu1 %7610  ;;  %7636 = vrot.lane.b32.xlu0 %v13526_v62, %s9587_s27  ;;  %v13567_v19 = vld [vmem:[#allocation2 + $0x151] sm:$0xff] }
 0x7bd   : > { %6465 = vst.msk [vmem:[#allocation2 + $0x189] sm:$0xff] %vm522_vm2, %v6433_v27  ;;  %7137 = vst.msk [vmem:[#allocation3 + $0x2f0] sm:$0xff] %vm522_vm2, %v6433_v27 }
 0x7be   : > { %6529 = vst.msk [vmem:[#allocation3 + $0x2e8] sm:$0xff] %vm522_vm2, %v13530_v29  ;;  %6464 = vst.msk [vmem:[#allocation2 + $0x181] sm:$0xff] %vm522_vm2, %v6432_v44  ;;  %6834 = vrot.lane.b32.xlu1 %v13337_v48, %s9585_s19  ;;  %v7007_v41 = vpop.permute.xlu0 %7006 }
 0x7bf   : > { %7694 = vst.msk [vmem:[#allocation3 + $0x128] sm:$0xff] %vm1755_vm7, %v7611_v25  ;;  %7088 = vst.msk [vmem:[#allocation3 + $0x150] sm:$0xff] %vm1755_vm7, %v7007_v41  ;;  %v7818_v27 = vld [vmem:[#allocation3 + $0x140] sm:$0xff] }
 0x7c0   : > { %7136 = vst.msk [vmem:[#allocation3 + $0x2d8] sm:$0xff] %vm522_vm2, %v6432_v44  ;;  %v7009_v7 = vpop.permute.xlu1 %7008  ;;  %7256 = vrot.lane.b32.xlu0 %v13449_v57, %s9586_s20  ;;  %v7817_v44 = vld [vmem:[#allocation3 + $0x138] sm:$0xff] }
 0x7c1   : > { %7089 = vst.msk [vmem:[#allocation3 + $0x168] sm:$0xff] %vm1755_vm7, %v7009_v7  ;;  %v7861_v2 = vld [vmem:[#allocation3 + $0x298] sm:$0xff] }
 0x7c2   : > { %6648 = vrot.lane.b32.xlu1 %v13460_v35, %s9586_s20  ;;  %v6819_v5 = vpop.permute.xlu0 %6818  ;;  %v7814_v35 = vld [vmem:[#allocation3 + $0x120] sm:$0xff] }
 0x7c3   : > { %v7858_v9 = vld [vmem:[#allocation3 + $0x280] sm:$0xff]  ;;  %6898 = vst.msk [vmem:[#allocation3 + $0x180] sm:$0xff] %vm1562_vm6, %v6819_v5 }
 0x7c4   : > { %9449 = vmatprep.mubr.msk.f32.mxu0 %vm522_vm2, %v7858_v9  ;;  %v13553_v48 = vld [vmem:[#allocation2 + $0x18a] sm:$0xff]  ;;  %v6633_v12 = vpop.permute.xlu1 %6632  ;;  %7442 = vrot.lane.b32.xlu0 %v13457_v10, %s9585_s19 }
 0x7c5   : > { %9450 = vmatmul.mubr.msk.f32.gmra.mxu0 %vm522_vm2, %v7861_v2  ;;  %7775 = vst.msk [vmem:[#allocation3 + $0x2c8] sm:$0xff] %vm522_vm2, %v13553_v48  ;;  %v13561_v45 = vld [vmem:[#allocation2 + $0x182] sm:$0xff]  ;;  %v7549_v9 = vld [vmem:[#allocation2 + $0x171] sm:$0xff] }
 0x7c6   : > { %v7815_v6 = vld [vmem:[#allocation3 + $0x128] sm:$0xff]  ;;  %6709 = vst.msk [vmem:[#allocation3 + $0x1c8] sm:$0xff] %vm1369_vm5, %v6633_v12  ;;  %6840 = vrot.lane.b32.xlu1 %v13387_v54, %s9585_s19  ;;  %v7617_v60 = vpop.permute.xlu0 %7616 }
 0x7c7   : > { %8094 = vmatprep.mubr.f32.mxu1 %v7815_v6  ;;  %7774 = vst.msk [vmem:[#allocation3 + $0x2b0] sm:$0xff] %vm522_vm2, %v13561_v45 }
 0x7c8   : > { %8095 = vmatmul.mubr.f32.gmra.mxu1 %v7814_v35  ;;  %v7237_v17 = vpop.permute.xlu1 %7236  ;;  %7634 = vrot.lane.b32.xlu0 %v13567_v19, %s9587_s27 }
 0x7c9   : > { %8099 = vmatprep.mubr.f32.mxu1 %v7818_v27  ;;  %7315 = vst.msk [vmem:[#allocation3 + $0x1a0] sm:$0xff] %vm1369_vm5, %v7237_v17 }
 0x7ca   : > { %7026 = vrot.lane.b32.xlu1 %v13395_v28, %s9587_s27  ;;  %v6631_v54 = vpop.permute.xlu0 %6630 }
 0x7cb   : > { %6708 = vst.msk [vmem:[#allocation3 + $0x1b0] sm:$0xff] %vm1369_vm5, %v6631_v54  ;;  %v7823_v54 = vld [vmem:[#allocation3 + $0x168] sm:$0xff] }
 0x7cc   : > { %8100 = vmatmul.mubr.f32.gmra.mxu1 %v7817_v44  ;;  %v6825_v25 = vpop.permute.xlu1 %6824  ;;  %7444 = vrot.lane.b32.xlu0 %v13464_v49, %s9585_s19  ;;  %v7867_v5 = vld [vmem:[#allocation3 + $0x2c8] sm:$0xff] }
 0x7cd   : > { %6901 = vst.msk [vmem:[#allocation3 + $0x1c8] sm:$0xff] %vm1562_vm6, %v6825_v25 }
 0x7ce   : > { %v7864_v41 = vld [vmem:[#allocation3 + $0x2b0] sm:$0xff]  ;;  %7028 = vrot.lane.b32.xlu1 %v13402_v40, %s9587_s27  ;;  %v7425_v7 = vpop.permute.xlu0 %7424 }
 0x7cf   : > { %9452 = vmatprep.mubr.msk.f32.mxu0 %vm522_vm2, %v7864_v41  ;;  %7505 = vst.msk [vmem:[#allocation3 + $0x170] sm:$0xff] %vm1562_vm6, %v7425_v7 }
 0x7d0   : > { %9453 = vmatmul.mubr.msk.f32.gmra.mxu0 %vm522_vm2, %v7867_v5  ;;  %7697 = vst.msk [vmem:[#allocation3 + $0x170] sm:$0xff] %vm1755_vm7, %v7617_v60  ;;  %v7423_v28 = vpop.permute.xlu1 %7422  ;;  %7254 = vrot.lane.b32.xlu0 %v13455_v20, %s9586_s20  ;;  %v7820_v60 = vld [vmem:[#allocation3 + $0x150] sm:$0xff]  ;;  %v7551_v5 = vld [vmem:[#allocation2 + $0x189] sm:$0xff] }
 0x7d1   : > { %7504 = vst.msk [vmem:[#allocation3 + $0x158] sm:$0xff] %vm1562_vm6, %v7423_v28 }
 0x7d2   : > { %6646 = vrot.lane.b32.xlu1 %v13491_v39, %s9586_s20  ;;  %v7235_v40 = vpop.permute.xlu0 %7234 }
 0x7d3   : > { %7314 = vst.msk [vmem:[#allocation3 + $0x188] sm:$0xff] %vm1369_vm5, %v7235_v40 }
 0x7d4   : > { %v7615_v2 = vpop.permute.xlu1 %7614  ;;  %7640 = vrot.lane.b32.xlu0 %v7549_v9, %s9587_s27 }
 0x7d5   : > { %7696 = vst.msk [vmem:[#allocation3 + $0x158] sm:$0xff] %vm1755_vm7, %v7615_v2  ;;  %v7358_v2 = vld [vmem:[#allocation2 + $0x180] sm:$0xff] }
 0x7d6   : > { %6838 = vrot.lane.b32.xlu1 %v13393_v43, %s9585_s19  ;;  %v7011_v12 = vpop.permute.xlu0 %7010 }
 0x7d7   : > { %7090 = vst.msk [vmem:[#allocation3 + $0x180] sm:$0xff] %vm1755_vm7, %v7011_v12  ;;  %v7824_v17 = vld [vmem:[#allocation3 + $0x170] sm:$0xff] }
 0x7d8   : > { %v7013_v6 = vpop.permute.xlu1 %7012  ;;  %7260 = vrot.lane.b32.xlu0 %v13513_v21, %s9586_s20 }
 0x7d9   : > { %7091 = vst.msk [vmem:[#allocation3 + $0x198] sm:$0xff] %vm1755_vm7, %v7013_v6 }
 0x7da   : > { %6652 = vrot.lane.b32.xlu1 %v13526_v62, %s9586_s20  ;;  %v6823_v39 = vpop.permute.xlu0 %6822  ;;  %v13606_v62 = vld [vmem:[#allocation2 + $0x169] sm:$0xff] }
 0x7db   : > { %6900 = vst.msk [vmem:[#allocation3 + $0x1b0] sm:$0xff] %vm1562_vm6, %v6823_v39 }
 0x7dc   : > { %v7241_v35 = vpop.permute.xlu1 %7240  ;;  %7446 = vrot.lane.b32.xlu0 %v13523_v37, %s9585_s19  ;;  %v7821_v43 = vld [vmem:[#allocation3 + $0x158] sm:$0xff] }
 0x7dd   : > { %7317 = vst.msk [vmem:[#allocation3 + $0x1d0] sm:$0xff] %vm1369_vm5, %v7241_v35  ;;  %8104 = vmatprep.mubr.f32.mxu1 %v7821_v43 }
 0x7de   : > { %6844 = vrot.lane.b32.xlu1 %v13449_v57, %s9585_s19  ;;  %8105 = vmatmul.mubr.f32.gmra.mxu1 %v7820_v60  ;;  %v7621_v27 = vpop.permute.xlu0 %7620 }
 0x7df   : > { %8109 = vmatprep.mubr.f32.mxu1 %v7824_v17 }
 0x7e0   : > { %v6637_v44 = vpop.permute.xlu1 %6636  ;;  %7638 = vrot.lane.b32.xlu0 %v13606_v62, %s9587_s27 }
 0x7e1   : > { %6711 = vst.msk [vmem:[#allocation3 + $0x1f8] sm:$0xff] %vm1369_vm5, %v6637_v44  ;;  %v7359_v44 = vld [vmem:[#allocation2 + $0x188] sm:$0xff] }
 0x7e2   : > { %7030 = vrot.lane.b32.xlu1 %v13457_v10, %s9587_s27  ;;  %8110 = vmatmul.mubr.f32.gmra.mxu1 %v7823_v54  ;;  %v7429_v25 = vpop.permute.xlu0 %7428 }
 0x7e3   : > { %7507 = vst.msk [vmem:[#allocation3 + $0x1a0] sm:$0xff] %vm1562_vm6, %v7429_v25 }
 0x7e4   : > { %7699 = vst.msk [vmem:[#allocation3 + $0x1a0] sm:$0xff] %vm1755_vm7, %v7621_v27  ;;  %v6829_v57 = vpop.permute.xlu1 %6828  ;;  %7448 = vrot.lane.b32.xlu0 %v13530_v29, %s9585_s19  ;;  %v7829_v27 = vld [vmem:[#allocation3 + $0x198] sm:$0xff] }
 0x7e5   : > { %6903 = vst.msk [vmem:[#allocation3 + $0x1f8] sm:$0xff] %vm1562_vm6, %v6829_v57 }
 0x7e6   : > { %7032 = vrot.lane.b32.xlu1 %v13464_v49, %s9587_s27  ;;  %v7239_v41 = vpop.permute.xlu0 %7238 }
 0x7e7   : > { %7316 = vst.msk [vmem:[#allocation3 + $0x1b8] sm:$0xff] %vm1369_vm5, %v7239_v41  ;;  %v7870_v41 = vld [vmem:[#allocation3 + $0x2e0] sm:$0xff] }
 0x7e8   : > { %v7427_v7 = vpop.permute.xlu1 %7426  ;;  %7258 = vrot.lane.b32.xlu0 %v13521_v36, %s9586_s20  ;;  %9455 = vmatprep.mubr.msk.f32.mxu0 %vm522_vm2, %v7870_v41 }
 0x7e9   : > { %7506 = vst.msk [vmem:[#allocation3 + $0x188] sm:$0xff] %vm1562_vm6, %v7427_v7 }
 0x7ea   : > { %6650 = vrot.lane.b32.xlu1 %v13567_v19, %s9586_s20  ;;  %v7015_v10 = vpop.permute.xlu0 %7014 }
 0x7eb   : > { %7092 = vst.msk [vmem:[#allocation3 + $0x1b0] sm:$0xff] %vm1755_vm7, %v7015_v10  ;;  %v7830_v35 = vld [vmem:[#allocation3 + $0x1a0] sm:$0xff]  ;;  %v7361_v10 = vld [vmem:[#allocation2 + $0x1a0] sm:$0xff] }
 0x7ec   : > { %v7619_v28 = vpop.permute.xlu1 %7618  ;;  %7644 = vrot.lane.b32.xlu0 %v7551_v5, %s9587_s27  ;;  %v7873_v5 = vld [vmem:[#allocation3 + $0x2f8] sm:$0xff] }
 0x7ed   : > { %7698 = vst.msk [vmem:[#allocation3 + $0x188] sm:$0xff] %vm1755_vm7, %v7619_v28  ;;  %9456 = vmatmul.mubr.msk.f32.gmra.mxu0 %vm522_vm2, %v7873_v5 }
 0x7ee   : > { %6842 = vrot.lane.b32.xlu1 %v13455_v20, %s9585_s19  ;;  %v7625_v49 = vpop.permute.xlu0 %7624  ;;  %v7826_v20 = vld [vmem:[#allocation3 + $0x180] sm:$0xff] }
 0x7f0   : > { %v7017_v40 = vpop.permute.xlu1 %7016  ;;  %7264 = vrot.lane.b32.xlu0 %v13553_v48, %s9586_s20 }
 0x7f1   : > { %7093 = vst.msk [vmem:[#allocation3 + $0x1c8] sm:$0xff] %vm1755_vm7, %v7017_v40 }
 0x7f2   : > { %6656 = vrot.lane.b32.xlu1 %v7549_v9, %s9586_s20  ;;  %v7245_v19 = vpop.permute.xlu0 %7244  ;;  %v7550_v9 = vld [vmem:[#allocation2 + $0x181] sm:$0xff] }
 0x7f3   : > { %7319 = vst.msk [vmem:[#allocation3 + $0x200] sm:$0xff] %vm1369_vm5, %v7245_v19 }
 0x7f4   : > { %v6635_v12 = vpop.permute.xlu1 %6634  ;;  %7450 = vrot.lane.b32.xlu0 %v7358_v2, %s9585_s19  ;;  %v7827_v6 = vld [vmem:[#allocation3 + $0x188] sm:$0xff] }
 0x7f5   : > { %6710 = vst.msk [vmem:[#allocation3 + $0x1e0] sm:$0xff] %vm1369_vm5, %v6635_v12  ;;  %8114 = vmatprep.mubr.f32.mxu1 %v7827_v6 }
 0x7f6   : > { %7034 = vrot.lane.b32.xlu1 %v13523_v37, %s9587_s27  ;;  %8115 = vmatmul.mubr.f32.gmra.mxu1 %v7826_v20  ;;  %v7433_v39 = vpop.permute.xlu0 %7432 }
 0x7f7   : > { %v8036_v48 = vpop.f32.mrf.mxu1  ;;  %7509 = vst.msk [vmem:[#allocation3 + $0x1d0] sm:$0xff] %vm1562_vm6, %v7433_v39  ;;  %8119 = vmatprep.mubr.f32.mxu1 %v7830_v35 }
 0x7f8   : > { %7701 = vst.msk [vmem:[#allocation3 + $0x1d0] sm:$0xff] %vm1755_vm7, %v7625_v49  ;;  %v6827_v43 = vpop.permute.xlu1 %6826  ;;  %7642 = vrot.lane.b32.xlu0 %v7550_v9, %s9587_s27  ;;  %v7835_v41 = vld [vmem:[#allocation3 + $0x1c8] sm:$0xff] }
 0x7f9   : > { %v8038_v60 = vpop.f32.mrf.mxu1  ;;  %6902 = vst.msk [vmem:[#allocation3 + $0x1e0] sm:$0xff] %vm1562_vm6, %v6827_v43 }
 0x7fa   : > { %7036 = vrot.lane.b32.xlu1 %v13530_v29, %s9587_s27  ;;  %8120 = vmatmul.mubr.f32.gmra.mxu1 %v7829_v27  ;;  %v7243_v17 = vpop.permute.xlu0 %7242  ;;  %v9412_v29 = vpop.f32.mrf.mxu0  ;;  %v7832_v27 = vld [vmem:[#allocation3 + $0x1b0] sm:$0xff] }
 0x7fb   : > { %v8041_v37 = vpop.f32.mrf.mxu1  ;;  %7318 = vst.msk [vmem:[#allocation3 + $0x1e8] sm:$0xff] %vm1369_vm5, %v7243_v17 }
 0x7fc   : > { %v6641_v54 = vpop.permute.xlu1 %6640  ;;  %7452 = vrot.lane.b32.xlu0 %v7359_v44, %s9585_s19  ;;  %v8261_v49 = vpop.f32.mrf.mxu0 }
 0x7fd   : > { %v8043_v25 = vpop.f32.mrf.mxu1  ;;  %6713 = vst.msk [vmem:[#allocation3 + $0x228] sm:$0xff] %vm1369_vm5, %v6641_v54  ;;  %v8262_v12 = vadd.f32 %v8261_v49, %v8036_v48  ;;  %v8267_v48 = vadd.f32 %v9412_v29, %v8041_v37 }
 0x7fe   : > { %6654 = vrot.lane.b32.xlu1 %v13606_v62, %s9586_s20  ;;  %v7629_v57 = vpop.permute.xlu0 %7628 }
 0x7ff   : > { %v7836_v54 = vld [vmem:[#allocation3 + $0x1d0] sm:$0xff] }
 0x800   : > { %v6833_v7 = vpop.permute.xlu1 %6832  ;;  %7262 = vrot.lane.b32.xlu0 %v13561_v45, %s9586_s20  ;;  %v7553_v45 = vld [vmem:[#allocation2 + $0x1a1] sm:$0xff]  ;;  %s9590_s20 = smov 20  }
 0x801   : > { %6905 = vst.msk [vmem:[#allocation3 + $0x228] sm:$0xff] %vm1562_vm6, %v6833_v7 }
 0x802   : > { %6846 = vrot.lane.b32.xlu1 %v13521_v36, %s9585_s19  ;;  %v7249_v28 = vpop.permute.xlu0 %7248  ;;  %v9415_v36 = vpop.f32.mrf.mxu0 }
 0x803   : > { %7321 = vst.msk [vmem:[#allocation3 + $0x230] sm:$0xff] %vm1369_vm5, %v7249_v28 }
 0x804   : > { %v7431_v62 = vpop.permute.xlu1 %7430  ;;  %7456 = vrot.lane.b32.xlu0 %v7361_v10, %s9585_s19 }
 0x805   : > { %7508 = vst.msk [vmem:[#allocation3 + $0x1b8] sm:$0xff] %vm1562_vm6, %v7431_v62 }
 0x806   : > { %6848 = vrot.lane.b32.xlu1 %v13513_v21, %s9585_s19  ;;  %v7435_v40 = vpop.permute.xlu0 %7434  ;;  %v8271_v21 = vpop.f32.mrf.mxu0  ;;  %s8923_s19 = sshll.u32 %s13868_s22, 6 }
 0x807   : > { %7510 = vst.msk [vmem:[#allocation3 + $0x1e8] sm:$0xff] %vm1562_vm6, %v7435_v40  ;;  %s13806_s25 = scalar_lea.vmem %s13861_s16, %s8923_s19 }
 0x808   : > { %v7623_v19 = vpop.permute.xlu1 %7622  ;;  %7648 = vrot.lane.b32.xlu0 %v7553_v45, %s9587_s27 }
 0x809   : > { %7700 = vst.msk [vmem:[#allocation3 + $0x1b8] sm:$0xff] %vm1755_vm7, %v7623_v19 }
 0x80a   : > { %7038 = vrot.lane.b32.xlu1 %v7358_v2, %s9587_s27  ;;  %v7627_v6 = vpop.permute.xlu0 %7626 }
 0x80b   : > { %7702 = vst.msk [vmem:[#allocation3 + $0x1e8] sm:$0xff] %vm1755_vm7, %v7627_v6 }
 0x80c   : > { %v7019_v20 = vpop.permute.xlu1 %7018  ;;  %8452 = vrot.lane.b32.xlu0 %v8262_v12, %s9590_s20 }
 0x80d   : > { %7094 = vst.msk [vmem:[#allocation3 + $0x1e0] sm:$0xff] %vm1755_vm7, %v7019_v20 }
 0x80e   : > { %7040 = vrot.lane.b32.xlu1 %v7359_v44, %s9587_s27  ;;  %v7437_v35 = vpop.permute.xlu0 %7436 }
 0x80f   : > { %v8046_v39 = vpop.f32.mrf.mxu1  ;;  %7511 = vst.msk [vmem:[#allocation3 + $0x200] sm:$0xff] %vm1562_vm6, %v7437_v35 }
 0x810   : > { %v8272_v9 = vadd.f32 %v8271_v21, %v8046_v39  ;;  %7703 = vst.msk [vmem:[#allocation3 + $0x200] sm:$0xff] %vm1755_vm7, %v7629_v57  ;;  %v7021_v2 = vpop.permute.xlu1 %7020  ;;  %v7833_v60 = vld [vmem:[#allocation3 + $0x1b8] sm:$0xff] }
 0x811   : > { %v8048_v43 = vpop.f32.mrf.mxu1  ;;  %7095 = vst.msk [vmem:[#allocation3 + $0x1f8] sm:$0xff] %vm1755_vm7, %v7021_v2  ;;  %8124 = vmatprep.mubr.f32.mxu1 %v7833_v60 }
 0x812   : > { %8456 = vrot.lane.b32.xlu0 %v8272_v9, %s9590_s20  ;;  %8454 = vrot.lane.b32.xlu1 %v8267_v48, %s9590_s20  ;;  %v7247_v44 = vpop.permute.xlu0 %7246  ;;  %v7839_v29 = vld [vmem:[#allocation3 + $0x1e8] sm:$0xff] }
 0x813   : > { %v8051_v17 = vpop.f32.mrf.mxu1  ;;  %8125 = vmatmul.mubr.f32.gmra.mxu1 %v7832_v27  ;;  %7320 = vst.msk [vmem:[#allocation3 + $0x218] sm:$0xff] %vm1369_vm5, %v7247_v44 }
 0x814   : > { %v8277_v25 = vadd.f32 %v9415_v36, %v8051_v17  ;;  %8129 = vmatprep.mubr.f32.mxu1 %v7836_v54  ;;  %v6639_v37 = vpop.permute.xlu1 %6638  ;;  %v7838_v5 = vld [vmem:[#allocation3 + $0x1e0] sm:$0xff]  ;;  %v9418_v36 = vpop.f32.mrf.mxu0 }
 0x815   : > { %v8053_v57 = vpop.f32.mrf.mxu1  ;;  %6712 = vst.msk [vmem:[#allocation3 + $0x210] sm:$0xff] %vm1369_vm5, %v6639_v37 }
 0x816   : > { %8458 = vrot.lane.b32.xlu1 %v8277_v25, %s9590_s20  ;;  %v7633_v7 = vpop.permute.xlu0 %7632  ;;  %v8281_v20 = vpop.f32.mrf.mxu0 }
 0x817   : > { %8130 = vmatmul.mubr.f32.gmra.mxu1 %v7835_v41  ;;  %v7842_v62 = vld [vmem:[#allocation3 + $0x200] sm:$0xff] }
 0x818   : > { %8134 = vmatprep.mubr.f32.mxu1 %v7839_v29  ;;  %v6831_v10 = vpop.permute.xlu1 %6830  ;;  %v7841_v45 = vld [vmem:[#allocation3 + $0x1f8] sm:$0xff] }
 0x819   : > { %6904 = vst.msk [vmem:[#allocation3 + $0x210] sm:$0xff] %vm1562_vm6, %v6831_v10 }
 0x81a   : > { %v7253_v28 = vpop.permute.xlu0 %7252 }
 0x81b   : > { %8135 = vmatmul.mubr.f32.gmra.mxu1 %v7838_v5  ;;  %7323 = vst.msk [vmem:[#allocation3 + $0x260] sm:$0xff] %vm1369_vm5, %v7253_v28  ;;  %v9421_v28 = vpop.f32.mrf.mxu0 }
 0x81c   : > { %8139 = vmatprep.mubr.f32.mxu1 %v7842_v62  ;;  %v6645_v49 = vpop.permute.xlu1 %6644 }
 0x81d   : > { %6715 = vst.msk [vmem:[#allocation3 + $0x258] sm:$0xff] %vm1369_vm5, %v6645_v49 }
 0x81e   : > { %v7439_v40 = vpop.permute.xlu0 %7438 }
 0x81f   : > { %8140 = vmatmul.mubr.f32.gmra.mxu1 %v7841_v45  ;;  %7512 = vst.msk [vmem:[#allocation3 + $0x218] sm:$0xff] %vm1562_vm6, %v7439_v40  ;;  %v8291_v45 = vpop.f32.mrf.mxu0 }
 0x820   : > { %v6837_v19 = vpop.permute.xlu1 %6836 }
 0x821   : > { %6907 = vst.msk [vmem:[#allocation3 + $0x258] sm:$0xff] %vm1562_vm6, %v6837_v19 }
 0x822   : > { %v7631_v12 = vpop.permute.xlu0 %7630 }
 0x823   : > { %7704 = vst.msk [vmem:[#allocation3 + $0x218] sm:$0xff] %vm1755_vm7, %v7631_v12 }
 0x824   : > { %v7023_v6 = vpop.permute.xlu1 %7022 }
 0x825   : > { %7096 = vst.msk [vmem:[#allocation3 + $0x210] sm:$0xff] %vm1755_vm7, %v7023_v6 }
 0x826   : > { %v7441_v39 = vpop.permute.xlu0 %7440 }
 0x827   : > { %v8056_v21 = vpop.f32.mrf.mxu1  ;;  %7513 = vst.msk [vmem:[#allocation3 + $0x230] sm:$0xff] %vm1562_vm6, %v7441_v39 }
 0x828   : > { %v8282_v35 = vadd.f32 %v8281_v20, %v8056_v21  ;;  %7705 = vst.msk [vmem:[#allocation3 + $0x230] sm:$0xff] %vm1755_vm7, %v7633_v7  ;;  %v7025_v9 = vpop.permute.xlu1 %7024 }
 0x829   : > { %v8058_v48 = vpop.f32.mrf.mxu1  ;;  %7097 = vst.msk [vmem:[#allocation3 + $0x228] sm:$0xff] %vm1755_vm7, %v7025_v9 }
 0x82a   : > { %8460 = vrot.lane.b32.xlu0 %v8282_v35, %s9590_s20  ;;  %v7251_v43 = vpop.permute.xlu0 %7250  ;;  %v7845_v60 = vld [vmem:[#allocation3 + $0x218] sm:$0xff] }
 0x82b   : > { %v8061_v2 = vpop.f32.mrf.mxu1  ;;  %7322 = vst.msk [vmem:[#allocation3 + $0x248] sm:$0xff] %vm1369_vm5, %v7251_v43  ;;  %8144 = vmatprep.mubr.f32.mxu1 %v7845_v60 }
 0x82c   : > { %v8287_v27 = vadd.f32 %v9418_v36, %v8061_v2  ;;  %v6643_v17 = vpop.permute.xlu1 %6642  ;;  %v7844_v54 = vld [vmem:[#allocation3 + $0x210] sm:$0xff] }
 0x82d   : > { %v8063_v44 = vpop.f32.mrf.mxu1  ;;  %6714 = vst.msk [vmem:[#allocation3 + $0x240] sm:$0xff] %vm1369_vm5, %v6643_v17  ;;  %8145 = vmatmul.mubr.f32.gmra.mxu1 %v7844_v54 }
 0x82e   : > { %8462 = vrot.lane.b32.xlu1 %v8287_v27, %s9590_s20  ;;  %v7637_v25 = vpop.permute.xlu0 %7636 }
 0x82f   : > { %v7848_v37 = vld [vmem:[#allocation3 + $0x230] sm:$0xff] }
 0x830   : > { %v6835_v57 = vpop.permute.xlu1 %6834  ;;  %8149 = vmatprep.mubr.f32.mxu1 %v7848_v37  ;;  %v7847_v41 = vld [vmem:[#allocation3 + $0x228] sm:$0xff] }
 0x831   : > { %6906 = vst.msk [vmem:[#allocation3 + $0x240] sm:$0xff] %vm1562_vm6, %v6835_v57  ;;  %8150 = vmatmul.mubr.f32.gmra.mxu1 %v7847_v41  ;;  %v9424_v57 = vpop.f32.mrf.mxu0 }
 0x832   : > { %v7257_v7 = vpop.permute.xlu0 %7256 }
 0x833   : > { %7325 = vst.msk [vmem:[#allocation3 + $0x290] sm:$0xff] %vm1369_vm5, %v7257_v7 }
 0x834   : > { %v6649_v29 = vpop.permute.xlu1 %6648 }
 0x835   : > { %6717 = vst.msk [vmem:[#allocation3 + $0x288] sm:$0xff] %vm1369_vm5, %v6649_v29  ;;  %v8301_v29 = vpop.f32.mrf.mxu0 }
 0x836   : > { %v7443_v10 = vpop.permute.xlu0 %7442 }
 0x837   : > { %7514 = vst.msk [vmem:[#allocation3 + $0x248] sm:$0xff] %vm1562_vm6, %v7443_v10 }
 0x838   : > { %v6841_v5 = vpop.permute.xlu1 %6840 }
 0x839   : > { %6909 = vst.msk [vmem:[#allocation3 + $0x288] sm:$0xff] %vm1562_vm6, %v6841_v5 }
 0x83a   : > { %v7635_v62 = vpop.permute.xlu0 %7634 }
 0x83b   : > { %7706 = vst.msk [vmem:[#allocation3 + $0x248] sm:$0xff] %vm1755_vm7, %v7635_v62 }
 0x83c   : > { %v7027_v49 = vpop.permute.xlu1 %7026 }
 0x83d   : > { %7098 = vst.msk [vmem:[#allocation3 + $0x240] sm:$0xff] %vm1755_vm7, %v7027_v49 }
 0x83e   : > { %v7445_v36 = vpop.permute.xlu0 %7444 }
 0x83f   : > { %v8066_v40 = vpop.f32.mrf.mxu1  ;;  %7515 = vst.msk [vmem:[#allocation3 + $0x260] sm:$0xff] %vm1562_vm6, %v7445_v36 }
 0x840   : > { %v8292_v19 = vadd.f32 %v8291_v45, %v8066_v40  ;;  %v7029_v12 = vpop.permute.xlu1 %7028  ;;  %7707 = vst.msk [vmem:[#allocation3 + $0x260] sm:$0xff] %vm1755_vm7, %v7637_v25 }
 0x841   : > { %v8068_v6 = vpop.f32.mrf.mxu1  ;;  %7099 = vst.msk [vmem:[#allocation3 + $0x258] sm:$0xff] %vm1755_vm7, %v7029_v12 }
 0x842   : > { %8464 = vrot.lane.b32.xlu0 %v8292_v19, %s9590_s20  ;;  %v7851_v21 = vld [vmem:[#allocation3 + $0x248] sm:$0xff]  ;;  %v7255_v35 = vpop.permute.xlu0 %7254 }
 0x843   : > { %v8071_v20 = vpop.f32.mrf.mxu1  ;;  %8154 = vmatprep.mubr.f32.mxu1 %v7851_v21  ;;  %7324 = vst.msk [vmem:[#allocation3 + $0x278] sm:$0xff] %vm1369_vm5, %v7255_v35 }
 0x844   : > { %v8297_v39 = vadd.f32 %v9421_v28, %v8071_v20  ;;  %v6647_v9 = vpop.permute.xlu1 %6646  ;;  %v7850_v2 = vld [vmem:[#allocation3 + $0x240] sm:$0xff] }
 0x845   : > { %v8073_v48 = vpop.f32.mrf.mxu1  ;;  %6716 = vst.msk [vmem:[#allocation3 + $0x270] sm:$0xff] %vm1369_vm5, %v6647_v9  ;;  %8155 = vmatmul.mubr.f32.gmra.mxu1 %v7850_v2 }
 0x846   : > { %8466 = vrot.lane.b32.xlu0 %v8297_v39, %s9590_s20  ;;  %v7641_v43 = vpop.permute.xlu0 %7640 }
 0x847   : > { %v7854_v27 = vld [vmem:[#allocation3 + $0x260] sm:$0xff] }
 0x848   : > { %v6839_v60 = vpop.permute.xlu1 %6838  ;;  %v7853_v17 = vld [vmem:[#allocation3 + $0x258] sm:$0xff]  ;;  %8159 = vmatprep.mubr.f32.mxu1 %v7854_v27  ;;  %v9427_v27 = vpop.f32.mrf.mxu0 }
 0x849   : > { %6908 = vst.msk [vmem:[#allocation3 + $0x270] sm:$0xff] %vm1562_vm6, %v6839_v60  ;;  %8160 = vmatmul.mubr.f32.gmra.mxu1 %v7853_v17 }
 0x84a   : > { %v7261_v44 = vpop.permute.xlu0 %7260 }
 0x84b   : > { %7327 = vst.msk [vmem:[#allocation3 + $0x2c0] sm:$0xff] %vm1369_vm5, %v7261_v44 }
 0x84c   : > { %v6653_v54 = vpop.permute.xlu1 %6652 }
 0x84d   : > { %6719 = vst.msk [vmem:[#allocation3 + $0x2b8] sm:$0xff] %vm1369_vm5, %v6653_v54  ;;  %v8311_v54 = vpop.f32.mrf.mxu0 }
 0x84e   : > { %v7447_v25 = vpop.permute.xlu0 %7446 }
 0x84f   : > { %7516 = vst.msk [vmem:[#allocation3 + $0x278] sm:$0xff] %vm1562_vm6, %v7447_v25 }
 0x850   : > { %v6845_v37 = vpop.permute.xlu1 %6844 }
 0x851   : > { %6911 = vst.msk [vmem:[#allocation3 + $0x2b8] sm:$0xff] %vm1562_vm6, %v6845_v37 }
 0x852   : > { %v7639_v41 = vpop.permute.xlu0 %7638 }
 0x853   : > { %7708 = vst.msk [vmem:[#allocation3 + $0x278] sm:$0xff] %vm1755_vm7, %v7639_v41 }
 0x854   : > { %v7031_v7 = vpop.permute.xlu1 %7030 }
 0x855   : > { %7100 = vst.msk [vmem:[#allocation3 + $0x270] sm:$0xff] %vm1755_vm7, %v7031_v7 }
 0x856   : > { %v7449_v28 = vpop.permute.xlu0 %7448 }
 0x857   : > { %v8076_v10 = vpop.f32.mrf.mxu1  ;;  %7517 = vst.msk [vmem:[#allocation3 + $0x290] sm:$0xff] %vm1562_vm6, %v7449_v28 }
 0x858   : > { %v8302_v5 = vadd.f32 %v8301_v29, %v8076_v10  ;;  %v7033_v62 = vpop.permute.xlu1 %7032  ;;  %7709 = vst.msk [vmem:[#allocation3 + $0x290] sm:$0xff] %vm1755_vm7, %v7641_v43 }
 0x859   : > { %v8078_v49 = vpop.f32.mrf.mxu1  ;;  %7101 = vst.msk [vmem:[#allocation3 + $0x288] sm:$0xff] %vm1755_vm7, %v7033_v62 }
 0x85a   : > { %8468 = vrot.lane.b32.xlu0 %v8302_v5, %s9590_s20  ;;  %v7259_v19 = vpop.permute.xlu0 %7258  ;;  %v7857_v36 = vld [vmem:[#allocation3 + $0x278] sm:$0xff] }
 0x85b   : > { %v8081_v45 = vpop.f32.mrf.mxu1  ;;  %7326 = vst.msk [vmem:[#allocation3 + $0x2a8] sm:$0xff] %vm1369_vm5, %v7259_v19  ;;  %8164 = vmatprep.mubr.f32.mxu1 %v7857_v36 }
 0x85c   : > { %v8307_v40 = vadd.f32 %v9424_v57, %v8081_v45  ;;  %v6651_v12 = vpop.permute.xlu1 %6650  ;;  %v7856_v20 = vld [vmem:[#allocation3 + $0x270] sm:$0xff] }
 0x85d   : > { %v8083_v6 = vpop.f32.mrf.mxu1  ;;  %6718 = vst.msk [vmem:[#allocation3 + $0x2a0] sm:$0xff] %vm1369_vm5, %v6651_v12  ;;  %8165 = vmatmul.mubr.f32.gmra.mxu1 %v7856_v20 }
 0x85e   : > { %8470 = vrot.lane.b32.xlu0 %v8307_v40, %s9590_s20  ;;  %v7645_v21 = vpop.permute.xlu0 %7644 }
 0x85f   : > { %v7860_v35 = vld [vmem:[#allocation3 + $0x290] sm:$0xff] }
 0x860   : > { %v6843_v39 = vpop.permute.xlu1 %6842  ;;  %v7859_v9 = vld [vmem:[#allocation3 + $0x288] sm:$0xff]  ;;  %8169 = vmatprep.mubr.f32.mxu1 %v7860_v35 }
 0x861   : > { %6910 = vst.msk [vmem:[#allocation3 + $0x2a0] sm:$0xff] %vm1562_vm6, %v6843_v39  ;;  %8170 = vmatmul.mubr.f32.gmra.mxu1 %v7859_v9 }
 0x862   : > { %v7265_v48 = vpop.permute.xlu0 %7264 }
 0x863   : > { %7329 = vst.msk [vmem:[#allocation3 + $0x2f0] sm:$0xff] %vm1369_vm5, %v7265_v48 }
 0x864   : > { %v6657_v2 = vpop.permute.xlu1 %6656 }
 0x865   : > { %6721 = vst.msk [vmem:[#allocation3 + $0x2e8] sm:$0xff] %vm1369_vm5, %v6657_v2 }
 0x866   : > { %v7451_v43 = vpop.permute.xlu0 %7450 }
 0x867   : > { %7518 = vst.msk [vmem:[#allocation3 + $0x2a8] sm:$0xff] %vm1562_vm6, %v7451_v43 }
 0x868   : > { %v7035_v60 = vpop.permute.xlu1 %7034 }
 0x869   : > { %7102 = vst.msk [vmem:[#allocation3 + $0x2a0] sm:$0xff] %vm1755_vm7, %v7035_v60 }
 0x86a   : > { %v7643_v17 = vpop.permute.xlu0 %7642 }
 0x86b   : > { %7710 = vst.msk [vmem:[#allocation3 + $0x2a8] sm:$0xff] %vm1755_vm7, %v7643_v17 }
 0x86c   : > { %v7037_v44 = vpop.permute.xlu1 %7036 }
 0x86d   : > { %7103 = vst.msk [vmem:[#allocation3 + $0x2b8] sm:$0xff] %vm1755_vm7, %v7037_v44 }
 0x86e   : > { %v7453_v57 = vpop.permute.xlu0 %7452 }
 0x86f   : > { %v8086_v25 = vpop.f32.mrf.mxu1  ;;  %7519 = vst.msk [vmem:[#allocation3 + $0x2c0] sm:$0xff] %vm1562_vm6, %v7453_v57 }
 0x870   : > { %v8312_v37 = vadd.f32 %v8311_v54, %v8086_v25  ;;  %v6655_v41 = vpop.permute.xlu1 %6654  ;;  %7711 = vst.msk [vmem:[#allocation3 + $0x2c0] sm:$0xff] %vm1755_vm7, %v7645_v21  ;;  %v7862_v45 = vld [vmem:[#allocation3 + $0x2a0] sm:$0xff] }
 0x871   : > { %v8088_v7 = vpop.f32.mrf.mxu1  ;;  %6720 = vst.msk [vmem:[#allocation3 + $0x2d0] sm:$0xff] %vm1369_vm5, %v6655_v41 }
 0x872   : > { %8472 = vrot.lane.b32.xlu0 %v8312_v37, %s9590_s20  ;;  %v7263_v5 = vpop.permute.xlu0 %7262  ;;  %v7863_v28 = vld [vmem:[#allocation3 + $0x2a8] sm:$0xff] }
 0x873   : > { %v8091_v29 = vpop.f32.mrf.mxu1  ;;  %7328 = vst.msk [vmem:[#allocation3 + $0x2d8] sm:$0xff] %vm1369_vm5, %v7263_v5  ;;  %8174 = vmatprep.mubr.f32.mxu1 %v7863_v28 }
 0x874   : > { %v8317_v10 = vadd.f32 %v9427_v27, %v8091_v29  ;;  %v6847_v62 = vpop.permute.xlu1 %6846  ;;  %7520 = vst.msk [vmem:[#allocation3 + $0x2d8] sm:$0xff] %vm1562_vm6, %v12417_v18  ;;  %8175 = vmatmul.mubr.f32.gmra.mxu1 %v7862_v45  ;;  %v7865_v12 = vld [vmem:[#allocation3 + $0x2b8] sm:$0xff] }
 0x875   : > { %v8093_v49 = vpop.f32.mrf.mxu1  ;;  %6912 = vst.msk [vmem:[#allocation3 + $0x2d0] sm:$0xff] %vm1562_vm6, %v6847_v62 }
 0x876   : > { %8474 = vrot.lane.b32.xlu0 %v8317_v10, %s9590_s20  ;;  %7712 = vst.msk [vmem:[#allocation3 + $0x2d8] sm:$0xff] %vm1755_vm7, %v12428_v24  ;;  %v7457_v40 = vpop.permute.xlu0 %7456  ;;  %v9430_v24 = vpop.f32.mrf.mxu0 }
 0x877   : > { %7521 = vst.msk [vmem:[#allocation3 + $0x2f0] sm:$0xff] %vm1562_vm6, %v7457_v40  ;;  %v7866_v36 = vld [vmem:[#allocation3 + $0x2c0] sm:$0xff] }
 0x878   : > { %v6849_v19 = vpop.permute.xlu1 %6848  ;;  %8179 = vmatprep.mubr.f32.mxu1 %v7866_v36  ;;  %v8321_v9 = vpop.f32.mrf.mxu0 }
 0x879   : > { %6913 = vst.msk [vmem:[#allocation3 + $0x2e8] sm:$0xff] %vm1562_vm6, %v6849_v19  ;;  %8180 = vmatmul.mubr.f32.gmra.mxu1 %v7865_v12 }
 0x87a   : > { %v7649_v6 = vpop.permute.xlu0 %7648  ;;  %v9433_v54 = vpop.f32.mrf.mxu0 }
 0x87b   : > { %7713 = vst.msk [vmem:[#allocation3 + $0x2f0] sm:$0xff] %vm1755_vm7, %v7649_v6 }
 0x87c   : > { %v7039_v18 = vpop.permute.xlu1 %7038  ;;  %v8331_v25 = vpop.f32.mrf.mxu0 }
 0x87d   : > { %7104 = vst.msk [vmem:[#allocation3 + $0x2d0] sm:$0xff] %vm1755_vm7, %v7039_v18  ;;  %v7869_v20 = vld [vmem:[#allocation3 + $0x2d8] sm:$0xff] }
 0x87e   : > { %8184 = vmatprep.mubr.f32.mxu1 %v7869_v20  ;;  %v9436_v5 = vpop.f32.mrf.mxu0 }
 0x880   : > { %v7041_v21 = vpop.permute.xlu1 %7040  ;;  %v8341_v28 = vpop.f32.mrf.mxu0 }
 0x881   : > { %7105 = vst.msk [vmem:[#allocation3 + $0x2e8] sm:$0xff] %vm1755_vm7, %v7041_v21 }
 0x882   : > { %v7872_v39 = vld [vmem:[#allocation3 + $0x2f0] sm:$0xff]  ;;  %v9439_v12 = vpop.f32.mrf.mxu0 }
 0x884   : > { %v7868_v35 = vld [vmem:[#allocation3 + $0x2d0] sm:$0xff]  ;;  %v8351_v6 = vpop.f32.mrf.mxu0 }
 0x885   : > { %8185 = vmatmul.mubr.f32.gmra.mxu1 %v7868_v35 }
 0x886   : > { %8189 = vmatprep.mubr.f32.mxu1 %v7872_v39 }
 0x888   : > { %v8096_v48 = vpop.f32.mrf.mxu1  ;;  %v7871_v60 = vld [vmem:[#allocation3 + $0x2e8] sm:$0xff] }
 0x889   : > { %v8322_v2 = vadd.f32 %v8321_v9, %v8096_v48  ;;  %8190 = vmatmul.mubr.f32.gmra.mxu1 %v7871_v60 }
 0x88a   : > { %v8098_v43 = vpop.f32.mrf.mxu1 }
 0x88b   : > { %8476 = vrot.lane.b32.xlu0 %v8322_v2, %s9590_s20 }
 0x88c   : > { %v8101_v27 = vpop.f32.mrf.mxu1 }
 0x88d   : > { %v8327_v17 = vadd.f32 %v9430_v24, %v8101_v27  ;;  %v9442_v24 = vpop.f32.mrf.mxu0 }
 0x88e   : > { %v8103_v44 = vpop.f32.mrf.mxu1 }
 0x88f   : > { %8478 = vrot.lane.b32.xlu0 %v8327_v17, %s9590_s20  ;;  %v8361_v48 = vpop.f32.mrf.mxu0 }
 0x89e   : > { %v8106_v37 = vpop.f32.mrf.mxu1 }
 0x89f   : > { %v8332_v57 = vadd.f32 %v8331_v25, %v8106_v37 }
 0x8a0   : > { %v8108_v41 = vpop.f32.mrf.mxu1 }
 0x8a1   : > { %8480 = vrot.lane.b32.xlu0 %v8332_v57, %s9590_s20 }
 0x8a2   : > { %v8111_v7 = vpop.f32.mrf.mxu1 }
 0x8a3   : > { %v8337_v29 = vadd.f32 %v9433_v54, %v8111_v7  ;;  %v9445_v54 = vpop.f32.mrf.mxu0 }
 0x8a4   : > { %v8113_v10 = vpop.f32.mrf.mxu1 }
 0x8a5   : > { %8482 = vrot.lane.b32.xlu0 %v8337_v29, %s9590_s20  ;;  %v8371_v25 = vpop.f32.mrf.mxu0 }
 0x8b6   : > { %v8116_v62 = vpop.f32.mrf.mxu1 }
 0x8b7   : > { %v8342_v49 = vadd.f32 %v8341_v28, %v8116_v62  ;;  %v8455_v62 = vpop.permute.xlu1 %8454 }
 0x8b8   : > { %v8118_v45 = vpop.f32.mrf.mxu1 }
 0x8b9   : > { %8484 = vrot.lane.b32.xlu1 %v8342_v49, %s9590_s20  ;;  %v9448_v49 = vpop.f32.mrf.mxu0 }
 0x8ba   : > { %v8121_v40 = vpop.f32.mrf.mxu1 }
 0x8bb   : > { %v8347_v19 = vadd.f32 %v9436_v5, %v8121_v40  ;;  %v8453_v5 = vpop.permute.xlu0 %8452  ;;  %v8549_v40 = vsel %vm6077_vm9, %v12426_v59, %v8455_v62 }
 0x8bc   : > { %v8123_v36 = vpop.f32.mrf.mxu1  ;;  %v8548_v28 = vsel %vm6077_vm9, %v12444_v13, %v8453_v5 }
 0x8bd   : > { %8486 = vrot.lane.b32.xlu0 %v8347_v19, %s9590_s20  ;;  %v8381_v19 = vpop.f32.mrf.mxu0 }
 0x8bf   : > { %v8457_v45 = vpop.permute.xlu0 %8456 }
 0x8c3   : > { %v8461_v36 = vpop.permute.xlu0 %8460 }
 0x8c7   : > { %v8465_v13 = vpop.permute.xlu0 %8464 }
 0x8d3   : > { %v8126_v18 = vpop.f32.mrf.mxu1 }
 0x8d4   : > { %v8352_v20 = vadd.f32 %v8351_v6, %v8126_v18  ;;  %v8550_v18 = vsel %vm6077_vm9, %v12458_v34, %v8457_v45  ;;  %v8467_v34 = vpop.permute.xlu0 %8466 }
 0x8d5   : > { %v8128_v21 = vpop.f32.mrf.mxu1 }
 0x8d6   : > { %8488 = vrot.lane.b32.xlu1 %v8352_v20, %s9590_s20  ;;  %v8459_v20 = vpop.permute.xlu1 %8458 }
 0x8d7   : > { %v8131_v39 = vpop.f32.mrf.mxu1 }
 0x8d8   : > { %v8357_v35 = vadd.f32 %v9439_v12, %v8131_v39  ;;  %v8551_v39 = vsel %vm6077_vm9, %v12439_v14, %v8459_v20  ;;  %v9451_v14 = vpop.f32.mrf.mxu0 }
 0x8d9   : > { %v8133_v9 = vpop.f32.mrf.mxu1 }
 0x8da   : > { %8490 = vrot.lane.b32.xlu0 %v8357_v35, %s9590_s20  ;;  %v8552_v9 = vsel %vm6077_vm9, %v12470_v3, %v8461_v36 }
 0x8db   : > { %v8136_v2 = vpop.f32.mrf.mxu1 }
 0x8dc   : > { %v8362_v43 = vadd.f32 %v8361_v48, %v8136_v2  ;;  %v8463_v48 = vpop.permute.xlu1 %8462 }
 0x8dd   : > { %v8138_v60 = vpop.f32.mrf.mxu1  ;;  %v8553_v2 = vsel %vm6077_vm9, %v12453_v63, %v8463_v48 }
 0x8de   : > { %8492 = vrot.lane.b32.xlu1 %v8362_v43, %s9590_s20  ;;  %v8469_v43 = vpop.permute.xlu0 %8468  ;;  %v8554_v60 = vsel %vm6077_vm9, %v12483_v50, %v8465_v13 }
 0x8df   : > { %v8141_v27 = vpop.f32.mrf.mxu1 }
 0x8e0   : > { %v8367_v17 = vadd.f32 %v9442_v24, %v8141_v27 }
 0x8e1   : > { %v8143_v44 = vpop.f32.mrf.mxu1 }
 0x8e2   : > { %8494 = vrot.lane.b32.xlu0 %v8367_v17, %s9590_s20  ;;  %v8471_v27 = vpop.permute.xlu0 %8470  ;;  %v8555_v17 = vsel %vm6077_vm9, %v12490_v46, %v8467_v34  ;;  %v8391_v44 = vpop.f32.mrf.mxu0 }
 0x8e3   : > { %v8557_v50 = vsel %vm6077_vm9, %v12508_v4, %v8471_v27 }
 0x8e4   : > { %v9454_v4 = vpop.f32.mrf.mxu0 }
 0x8e6   : > { %v8473_v3 = vpop.permute.xlu0 %8472  ;;  %v8401_v45 = vpop.f32.mrf.mxu0 }
 0x8ed   : > { %v8146_v37 = vpop.f32.mrf.mxu1 }
 0x8ee   : > { %v8372_v57 = vadd.f32 %v8371_v25, %v8146_v37  ;;  %v8556_v37 = vsel %vm6077_vm9, %v12501_v0, %v8469_v43 }
 0x8ef   : > { %v8148_v41 = vpop.f32.mrf.mxu1 }
 0x8f0   : > { %8496 = vrot.lane.b32.xlu1 %v8372_v57, %s9590_s20  ;;  %v8475_v41 = vpop.permute.xlu0 %8474 }
 0x8f1   : > { %v8151_v7 = vpop.f32.mrf.mxu1  ;;  %v8559_v0 = vsel %vm6077_vm9, %v12526_v30, %v8475_v41 }
 0x8f2   : > { %v8377_v29 = vadd.f32 %v9445_v54, %v8151_v7 }
 0x8f3   : > { %v8153_v10 = vpop.f32.mrf.mxu1 }
 0x8f4   : > { %8498 = vrot.lane.b32.xlu1 %v8377_v29, %s9590_s20  ;;  %v8558_v29 = vsel %vm6077_vm9, %v12519_v55, %v8473_v3 }
 0x8fd   : > { %v8477_v10 = vpop.permute.xlu0 %8476 }
 0x900   : > { %8580 = vxpose.xlu0.b32.start [1/16] (narrow) %v8548_v28, 32  ;;  %v8560_v28 = vsel %vm6077_vm9, %v12537_v23, %v8477_v10 }
 0x901   : > { %v8479_v5 = vpop.permute.xlu0 %8478 }
 0x904   : > { %8581 = vxpose.xlu0.b32.cont [2/16] (narrow) %v8549_v40, 32 }
 0x905   : > { %v8156_v12 = vpop.f32.mrf.mxu1 }
 0x906   : > { %v8382_v6 = vadd.f32 %v8381_v19, %v8156_v12 }
 0x907   : > { %v8158_v21 = vpop.f32.mrf.mxu1 }
 0x908   : > { %8582 = vxpose.xlu0.b32.cont [3/16] (narrow) %v8550_v18, 32  ;;  %8500 = vrot.lane.b32.xlu1 %v8382_v6, %s9590_s20 }
 0x909   : > { %v8161_v24 = vpop.f32.mrf.mxu1 }
 0x90a   : > { %v8387_v35 = vadd.f32 %v9448_v49, %v8161_v24  ;;  %v8561_v49 = vsel %vm6077_vm9, %v12544_v51, %v8479_v5  ;;  %v9457_v51 = vpop.f32.mrf.mxu0 }
 0x90b   : > { %v8163_v59 = vpop.f32.mrf.mxu1 }
 0x90c   : > { %8583 = vxpose.xlu0.b32.cont [4/16] (narrow) %v8551_v39, 32  ;;  %8502 = vrot.lane.b32.xlu1 %v8387_v35, %s9590_s20  ;;  %v8411_v20 = vpop.f32.mrf.mxu0 }
 0x910   : > { %8584 = vxpose.xlu0.b32.cont [5/16] (narrow) %v8552_v9, 32 }
 0x913   : > { %v8481_v62 = vpop.permute.xlu0 %8480 }
 0x914   : > { %8585 = vxpose.xlu0.b32.cont [6/16] (narrow) %v8553_v2, 32  ;;  %v8562_v19 = vsel %vm6077_vm9, %v12555_v58, %v8481_v62 }
 0x917   : > { %v8483_v36 = vpop.permute.xlu0 %8482 }
 0x918   : > { %8586 = vxpose.xlu0.b32.cont [7/16] (narrow) %v8554_v60, 32  ;;  %v8563_v23 = vsel %vm6077_vm9, %v12562_v42, %v8483_v36 }
 0x91c   : > { %8587 = vxpose.xlu0.b32.cont [8/16] (narrow) %v8555_v17, 32 }
 0x91d   : > { %v8166_v54 = vpop.f32.mrf.mxu1 }
 0x91e   : > { %v8392_v25 = vadd.f32 %v8391_v44, %v8166_v54 }
 0x91f   : > { %v8168_v63 = vpop.f32.mrf.mxu1 }
 0x920   : > { %8588 = vxpose.xlu0.b32.cont [9/16] (narrow) %v8556_v37, 32  ;;  %8504 = vrot.lane.b32.xlu1 %v8392_v25, %s9590_s20 }
 0x921   : > { %v8171_v57 = vpop.f32.mrf.mxu1 }
 0x922   : > { %v8397_v7 = vadd.f32 %v9451_v14, %v8171_v57 }
 0x923   : > { %v8173_v46 = vpop.f32.mrf.mxu1 }
 0x924   : > { %8589 = vxpose.xlu0.b32.cont [10/16] (narrow) %v8557_v50, 32  ;;  %8506 = vrot.lane.b32.xlu1 %v8397_v7, %s9590_s20 }
 0x928   : > { %8590 = vxpose.xlu0.b32.cont [11/16] (narrow) %v8558_v29, 32 }
 0x92b   : > { %v8485_v59 = vpop.permute.xlu1 %8484 }
 0x92c   : > { %8591 = vxpose.xlu0.b32.cont [12/16] (narrow) %v8559_v0, 32  ;;  %v8564_v42 = vsel %vm6077_vm9, %v12573_v11, %v8485_v59 }
 0x92f   : > { %v8487_v9 = vpop.permute.xlu0 %8486 }
 0x930   : > { %8592 = vxpose.xlu0.b32.cont [13/16] (narrow) %v8560_v28, 32  ;;  %v8565_v48 = vsel %vm6077_vm9, %v12580_v61, %v8487_v9 }
 0x934   : > { %8593 = vxpose.xlu0.b32.cont [14/16] (narrow) %v8561_v49, 32  ;;  %v8176_v40 = vpop.f32.mrf.mxu1 }
 0x935   : > { %v8402_v55 = vadd.f32 %v8401_v45, %v8176_v40 }
 0x936   : > { %v8178_v30 = vpop.f32.mrf.mxu1 }
 0x937   : > { %8508 = vrot.lane.b32.xlu1 %v8402_v55, %s9590_s20 }
 0x938   : > { %8594 = vxpose.xlu0.b32.cont [15/16] (narrow) %v8562_v19, 32 }
 0x939   : > { %v8181_v12 = vpop.f32.mrf.mxu1 }
 0x93a   : > { %v8407_v6 = vadd.f32 %v9454_v4, %v8181_v12 }
 0x93b   : > { %v8183_v18 = vpop.f32.mrf.mxu1 }
 0x93c   : > { %8595 = vxpose.xlu0.b32.end [16/16] (narrow) %v8563_v23, 32  ;;  %8510 = vrot.lane.b32.xlu1 %v8407_v6, %s9590_s20 }
 0x945   : > { %v8186_v21 = vpop.f32.mrf.mxu1 }
 0x946   : > { %v8412_v13 = vadd.f32 %v8411_v20, %v8186_v21 }
 0x947   : > { %v8188_v58 = vpop.f32.mrf.mxu1 }
 0x948   : > { %8512 = vrot.lane.b32.xlu1 %v8412_v13, %s9590_s20  ;;  %v8489_v34 = vpop.permute.xlu1 %8488 }
 0x949   : > { %v8191_v24 = vpop.f32.mrf.mxu1  ;;  %v8566_v43 = vsel %vm6077_vm9, %v12591_v26, %v8489_v34 }
 0x94a   : > { %v8417_v39 = vadd.f32 %v9457_v51, %v8191_v24 }
 0x94b   : > { %v8193_v35 = vpop.f32.mrf.mxu1 }
 0x94c   : > { %8514 = vrot.lane.b32.xlu1 %v8417_v39, %s9590_s20  ;;  %v8491_v2 = vpop.permute.xlu0 %8490 }
 0x94d   : > { %v8567_v11 = vsel %vm6077_vm9, %v12598_v22, %v8491_v2 }
 0x950   : > { %v8493_v14 = vpop.permute.xlu1 %8492 }
 0x951   : > { %v8568_v27 = vsel %vm6077_vm9, %v12641_v52, %v8493_v14 }
 0x954   : > { %v8495_v60 = vpop.permute.xlu0 %8494 }
 0x955   : > { %v8569_v44 = vsel %vm6077_vm9, %v12657_v47, %v8495_v60 }
 0x962   : > { %v8497_v26 = vpop.permute.xlu1 %8496 }
 0x963   : > { %v8570_v22 = vsel %vm6077_vm9, %v12725_v15, %v8497_v26 }
 0x966   : > { %v8499_v3 = vpop.permute.xlu1 %8498 }
 0x967   : > { %v8571_v52 = vsel %vm6077_vm9, %v12747_v38, %v8499_v3 }
 0x975   : > { %8612 = vxpose.xlu1.b32.start [1/16] (narrow) %v8564_v42, 32 }
 0x979   : > { %8613 = vxpose.xlu1.b32.cont [2/16] (narrow) %v8565_v48, 32 }
 0x97a   : > { %v8501_v25 = vpop.permute.xlu1 %8500 }
 0x97b   : > { %v8572_v57 = vsel %vm6077_vm9, %v12846_v32, %v8501_v25 }
 0x97c   : > { %v8596_v61 = vpop.trf.xlu0 }
 0x97d   : > { %8614 = vxpose.xlu1.b32.cont [3/16] (narrow) %v8566_v43, 32  ;;  %8644 = vst [vmem:[%s13806_s25] sm:$0xff] %v8596_v61 }
 0x97e   : > { %v8503_v63 = vpop.permute.xlu1 %8502 }
 0x97f   : > { %v8573_v50 = vsel %vm6077_vm9, %v12880_v53, %v8503_v63 }
 0x980   : > { %v8597_v17 = vpop.trf.xlu0 }
 0x981   : > { %8615 = vxpose.xlu1.b32.cont [4/16] (narrow) %v8567_v11, 32  ;;  %8646 = vst [vmem:[%s13806_s25 + $0x10] sm:$0xff] %v8597_v17 }
 0x984   : > { %v8598_v54 = vpop.trf.xlu0 }
 0x985   : > { %8616 = vxpose.xlu1.b32.cont [5/16] (narrow) %v8568_v27, 32  ;;  %8648 = vst [vmem:[%s13806_s25 + $0x20] sm:$0xff] %v8598_v54 }
 0x988   : > { %v8599_v37 = vpop.trf.xlu0 }
 0x989   : > { %8617 = vxpose.xlu1.b32.cont [6/16] (narrow) %v8569_v44, 32  ;;  %8650 = vst [vmem:[%s13806_s25 + $0x30] sm:$0xf] %v8599_v37 }
 0x98d   : > { %8618 = vxpose.xlu1.b32.cont [7/16] (narrow) %v8570_v22, 32 }
 0x991   : > { %8619 = vxpose.xlu1.b32.cont [8/16] (narrow) %v8571_v52, 32 }
 0x992   : > { %v8505_v47 = vpop.permute.xlu1 %8504 }
 0x993   : > { %v8574_v15 = vsel %vm6077_vm9, %v12917_v1, %v8505_v47 }
 0x995   : > { %8620 = vxpose.xlu1.b32.cont [9/16] (narrow) %v8572_v57, 32 }
 0x996   : > { %v8507_v41 = vpop.permute.xlu1 %8506 }
 0x997   : > { %v8575_v38 = vsel %vm6077_vm9, %v12943_v16, %v8507_v41 }
 0x999   : > { %8621 = vxpose.xlu1.b32.cont [10/16] (narrow) %v8573_v50, 32 }
 0x99d   : > { %8622 = vxpose.xlu1.b32.cont [11/16] (narrow) %v8574_v15, 32 }
 0x9a1   : > { %8623 = vxpose.xlu1.b32.cont [12/16] (narrow) %v8575_v38, 32 }
 0x9a9   : > { %v8509_v7 = vpop.permute.xlu1 %8508 }
 0x9aa   : > { %v8576_v32 = vsel %vm6077_vm9, %v12975_v56, %v8509_v7 }
 0x9ab   : > { %8624 = vxpose.xlu1.b32.cont [13/16] (narrow) %v8576_v32, 32 }
 0x9ae   : > { %v8511_v46 = vpop.permute.xlu1 %8510 }
 0x9af   : > { %v8577_v53 = vsel %vm6077_vm9, %v13005_v8, %v8511_v46 }
 0x9b0   : > { %8625 = vxpose.xlu1.b32.cont [14/16] (narrow) %v8577_v53, 32 }
 0x9ba   : > { %v8513_v1 = vpop.permute.xlu1 %8512 }
 0x9bb   : > { %v8578_v29 = vsel %vm6077_vm9, %v13015_v31, %v8513_v1 }
 0x9bc   : > { %8626 = vxpose.xlu1.b32.cont [15/16] (narrow) %v8578_v29, 32 }
 0x9be   : > { %v8515_v16 = vpop.permute.xlu1 %8514 }
 0x9bf   : > { %v8579_v10 = vsel %vm6077_vm9, %v13030_v33, %v8515_v16 }
 0x9c0   : > { %8627 = vxpose.xlu1.b32.end [16/16] (narrow) %v8579_v10, 32 }
 0xa00   : > { %v8628_v0 = vpop.trf.xlu1 }
 0xa01   : > { %8645 = vst [vmem:[%s13806_s25 + $0x8] sm:$0xff] %v8628_v0 }
 0xa04   : > { %v8629_v56 = vpop.trf.xlu1 }
 0xa05   : > { %8647 = vst [vmem:[%s13806_s25 + $0x18] sm:$0xff] %v8629_v56 }
 0xa08   : > { %v8630_v5 = vpop.trf.xlu1 }
 0xa09   : > { %8649 = vst [vmem:[%s13806_s25 + $0x28] sm:$0xff] %v8630_v5 }
 0xa0c   : > { %v8631_v28 = vpop.trf.xlu1 }
 0xa0d   : > { %8651 = vst [vmem:[%s13806_s25 + $0x38] sm:$0xf] %v8631_v28 }
 0xa0e PF: > { %s26_s21 = sadd.s32 1, %s9582_s21  }
 0xa0f   : > { %p23_p4 = scmp.ge.s32.totalorder %s26_s21, 4  }
 0xa11   :  { %25 = sbr.rel (!%p23_p4) target bundleno = 2 (0x2), region = 117 }

</bundles_post_ra>
